<compile_context>
chip_gen: v7x
topology: tpu7x:2x2x1
jax: 0.10.0
libtpu: 0.0.40
codegen_flags: <defaults>
</compile_context>

<pallas_src>
from functools import partial

import jax
import jax.numpy as jnp
from jax.experimental import pallas as pl
from jax.experimental.pallas import tpu as pltpu

_EPS = 1e-5
_LANES = 128


def _round_up(v, m):
    return (v + m - 1) // m * m


def _vmem_limit_bytes(H, W, Ho, Wo, Cp, Pp):
    """Scoped-VMEM budget sized to the tile plan (generous margin, <64 MiB)."""
    blocks = (H * W * Cp * 2 + (9 * Cp + Cp) * Pp * 2
              + 2 * Ho * Wo * Pp * 4 + 8 * Pp * 4)
    scratch = ((H + 2) * (W + 2) * Cp * 2
               + Ho * Wo * 9 * max(Cp, Pp) * 2
               + 2 * Ho * Wo * Pp * 4)
    need = 2 * blocks + scratch            # x2: double-buffered pipeline
    return int(min(max(4 * need, 16 * 1024 * 1024), 56 * 1024 * 1024))


def _fold_bn(stats, gamma, beta, count):
    """Fold train-mode BatchNorm (global batch stats) into per-channel scale/shift."""
    tot = jnp.sum(stats, axis=0)                              # (2, C)
    mean = tot[0:1] / count                                   # (1, C)
    var = jnp.maximum(tot[1:2] / count - mean * mean, 0.0)    # single-pass E[x^2]-mu^2
    scale = gamma * jax.lax.rsqrt(var + _EPS)
    shift = beta - mean * scale
    return scale, shift


# ---------------------------------------------------------------------------
# Phase A: conv1 (3x3, stride) + optional 1x1 projection conv + partial stats.
# ---------------------------------------------------------------------------
def _conv1_kernel(H, W, Ho, Wo, Cp, Pp, stride, has_proj):
    M = Ho * Wo
    bf16 = jnp.bfloat16

    def kernel(*refs):
        if stride == 1:
            if has_proj:
                (x_ref, w1_ref, wsc_ref,
                 y1_ref, st1_ref, sc_ref, stsc_ref, xpad_ref, col_ref) = refs
            else:
                (x_ref, w1_ref, y1_ref, st1_ref, xpad_ref, col_ref) = refs

            # Stage the zero-padded input in VMEM; only the halo ring is zeroed.
            zrow = jnp.zeros((1, W + 2, Cp), bf16)
            zcol = jnp.zeros((H, 1, Cp), bf16)
            xpad_ref[0:1, :, :] = zrow
            xpad_ref[H + 1:H + 2, :, :] = zrow
            xpad_ref[1:H + 1, 0:1, :] = zcol
            xpad_ref[1:H + 1, W + 1:W + 2, :] = zcol
            xpad_ref[1:H + 1, 1:W + 1, :] = x_ref[0]

            def window(kh, kw):                                   # (Ho, Wo, Cp)
                return xpad_ref[kh:kh + Ho, kw:kw + Wo, :]

            x_sub = x_ref[0]                                      # shortcut input
        else:
            # stride == 2: the padded image arrives split into 4 spatial phases,
            # so every tap is a contiguous slice and only the Ho*Wo outputs that
            # are kept are ever computed (no conv-then-subsample waste).
            (x_ref, w1_ref, wsc_ref,
             y1_ref, st1_ref, sc_ref, stsc_ref, col_ref) = refs

            def window(kh, kw):
                p = (kh % 2) * 2 + (kw % 2)
                return x_ref[p, kh // 2:kh // 2 + Ho, kw // 2:kw // 2 + Wo, :]

            x_sub = x_ref[3, 0:Ho, 0:Wo, :]                       # x[::2, ::2]

        # im2col: 9 taps written at 128-aligned lane offsets -> ONE MXU matmul
        # with K = 9*Cp (instead of 9 narrow-K matmuls).
        for kh in range(3):
            for kw in range(3):
                t = kh * 3 + kw
                col_ref[:, t * Cp:(t + 1) * Cp] = window(kh, kw).reshape(M, Cp)
        y1 = jnp.dot(col_ref[...], w1_ref[...], preferred_element_type=jnp.float32)

        # per-grid-step partial BN statistics (single pass: sum, sum of squares)
        st1_ref[0, 0:1, :] = jnp.sum(y1, axis=0, keepdims=True)
        st1_ref[0, 1:2, :] = jnp.sum(y1 * y1, axis=0, keepdims=True)
        y1_ref[...] = y1.reshape(1, Ho, Wo, Pp)

        if has_proj:
            sc = jnp.dot(x_sub.reshape(M, Cp), wsc_ref[...],
                         preferred_element_type=jnp.float32)
            stsc_ref[0, 0:1, :] = jnp.sum(sc, axis=0, keepdims=True)
            stsc_ref[0, 1:2, :] = jnp.sum(sc * sc, axis=0, keepdims=True)
            sc_ref[...] = sc.reshape(1, Ho, Wo, Pp)

    return kernel


def _run_conv1(xa, w1r, wsc, *, N, H, W, Ho, Wo, Cp, Pp, stride, has_proj, cparams):
    M = Ho * Wo
    bf16 = jnp.bfloat16
    kernel = _conv1_kernel(H, W, Ho, Wo, Cp, Pp, stride, has_proj)

    if stride == 1:
        x_spec = pl.BlockSpec((1, H, W, Cp), lambda n: (n, 0, 0, 0))
        scratch = [pltpu.VMEM((H + 2, W + 2, Cp), bf16),
                   pltpu.VMEM((M, 9 * Cp), bf16)]
    else:
        x_spec = pl.BlockSpec((stride * stride, Ho + 1, Wo + 1, Cp),
                              lambda n: (n, 0, 0, 0))
        scratch = [pltpu.VMEM((M, 9 * Cp), bf16)]

    y_spec = pl.BlockSpec((1, Ho, Wo, Pp), lambda n: (n, 0, 0, 0))
    st_spec = pl.BlockSpec((1, 2, Pp), lambda n: (n, 0, 0))
    y_shape = jax.ShapeDtypeStruct((N, Ho, Wo, Pp), jnp.float32)
    st_shape = jax.ShapeDtypeStruct((N, 2, Pp), jnp.float32)

    in_specs = [x_spec, pl.BlockSpec((9 * Cp, Pp), lambda n: (0, 0))]
    inputs = [xa, w1r]
    out_specs = [y_spec, st_spec]
    out_shapes = [y_shape, st_shape]
    if has_proj:
        in_specs.append(pl.BlockSpec((Cp, Pp), lambda n: (0, 0)))
        inputs.append(wsc)
        out_specs += [y_spec, st_spec]
        out_shapes += [y_shape, st_shape]

    return pl.pallas_call(
        kernel,
        grid=(N,),
        in_specs=in_specs,
        out_specs=tuple(out_specs),
        out_shape=tuple(out_shapes),
        scratch_shapes=scratch,
        compiler_params=cparams,
    )(*inputs)


# ---------------------------------------------------------------------------
# Phase B: BN1 + ReLU + conv2 (3x3, stride 1) + partial stats.
# ---------------------------------------------------------------------------
def _conv2_kernel(Ho, Wo, Pp):
    M = Ho * Wo
    bf16 = jnp.bfloat16

    def kernel(y1_ref, s1_ref, t1_ref, w2_ref, y2_ref, st2_ref, hpad_ref, col_ref):
        # BN1 (folded global-batch scale/shift) + ReLU in f32, then bf16 for the MXU.
        h = jnp.maximum(y1_ref[0].reshape(M, Pp) * s1_ref[...] + t1_ref[...], 0.0)
        h = h.astype(bf16)

        # Stage zero-padded h in VMEM; only the halo ring is zeroed.
        zrow = jnp.zeros((1, Wo + 2, Pp), bf16)
        zcol = jnp.zeros((Ho, 1, Pp), bf16)
        hpad_ref[0:1, :, :] = zrow
        hpad_ref[Ho + 1:Ho + 2, :, :] = zrow
        hpad_ref[1:Ho + 1, 0:1, :] = zcol
        hpad_ref[1:Ho + 1, Wo + 1:Wo + 2, :] = zcol
        hpad_ref[1:Ho + 1, 1:Wo + 1, :] = h.reshape(Ho, Wo, Pp)

        for kh in range(3):
            for kw in range(3):
                t = kh * 3 + kw
                col_ref[:, t * Pp:(t + 1) * Pp] = (
                    hpad_ref[kh:kh + Ho, kw:kw + Wo, :].reshape(M, Pp))
        y2 = jnp.dot(col_ref[...], w2_ref[...], preferred_element_type=jnp.float32)

        st2_ref[0, 0:1, :] = jnp.sum(y2, axis=0, keepdims=True)
        st2_ref[0, 1:2, :] = jnp.sum(y2 * y2, axis=0, keepdims=True)
        y2_ref[...] = y2.reshape(1, Ho, Wo, Pp)

    return kernel


# ---------------------------------------------------------------------------
# Phase C: BN2 + shortcut(-BN) + residual add + ReLU.
# ---------------------------------------------------------------------------
def _finalize_kernel(Ho, Wo, Pp, has_proj):
    M = Ho * Wo

    def kernel(*refs):
        if has_proj:
            y2_ref, sc_ref, s2_ref, t2_ref, ss_ref, ts_ref, out_ref = refs
            short = sc_ref[0].reshape(M, Pp) * ss_ref[...] + ts_ref[...]
        else:
            y2_ref, x_ref, s2_ref, t2_ref, out_ref = refs
            short = x_ref[0].reshape(M, Pp)
        main = y2_ref[0].reshape(M, Pp) * s2_ref[...] + t2_ref[...]
        out_ref[...] = jnp.maximum(main + short, 0.0).reshape(1, Ho, Wo, Pp)

    return kernel


# ---------------------------------------------------------------------------
# Public wrapper (NCHW in / NCHW out, like PyTorch).
# ---------------------------------------------------------------------------
@partial(jax.jit, static_argnames=("stride",))
def basic_block_forward(x_nchw, params, stride=1):
    """BasicBlock forward. x_nchw: (N, Cin, H, W) float32, like PyTorch."""
    assert stride in (1, 2)
    x = jnp.transpose(x_nchw, (0, 2, 3, 1)).astype(jnp.float32)      # NHWC
    N, H, W, Cin = x.shape
    P = params["w1"].shape[-1]
    assert H % stride == 0 and W % stride == 0
    has_proj = (stride != 1) or (Cin != P)
    Ho, Wo = H // stride, W // stride
    Cp, Pp = _round_up(Cin, _LANES), _round_up(P, _LANES)
    M = Ho * Wo
    count = float(N * M)
    bf16 = jnp.bfloat16

    # Lane-dense channel padding (every VMEM load/store uses full 128-lane vregs).
    xc = jnp.pad(x, ((0, 0), (0, 0), (0, 0), (0, Cp - Cin)))         # f32
    w1 = jnp.pad(params["w1"], ((0, 0), (0, 0), (0, Cp - Cin), (0, Pp - P))
                 ).astype(bf16).reshape(9 * Cp, Pp)
    w2 = jnp.pad(params["w2"], ((0, 0), (0, 0), (0, Pp - P), (0, Pp - P))
                 ).astype(bf16).reshape(9 * Pp, Pp)
    g1 = jnp.pad(params["g1"], ((0, 0), (0, Pp - P)))
    b1 = jnp.pad(params["b1"], ((0, 0), (0, Pp - P)))
    g2 = jnp.pad(params["g2"], ((0, 0), (0, Pp - P)))
    b2 = jnp.pad(params["b2"], ((0, 0), (0, Pp - P)))
    if has_proj:
        wsc = jnp.pad(params["wsc"], ((0, Cp - Cin), (0, Pp - P))).astype(bf16)
        gsc = jnp.pad(params["gsc"], ((0, 0), (0, Pp - P)))
        bsc = jnp.pad(params["bsc"], ((0, 0), (0, Pp - P)))
    else:
        wsc = gsc = bsc = None

    # conv1 input (bf16 MXU operands).
    if stride == 1:
        xa = xc.astype(bf16)          # spatial zero-padding happens inside the kernel
    else:
        # Phase-decompose the padded image so the strided conv uses contiguous
        # slices and computes only the Ho*Wo outputs it keeps.
        xp = jnp.pad(xc, ((0, 0), (1, 1), (1, 1), (0, 0))).astype(bf16)
        phases = [xp[:, ph::2, pw::2, :] for ph in (0, 1) for pw in (0, 1)]
        xa = jnp.stack(phases, axis=1).reshape(N * 4, Ho + 1, Wo + 1, Cp)

    cparams = pltpu.CompilerParams(
        dimension_semantics=("parallel",),
        vmem_limit_bytes=_vmem_limit_bytes(H, W, Ho, Wo, Cp, Pp),
    )

    # ---- phase A: conv1 (+ projection conv) + partial stats -------------------
    if has_proj:
        y1, st1, sc, stsc = _run_conv1(
            xa, w1, wsc, N=N, H=H, W=W, Ho=Ho, Wo=Wo, Cp=Cp, Pp=Pp,
            stride=stride, has_proj=True, cparams=cparams)
    else:
        y1, st1 = _run_conv1(
            xa, w1, None, N=N, H=H, W=W, Ho=Ho, Wo=Wo, Cp=Cp, Pp=Pp,
            stride=stride, has_proj=False, cparams=cparams)
        sc = stsc = None

    s1, t1 = _fold_bn(st1, g1, b1, count)   # tiny cross-tile reduction (XLA glue)

    # ---- phase B: BN1 + ReLU + conv2 + partial stats --------------------------
    y2, st2 = pl.pallas_call(
        _conv2_kernel(Ho, Wo, Pp),
        grid=(N,),
        in_specs=[
            pl.BlockSpec((1, Ho, Wo, Pp), lambda n: (n, 0, 0, 0)),
            pl.BlockSpec((1, Pp), lambda n: (0, 0)),
            pl.BlockSpec((1, Pp), lambda n: (0, 0)),
            pl.BlockSpec((9 * Pp, Pp), lambda n: (0, 0)),
        ],
        out_specs=(pl.BlockSpec((1, Ho, Wo, Pp), lambda n: (n, 0, 0, 0)),
                   pl.BlockSpec((1, 2, Pp), lambda n: (n, 0, 0))),
        out_shape=(jax.ShapeDtypeStruct((N, Ho, Wo, Pp), jnp.float32),
                   jax.ShapeDtypeStruct((N, 2, Pp), jnp.float32)),
        scratch_shapes=[pltpu.VMEM((Ho + 2, Wo + 2, Pp), bf16),
                        pltpu.VMEM((M, 9 * Pp), bf16)],
        compiler_params=cparams,
    )(y1, s1, t1, w2)

    s2, t2 = _fold_bn(st2, g2, b2, count)

    # ---- phase C: BN2 + shortcut(-BN) + add + ReLU ----------------------------
    if has_proj:
        ss, ts = _fold_bn(stsc, gsc, bsc, count)
        ins = [y2, sc, s2, t2, ss, ts]
        in_specs = [
            pl.BlockSpec((1, Ho, Wo, Pp), lambda n: (n, 0, 0, 0)),
            pl.BlockSpec((1, Ho, Wo, Pp), lambda n: (n, 0, 0, 0)),
            pl.BlockSpec((1, Pp), lambda n: (0, 0)),
            pl.BlockSpec((1, Pp), lambda n: (0, 0)),
            pl.BlockSpec((1, Pp), lambda n: (0, 0)),
            pl.BlockSpec((1, Pp), lambda n: (0, 0)),
        ]
    else:
        ins = [y2, xc, s2, t2]
        in_specs = [
            pl.BlockSpec((1, Ho, Wo, Pp), lambda n: (n, 0, 0, 0)),
            pl.BlockSpec((1, H, W, Cp), lambda n: (n, 0, 0, 0)),
            pl.BlockSpec((1, Pp), lambda n: (0, 0)),
            pl.BlockSpec((1, Pp), lambda n: (0, 0)),
        ]
    out = pl.pallas_call(
        _finalize_kernel(Ho, Wo, Pp, has_proj),
        grid=(N,),
        in_specs=in_specs,
        out_specs=pl.BlockSpec((1, Ho, Wo, Pp), lambda n: (n, 0, 0, 0)),
        out_shape=jax.ShapeDtypeStruct((N, Ho, Wo, Pp), jnp.float32),
        compiler_params=cparams,
    )(*ins)

    return jnp.transpose(out[..., :P], (0, 3, 1, 2))                 # back to NCHW


# ---------------------------------------------------------------------------
# Deterministic synthetic parameters (shapes implied by the module __init__).
# ---------------------------------------------------------------------------
def init_params(key, in_planes, planes):
    ks = jax.random.split(key, 10)
    f32 = jnp.float32
    return {
        "w1": 0.1 * jax.random.normal(ks[0], (3, 3, in_planes, planes), f32),
        "g1": 1.0 + 0.1 * jax.random.normal(ks[1], (1, planes), f32),
        "b1": 0.1 * jax.random.normal(ks[2], (1, planes), f32),
        "w2": 0.1 * jax.random.normal(ks[3], (3, 3, planes, planes), f32),
        "g2": 1.0 + 0.1 * jax.random.normal(ks[4], (1, planes), f32),
        "b2": 0.1 * jax.random.normal(ks[5], (1, planes), f32),
        "wsc": 0.1 * jax.random.normal(ks[6], (in_planes, planes), f32),
        "gsc": 1.0 + 0.1 * jax.random.normal(ks[7], (1, planes), f32),
        "bsc": 0.1 * jax.random.normal(ks[8], (1, planes), f32),
    }


# ---------------------------------------------------------------------------
# Pure-JAX reference mirroring the PyTorch forward (train-mode BN). Conv inputs
# and weights are rounded to bf16 to mirror the kernel's MXU operand dtype
# (accumulation is f32 on both sides), so the comparison stays tight.
# ---------------------------------------------------------------------------
def reference_forward(x_nchw, params, stride=1):
    x = jnp.transpose(x_nchw, (0, 2, 3, 1)).astype(jnp.float32)
    Cin, P = x.shape[-1], params["w1"].shape[-1]

    def _q(v):
        return v.astype(jnp.bfloat16).astype(jnp.float32)

    def conv3(v, w, s):
        return jax.lax.conv_general_dilated(
            _q(v), _q(w), (s, s), ((1, 1), (1, 1)),
            dimension_numbers=("NHWC", "HWIO", "NHWC"))

    def bn(v, g, b):
        mu = jnp.mean(v, axis=(0, 1, 2), keepdims=True)
        var = jnp.mean((v - mu) ** 2, axis=(0, 1, 2), keepdims=True)
        return (v - mu) * jax.lax.rsqrt(var + _EPS) * g.reshape(1, 1, 1, -1) \
            + b.reshape(1, 1, 1, -1)

    out = jax.nn.relu(bn(conv3(x, params["w1"], stride), params["g1"], params["b1"]))
    out = bn(conv3(out, params["w2"], 1), params["g2"], params["b2"])
    if stride != 1 or Cin != P:
        sc = jax.lax.conv_general_dilated(
            _q(x), _q(params["wsc"]).reshape(1, 1, Cin, P), (stride, stride), "VALID",
            dimension_numbers=("NHWC", "HWIO", "NHWC"))
        sc = bn(sc, params["gsc"], params["bsc"])
    else:
        sc = x
    out = jax.nn.relu(out + sc)
    return jnp.transpose(out, (0, 3, 1, 2))


if __name__ == "__main__":
    key = jax.random.PRNGKey(0)
    kx, kp1, kp2, kp3 = jax.random.split(key, 4)

    x = jax.random.normal(kx, (2, 4, 16, 16), jnp.float32)

    # Case 1: projection shortcut (in_planes=4 != planes=8), stride=1.
    params = init_params(kp1, 4, 8)
    out = basic_block_forward(x, params, stride=1)
    jax.block_until_ready(out)
    assert out.shape == (2, 8, 16, 16), out.shape
    ref = reference_forward(x, params, stride=1)
    err = float(jnp.max(jnp.abs(out - ref)))
    assert err < 3e-3, f"projection-shortcut mismatch, max abs err={err}"

    # Case 2: identity shortcut (in_planes == planes == 4), stride=1.
    params_id = init_params(kp2, 4, 4)
    out_id = basic_block_forward(x, params_id, stride=1)
    jax.block_until_ready(out_id)
    assert out_id.shape == (2, 4, 16, 16), out_id.shape
    ref_id = reference_forward(x, params_id, stride=1)
    err_id = float(jnp.max(jnp.abs(out_id - ref_id)))
    assert err_id < 3e-3, f"identity-shortcut mismatch, max abs err={err_id}"

    # Case 3: downsampling block (stride=2, projection shortcut).
    params_s2 = init_params(kp3, 4, 8)
    out_s2 = basic_block_forward(x, params_s2, stride=2)
    jax.block_until_ready(out_s2)
    assert out_s2.shape == (2, 8, 8, 8), out_s2.shape
    ref_s2 = reference_forward(x, params_s2, stride=2)
    err_s2 = float(jnp.max(jnp.abs(out_s2 - ref_s2)))
    assert err_s2 < 3e-3, f"stride-2 mismatch, max abs err={err_s2}"

    print("KERNEL_OK")
</pallas_src>

<mosaic_0001>
module attributes {stable_mosaic.version = 11 : i64} {
  func.func @kernel(%arg0: i32, %arg1: memref<1x16x16x128xbf16, #tpu.memory_space<vmem>>, %arg2: memref<1152x128xbf16, #tpu.memory_space<vmem>>, %arg3: memref<128x128xbf16, #tpu.memory_space<vmem>>, %arg4: memref<1x16x16x128xf32, #tpu.memory_space<vmem>>, %arg5: memref<1x2x128xf32, #tpu.memory_space<vmem>>, %arg6: memref<1x16x16x128xf32, #tpu.memory_space<vmem>>, %arg7: memref<1x2x128xf32, #tpu.memory_space<vmem>>, %arg8: memref<18x18x128xbf16, #tpu.memory_space<vmem>>, %arg9: memref<256x1152xbf16, #tpu.memory_space<vmem>>) attributes {dimension_semantics = [#tpu.dimension_semantics<parallel>], iteration_bounds = array<i64: 2>, scalar_prefetch = 0 : i64, scratch_operands = 2 : i64, tpu.core_type = #tpu.core_type<tc>, window_params = [{transform_indices = @transform_0, window_bounds = array<i64: 1, 16, 16, 128>}, {pipeline_mode = #tpu.pipeline_mode<synchronous>, transform_indices = @transform_1, window_bounds = array<i64: 1152, 128>}, {pipeline_mode = #tpu.pipeline_mode<synchronous>, transform_indices = @transform_2, window_bounds = array<i64: 128, 128>}, {transform_indices = @transform_3, window_bounds = array<i64: 1, 16, 16, 128>}, {transform_indices = @transform_4, window_bounds = array<i64: 1, 2, 128>}, {transform_indices = @transform_5, window_bounds = array<i64: 1, 16, 16, 128>}, {transform_indices = @transform_6, window_bounds = array<i64: 1, 2, 128>}]} {
    %cst = arith.constant 0.000000e+00 : bf16
    %0 = vector.broadcast %cst : bf16 to vector<1x18x128xbf16>
    %cst_0 = arith.constant 0.000000e+00 : bf16
    %1 = vector.broadcast %cst_0 : bf16 to vector<16x1x128xbf16>
    %c0 = arith.constant 0 : index
    %c0_1 = arith.constant 0 : index
    %c0_2 = arith.constant 0 : index
    %2 = vector.load %arg8[%c0, %c0_1, %c0_2] : memref<18x18x128xbf16, #tpu.memory_space<vmem>>, vector<1x18x128xbf16>
    tpu.vector_store %arg8[%c0, %c0_1, %c0_2], %0 {strides = array<i32>} : memref<18x18x128xbf16, #tpu.memory_space<vmem>>, vector<1x18x128xbf16>,
    %c17 = arith.constant 17 : index
    %c0_3 = arith.constant 0 : index
    %c0_4 = arith.constant 0 : index
    %3 = vector.load %arg8[%c17, %c0_3, %c0_4] : memref<18x18x128xbf16, #tpu.memory_space<vmem>>, vector<1x18x128xbf16>
    tpu.vector_store %arg8[%c17, %c0_3, %c0_4], %0 {strides = array<i32>} : memref<18x18x128xbf16, #tpu.memory_space<vmem>>, vector<1x18x128xbf16>,
    %c1 = arith.constant 1 : index
    %c0_5 = arith.constant 0 : index
    %c0_6 = arith.constant 0 : index
    %4 = vector.load %arg8[%c1, %c0_5, %c0_6] : memref<18x18x128xbf16, #tpu.memory_space<vmem>>, vector<16x1x128xbf16>
    tpu.vector_store %arg8[%c1, %c0_5, %c0_6], %1 {strides = array<i32>} : memref<18x18x128xbf16, #tpu.memory_space<vmem>>, vector<16x1x128xbf16>,
    %c1_7 = arith.constant 1 : index
    %c17_8 = arith.constant 17 : index
    %c0_9 = arith.constant 0 : index
    %5 = vector.load %arg8[%c1_7, %c17_8, %c0_9] : memref<18x18x128xbf16, #tpu.memory_space<vmem>>, vector<16x1x128xbf16>
    tpu.vector_store %arg8[%c1_7, %c17_8, %c0_9], %1 {strides = array<i32>} : memref<18x18x128xbf16, #tpu.memory_space<vmem>>, vector<16x1x128xbf16>,
    %c0_10 = arith.constant 0 : index
    %c0_11 = arith.constant 0 : index
    %c0_12 = arith.constant 0 : index
    %c0_13 = arith.constant 0 : index
    %6 = vector.load %arg1[%c0_10, %c0_11, %c0_12, %c0_13] : memref<1x16x16x128xbf16, #tpu.memory_space<vmem>>, vector<1x16x16x128xbf16>
    %7 = vector.shape_cast %6 : vector<1x16x16x128xbf16> to vector<16x16x128xbf16>
    %c1_14 = arith.constant 1 : index
    %c1_15 = arith.constant 1 : index
    %c0_16 = arith.constant 0 : index
    %8 = vector.load %arg8[%c1_14, %c1_15, %c0_16] : memref<18x18x128xbf16, #tpu.memory_space<vmem>>, vector<16x16x128xbf16>
    tpu.vector_store %arg8[%c1_14, %c1_15, %c0_16], %7 {strides = array<i32>} : memref<18x18x128xbf16, #tpu.memory_space<vmem>>, vector<16x16x128xbf16>,
    %c0_17 = arith.constant 0 : index
    %c0_18 = arith.constant 0 : index
    %c0_19 = arith.constant 0 : index
    %c0_20 = arith.constant 0 : index
    %9 = vector.load %arg1[%c0_17, %c0_18, %c0_19, %c0_20] : memref<1x16x16x128xbf16, #tpu.memory_space<vmem>>, vector<1x16x16x128xbf16>
    %10 = vector.shape_cast %9 : vector<1x16x16x128xbf16> to vector<16x16x128xbf16>
    %c0_21 = arith.constant 0 : index
    %c0_22 = arith.constant 0 : index
    %c0_23 = arith.constant 0 : index
    %11 = vector.load %arg8[%c0_21, %c0_22, %c0_23] : memref<18x18x128xbf16, #tpu.memory_space<vmem>>, vector<16x16x128xbf16>
    %12 = vector.shape_cast %11 : vector<16x16x128xbf16> to vector<256x128xbf16>
    %c0_24 = arith.constant 0 : index
    %c0_25 = arith.constant 0 : index
    %13 = vector.load %arg9[%c0_24, %c0_25] : memref<256x1152xbf16, #tpu.memory_space<vmem>>, vector<256x128xbf16>
    tpu.vector_store %arg9[%c0_24, %c0_25], %12 {strides = array<i32>} : memref<256x1152xbf16, #tpu.memory_space<vmem>>, vector<256x128xbf16>,
    %c0_26 = arith.constant 0 : index
    %c1_27 = arith.constant 1 : index
    %c0_28 = arith.constant 0 : index
    %14 = vector.load %arg8[%c0_26, %c1_27, %c0_28] : memref<18x18x128xbf16, #tpu.memory_space<vmem>>, vector<16x16x128xbf16>
    %15 = vector.shape_cast %14 : vector<16x16x128xbf16> to vector<256x128xbf16>
    %c0_29 = arith.constant 0 : index
    %c128 = arith.constant 128 : index
    %16 = vector.load %arg9[%c0_29, %c128] : memref<256x1152xbf16, #tpu.memory_space<vmem>>, vector<256x128xbf16>
    tpu.vector_store %arg9[%c0_29, %c128], %15 {strides = array<i32>} : memref<256x1152xbf16, #tpu.memory_space<vmem>>, vector<256x128xbf16>,
    %c0_30 = arith.constant 0 : index
    %c2 = arith.constant 2 : index
    %c0_31 = arith.constant 0 : index
    %17 = vector.load %arg8[%c0_30, %c2, %c0_31] : memref<18x18x128xbf16, #tpu.memory_space<vmem>>, vector<16x16x128xbf16>
    %18 = vector.shape_cast %17 : vector<16x16x128xbf16> to vector<256x128xbf16>
    %c0_32 = arith.constant 0 : index
    %c256 = arith.constant 256 : index
    %19 = vector.load %arg9[%c0_32, %c256] : memref<256x1152xbf16, #tpu.memory_space<vmem>>, vector<256x128xbf16>
    tpu.vector_store %arg9[%c0_32, %c256], %18 {strides = array<i32>} : memref<256x1152xbf16, #tpu.memory_space<vmem>>, vector<256x128xbf16>,
    %c1_33 = arith.constant 1 : index
    %c0_34 = arith.constant 0 : index
    %c0_35 = arith.constant 0 : index
    %20 = vector.load %arg8[%c1_33, %c0_34, %c0_35] : memref<18x18x128xbf16, #tpu.memory_space<vmem>>, vector<16x16x128xbf16>
    %21 = vector.shape_cast %20 : vector<16x16x128xbf16> to vector<256x128xbf16>
    %c0_36 = arith.constant 0 : index
    %c384 = arith.constant 384 : index
    %22 = vector.load %arg9[%c0_36, %c384] : memref<256x1152xbf16, #tpu.memory_space<vmem>>, vector<256x128xbf16>
    tpu.vector_store %arg9[%c0_36, %c384], %21 {strides = array<i32>} : memref<256x1152xbf16, #tpu.memory_space<vmem>>, vector<256x128xbf16>,
    %c1_37 = arith.constant 1 : index
    %c1_38 = arith.constant 1 : index
    %c0_39 = arith.constant 0 : index
    %23 = vector.load %arg8[%c1_37, %c1_38, %c0_39] : memref<18x18x128xbf16, #tpu.memory_space<vmem>>, vector<16x16x128xbf16>
    %24 = vector.shape_cast %23 : vector<16x16x128xbf16> to vector<256x128xbf16>
    %c0_40 = arith.constant 0 : index
    %c512 = arith.constant 512 : index
    %25 = vector.load %arg9[%c0_40, %c512] : memref<256x1152xbf16, #tpu.memory_space<vmem>>, vector<256x128xbf16>
    tpu.vector_store %arg9[%c0_40, %c512], %24 {strides = array<i32>} : memref<256x1152xbf16, #tpu.memory_space<vmem>>, vector<256x128xbf16>,
    %c1_41 = arith.constant 1 : index
    %c2_42 = arith.constant 2 : index
    %c0_43 = arith.constant 0 : index
    %26 = vector.load %arg8[%c1_41, %c2_42, %c0_43] : memref<18x18x128xbf16, #tpu.memory_space<vmem>>, vector<16x16x128xbf16>
    %27 = vector.shape_cast %26 : vector<16x16x128xbf16> to vector<256x128xbf16>
    %c0_44 = arith.constant 0 : index
    %c640 = arith.constant 640 : index
    %28 = vector.load %arg9[%c0_44, %c640] : memref<256x1152xbf16, #tpu.memory_space<vmem>>, vector<256x128xbf16>
    tpu.vector_store %arg9[%c0_44, %c640], %27 {strides = array<i32>} : memref<256x1152xbf16, #tpu.memory_space<vmem>>, vector<256x128xbf16>,
    %c2_45 = arith.constant 2 : index
    %c0_46 = arith.constant 0 : index
    %c0_47 = arith.constant 0 : index
    %29 = vector.load %arg8[%c2_45, %c0_46, %c0_47] : memref<18x18x128xbf16, #tpu.memory_space<vmem>>, vector<16x16x128xbf16>
    %30 = vector.shape_cast %29 : vector<16x16x128xbf16> to vector<256x128xbf16>
    %c0_48 = arith.constant 0 : index
    %c768 = arith.constant 768 : index
    %31 = vector.load %arg9[%c0_48, %c768] : memref<256x1152xbf16, #tpu.memory_space<vmem>>, vector<256x128xbf16>
    tpu.vector_store %arg9[%c0_48, %c768], %30 {strides = array<i32>} : memref<256x1152xbf16, #tpu.memory_space<vmem>>, vector<256x128xbf16>,
    %c2_49 = arith.constant 2 : index
    %c1_50 = arith.constant 1 : index
    %c0_51 = arith.constant 0 : index
    %32 = vector.load %arg8[%c2_49, %c1_50, %c0_51] : memref<18x18x128xbf16, #tpu.memory_space<vmem>>, vector<16x16x128xbf16>
    %33 = vector.shape_cast %32 : vector<16x16x128xbf16> to vector<256x128xbf16>
    %c0_52 = arith.constant 0 : index
    %c896 = arith.constant 896 : index
    %34 = vector.load %arg9[%c0_52, %c896] : memref<256x1152xbf16, #tpu.memory_space<vmem>>, vector<256x128xbf16>
    tpu.vector_store %arg9[%c0_52, %c896], %33 {strides = array<i32>} : memref<256x1152xbf16, #tpu.memory_space<vmem>>, vector<256x128xbf16>,
    %c2_53 = arith.constant 2 : index
    %c2_54 = arith.constant 2 : index
    %c0_55 = arith.constant 0 : index
    %35 = vector.load %arg8[%c2_53, %c2_54, %c0_55] : memref<18x18x128xbf16, #tpu.memory_space<vmem>>, vector<16x16x128xbf16>
    %36 = vector.shape_cast %35 : vector<16x16x128xbf16> to vector<256x128xbf16>
    %c0_56 = arith.constant 0 : index
    %c1024 = arith.constant 1024 : index
    %37 = vector.load %arg9[%c0_56, %c1024] : memref<256x1152xbf16, #tpu.memory_space<vmem>>, vector<256x128xbf16>
    tpu.vector_store %arg9[%c0_56, %c1024], %36 {strides = array<i32>} : memref<256x1152xbf16, #tpu.memory_space<vmem>>, vector<256x128xbf16>,
    %c0_57 = arith.constant 0 : index
    %c0_58 = arith.constant 0 : index
    %38 = vector.load %arg9[%c0_57, %c0_58] : memref<256x1152xbf16, #tpu.memory_space<vmem>>, vector<256x1152xbf16>
    %c0_59 = arith.constant 0 : index
    %c0_60 = arith.constant 0 : index
    %39 = vector.load %arg2[%c0_59, %c0_60] : memref<1152x128xbf16, #tpu.memory_space<vmem>>, vector<1152x128xbf16>
    %cst_61 = arith.constant dense<0.000000e+00> : vector<256x128xf32>
    %40 = tpu.matmul %38, %39, %cst_61 {dimension_numbers = #tpu.dot_dimension_numbers<[1], [0], [0], [1], [0, 0, 1, 1], [], []>} : vector<256x1152xbf16>, vector<1152x128xbf16>, vector<256x128xf32> -> vector<256x128xf32>
    %cst_62 = arith.constant dense<0.000000e+00> : vector<128xf32>
    %41 = vector.multi_reduction <add>, %40, %cst_62 [0] : vector<256x128xf32> to vector<128xf32>
    %42 = vector.shape_cast %41 : vector<128xf32> to vector<1x128xf32>
    %c0_63 = arith.constant 0 : index
    %c0_64 = arith.constant 0 : index
    %c0_65 = arith.constant 0 : index
    %43 = vector.load %arg5[%c0_63, %c0_64, %c0_65] : memref<1x2x128xf32, #tpu.memory_space<vmem>>, vector<1x1x128xf32>
    %44 = vector.shape_cast %43 : vector<1x1x128xf32> to vector<1x128xf32>
    %45 = vector.shape_cast %42 : vector<1x128xf32> to vector<1x1x128xf32>
    tpu.vector_store %arg5[%c0_63, %c0_64, %c0_65], %45 {strides = array<i32>} : memref<1x2x128xf32, #tpu.memory_space<vmem>>, vector<1x1x128xf32>,
    %46 = arith.mulf %40, %40 : vector<256x128xf32>
    %cst_66 = arith.constant dense<0.000000e+00> : vector<128xf32>
    %47 = vector.multi_reduction <add>, %46, %cst_66 [0] : vector<256x128xf32> to vector<128xf32>
    %48 = vector.shape_cast %47 : vector<128xf32> to vector<1x128xf32>
    %c0_67 = arith.constant 0 : index
    %c1_68 = arith.constant 1 : index
    %c0_69 = arith.constant 0 : index
    %49 = vector.load %arg5[%c0_67, %c1_68, %c0_69] : memref<1x2x128xf32, #tpu.memory_space<vmem>>, vector<1x1x128xf32>
    %50 = vector.shape_cast %49 : vector<1x1x128xf32> to vector<1x128xf32>
    %51 = vector.shape_cast %48 : vector<1x128xf32> to vector<1x1x128xf32>
    tpu.vector_store %arg5[%c0_67, %c1_68, %c0_69], %51 {strides = array<i32>} : memref<1x2x128xf32, #tpu.memory_space<vmem>>, vector<1x1x128xf32>,
    %52 = vector.shape_cast %40 : vector<256x128xf32> to vector<1x16x16x128xf32>
    %c0_70 = arith.constant 0 : index
    %c0_71 = arith.constant 0 : index
    %c0_72 = arith.constant 0 : index
    %c0_73 = arith.constant 0 : index
    %53 = vector.load %arg4[%c0_70, %c0_71, %c0_72, %c0_73] : memref<1x16x16x128xf32, #tpu.memory_space<vmem>>, vector<1x16x16x128xf32>
    tpu.vector_store %arg4[%c0_70, %c0_71, %c0_72, %c0_73], %52 {strides = array<i32>} : memref<1x16x16x128xf32, #tpu.memory_space<vmem>>, vector<1x16x16x128xf32>,
    %54 = vector.shape_cast %10 : vector<16x16x128xbf16> to vector<256x128xbf16>
    %c0_74 = arith.constant 0 : index
    %c0_75 = arith.constant 0 : index
    %55 = vector.load %arg3[%c0_74, %c0_75] : memref<128x128xbf16, #tpu.memory_space<vmem>>, vector<128x128xbf16>
    %cst_76 = arith.constant dense<0.000000e+00> : vector<256x128xf32>
    %56 = tpu.matmul %54, %55, %cst_76 {dimension_numbers = #tpu.dot_dimension_numbers<[1], [0], [0], [1], [0, 0, 1, 1], [], []>} : vector<256x128xbf16>, vector<128x128xbf16>, vector<256x128xf32> -> vector<256x128xf32>
    %cst_77 = arith.constant dense<0.000000e+00> : vector<128xf32>
    %57 = vector.multi_reduction <add>, %56, %cst_77 [0] : vector<256x128xf32> to vector<128xf32>
    %58 = vector.shape_cast %57 : vector<128xf32> to vector<1x128xf32>
    %c0_78 = arith.constant 0 : index
    %c0_79 = arith.constant 0 : index
    %c0_80 = arith.constant 0 : index
    %59 = vector.load %arg7[%c0_78, %c0_79, %c0_80] : memref<1x2x128xf32, #tpu.memory_space<vmem>>, vector<1x1x128xf32>
    %60 = vector.shape_cast %59 : vector<1x1x128xf32> to vector<1x128xf32>
    %61 = vector.shape_cast %58 : vector<1x128xf32> to vector<1x1x128xf32>
    tpu.vector_store %arg7[%c0_78, %c0_79, %c0_80], %61 {strides = array<i32>} : memref<1x2x128xf32, #tpu.memory_space<vmem>>, vector<1x1x128xf32>,
    %62 = arith.mulf %56, %56 : vector<256x128xf32>
    %cst_81 = arith.constant dense<0.000000e+00> : vector<128xf32>
    %63 = vector.multi_reduction <add>, %62, %cst_81 [0] : vector<256x128xf32> to vector<128xf32>
    %64 = vector.shape_cast %63 : vector<128xf32> to vector<1x128xf32>
    %c0_82 = arith.constant 0 : index
    %c1_83 = arith.constant 1 : index
    %c0_84 = arith.constant 0 : index
    %65 = vector.load %arg7[%c0_82, %c1_83, %c0_84] : memref<1x2x128xf32, #tpu.memory_space<vmem>>, vector<1x1x128xf32>
    %66 = vector.shape_cast %65 : vector<1x1x128xf32> to vector<1x128xf32>
    %67 = vector.shape_cast %64 : vector<1x128xf32> to vector<1x1x128xf32>
    tpu.vector_store %arg7[%c0_82, %c1_83, %c0_84], %67 {strides = array<i32>} : memref<1x2x128xf32, #tpu.memory_space<vmem>>, vector<1x1x128xf32>,
    %68 = vector.shape_cast %56 : vector<256x128xf32> to vector<1x16x16x128xf32>
    %c0_85 = arith.constant 0 : index
    %c0_86 = arith.constant 0 : index
    %c0_87 = arith.constant 0 : index
    %c0_88 = arith.constant 0 : index
    %69 = vector.load %arg6[%c0_85, %c0_86, %c0_87, %c0_88] : memref<1x16x16x128xf32, #tpu.memory_space<vmem>>, vector<1x16x16x128xf32>
    tpu.vector_store %arg6[%c0_85, %c0_86, %c0_87, %c0_88], %68 {strides = array<i32>} : memref<1x16x16x128xf32, #tpu.memory_space<vmem>>, vector<1x16x16x128xf32>,
    return
  }
  func.func @transform_0(%arg0: i32) -> (i32, i32, i32, i32) {
    %c0_i32 = arith.constant 0 : i32
    %c0_i32_0 = arith.constant 0 : i32
    %c0_i32_1 = arith.constant 0 : i32
    %c0_i32_2 = arith.constant 0 : i32
    return %arg0, %c0_i32, %c0_i32_0, %c0_i32_1 : i32, i32, i32, i32
  }
  func.func @transform_1(%arg0: i32) -> (i32, i32) {
    %c0_i32 = arith.constant 0 : i32
    %c0_i32_0 = arith.constant 0 : i32
    %c0_i32_1 = arith.constant 0 : i32
    return %c0_i32, %c0_i32_0 : i32, i32
  }
  func.func @transform_2(%arg0: i32) -> (i32, i32) {
    %c0_i32 = arith.constant 0 : i32
    %c0_i32_0 = arith.constant 0 : i32
    %c0_i32_1 = arith.constant 0 : i32
    return %c0_i32, %c0_i32_0 : i32, i32
  }
  func.func @transform_3(%arg0: i32) -> (i32, i32, i32, i32) {
    %c0_i32 = arith.constant 0 : i32
    %c0_i32_0 = arith.constant 0 : i32
    %c0_i32_1 = arith.constant 0 : i32
    %c0_i32_2 = arith.constant 0 : i32
    return %arg0, %c0_i32, %c0_i32_0, %c0_i32_1 : i32, i32, i32, i32
  }
  func.func @transform_4(%arg0: i32) -> (i32, i32, i32) {
    %c0_i32 = arith.constant 0 : i32
    %c0_i32_0 = arith.constant 0 : i32
    %c0_i32_1 = arith.constant 0 : i32
    return %arg0, %c0_i32, %c0_i32_0 : i32, i32, i32
  }
  func.func @transform_5(%arg0: i32) -> (i32, i32, i32, i32) {
    %c0_i32 = arith.constant 0 : i32
    %c0_i32_0 = arith.constant 0 : i32
    %c0_i32_1 = arith.constant 0 : i32
    %c0_i32_2 = arith.constant 0 : i32
    return %arg0, %c0_i32, %c0_i32_0, %c0_i32_1 : i32, i32, i32, i32
  }
  func.func @transform_6(%arg0: i32) -> (i32, i32, i32) {
    %c0_i32 = arith.constant 0 : i32
    %c0_i32_0 = arith.constant 0 : i32
    %c0_i32_1 = arith.constant 0 : i32
    return %arg0, %c0_i32, %c0_i32_0 : i32, i32, i32
  }
}

module attributes {stable_mosaic.version = 11 : i64} {
  func.func @kernel(%arg0: i32, %arg1: memref<1x16x16x128xf32, #tpu.memory_space<vmem>>, %arg2: memref<1x128xf32, #tpu.memory_space<vmem>>, %arg3: memref<1x128xf32, #tpu.memory_space<vmem>>, %arg4: memref<1152x128xbf16, #tpu.memory_space<vmem>>, %arg5: memref<1x16x16x128xf32, #tpu.memory_space<vmem>>, %arg6: memref<1x2x128xf32, #tpu.memory_space<vmem>>, %arg7: memref<18x18x128xbf16, #tpu.memory_space<vmem>>, %arg8: memref<256x1152xbf16, #tpu.memory_space<vmem>>) attributes {dimension_semantics = [#tpu.dimension_semantics<parallel>], iteration_bounds = array<i64: 2>, scalar_prefetch = 0 : i64, scratch_operands = 2 : i64, tpu.core_type = #tpu.core_type<tc>, window_params = [{transform_indices = @transform_0, window_bounds = array<i64: 1, 16, 16, 128>}, {pipeline_mode = #tpu.pipeline_mode<synchronous>, transform_indices = @transform_1, window_bounds = array<i64: 1, 128>}, {pipeline_mode = #tpu.pipeline_mode<synchronous>, transform_indices = @transform_2, window_bounds = array<i64: 1, 128>}, {pipeline_mode = #tpu.pipeline_mode<synchronous>, transform_indices = @transform_3, window_bounds = array<i64: 1152, 128>}, {transform_indices = @transform_4, window_bounds = array<i64: 1, 16, 16, 128>}, {transform_indices = @transform_5, window_bounds = array<i64: 1, 2, 128>}]} {
    %c0 = arith.constant 0 : index
    %c0_0 = arith.constant 0 : index
    %c0_1 = arith.constant 0 : index
    %c0_2 = arith.constant 0 : index
    %0 = vector.load %arg1[%c0, %c0_0, %c0_1, %c0_2] : memref<1x16x16x128xf32, #tpu.memory_space<vmem>>, vector<1x16x16x128xf32>
    %1 = vector.shape_cast %0 : vector<1x16x16x128xf32> to vector<16x16x128xf32>
    %2 = vector.shape_cast %1 : vector<16x16x128xf32> to vector<256x128xf32>
    %c0_3 = arith.constant 0 : index
    %c0_4 = arith.constant 0 : index
    %3 = vector.load %arg2[%c0_3, %c0_4] : memref<1x128xf32, #tpu.memory_space<vmem>>, vector<1x128xf32>
    %4 = vector.broadcast %3 : vector<1x128xf32> to vector<256x128xf32>
    %5 = arith.mulf %2, %4 : vector<256x128xf32>
    %c0_5 = arith.constant 0 : index
    %c0_6 = arith.constant 0 : index
    %6 = vector.load %arg3[%c0_5, %c0_6] : memref<1x128xf32, #tpu.memory_space<vmem>>, vector<1x128xf32>
    %7 = vector.broadcast %6 : vector<1x128xf32> to vector<256x128xf32>
    %8 = arith.addf %5, %7 : vector<256x128xf32>
    %cst = arith.constant 0.000000e+00 : f32
    %9 = vector.broadcast %cst : f32 to vector<256x128xf32>
    %10 = arith.maximumf %8, %9 : vector<256x128xf32>
    %11 = arith.truncf %10 : vector<256x128xf32> to vector<256x128xbf16>
    %cst_7 = arith.constant 0.000000e+00 : bf16
    %12 = vector.broadcast %cst_7 : bf16 to vector<1x18x128xbf16>
    %cst_8 = arith.constant 0.000000e+00 : bf16
    %13 = vector.broadcast %cst_8 : bf16 to vector<16x1x128xbf16>
    %c0_9 = arith.constant 0 : index
    %c0_10 = arith.constant 0 : index
    %c0_11 = arith.constant 0 : index
    %14 = vector.load %arg7[%c0_9, %c0_10, %c0_11] : memref<18x18x128xbf16, #tpu.memory_space<vmem>>, vector<1x18x128xbf16>
    tpu.vector_store %arg7[%c0_9, %c0_10, %c0_11], %12 {strides = array<i32>} : memref<18x18x128xbf16, #tpu.memory_space<vmem>>, vector<1x18x128xbf16>,
    %c17 = arith.constant 17 : index
    %c0_12 = arith.constant 0 : index
    %c0_13 = arith.constant 0 : index
    %15 = vector.load %arg7[%c17, %c0_12, %c0_13] : memref<18x18x128xbf16, #tpu.memory_space<vmem>>, vector<1x18x128xbf16>
    tpu.vector_store %arg7[%c17, %c0_12, %c0_13], %12 {strides = array<i32>} : memref<18x18x128xbf16, #tpu.memory_space<vmem>>, vector<1x18x128xbf16>,
    %c1 = arith.constant 1 : index
    %c0_14 = arith.constant 0 : index
    %c0_15 = arith.constant 0 : index
    %16 = vector.load %arg7[%c1, %c0_14, %c0_15] : memref<18x18x128xbf16, #tpu.memory_space<vmem>>, vector<16x1x128xbf16>
    tpu.vector_store %arg7[%c1, %c0_14, %c0_15], %13 {strides = array<i32>} : memref<18x18x128xbf16, #tpu.memory_space<vmem>>, vector<16x1x128xbf16>,
    %c1_16 = arith.constant 1 : index
    %c17_17 = arith.constant 17 : index
    %c0_18 = arith.constant 0 : index
    %17 = vector.load %arg7[%c1_16, %c17_17, %c0_18] : memref<18x18x128xbf16, #tpu.memory_space<vmem>>, vector<16x1x128xbf16>
    tpu.vector_store %arg7[%c1_16, %c17_17, %c0_18], %13 {strides = array<i32>} : memref<18x18x128xbf16, #tpu.memory_space<vmem>>, vector<16x1x128xbf16>,
    %18 = vector.shape_cast %11 : vector<256x128xbf16> to vector<16x16x128xbf16>
    %c1_19 = arith.constant 1 : index
    %c1_20 = arith.constant 1 : index
    %c0_21 = arith.constant 0 : index
    %19 = vector.load %arg7[%c1_19, %c1_20, %c0_21] : memref<18x18x128xbf16, #tpu.memory_space<vmem>>, vector<16x16x128xbf16>
    tpu.vector_store %arg7[%c1_19, %c1_20, %c0_21], %18 {strides = array<i32>} : memref<18x18x128xbf16, #tpu.memory_space<vmem>>, vector<16x16x128xbf16>,
    %c0_22 = arith.constant 0 : index
    %c0_23 = arith.constant 0 : index
    %c0_24 = arith.constant 0 : index
    %20 = vector.load %arg7[%c0_22, %c0_23, %c0_24] : memref<18x18x128xbf16, #tpu.memory_space<vmem>>, vector<16x16x128xbf16>
    %21 = vector.shape_cast %20 : vector<16x16x128xbf16> to vector<256x128xbf16>
    %c0_25 = arith.constant 0 : index
    %c0_26 = arith.constant 0 : index
    %22 = vector.load %arg8[%c0_25, %c0_26] : memref<256x1152xbf16, #tpu.memory_space<vmem>>, vector<256x128xbf16>
    tpu.vector_store %arg8[%c0_25, %c0_26], %21 {strides = array<i32>} : memref<256x1152xbf16, #tpu.memory_space<vmem>>, vector<256x128xbf16>,
    %c0_27 = arith.constant 0 : index
    %c1_28 = arith.constant 1 : index
    %c0_29 = arith.constant 0 : index
    %23 = vector.load %arg7[%c0_27, %c1_28, %c0_29] : memref<18x18x128xbf16, #tpu.memory_space<vmem>>, vector<16x16x128xbf16>
    %24 = vector.shape_cast %23 : vector<16x16x128xbf16> to vector<256x128xbf16>
    %c0_30 = arith.constant 0 : index
    %c128 = arith.constant 128 : index
    %25 = vector.load %arg8[%c0_30, %c128] : memref<256x1152xbf16, #tpu.memory_space<vmem>>, vector<256x128xbf16>
    tpu.vector_store %arg8[%c0_30, %c128], %24 {strides = array<i32>} : memref<256x1152xbf16, #tpu.memory_space<vmem>>, vector<256x128xbf16>,
    %c0_31 = arith.constant 0 : index
    %c2 = arith.constant 2 : index
    %c0_32 = arith.constant 0 : index
    %26 = vector.load %arg7[%c0_31, %c2, %c0_32] : memref<18x18x128xbf16, #tpu.memory_space<vmem>>, vector<16x16x128xbf16>
    %27 = vector.shape_cast %26 : vector<16x16x128xbf16> to vector<256x128xbf16>
    %c0_33 = arith.constant 0 : index
    %c256 = arith.constant 256 : index
    %28 = vector.load %arg8[%c0_33, %c256] : memref<256x1152xbf16, #tpu.memory_space<vmem>>, vector<256x128xbf16>
    tpu.vector_store %arg8[%c0_33, %c256], %27 {strides = array<i32>} : memref<256x1152xbf16, #tpu.memory_space<vmem>>, vector<256x128xbf16>,
    %c1_34 = arith.constant 1 : index
    %c0_35 = arith.constant 0 : index
    %c0_36 = arith.constant 0 : index
    %29 = vector.load %arg7[%c1_34, %c0_35, %c0_36] : memref<18x18x128xbf16, #tpu.memory_space<vmem>>, vector<16x16x128xbf16>
    %30 = vector.shape_cast %29 : vector<16x16x128xbf16> to vector<256x128xbf16>
    %c0_37 = arith.constant 0 : index
    %c384 = arith.constant 384 : index
    %31 = vector.load %arg8[%c0_37, %c384] : memref<256x1152xbf16, #tpu.memory_space<vmem>>, vector<256x128xbf16>
    tpu.vector_store %arg8[%c0_37, %c384], %30 {strides = array<i32>} : memref<256x1152xbf16, #tpu.memory_space<vmem>>, vector<256x128xbf16>,
    %c1_38 = arith.constant 1 : index
    %c1_39 = arith.constant 1 : index
    %c0_40 = arith.constant 0 : index
    %32 = vector.load %arg7[%c1_38, %c1_39, %c0_40] : memref<18x18x128xbf16, #tpu.memory_space<vmem>>, vector<16x16x128xbf16>
    %33 = vector.shape_cast %32 : vector<16x16x128xbf16> to vector<256x128xbf16>
    %c0_41 = arith.constant 0 : index
    %c512 = arith.constant 512 : index
    %34 = vector.load %arg8[%c0_41, %c512] : memref<256x1152xbf16, #tpu.memory_space<vmem>>, vector<256x128xbf16>
    tpu.vector_store %arg8[%c0_41, %c512], %33 {strides = array<i32>} : memref<256x1152xbf16, #tpu.memory_space<vmem>>, vector<256x128xbf16>,
    %c1_42 = arith.constant 1 : index
    %c2_43 = arith.constant 2 : index
    %c0_44 = arith.constant 0 : index
    %35 = vector.load %arg7[%c1_42, %c2_43, %c0_44] : memref<18x18x128xbf16, #tpu.memory_space<vmem>>, vector<16x16x128xbf16>
    %36 = vector.shape_cast %35 : vector<16x16x128xbf16> to vector<256x128xbf16>
    %c0_45 = arith.constant 0 : index
    %c640 = arith.constant 640 : index
    %37 = vector.load %arg8[%c0_45, %c640] : memref<256x1152xbf16, #tpu.memory_space<vmem>>, vector<256x128xbf16>
    tpu.vector_store %arg8[%c0_45, %c640], %36 {strides = array<i32>} : memref<256x1152xbf16, #tpu.memory_space<vmem>>, vector<256x128xbf16>,
    %c2_46 = arith.constant 2 : index
    %c0_47 = arith.constant 0 : index
    %c0_48 = arith.constant 0 : index
    %38 = vector.load %arg7[%c2_46, %c0_47, %c0_48] : memref<18x18x128xbf16, #tpu.memory_space<vmem>>, vector<16x16x128xbf16>
    %39 = vector.shape_cast %38 : vector<16x16x128xbf16> to vector<256x128xbf16>
    %c0_49 = arith.constant 0 : index
    %c768 = arith.constant 768 : index
    %40 = vector.load %arg8[%c0_49, %c768] : memref<256x1152xbf16, #tpu.memory_space<vmem>>, vector<256x128xbf16>
    tpu.vector_store %arg8[%c0_49, %c768], %39 {strides = array<i32>} : memref<256x1152xbf16, #tpu.memory_space<vmem>>, vector<256x128xbf16>,
    %c2_50 = arith.constant 2 : index
    %c1_51 = arith.constant 1 : index
    %c0_52 = arith.constant 0 : index
    %41 = vector.load %arg7[%c2_50, %c1_51, %c0_52] : memref<18x18x128xbf16, #tpu.memory_space<vmem>>, vector<16x16x128xbf16>
    %42 = vector.shape_cast %41 : vector<16x16x128xbf16> to vector<256x128xbf16>
    %c0_53 = arith.constant 0 : index
    %c896 = arith.constant 896 : index
    %43 = vector.load %arg8[%c0_53, %c896] : memref<256x1152xbf16, #tpu.memory_space<vmem>>, vector<256x128xbf16>
    tpu.vector_store %arg8[%c0_53, %c896], %42 {strides = array<i32>} : memref<256x1152xbf16, #tpu.memory_space<vmem>>, vector<256x128xbf16>,
    %c2_54 = arith.constant 2 : index
    %c2_55 = arith.constant 2 : index
    %c0_56 = arith.constant 0 : index
    %44 = vector.load %arg7[%c2_54, %c2_55, %c0_56] : memref<18x18x128xbf16, #tpu.memory_space<vmem>>, vector<16x16x128xbf16>
    %45 = vector.shape_cast %44 : vector<16x16x128xbf16> to vector<256x128xbf16>
    %c0_57 = arith.constant 0 : index
    %c1024 = arith.constant 1024 : index
    %46 = vector.load %arg8[%c0_57, %c1024] : memref<256x1152xbf16, #tpu.memory_space<vmem>>, vector<256x128xbf16>
    tpu.vector_store %arg8[%c0_57, %c1024], %45 {strides = array<i32>} : memref<256x1152xbf16, #tpu.memory_space<vmem>>, vector<256x128xbf16>,
    %c0_58 = arith.constant 0 : index
    %c0_59 = arith.constant 0 : index
    %47 = vector.load %arg8[%c0_58, %c0_59] : memref<256x1152xbf16, #tpu.memory_space<vmem>>, vector<256x1152xbf16>
    %c0_60 = arith.constant 0 : index
    %c0_61 = arith.constant 0 : index
    %48 = vector.load %arg4[%c0_60, %c0_61] : memref<1152x128xbf16, #tpu.memory_space<vmem>>, vector<1152x128xbf16>
    %cst_62 = arith.constant dense<0.000000e+00> : vector<256x128xf32>
    %49 = tpu.matmul %47, %48, %cst_62 {dimension_numbers = #tpu.dot_dimension_numbers<[1], [0], [0], [1], [0, 0, 1, 1], [], []>} : vector<256x1152xbf16>, vector<1152x128xbf16>, vector<256x128xf32> -> vector<256x128xf32>
    %cst_63 = arith.constant dense<0.000000e+00> : vector<128xf32>
    %50 = vector.multi_reduction <add>, %49, %cst_63 [0] : vector<256x128xf32> to vector<128xf32>
    %51 = vector.shape_cast %50 : vector<128xf32> to vector<1x128xf32>
    %c0_64 = arith.constant 0 : index
    %c0_65 = arith.constant 0 : index
    %c0_66 = arith.constant 0 : index
    %52 = vector.load %arg6[%c0_64, %c0_65, %c0_66] : memref<1x2x128xf32, #tpu.memory_space<vmem>>, vector<1x1x128xf32>
    %53 = vector.shape_cast %52 : vector<1x1x128xf32> to vector<1x128xf32>
    %54 = vector.shape_cast %51 : vector<1x128xf32> to vector<1x1x128xf32>
    tpu.vector_store %arg6[%c0_64, %c0_65, %c0_66], %54 {strides = array<i32>} : memref<1x2x128xf32, #tpu.memory_space<vmem>>, vector<1x1x128xf32>,
    %55 = arith.mulf %49, %49 : vector<256x128xf32>
    %cst_67 = arith.constant dense<0.000000e+00> : vector<128xf32>
    %56 = vector.multi_reduction <add>, %55, %cst_67 [0] : vector<256x128xf32> to vector<128xf32>
    %57 = vector.shape_cast %56 : vector<128xf32> to vector<1x128xf32>
    %c0_68 = arith.constant 0 : index
    %c1_69 = arith.constant 1 : index
    %c0_70 = arith.constant 0 : index
    %58 = vector.load %arg6[%c0_68, %c1_69, %c0_70] : memref<1x2x128xf32, #tpu.memory_space<vmem>>, vector<1x1x128xf32>
    %59 = vector.shape_cast %58 : vector<1x1x128xf32> to vector<1x128xf32>
    %60 = vector.shape_cast %57 : vector<1x128xf32> to vector<1x1x128xf32>
    tpu.vector_store %arg6[%c0_68, %c1_69, %c0_70], %60 {strides = array<i32>} : memref<1x2x128xf32, #tpu.memory_space<vmem>>, vector<1x1x128xf32>,
    %61 = vector.shape_cast %49 : vector<256x128xf32> to vector<1x16x16x128xf32>
    %c0_71 = arith.constant 0 : index
    %c0_72 = arith.constant 0 : index
    %c0_73 = arith.constant 0 : index
    %c0_74 = arith.constant 0 : index
    %62 = vector.load %arg5[%c0_71, %c0_72, %c0_73, %c0_74] : memref<1x16x16x128xf32, #tpu.memory_space<vmem>>, vector<1x16x16x128xf32>
    tpu.vector_store %arg5[%c0_71, %c0_72, %c0_73, %c0_74], %61 {strides = array<i32>} : memref<1x16x16x128xf32, #tpu.memory_space<vmem>>, vector<1x16x16x128xf32>,
    return
  }
  func.func @transform_0(%arg0: i32) -> (i32, i32, i32, i32) {
    %c0_i32 = arith.constant 0 : i32
    %c0_i32_0 = arith.constant 0 : i32
    %c0_i32_1 = arith.constant 0 : i32
    %c0_i32_2 = arith.constant 0 : i32
    return %arg0, %c0_i32, %c0_i32_0, %c0_i32_1 : i32, i32, i32, i32
  }
  func.func @transform_1(%arg0: i32) -> (i32, i32) {
    %c0_i32 = arith.constant 0 : i32
    %c0_i32_0 = arith.constant 0 : i32
    %c0_i32_1 = arith.constant 0 : i32
    return %c0_i32, %c0_i32_0 : i32, i32
  }
  func.func @transform_2(%arg0: i32) -> (i32, i32) {
    %c0_i32 = arith.constant 0 : i32
    %c0_i32_0 = arith.constant 0 : i32
    %c0_i32_1 = arith.constant 0 : i32
    return %c0_i32, %c0_i32_0 : i32, i32
  }
  func.func @transform_3(%arg0: i32) -> (i32, i32) {
    %c0_i32 = arith.constant 0 : i32
    %c0_i32_0 = arith.constant 0 : i32
    %c0_i32_1 = arith.constant 0 : i32
    return %c0_i32, %c0_i32_0 : i32, i32
  }
  func.func @transform_4(%arg0: i32) -> (i32, i32, i32, i32) {
    %c0_i32 = arith.constant 0 : i32
    %c0_i32_0 = arith.constant 0 : i32
    %c0_i32_1 = arith.constant 0 : i32
    %c0_i32_2 = arith.constant 0 : i32
    return %arg0, %c0_i32, %c0_i32_0, %c0_i32_1 : i32, i32, i32, i32
  }
  func.func @transform_5(%arg0: i32) -> (i32, i32, i32) {
    %c0_i32 = arith.constant 0 : i32
    %c0_i32_0 = arith.constant 0 : i32
    %c0_i32_1 = arith.constant 0 : i32
    return %arg0, %c0_i32, %c0_i32_0 : i32, i32, i32
  }
}

module attributes {stable_mosaic.version = 11 : i64} {
  func.func @kernel(%arg0: i32, %arg1: memref<1x16x16x128xf32, #tpu.memory_space<vmem>>, %arg2: memref<1x16x16x128xf32, #tpu.memory_space<vmem>>, %arg3: memref<1x128xf32, #tpu.memory_space<vmem>>, %arg4: memref<1x128xf32, #tpu.memory_space<vmem>>, %arg5: memref<1x128xf32, #tpu.memory_space<vmem>>, %arg6: memref<1x128xf32, #tpu.memory_space<vmem>>, %arg7: memref<1x16x16x128xf32, #tpu.memory_space<vmem>>) attributes {dimension_semantics = [#tpu.dimension_semantics<parallel>], iteration_bounds = array<i64: 2>, scalar_prefetch = 0 : i64, scratch_operands = 0 : i64, tpu.core_type = #tpu.core_type<tc>, window_params = [{transform_indices = @transform_0, window_bounds = array<i64: 1, 16, 16, 128>}, {transform_indices = @transform_1, window_bounds = array<i64: 1, 16, 16, 128>}, {pipeline_mode = #tpu.pipeline_mode<synchronous>, transform_indices = @transform_2, window_bounds = array<i64: 1, 128>}, {pipeline_mode = #tpu.pipeline_mode<synchronous>, transform_indices = @transform_3, window_bounds = array<i64: 1, 128>}, {pipeline_mode = #tpu.pipeline_mode<synchronous>, transform_indices = @transform_4, window_bounds = array<i64: 1, 128>}, {pipeline_mode = #tpu.pipeline_mode<synchronous>, transform_indices = @transform_5, window_bounds = array<i64: 1, 128>}, {transform_indices = @transform_6, window_bounds = array<i64: 1, 16, 16, 128>}]} {
    %c0 = arith.constant 0 : index
    %c0_0 = arith.constant 0 : index
    %c0_1 = arith.constant 0 : index
    %c0_2 = arith.constant 0 : index
    %0 = vector.load %arg2[%c0, %c0_0, %c0_1, %c0_2] : memref<1x16x16x128xf32, #tpu.memory_space<vmem>>, vector<1x16x16x128xf32>
    %1 = vector.shape_cast %0 : vector<1x16x16x128xf32> to vector<16x16x128xf32>
    %2 = vector.shape_cast %1 : vector<16x16x128xf32> to vector<256x128xf32>
    %c0_3 = arith.constant 0 : index
    %c0_4 = arith.constant 0 : index
    %3 = vector.load %arg5[%c0_3, %c0_4] : memref<1x128xf32, #tpu.memory_space<vmem>>, vector<1x128xf32>
    %4 = vector.broadcast %3 : vector<1x128xf32> to vector<256x128xf32>
    %5 = arith.mulf %2, %4 : vector<256x128xf32>
    %c0_5 = arith.constant 0 : index
    %c0_6 = arith.constant 0 : index
    %6 = vector.load %arg6[%c0_5, %c0_6] : memref<1x128xf32, #tpu.memory_space<vmem>>, vector<1x128xf32>
    %7 = vector.broadcast %6 : vector<1x128xf32> to vector<256x128xf32>
    %8 = arith.addf %5, %7 : vector<256x128xf32>
    %c0_7 = arith.constant 0 : index
    %c0_8 = arith.constant 0 : index
    %c0_9 = arith.constant 0 : index
    %c0_10 = arith.constant 0 : index
    %9 = vector.load %arg1[%c0_7, %c0_8, %c0_9, %c0_10] : memref<1x16x16x128xf32, #tpu.memory_space<vmem>>, vector<1x16x16x128xf32>
    %10 = vector.shape_cast %9 : vector<1x16x16x128xf32> to vector<16x16x128xf32>
    %11 = vector.shape_cast %10 : vector<16x16x128xf32> to vector<256x128xf32>
    %c0_11 = arith.constant 0 : index
    %c0_12 = arith.constant 0 : index
    %12 = vector.load %arg3[%c0_11, %c0_12] : memref<1x128xf32, #tpu.memory_space<vmem>>, vector<1x128xf32>
    %13 = vector.broadcast %12 : vector<1x128xf32> to vector<256x128xf32>
    %14 = arith.mulf %11, %13 : vector<256x128xf32>
    %c0_13 = arith.constant 0 : index
    %c0_14 = arith.constant 0 : index
    %15 = vector.load %arg4[%c0_13, %c0_14] : memref<1x128xf32, #tpu.memory_space<vmem>>, vector<1x128xf32>
    %16 = vector.broadcast %15 : vector<1x128xf32> to vector<256x128xf32>
    %17 = arith.addf %14, %16 : vector<256x128xf32>
    %18 = arith.addf %17, %8 : vector<256x128xf32>
    %cst = arith.constant 0.000000e+00 : f32
    %19 = vector.broadcast %cst : f32 to vector<256x128xf32>
    %20 = arith.maximumf %18, %19 : vector<256x128xf32>
    %21 = vector.shape_cast %20 : vector<256x128xf32> to vector<1x16x16x128xf32>
    %c0_15 = arith.constant 0 : index
    %c0_16 = arith.constant 0 : index
    %c0_17 = arith.constant 0 : index
    %c0_18 = arith.constant 0 : index
    %22 = vector.load %arg7[%c0_15, %c0_16, %c0_17, %c0_18] : memref<1x16x16x128xf32, #tpu.memory_space<vmem>>, vector<1x16x16x128xf32>
    tpu.vector_store %arg7[%c0_15, %c0_16, %c0_17, %c0_18], %21 {strides = array<i32>} : memref<1x16x16x128xf32, #tpu.memory_space<vmem>>, vector<1x16x16x128xf32>,
    return
  }
  func.func @transform_0(%arg0: i32) -> (i32, i32, i32, i32) {
    %c0_i32 = arith.constant 0 : i32
    %c0_i32_0 = arith.constant 0 : i32
    %c0_i32_1 = arith.constant 0 : i32
    %c0_i32_2 = arith.constant 0 : i32
    return %arg0, %c0_i32, %c0_i32_0, %c0_i32_1 : i32, i32, i32, i32
  }
  func.func @transform_1(%arg0: i32) -> (i32, i32, i32, i32) {
    %c0_i32 = arith.constant 0 : i32
    %c0_i32_0 = arith.constant 0 : i32
    %c0_i32_1 = arith.constant 0 : i32
    %c0_i32_2 = arith.constant 0 : i32
    return %arg0, %c0_i32, %c0_i32_0, %c0_i32_1 : i32, i32, i32, i32
  }
  func.func @transform_2(%arg0: i32) -> (i32, i32) {
    %c0_i32 = arith.constant 0 : i32
    %c0_i32_0 = arith.constant 0 : i32
    %c0_i32_1 = arith.constant 0 : i32
    return %c0_i32, %c0_i32_0 : i32, i32
  }
  func.func @transform_3(%arg0: i32) -> (i32, i32) {
    %c0_i32 = arith.constant 0 : i32
    %c0_i32_0 = arith.constant 0 : i32
    %c0_i32_1 = arith.constant 0 : i32
    return %c0_i32, %c0_i32_0 : i32, i32
  }
  func.func @transform_4(%arg0: i32) -> (i32, i32) {
    %c0_i32 = arith.constant 0 : i32
    %c0_i32_0 = arith.constant 0 : i32
    %c0_i32_1 = arith.constant 0 : i32
    return %c0_i32, %c0_i32_0 : i32, i32
  }
  func.func @transform_5(%arg0: i32) -> (i32, i32) {
    %c0_i32 = arith.constant 0 : i32
    %c0_i32_0 = arith.constant 0 : i32
    %c0_i32_1 = arith.constant 0 : i32
    return %c0_i32, %c0_i32_0 : i32, i32
  }
  func.func @transform_6(%arg0: i32) -> (i32, i32, i32, i32) {
    %c0_i32 = arith.constant 0 : i32
    %c0_i32_0 = arith.constant 0 : i32
    %c0_i32_1 = arith.constant 0 : i32
    %c0_i32_2 = arith.constant 0 : i32
    return %arg0, %c0_i32, %c0_i32_0, %c0_i32_1 : i32, i32, i32, i32
  }
}

</mosaic_0001>

<bundles_post_ra>
// kernel: basic_block_forward.5
= control target key start
LH: loop header
LB: loop body
LE: loop exit
PB: predicated region body
PF: predicated region fallthrough
CT: control target
= control target key end

     0   :  { %s726_s21 = smov 0   ;;  %s1001_s0 = inlined_call_operand.vmem [shape: f32[2,16,16,128], index: 0, kind: input, shape index: {}]   ;;  %s1002_s1 = inlined_call_operand.vmem [shape: f32[2,16,16,128], index: 1, kind: input, shape index: {}]   ;;  %s1003_s2 = inlined_call_operand.vmem [shape: f32[1,128], index: 2, kind: input, shape index: {}]   ;;  %s1004_s3 = inlined_call_operand.vmem [shape: f32[1,128], index: 3, kind: input, shape index: {}]   ;;  %s1005_s4 = inlined_call_operand.vmem [shape: f32[1,128], index: 4, kind: input, shape index: {}]   ;;  %s1006_s5 = inlined_call_operand.vmem [shape: f32[1,128], index: 5, kind: input, shape index: {}]   ;;  %s1007_s6 = inlined_call_operand.vmem [shape: f32[2,16,16,128], index: 6, kind: output, shape index: {}]  }
   0x1 LB: > { %s655_s22 = sadd.s32 4294967295, %s689_s21   ;;  %p659_p0 = scmp.ge.s32.totalorder %s689_s21, 1  ;;  %s689_s21 = sphi %s726_s21, %s16_s21  }
   0x2   : > { %p222_p1 = scmp.lt.s32.totalorder %s689_s21, 3 }
   0x4   : > { %p223_p2 = pnand %p659_p0, %p222_p1 }
   0x5   : > { %p257_p3 = scmp.lt.s32.totalorder (!%p223_p2), %s655_s22, 1  ;;  %v739_v0 = vld [vmem:[%s1005_s4] ss:$0 sm:$0xff] (!%p223_p2) }
   0x6   : > { %226 = sbr.rel (%p223_p2) target bundleno = 71 (0x47), region = 44  ;;  %v744_v1 = vld [vmem:[%s1003_s2] ss:$0 sm:$0xff] (!%p223_p2) }
   0x7   : > { %v761_v2 = vld [vmem:[%s1006_s5] ss:$0 sm:$0xff] (!%p223_p2) }
   0x8   : > { %v766_v3 = vld [vmem:[%s1004_s3] ss:$0 sm:$0xff] (!%p223_p2) }
   0xd   : > { %s1009_s22 = smov (!%p257_p3, %s655_s22), 1 }
   0xe   : > { %s734_s23 = sshll.u32 %s1009_s22, 8 }
   0xf   : > { %s750_s30 = scalar_lea.vmem %s1001_s0, %s734_s23  ;;  %s756_s9 = scalar_lea.vmem %s1002_s1, %s734_s23 }
  0x10   : > { %v272_v4 = vld [vmem:[%s756_s9] sm:$0xff]  ;;  %v273_v6 = vld [vmem:[%s756_s9 + $0x8] sm:$0xff]  ;;  %v274_v11 = vld [vmem:[%s756_s9 + $0x10] sm:$0xff]  ;;  %s801_s16 = scalar_lea.vmem %s1007_s6, %s734_s23 }
  0x11   : > { %v382_v5 = vld [vmem:[%s750_s30] sm:$0xff]  ;;  %v311_v7 = vmul.f32 %v739_v0, %v272_v4  ;;  %v312_v9 = vmul.f32 %v739_v0, %v273_v6  ;;  %v383_v10 = vld [vmem:[%s750_s30 + $0x8] sm:$0xff]  ;;  %v384_v12 = vld [vmem:[%s750_s30 + $0x10] sm:$0xff]  ;;  %v313_v14 = vmul.f32 %v739_v0, %v274_v11 }
  0x12   : > { %v421_v8 = vmul.f32 %v744_v1, %v382_v5  ;;  %v422_v13 = vmul.f32 %v744_v1, %v383_v10  ;;  %v423_v15 = vmul.f32 %v744_v1, %v384_v12  ;;  %v275_v16 = vld [vmem:[%s756_s9 + $0x18] sm:$0xff]  ;;  %v276_v18 = vld [vmem:[%s756_s9 + $0x20] sm:$0xff]  ;;  %v277_v24 = vld [vmem:[%s756_s9 + $0x28] sm:$0xff] }
  0x13   : > { %v385_v17 = vld [vmem:[%s750_s30 + $0x18] sm:$0xff]  ;;  %v350_v19 = vadd.f32 %v761_v2, %v311_v7  ;;  %v351_v21 = vadd.f32 %v761_v2, %v312_v9  ;;  %v314_v22 = vmul.f32 %v739_v0, %v275_v16  ;;  %v386_v23 = vld [vmem:[%s750_s30 + $0x20] sm:$0xff]  ;;  %v352_v26 = vadd.f32 %v761_v2, %v313_v14  ;;  %v387_v29 = vld [vmem:[%s750_s30 + $0x28] sm:$0xff] }
  0x14   : > { %v460_v20 = vadd.f32 %v766_v3, %v421_v8  ;;  %v461_v25 = vadd.f32 %v766_v3, %v422_v13  ;;  %v462_v27 = vadd.f32 %v766_v3, %v423_v15  ;;  %v424_v28 = vmul.f32 %v744_v1, %v385_v17  ;;  %v278_v38 = vld [vmem:[%s756_s9 + $0x30] sm:$0xff]  ;;  %v279_v44 = vld [vmem:[%s756_s9 + $0x38] sm:$0xff]  ;;  %v280_v46 = vld [vmem:[%s756_s9 + $0x40] sm:$0xff] }
  0x15   : > { %v353_v31 = vadd.f32 %v761_v2, %v314_v22  ;;  %v315_v32 = vmul.f32 %v739_v0, %v276_v18  ;;  %v425_v33 = vmul.f32 %v744_v1, %v386_v23  ;;  %v316_v37 = vmul.f32 %v739_v0, %v277_v24  ;;  %v388_v39 = vld [vmem:[%s750_s30 + $0x30] sm:$0xff]  ;;  %v389_v45 = vld [vmem:[%s750_s30 + $0x38] sm:$0xff]  ;;  %v390_v55 = vld [vmem:[%s750_s30 + $0x40] sm:$0xff] }
  0x16   : > { %v492_v30 = vadd.f32 %v460_v20, %v350_v19  ;;  %v493_v34 = vadd.f32 %v461_v25, %v351_v21  ;;  %v494_v35 = vadd.f32 %v462_v27, %v352_v26  ;;  %v463_v36 = vadd.f32 %v766_v3, %v424_v28  ;;  %v281_v60 = vld [vmem:[%s756_s9 + $0x48] sm:$0xff]  ;;  %v282_v6 = vld [vmem:[%s756_s9 + $0x50] sm:$0xff]  ;;  %v283_v12 = vld [vmem:[%s756_s9 + $0x58] sm:$0xff] }
  0x17   : > { %v354_v41 = vadd.f32 %v761_v2, %v315_v32  ;;  %v464_v42 = vadd.f32 %v766_v3, %v425_v33  ;;  %v426_v43 = vmul.f32 %v744_v1, %v387_v29  ;;  %v355_v50 = vadd.f32 %v761_v2, %v316_v37  ;;  %v391_v61 = vld [vmem:[%s750_s30 + $0x48] sm:$0xff]  ;;  %v392_v7 = vld [vmem:[%s750_s30 + $0x50] sm:$0xff]  ;;  %v393_v21 = vld [vmem:[%s750_s30 + $0x58] sm:$0xff] }
  0x18   : > { %v524_v40 = vmax.f32 %v492_v30, 0.0  ;;  %v525_v47 = vmax.f32 %v493_v34, 0.0  ;;  %v526_v48 = vmax.f32 %v494_v35, 0.0  ;;  %v495_v49 = vadd.f32 %v463_v36, %v353_v31  ;;  %v284_v22 = vld [vmem:[%s756_s9 + $0x60] sm:$0xff]  ;;  %v285_v28 = vld [vmem:[%s756_s9 + $0x68] sm:$0xff] }
  0x19   : > { %v496_v51 = vadd.f32 %v464_v42, %v354_v41  ;;  %v465_v52 = vadd.f32 %v766_v3, %v426_v43  ;;  %v317_v53 = vmul.f32 %v739_v0, %v278_v38  ;;  %v427_v54 = vmul.f32 %v744_v1, %v388_v39  ;;  %v394_v27 = vld [vmem:[%s750_s30 + $0x60] sm:$0xff]  ;;  %v395_v33 = vld [vmem:[%s750_s30 + $0x68] sm:$0xff]  ;;  %v286_v38 = vld [vmem:[%s756_s9 + $0x70] sm:$0xff] }
  0x1a   : > { %556 = vst [vmem:[%s801_s16] sm:$0xff] %v524_v40  ;;  %557 = vst [vmem:[%s801_s16 + $0x8] sm:$0xff] %v525_v47  ;;  %v527_v56 = vmax.f32 %v495_v49, 0.0  ;;  %v318_v57 = vmul.f32 %v739_v0, %v279_v44  ;;  %v428_v58 = vmul.f32 %v744_v1, %v389_v45  ;;  %v319_v59 = vmul.f32 %v739_v0, %v280_v46  ;;  %v396_v43 = vld [vmem:[%s750_s30 + $0x70] sm:$0xff]  ;;  %v287_v44 = vld [vmem:[%s756_s9 + $0x78] sm:$0xff] }
  0x1b   : > { %558 = vst [vmem:[%s801_s16 + $0x10] sm:$0xff] %v526_v48  ;;  %v528_v62 = vmax.f32 %v496_v51, 0.0  ;;  %v497_v63 = vadd.f32 %v465_v52, %v355_v50  ;;  %v356_v4 = vadd.f32 %v761_v2, %v317_v53  ;;  %v466_v5 = vadd.f32 %v766_v3, %v427_v54  ;;  %v397_v49 = vld [vmem:[%s750_s30 + $0x78] sm:$0xff]  ;;  %v288_v50 = vld [vmem:[%s756_s9 + $0x80] sm:$0xff] }
  0x1c   : > { %559 = vst [vmem:[%s801_s16 + $0x18] sm:$0xff] %v527_v56  ;;  %v357_v8 = vadd.f32 %v761_v2, %v318_v57  ;;  %v467_v9 = vadd.f32 %v766_v3, %v428_v58  ;;  %v358_v10 = vadd.f32 %v761_v2, %v319_v59  ;;  %v429_v11 = vmul.f32 %v744_v1, %v390_v55  ;;  %v398_v59 = vld [vmem:[%s750_s30 + $0x80] sm:$0xff] }
  0x1d   : > { %560 = vst [vmem:[%s801_s16 + $0x20] sm:$0xff] %v528_v62  ;;  %v529_v13 = vmax.f32 %v497_v63, 0.0  ;;  %v498_v14 = vadd.f32 %v466_v5, %v356_v4  ;;  %v320_v15 = vmul.f32 %v739_v0, %v281_v60  ;;  %v430_v16 = vmul.f32 %v744_v1, %v391_v61  ;;  %v289_v4 = vld [vmem:[%s756_s9 + $0x88] sm:$0xff] }
  0x1e   : > { %v499_v17 = vadd.f32 %v467_v9, %v357_v8  ;;  %v468_v18 = vadd.f32 %v766_v3, %v429_v11  ;;  %v321_v19 = vmul.f32 %v739_v0, %v282_v6  ;;  %v431_v20 = vmul.f32 %v744_v1, %v392_v7  ;;  %v399_v5 = vld [vmem:[%s750_s30 + $0x88] sm:$0xff]  ;;  %v400_v11 = vld [vmem:[%s750_s30 + $0x90] sm:$0xff] }
  0x1f   : > { %561 = vst [vmem:[%s801_s16 + $0x28] sm:$0xff] %v529_v13  ;;  %v530_v23 = vmax.f32 %v498_v14, 0.0  ;;  %v359_v24 = vadd.f32 %v761_v2, %v320_v15  ;;  %v469_v25 = vadd.f32 %v766_v3, %v430_v16  ;;  %v322_v26 = vmul.f32 %v739_v0, %v283_v12  ;;  %v291_v16 = vld [vmem:[%s756_s9 + $0x98] sm:$0xff] }
  0x20   : > { %v531_v29 = vmax.f32 %v499_v17, 0.0  ;;  %v500_v30 = vadd.f32 %v468_v18, %v358_v10  ;;  %v360_v31 = vadd.f32 %v761_v2, %v321_v19  ;;  %v470_v32 = vadd.f32 %v766_v3, %v431_v20  ;;  %v290_v10 = vld [vmem:[%s756_s9 + $0x90] sm:$0xff] }
  0x21   : > { %562 = vst [vmem:[%s801_s16 + $0x30] sm:$0xff] %v530_v23  ;;  %v501_v34 = vadd.f32 %v469_v25, %v359_v24  ;;  %v361_v35 = vadd.f32 %v761_v2, %v322_v26  ;;  %v432_v36 = vmul.f32 %v744_v1, %v393_v21  ;;  %v323_v37 = vmul.f32 %v739_v0, %v284_v22  ;;  %v401_v25 = vld [vmem:[%s750_s30 + $0x98] sm:$0xff]  ;;  %v292_v26 = vld [vmem:[%s756_s9 + $0xa0] sm:$0xff] }
  0x22   : > { %563 = vst [vmem:[%s801_s16 + $0x38] sm:$0xff] %v531_v29  ;;  %v532_v39 = vmax.f32 %v500_v30, 0.0  ;;  %v502_v40 = vadd.f32 %v470_v32, %v360_v31  ;;  %v433_v41 = vmul.f32 %v744_v1, %v394_v27  ;;  %v324_v42 = vmul.f32 %v739_v0, %v285_v28  ;;  %v402_v31 = vld [vmem:[%s750_s30 + $0xa0] sm:$0xff]  ;;  %v293_v32 = vld [vmem:[%s756_s9 + $0xa8] sm:$0xff] }
  0x23   : > { %v533_v45 = vmax.f32 %v501_v34, 0.0  ;;  %v471_v46 = vadd.f32 %v766_v3, %v432_v36  ;;  %v362_v47 = vadd.f32 %v761_v2, %v323_v37  ;;  %v434_v48 = vmul.f32 %v744_v1, %v395_v33  ;;  %v403_v37 = vld [vmem:[%s750_s30 + $0xa8] sm:$0xff] }
  0x24   : > { %564 = vst [vmem:[%s801_s16 + $0x40] sm:$0xff] %v532_v39  ;;  %v534_v51 = vmax.f32 %v502_v40, 0.0  ;;  %v472_v52 = vadd.f32 %v766_v3, %v433_v41  ;;  %v363_v53 = vadd.f32 %v761_v2, %v324_v42  ;;  %v325_v54 = vmul.f32 %v739_v0, %v286_v38  ;;  %v294_v42 = vld [vmem:[%s756_s9 + $0xb0] sm:$0xff] }
  0x25   : > { %565 = vst [vmem:[%s801_s16 + $0x48] sm:$0xff] %v533_v45  ;;  %v503_v55 = vadd.f32 %v471_v46, %v361_v35  ;;  %v473_v56 = vadd.f32 %v766_v3, %v434_v48  ;;  %v435_v57 = vmul.f32 %v744_v1, %v396_v43  ;;  %v326_v58 = vmul.f32 %v739_v0, %v287_v44  ;;  %v295_v48 = vld [vmem:[%s756_s9 + $0xb8] sm:$0xff] }
  0x26   : > { %566 = vst [vmem:[%s801_s16 + $0x50] sm:$0xff] %v534_v51  ;;  %v504_v60 = vadd.f32 %v472_v52, %v362_v47  ;;  %v364_v61 = vadd.f32 %v761_v2, %v325_v54  ;;  %v436_v62 = vmul.f32 %v744_v1, %v397_v49  ;;  %v327_v63 = vmul.f32 %v739_v0, %v288_v50  ;;  %v404_v47 = vld [vmem:[%s750_s30 + $0xb0] sm:$0xff]  ;;  %v296_v54 = vld [vmem:[%s756_s9 + $0xc0] sm:$0xff] }
  0x27   : > { %v535_v6 = vmax.f32 %v503_v55, 0.0  ;;  %v505_v7 = vadd.f32 %v473_v56, %v363_v53  ;;  %v474_v8 = vadd.f32 %v766_v3, %v435_v57  ;;  %v365_v9 = vadd.f32 %v761_v2, %v326_v58  ;;  %v405_v53 = vld [vmem:[%s750_s30 + $0xb8] sm:$0xff] }
  0x28   : > { %v536_v12 = vmax.f32 %v504_v60, 0.0  ;;  %v475_v13 = vadd.f32 %v766_v3, %v436_v62  ;;  %v366_v14 = vadd.f32 %v761_v2, %v327_v63  ;;  %v437_v15 = vmul.f32 %v744_v1, %v398_v59  ;;  %v406_v63 = vld [vmem:[%s750_s30 + $0xc0] sm:$0xff] }
  0x29   : > { %567 = vst [vmem:[%s801_s16 + $0x58] sm:$0xff] %v535_v6  ;;  %v537_v17 = vmax.f32 %v505_v7, 0.0  ;;  %v506_v18 = vadd.f32 %v474_v8, %v364_v61  ;;  %v328_v19 = vmul.f32 %v739_v0, %v289_v4  ;;  %v438_v20 = vmul.f32 %v744_v1, %v399_v5  ;;  %v297_v8 = vld [vmem:[%s756_s9 + $0xc8] sm:$0xff] }
  0x2a   : > { %568 = vst [vmem:[%s801_s16 + $0x60] sm:$0xff] %v536_v12  ;;  %v507_v21 = vadd.f32 %v475_v13, %v365_v9  ;;  %v476_v22 = vadd.f32 %v766_v3, %v437_v15  ;;  %v329_v23 = vmul.f32 %v739_v0, %v290_v10  ;;  %v439_v24 = vmul.f32 %v744_v1, %v400_v11  ;;  %v407_v9 = vld [vmem:[%s750_s30 + $0xc8] sm:$0xff]  ;;  %v408_v15 = vld [vmem:[%s750_s30 + $0xd0] sm:$0xff] }
  0x2b   : > { %569 = vst [vmem:[%s801_s16 + $0x68] sm:$0xff] %v537_v17  ;;  %v538_v27 = vmax.f32 %v506_v18, 0.0  ;;  %v367_v28 = vadd.f32 %v761_v2, %v328_v19  ;;  %v477_v29 = vadd.f32 %v766_v3, %v438_v20  ;;  %v330_v30 = vmul.f32 %v739_v0, %v291_v16  ;;  %v299_v20 = vld [vmem:[%s756_s9 + $0xd8] sm:$0xff] }
  0x2c   : > { %v539_v33 = vmax.f32 %v507_v21, 0.0  ;;  %v508_v34 = vadd.f32 %v476_v22, %v366_v14  ;;  %v368_v35 = vadd.f32 %v761_v2, %v329_v23  ;;  %v478_v36 = vadd.f32 %v766_v3, %v439_v24  ;;  %v298_v14 = vld [vmem:[%s756_s9 + $0xd0] sm:$0xff] }
  0x2d   : > { %570 = vst [vmem:[%s801_s16 + $0x70] sm:$0xff] %v538_v27  ;;  %v509_v38 = vadd.f32 %v477_v29, %v367_v28  ;;  %v369_v39 = vadd.f32 %v761_v2, %v330_v30  ;;  %v440_v40 = vmul.f32 %v744_v1, %v401_v25  ;;  %v331_v41 = vmul.f32 %v739_v0, %v292_v26  ;;  %v409_v29 = vld [vmem:[%s750_s30 + $0xd8] sm:$0xff]  ;;  %v300_v30 = vld [vmem:[%s756_s9 + $0xe0] sm:$0xff] }
  0x2e   : > { %571 = vst [vmem:[%s801_s16 + $0x78] sm:$0xff] %v539_v33  ;;  %v540_v43 = vmax.f32 %v508_v34, 0.0  ;;  %v510_v44 = vadd.f32 %v478_v36, %v368_v35  ;;  %v441_v45 = vmul.f32 %v744_v1, %v402_v31  ;;  %v332_v46 = vmul.f32 %v739_v0, %v293_v32  ;;  %v410_v35 = vld [vmem:[%s750_s30 + $0xe0] sm:$0xff]  ;;  %v301_v36 = vld [vmem:[%s756_s9 + $0xe8] sm:$0xff] }
  0x2f   : > { %v541_v49 = vmax.f32 %v509_v38, 0.0  ;;  %v479_v50 = vadd.f32 %v766_v3, %v440_v40  ;;  %v370_v51 = vadd.f32 %v761_v2, %v331_v41  ;;  %v442_v52 = vmul.f32 %v744_v1, %v403_v37  ;;  %v411_v41 = vld [vmem:[%s750_s30 + $0xe8] sm:$0xff] }
  0x30   : > { %572 = vst [vmem:[%s801_s16 + $0x80] sm:$0xff] %v540_v43  ;;  %v542_v55 = vmax.f32 %v510_v44, 0.0  ;;  %v480_v56 = vadd.f32 %v766_v3, %v441_v45  ;;  %v371_v57 = vadd.f32 %v761_v2, %v332_v46  ;;  %v333_v58 = vmul.f32 %v739_v0, %v294_v42  ;;  %v302_v46 = vld [vmem:[%s756_s9 + $0xf0] sm:$0xff] }
  0x31   : > { %573 = vst [vmem:[%s801_s16 + $0x88] sm:$0xff] %v541_v49  ;;  %v511_v59 = vadd.f32 %v479_v50, %v369_v39  ;;  %v481_v60 = vadd.f32 %v766_v3, %v442_v52  ;;  %v443_v61 = vmul.f32 %v744_v1, %v404_v47  ;;  %v334_v62 = vmul.f32 %v739_v0, %v295_v48  ;;  %v303_v52 = vld [vmem:[%s756_s9 + $0xf8] sm:$0xff] }
  0x32   : > { %574 = vst [vmem:[%s801_s16 + $0x90] sm:$0xff] %v542_v55  ;;  %v512_v4 = vadd.f32 %v480_v56, %v370_v51  ;;  %v372_v5 = vadd.f32 %v761_v2, %v333_v58  ;;  %v444_v6 = vmul.f32 %v744_v1, %v405_v53  ;;  %v335_v7 = vmul.f32 %v739_v0, %v296_v54  ;;  %v412_v51 = vld [vmem:[%s750_s30 + $0xf0] sm:$0xff] }
  0x33   : > { %v543_v10 = vmax.f32 %v511_v59, 0.0  ;;  %v513_v11 = vadd.f32 %v481_v60, %v371_v57  ;;  %v482_v12 = vadd.f32 %v766_v3, %v443_v61  ;;  %v373_v13 = vadd.f32 %v761_v2, %v334_v62  ;;  %v413_v57 = vld [vmem:[%s750_s30 + $0xf8] sm:$0xff] }
  0x34   : > { %v544_v16 = vmax.f32 %v512_v4, 0.0  ;;  %v483_v17 = vadd.f32 %v766_v3, %v444_v6  ;;  %v374_v18 = vadd.f32 %v761_v2, %v335_v7  ;;  %v445_v19 = vmul.f32 %v744_v1, %v406_v63 }
  0x35   : > { %575 = vst [vmem:[%s801_s16 + $0x98] sm:$0xff] %v543_v10  ;;  %v545_v21 = vmax.f32 %v513_v11, 0.0  ;;  %v514_v22 = vadd.f32 %v482_v12, %v372_v5  ;;  %v336_v23 = vmul.f32 %v739_v0, %v297_v8  ;;  %v446_v24 = vmul.f32 %v744_v1, %v407_v9 }
  0x36   : > { %576 = vst [vmem:[%s801_s16 + $0xa0] sm:$0xff] %v544_v16  ;;  %v515_v25 = vadd.f32 %v483_v17, %v373_v13  ;;  %v484_v26 = vadd.f32 %v766_v3, %v445_v19  ;;  %v337_v27 = vmul.f32 %v739_v0, %v298_v14  ;;  %v447_v28 = vmul.f32 %v744_v1, %v408_v15 }
  0x37   : > { %577 = vst [vmem:[%s801_s16 + $0xa8] sm:$0xff] %v545_v21  ;;  %v546_v31 = vmax.f32 %v514_v22, 0.0  ;;  %v375_v32 = vadd.f32 %v761_v2, %v336_v23  ;;  %v485_v33 = vadd.f32 %v766_v3, %v446_v24  ;;  %v338_v34 = vmul.f32 %v739_v0, %v299_v20 }
  0x38   : > { %v547_v37 = vmax.f32 %v515_v25, 0.0  ;;  %v516_v38 = vadd.f32 %v484_v26, %v374_v18  ;;  %v376_v39 = vadd.f32 %v761_v2, %v337_v27  ;;  %v486_v40 = vadd.f32 %v766_v3, %v447_v28 }
  0x39   : > { %578 = vst [vmem:[%s801_s16 + $0xb0] sm:$0xff] %v546_v31  ;;  %v517_v42 = vadd.f32 %v485_v33, %v375_v32  ;;  %v377_v43 = vadd.f32 %v761_v2, %v338_v34  ;;  %v448_v44 = vmul.f32 %v744_v1, %v409_v29  ;;  %v339_v45 = vmul.f32 %v739_v0, %v300_v30 }
  0x3a   : > { %579 = vst [vmem:[%s801_s16 + $0xb8] sm:$0xff] %v547_v37  ;;  %v548_v47 = vmax.f32 %v516_v38, 0.0  ;;  %v518_v48 = vadd.f32 %v486_v40, %v376_v39  ;;  %v449_v49 = vmul.f32 %v744_v1, %v410_v35  ;;  %v340_v50 = vmul.f32 %v739_v0, %v301_v36 }
  0x3b   : > { %v549_v53 = vmax.f32 %v517_v42, 0.0  ;;  %v487_v54 = vadd.f32 %v766_v3, %v448_v44  ;;  %v378_v55 = vadd.f32 %v761_v2, %v339_v45  ;;  %v450_v56 = vmul.f32 %v744_v1, %v411_v41 }
  0x3c   : > { %580 = vst [vmem:[%s801_s16 + $0xc0] sm:$0xff] %v548_v47  ;;  %v550_v58 = vmax.f32 %v518_v48, 0.0  ;;  %v488_v59 = vadd.f32 %v766_v3, %v449_v49  ;;  %v379_v60 = vadd.f32 %v761_v2, %v340_v50  ;;  %v341_v61 = vmul.f32 %v739_v0, %v302_v46 }
  0x3d   : > { %581 = vst [vmem:[%s801_s16 + $0xc8] sm:$0xff] %v549_v53  ;;  %v519_v62 = vadd.f32 %v487_v54, %v377_v43  ;;  %v489_v63 = vadd.f32 %v766_v3, %v450_v56  ;;  %v451_v4 = vmul.f32 %v744_v1, %v412_v51  ;;  %v342_v5 = vmul.f32 %v739_v0, %v303_v52 }
  0x3e   : > { %582 = vst [vmem:[%s801_s16 + $0xd0] sm:$0xff] %v550_v58  ;;  %v520_v6 = vadd.f32 %v488_v59, %v378_v55  ;;  %v380_v7 = vadd.f32 %v761_v2, %v341_v61  ;;  %v452_v8 = vmul.f32 %v744_v1, %v413_v57 }
  0x3f   : > { %v551_v9 = vmax.f32 %v519_v62, 0.0  ;;  %v521_v10 = vadd.f32 %v489_v63, %v379_v60  ;;  %v490_v11 = vadd.f32 %v766_v3, %v451_v4  ;;  %v381_v12 = vadd.f32 %v761_v2, %v342_v5 }
  0x40   : > { %v552_v13 = vmax.f32 %v520_v6, 0.0  ;;  %v491_v14 = vadd.f32 %v766_v3, %v452_v8 }
  0x41   : > { %583 = vst [vmem:[%s801_s16 + $0xd8] sm:$0xff] %v551_v9  ;;  %v553_v0 = vmax.f32 %v521_v10, 0.0  ;;  %v522_v15 = vadd.f32 %v490_v11, %v380_v7 }
  0x42   : > { %584 = vst [vmem:[%s801_s16 + $0xe0] sm:$0xff] %v552_v13  ;;  %v523_v16 = vadd.f32 %v491_v14, %v381_v12 }
  0x43   : > { %585 = vst [vmem:[%s801_s16 + $0xe8] sm:$0xff] %v553_v0  ;;  %v554_v17 = vmax.f32 %v522_v15, 0.0 }
  0x44   : > { %v555_v18 = vmax.f32 %v523_v16, 0.0 }
  0x45   : > { %586 = vst [vmem:[%s801_s16 + $0xf0] sm:$0xff] %v554_v17 }
  0x46   : > { %587 = vst [vmem:[%s801_s16 + $0xf8] sm:$0xff] %v555_v18 }
  0x47 PF: > { %s16_s21 = sadd.s32 1, %s689_s21  }
  0x48   : > { %p13_p4 = scmp.ge.s32.totalorder %s16_s21, 4  }
  0x4a   :  { %15 = sbr.rel (!%p13_p4) target bundleno = 1 (0x1), region = 77 }

// kernel: basic_block_forward.4
= control target key start
LH: loop header
LB: loop body
LE: loop exit
PB: predicated region body
PF: predicated region fallthrough
CT: control target
= control target key end

     0   :  { %s6662_s18 = smov 0   ;;  %s8453_s0 = inlined_call_operand.vmem [shape: f32[2,16,16,128], index: 0, kind: input, shape index: {}]   ;;  %s8454_s1 = inlined_call_operand.vmem [shape: f32[1,128], index: 1, kind: input, shape index: {}]   ;;  %s8455_s2 = inlined_call_operand.vmem [shape: f32[1,128], index: 2, kind: input, shape index: {}]   ;;  %s8456_s3 = inlined_call_operand.vmem [shape: bf16[1152,128], index: 3, kind: input, shape index: {}]   ;;  %s8457_s4 = inlined_call_operand.vmem [shape: f32[2,16,16,128], index: 4, kind: output, shape index: {0}]   ;;  %s8458_s5 = inlined_call_operand.vmem [shape: f32[2,2,128], index: 5, kind: output, shape index: {1}]  }
   0x1 LB: > { %s5610_s19 = sadd.s32 4294967295, %s6629_s18   ;;  %p5614_p0 = scmp.ge.s32.totalorder %s6629_s18, 1  ;;  %s6629_s18 = sphi %s6662_s18, %s16_s18  }
   0x2   : > { %p190_p1 = scmp.lt.s32.totalorder %s6629_s18, 3 }
   0x4   : > { %p191_p2 = pnand %p5614_p0, %p190_p1 }
   0x6   : > { %194 = sbr.rel (%p191_p2) target bundleno = 665 (0x299), region = 36 }
   0xd   : > { %v6499_v0 = vld [vmem:[%s8456_s3 + $0x40] sm:$0xff]   ;;  %v6631_v2 = vmov 0   ;;  %v6501_v3 = vld [vmem:[%s8456_s3 + $0x48] sm:$0xff]   ;;  %v6503_v5 = vld [vmem:[%s8456_s3 + $0x50] sm:$0xff]   ;;  %p222_p3 = scmp.lt.s32.totalorder %s5610_s19, 1  ;;  %vm403_vm0 = vcmask 1040384  }
   0xe   : > { %v6500_v1 = vld [vmem:[%s8456_s3] sm:$0xff]   ;;  %395 = vst [vmem:[#allocation2] sm:$0xf] %v6631_v2  ;;  %396 = vst [vmem:[#allocation2 + $0x4] sm:$0xf] %v6631_v2  ;;  %5954 = vmatprep.subr.bf16.mxu0 %v6499_v0  ;;  %6474 = vmatprep.subr.bf16.mxu1 %v6499_v0  ;;  %v6502_v4 = vld [vmem:[%s8456_s3 + $0x8] sm:$0xff]  }
   0xf   : > { %397 = vst [vmem:[#allocation2 + $0x8] sm:$0x1] %v6631_v2  ;;  %399 = vst [vmem:[#allocation2 + $0xcc] sm:$0xf] %v6631_v2  ;;  %5955 = vmatpush3.bf16.msra.mxu0 %v6500_v1  ;;  %6482 = vmatpush3.bf16.msra.mxu1 %v6500_v1  ;;  %v6504_v6 = vld [vmem:[%s8456_s3 + $0x10] sm:$0xff]   ;;  %v6505_v7 = vld [vmem:[%s8456_s3 + $0x58] sm:$0xff]  }
  0x10   : > { %400 = vst [vmem:[#allocation2 + $0xd0] sm:$0xf] %v6631_v2  ;;  %401 = vst [vmem:[#allocation2 + $0xd4] sm:$0x1] %v6631_v2  ;;  %5956 = vmatprep.subr.bf16.mxu0 %v6501_v3  ;;  %6475 = vmatprep.subr.bf16.mxu1 %v6501_v3  ;;  %s8508_s19 = smov (!%p222_p3, %s5610_s19), 1  ;;  %v6506_v8 = vld [vmem:[%s8456_s3 + $0x18] sm:$0xff]  }
  0x11   : > { %v6507_v9 = vld [vmem:[%s8456_s3 + $0x60] sm:$0xff]   ;;  %s5920_s13 = sshll.u32 %s8508_s19, 8  ;;  %v6509_v11 = vld [vmem:[%s8456_s3 + $0x68] sm:$0xff]   ;;  %vm1212_vm1 = vsmask.f32 3328  ;;  %v6511_v25 = vld [vmem:[%s8456_s3 + $0x70] sm:$0xff]  }
  0x12   : > { %v6508_v10 = vld [vmem:[%s8456_s3 + $0x20] sm:$0xff]   ;;  %s6715_s22 = scalar_lea.vmem %s8453_s0, %s5920_s13  ;;  %vm1213_vm2 = vsmask.f32 7440  ;;  %v6510_v17 = vld [vmem:[%s8456_s3 + $0x28] sm:$0xff]   ;;  %v6512_v29 = vld [vmem:[%s8456_s3 + $0x30] sm:$0xff]   ;;  %vm906_vm9 = vcmask 1043456   ;;  %s8362_s7 = scalar_lea.vmem %s8457_s4, %s5920_s13 }
  0x13   : > { %5957 = vmatpush3.bf16.msra.mxu0 %v6502_v4  ;;  %6483 = vmatpush3.bf16.msra.mxu1 %v6502_v4  ;;  %v259_v23 = vld [vmem:[%s6715_s22 + $0xb0] sm:$0xff]  ;;  %v260_v24 = vld [vmem:[%s6715_s22 + $0xb8] sm:$0xff]  ;;  %v6728_v28 = vld [vmem:[%s8454_s1] ss:$0 sm:$0xff]  ;;  %vm404_vm4 = vsmask.f32 256 }
  0x14   : > { %5958 = vmatprep.subr.bf16.mxu0 %v6503_v5  ;;  %6476 = vmatprep.subr.bf16.mxu1 %v6503_v5  ;;  %vm6735_vm3 = vmor %vm1212_vm1, %vm1213_vm2  ;;  %v298_v32 = vmul.f32 %v6728_v28, %v259_v23  ;;  %v299_v33 = vmul.f32 %v6728_v28, %v260_v24  ;;  %v6744_v34 = vld [vmem:[%s8455_s2] ss:$0 sm:$0xff]  ;;  %v439_v35 = vld [vmem:[#allocation2 + $0x90] sm:$0x1]  ;;  %vm454_vm6 = vsmask.f32 7938 }
  0x15   : > { %v1164_v12 = vld [vmem:[#allocation2] sm:$0xf]  ;;  %v1165_v13 = vld [vmem:[#allocation2 + $0x4] sm:$0xf]  ;;  %v6513_v36 = vld [vmem:[%s8456_s3 + $0x78] sm:$0xff]   ;;  %vm1775_vm12 = vcmask 1042432  }
  0x16   : > { %v1166_v14 = vld [vmem:[#allocation2 + $0x8] sm:$0x1]  ;;  %v1216_v15 = vshrl.u32 %v1164_v12, 16  ;;  %v1219_v16 = vshll.u32 %v1164_v12, 16  ;;  %v1225_v18 = vshll.u32 %v1165_v13, 16  ;;  %v1229_v19 = vshrl.u32 %v1165_v13, 16  ;;  %vm6751_vm5 = vmand %vm403_vm0, %vm404_vm4 }
  0x17   : > { %5959 = vmatpush3.bf16.msra.mxu0 %v6504_v6  ;;  %6484 = vmatpush3.bf16.msra.mxu1 %v6504_v6  ;;  %v1235_v20 = vshll.u32 %v1166_v14, 16  ;;  %v489_v40 = vld [vmem:[#allocation2 + $0x98] sm:$0x1]  ;;  %v337_v42 = vadd.f32 %v6744_v34, %v298_v32  ;;  %v338_v43 = vadd.f32 %v6744_v34, %v299_v33  ;;  %v440_v44 = vsel %vm6751_vm5, 0, %v439_v35  ;;  %vm6761_vm7 = vmand %vm403_vm0, %vm454_vm6  ;;  %v237_v52 = vld [vmem:[%s6715_s22] sm:$0xff]  ;;  %s5619_s13 = sshll.u32 %s8508_s19, 1 }
  0x18   : > { %5960 = vmatprep.subr.bf16.mxu0 %v6505_v7  ;;  %6477 = vmatprep.subr.bf16.mxu1 %v6505_v7  ;;  %v1218_v21 = vrot.slane %v1216_v15, 4  ;;  %v1221_v22 = vrot.slane %v1219_v16, 5  ;;  %v1227_v26 = vrot.slane %v1225_v18, 5  ;;  %v1231_v27 = vrot.slane %v1229_v19, 4  ;;  %441 = vst [vmem:[#allocation2 + $0x90] sm:$0x1] %v440_v44  ;;  %vm6798_vm11 = vmand %vm906_vm9, %vm454_vm6  ;;  %s235_s10 = scalar_lea.vmem %s8458_s5, %s5619_s13 }
  0x19   : > { %v1237_v38 = vrot.slane %v1235_v20, 5  ;;  %v490_v47 = vsel %vm6761_vm7, 0, %v489_v40  ;;  %v6514_v48 = vld [vmem:[%s8456_s3 + $0x38] sm:$0xff]   ;;  %v369_v50 = vmax.f32 %v337_v42, 0.0  ;;  %v370_v51 = vmax.f32 %v338_v43, 0.0  ;;  %v238_v54 = vld [vmem:[%s6715_s22 + $0x8] sm:$0xff] }
  0x1a   : > { %v1222_v31 = vor.u32 %v1221_v22, %v1218_v21  ;;  %v1232_v37 = vor.u32 %v1231_v27, %v1227_v26  ;;  %491 = vst [vmem:[#allocation2 + $0x98] sm:$0x1] %v490_v47  ;;  %vm584_vm8 = vsmask.f32 4368  ;;  %v276_v55 = vmul.f32 %v6728_v28, %v237_v52  ;;  %v406_v56 = vld [vmem:[#allocation2 + $0xc] sm:$0x1] }
  0x1b   : > { %5961 = vmatpush3.bf16.msra.mxu0 %v6506_v8  ;;  %6485 = vmatpush3.bf16.msra.mxu1 %v6506_v8  ;;  %v456_v57 = vld [vmem:[#allocation2 + $0x14] sm:$0x1]  ;;  %v5944_v59 = vpack.c.bf16 %v369_v50, %v369_v50  ;;  %v5945_v60 = vpack.c.bf16 %v370_v51, %v370_v51  ;;  %v6516_v61 = vld [vmem:[%s8456_s3 + $0xc0] sm:$0xff]   ;;  %v407_v62 = vsel %vm6751_vm5, 0, %v406_v56  ;;  %v277_v1 = vmul.f32 %v6728_v28, %v238_v54  ;;  %vm6791_vm10 = vmor %vm404_vm4, %vm584_vm8 }
  0x1c   : > { %5962 = vmatprep.subr.bf16.mxu0 %v6507_v9  ;;  %6478 = vmatprep.subr.bf16.mxu1 %v6507_v9  ;;  %v1223_v41 = vrot.slane %v1222_v31, 4  ;;  %v1233_v46 = vrot.slane %v1232_v37, 4  ;;  %v6515_v63 = vld [vmem:[#allocation2] sm:$0xff]   ;;  %v315_v2 = vadd.f32 %v6744_v34, %v276_v55  ;;  %408 = vst [vmem:[#allocation2 + $0xc] sm:$0x1] %v407_v62  ;;  %v457_v3 = vsel %vm6761_vm7, 0, %v456_v57 }
  0x1d   : > { %v6517_v0 = vld [vmem:[%s8456_s3 + $0x140] sm:$0xff]   ;;  %v774_v4 = vshrl.u32 %v5944_v59, 16  ;;  %v777_v5 = vshll.u32 %v5944_v59, 16  ;;  %v782_v6 = vshrl.u32 %v5945_v60, 16  ;;  %v785_v7 = vshll.u32 %v5945_v60, 16  ;;  %v262_v24 = vld [vmem:[%s6715_s22 + $0xc8] sm:$0xff] }
  0x1e   : > { %v1228_v49 = vsel %vm6735_vm3, %v1223_v41, %v1227_v26  ;;  %v1238_v53 = vsel %vm6735_vm3, %v1233_v46, %v1237_v38  ;;  %458 = vst [vmem:[#allocation2 + $0x14] sm:$0x1] %v457_v3  ;;  %v316_v9 = vadd.f32 %v6744_v34, %v277_v1  ;;  %v6520_v14 = vld [vmem:[%s8456_s3 + $0x100] sm:$0xff]   ;;  %v301_v37 = vmul.f32 %v6728_v28, %v262_v24  ;;  %v239_v38 = vld [vmem:[%s6715_s22 + $0x10] sm:$0xff]  ;;  %v240_v46 = vld [vmem:[%s6715_s22 + $0x18] sm:$0xff] }
  0x1f   : > { %5963 = vmatpush3.bf16.msra.mxu0 %v6508_v10  ;;  %6486 = vmatpush3.bf16.msra.mxu1 %v6508_v10  ;;  %v5670_v58 = vcombine.low %v1228_v49, %v1238_v53  ;;  %v347_v10 = vmax.f32 %v315_v2, 0.0  ;;  %v784_v12 = vrot.slane %v782_v6, 7  ;;  %v985_v15 = vld [vmem:[#allocation2 + $0x90] sm:$0xf]  ;;  %v261_v19 = vld [vmem:[%s6715_s22 + $0xc0] sm:$0xff]  ;;  %v278_v51 = vmul.f32 %v6728_v28, %v239_v38 }
  0x20   : > { %5964 = vmatprep.subr.bf16.mxu0 %v6509_v11  ;;  %6479 = vmatprep.subr.bf16.mxu1 %v6509_v11  ;;  %v776_v11 = vrot.slane %v774_v4, 7  ;;  %v300_v31 = vmul.f32 %v6728_v28, %v261_v19  ;;  %v492_v32 = vld [vmem:[#allocation2 + $0xa4] sm:$0x1]  ;;  %v409_v52 = vld [vmem:[#allocation2 + $0x18] sm:$0x1]  ;;  %v279_v59 = vmul.f32 %v6728_v28, %v240_v46  ;;  %vm1776_vm13 = vcmask 1046532  }
  0x21   : > { %4611 = vmatprep.mubr.bf16.mxu0 %v5670_v58  ;;  %v989_v16 = vld [vmem:[#allocation2 + $0x98] sm:$0x1]  ;;  %v5922_v18 = vpack.c.bf16 %v347_v10, %v347_v10  ;;  %v787_v22 = vor.u32 %v785_v7, %v784_v12  ;;  %v789_v23 = vrot.slane %v784_v12, 4  ;;  %v493_v50 = vsel %vm6761_vm7, 0, %v492_v32  ;;  %v459_v53 = vld [vmem:[#allocation2 + $0x20] sm:$0x1]  ;;  %vm7033_vm14 = vmor %vm1775_vm12, %vm1776_vm13 }
  0x22   : > { %v779_v20 = vor.u32 %v777_v5, %v776_v11  ;;  %v780_v21 = vrot.slane %v776_v11, 4  ;;  %v339_v44 = vadd.f32 %v6744_v34, %v300_v31  ;;  %494 = vst [vmem:[#allocation2 + $0xa4] sm:$0x1] %v493_v50  ;;  %v317_v60 = vadd.f32 %v6744_v34, %v278_v51  ;;  %v6529_v5 = vld [vmem:[%s8456_s3 + $0x148] sm:$0xff]  }
  0x23   : > { %5965 = vmatpush3.bf16.msra.mxu0 %v6510_v17  ;;  %6487 = vmatpush3.bf16.msra.mxu1 %v6510_v17  ;;  %v348_v17 = vmax.f32 %v316_v9, 0.0  ;;  %v587_v27 = vshrl.u32 %v5922_v18, 16  ;;  %v908_v43 = vld [vmem:[#allocation2 + $0xc] sm:$0xf]  ;;  %v460_v4 = vsel %vm6761_vm7, 0, %v459_v53 }
  0x24   : > { %5966 = vmatprep.subr.bf16.mxu0 %v6511_v25  ;;  %6480 = vmatprep.subr.bf16.mxu1 %v6511_v25  ;;  %v442_v25 = vld [vmem:[#allocation2 + $0x9c] sm:$0x1]  ;;  %v788_v33 = vsel %vm6791_vm10, %v780_v21, %v787_v22  ;;  %v986_v35 = vsel %vm6798_vm11, %v779_v20, %v985_v15  ;;  %v371_v57 = vmax.f32 %v339_v44, 0.0  ;;  %v349_v3 = vmax.f32 %v317_v60, 0.0  ;;  %461 = vst [vmem:[#allocation2 + $0x20] sm:$0x1] %v460_v4 }
  0x25   : > { %v5923_v26 = vpack.c.bf16 %v348_v17, %v348_v17  ;;  %987 = vst [vmem:[#allocation2 + $0x90] sm:$0xf] %v986_v35  ;;  %988 = vst [vmem:[#allocation2 + $0x94] sm:$0xf] %v788_v33  ;;  %v589_v40 = vrot.slane %v587_v27, 7  ;;  %v443_v49 = vsel %vm6751_vm5, 0, %v442_v25  ;;  %v318_v15 = vadd.f32 %v6744_v34, %v279_v59 }
  0x26   : > { %v912_v47 = vld [vmem:[#allocation2 + $0x14] sm:$0x1]  ;;  %444 = vst [vmem:[#allocation2 + $0x9c] sm:$0x1] %v443_v49  ;;  %v5946_v1 = vpack.c.bf16 %v371_v57, %v371_v57  ;;  %v6519_v59 = vld [vmem:[%s8456_s3 + $0x80] sm:$0xff]  }
  0x27   : > { %5967 = vmatpush3.bf16.msra.mxu0 %v6512_v29  ;;  %6488 = vmatpush3.bf16.msra.mxu1 %v6512_v29  ;;  %v590_v29 = vshll.u32 %v5922_v18, 16  ;;  %v595_v41 = vshrl.u32 %v5923_v26, 16  ;;  %v598_v42 = vshll.u32 %v5923_v26, 16  ;;  %v593_v55 = vrot.slane %v589_v40, 4 }
  0x28   : > { %5968 = vmatprep.subr.bf16.mxu0 %v6513_v36  ;;  %6481 = vmatprep.subr.bf16.mxu1 %v6513_v36  ;;  %v990_v36 = vsel %vm6751_vm5, %v789_v23, %v989_v16  ;;  %v791_v9 = vshrl.u32 %v5946_v1, 16  ;;  %v794_v10 = vshll.u32 %v5946_v1, 16  ;;  %v6840_v23 = vpack.c.bf16 %v349_v3, %v349_v3 }
  0x29   : > { %991 = vst [vmem:[#allocation2 + $0x98] sm:$0x1] %v990_v36  ;;  %v592_v54 = vor.u32 %v590_v29, %v589_v40  ;;  %v597_v56 = vrot.slane %v595_v41, 7  ;;  %v6531_v36 = vld [vmem:[%s8456_s3 + $0x108] sm:$0xff]  }
  0x2a   : > { %v793_v21 = vrot.slane %v791_v9, 7 }
  0x2b   : > { %5969 = vmatpush3.bf16.msra.mxu0 %v6514_v48  ;;  %6489 = vmatpush3.bf16.msra.mxu1 %v6514_v48  ;;  %v340_v48 = vadd.f32 %v6744_v34, %v301_v37  ;;  %v600_v62 = vor.u32 %v598_v42, %v597_v56  ;;  %v350_v42 = vmax.f32 %v318_v15, 0.0  ;;  %v241_v15 = vld [vmem:[%s6715_s22 + $0x20] sm:$0xff] }
  0x2c   : > { %6066 = vmatprep.subr.bf16.mxu1 %v6516_v61  ;;  %6178 = vmatprep.subr.bf16.mxu0 %v6517_v0  ;;  %v410_v61 = vsel %vm6751_vm5, 0, %v409_v52  ;;  %v909_v0 = vsel %vm6798_vm11, %v592_v54, %v908_v43  ;;  %v1200_v11 = vld [vmem:[#allocation2 + $0x90] sm:$0xf]  ;;  %v1201_v12 = vld [vmem:[#allocation2 + $0x94] sm:$0xf]  ;;  %v796_v32 = vor.u32 %v794_v10, %v793_v21  ;;  %v797_v33 = vrot.slane %v793_v21, 4 }
  0x2d   : > { %v372_v58 = vmax.f32 %v340_v48, 0.0  ;;  %411 = vst [vmem:[#allocation2 + $0x18] sm:$0x1] %v410_v61  ;;  %910 = vst [vmem:[#allocation2 + $0xc] sm:$0xf] %v909_v0  ;;  %v601_v6 = vsel %vm6791_vm10, %v593_v55, %v600_v62  ;;  %v1504_v16 = vshrl.u32 %v1200_v11, 16  ;;  %v5925_v54 = vpack.c.bf16 %v350_v42, %v350_v42 }
  0x2e   : > { %4612 = vmatmul.mubr.bf16.vlgmr.msra.gmra.mrb[0].mxu0 %v6515_v63  ;;  %v602_v63 = vrot.slane %v597_v56, 4  ;;  %911 = vst [vmem:[#allocation2 + $0x10] sm:$0xf] %v601_v6  ;;  %v1507_v17 = vshll.u32 %v1200_v11, 16  ;;  %v1513_v18 = vshll.u32 %v1201_v12, 16  ;;  %v1517_v19 = vshrl.u32 %v1201_v12, 16 }
  0x2f   : > { %6179 = vmatpush3.bf16.msra.mxu0 %v6520_v14  ;;  %v5947_v2 = vpack.c.bf16 %v372_v58, %v372_v58  ;;  %v1506_v24 = vrot.slane %v1504_v16, 4  ;;  %v992_v29 = vld [vmem:[#allocation2 + $0x9c] sm:$0xf]  ;;  %v996_v48 = vld [vmem:[#allocation2 + $0xa4] sm:$0x1]  ;;  %v6522_v0 = vld [vmem:[%s8456_s3 + $0xc8] sm:$0xff]  }
  0x30   : > { %v913_v7 = vsel %vm6751_vm5, %v602_v63, %v912_v47  ;;  %v1202_v14 = vld [vmem:[#allocation2 + $0x98] sm:$0x1]  ;;  %6180 = vmatprep.subr.bf16.mxu0 %v6529_v5  ;;  %v1509_v25 = vrot.slane %v1507_v17, 5  ;;  %v1515_v26 = vrot.slane %v1513_v18, 5  ;;  %v1519_v27 = vrot.slane %v1517_v19, 4  ;;  %v6518_v63 = vld [vmem:[#allocation2 + $0x90] sm:$0xff]  }
  0x31   : > { %914 = vst [vmem:[#allocation2 + $0x14] sm:$0x1] %v913_v7  ;;  %v1523_v20 = vshll.u32 %v1202_v14, 16  ;;  %v799_v22 = vshrl.u32 %v5947_v2, 16  ;;  %v802_v41 = vshll.u32 %v5947_v2, 16  ;;  %v993_v47 = vsel %vm6798_vm11, %v796_v32, %v992_v29  ;;  %v263_v6 = vld [vmem:[%s6715_s22 + $0xd0] sm:$0xff] }
  0x32   : > { %v1510_v37 = vor.u32 %v1509_v25, %v1506_v24  ;;  %v1520_v38 = vor.u32 %v1519_v27, %v1515_v26  ;;  %994 = vst [vmem:[#allocation2 + $0x9c] sm:$0xf] %v993_v47  ;;  %v264_v7 = vld [vmem:[%s6715_s22 + $0xd8] sm:$0xff]  ;;  %v604_v11 = vshrl.u32 %v6840_v23, 16  ;;  %v607_v12 = vshll.u32 %v6840_v23, 16  ;;  %v6523_v18 = vld [vmem:[%s8456_s3 + $0x88] sm:$0xff]  }
  0x33   : > { %v1525_v31 = vrot.slane %v1523_v20, 5  ;;  %v801_v35 = vrot.slane %v799_v22, 7  ;;  %6181 = vmatpush3.bf16.msra.mxu0 %v6531_v36  ;;  %v445_v14 = vld [vmem:[#allocation2 + $0xa8] sm:$0x1]  ;;  %v612_v19 = vshrl.u32 %v5925_v54, 16  ;;  %v615_v20 = vshll.u32 %v5925_v54, 16 }
  0x34   : > { %v1167_v40 = vld [vmem:[#allocation2 + $0xc] sm:$0xf]  ;;  %v1511_v49 = vrot.slane %v1510_v37, 4  ;;  %v1521_v50 = vrot.slane %v1520_v38, 4  ;;  %v915_v21 = vld [vmem:[#allocation2 + $0x18] sm:$0xf]  ;;  %v302_v23 = vmul.f32 %v6728_v28, %v263_v6  ;;  %v303_v25 = vmul.f32 %v6728_v28, %v264_v7 }
  0x35   : > { %v1240_v43 = vshrl.u32 %v1167_v40, 16  ;;  %v1243_v44 = vshll.u32 %v1167_v40, 16  ;;  %v806_v46 = vrot.slane %v801_v35, 4  ;;  %v1168_v51 = vld [vmem:[#allocation2 + $0x10] sm:$0xf]  ;;  %v804_v53 = vor.u32 %v802_v41, %v801_v35 }
  0x36   : > { %v1249_v57 = vshll.u32 %v1168_v51, 16  ;;  %v1253_v58 = vshrl.u32 %v1168_v51, 16  ;;  %v1516_v60 = vsel %vm6735_vm3, %v1511_v49, %v1515_v26  ;;  %v1526_v61 = vsel %vm6735_vm3, %v1521_v50, %v1525_v31  ;;  %v6524_v22 = vld [vmem:[%s8456_s3 + $0xd0] sm:$0xff]   ;;  %v919_v41 = vld [vmem:[#allocation2 + $0x20] sm:$0x1]  ;;  %v242_v49 = vld [vmem:[%s6715_s22 + $0x28] sm:$0xff] }
  0x37   : > { %v1242_v55 = vrot.slane %v1240_v43, 4  ;;  %v1245_v56 = vrot.slane %v1243_v44, 5  ;;  %v805_v1 = vsel %vm6791_vm10, %v797_v33, %v804_v53  ;;  %v5682_v2 = vcombine.low %v1516_v60, %v1526_v61  ;;  %v6521_v35 = vld [vmem:[#allocation2 + $0xc] sm:$0xff]   ;;  %v412_v60 = vld [vmem:[#allocation2 + $0x24] sm:$0x1] }
  0x38   : > { %v1169_v52 = vld [vmem:[#allocation2 + $0x14] sm:$0x1]  ;;  %v1251_v4 = vrot.slane %v1249_v57, 5  ;;  %v1255_v5 = vrot.slane %v1253_v58, 4  ;;  %995 = vst [vmem:[#allocation2 + $0xa0] sm:$0xf] %v805_v1  ;;  %v997_v10 = vsel %vm6751_vm5, %v806_v46, %v996_v48  ;;  %v280_v33 = vmul.f32 %v6728_v28, %v241_v15 }
  0x39   : > { %v1259_v62 = vshll.u32 %v1169_v52, 16  ;;  %v1246_v3 = vor.u32 %v1245_v56, %v1242_v55  ;;  %4707 = vmatprep.mubr.bf16.mxu1 %v5682_v2  ;;  %998 = vst [vmem:[#allocation2 + $0xa4] sm:$0x1] %v997_v10  ;;  %v606_v24 = vrot.slane %v604_v11, 7  ;;  %v446_v26 = vsel %vm6751_vm5, 0, %v445_v14  ;;  %v6526_v46 = vld [vmem:[%s8456_s3 + $0x90] sm:$0xff]  }
  0x3a   : > { %v1256_v17 = vor.u32 %v1255_v5, %v1251_v4  ;;  %4708 = vmatmul.mubr.bf16.vlgmr.msra.gmra.mrb[0].mxu1 %v6518_v63  ;;  %v1203_v31 = vld [vmem:[#allocation2 + $0x9c] sm:$0xf]  ;;  %v614_v32 = vrot.slane %v612_v19, 7  ;;  %447 = vst [vmem:[#allocation2 + $0xa8] sm:$0x1] %v446_v26  ;;  %v341_v47 = vadd.f32 %v6744_v34, %v302_v23  ;;  %v342_v63 = vadd.f32 %v6744_v34, %v303_v25  ;;  %v266_v19 = vld [vmem:[%s6715_s22 + $0xe8] sm:$0xff] }
  0x3b   : > { %v1261_v9 = vrot.slane %v1259_v62, 5  ;;  %v1247_v16 = vrot.slane %v1246_v3, 4  ;;  %6067 = vmatpush3.bf16.msra.mxu1 %v6519_v59  ;;  %v1528_v36 = vshrl.u32 %v1203_v31, 16  ;;  %v1531_v37 = vshll.u32 %v1203_v31, 16  ;;  %v495_v48 = vld [vmem:[#allocation2 + $0xb0] sm:$0x1] }
  0x3c   : > { %v1257_v29 = vrot.slane %v1256_v17, 4  ;;  %6068 = vmatprep.subr.bf16.mxu1 %v6522_v0  ;;  %v609_v38 = vor.u32 %v607_v12, %v606_v24  ;;  %v610_v40 = vrot.slane %v606_v24, 4  ;;  %v617_v43 = vor.u32 %v615_v20, %v614_v32  ;;  %v6528_v55 = vld [vmem:[%s8456_s3 + $0xd8] sm:$0xff]   ;;  %v462_v12 = vld [vmem:[#allocation2 + $0x2c] sm:$0x1]  ;;  %v6532_v23 = vld [vmem:[%s8456_s3 + $0xe0] sm:$0xff]  }
  0x3d   : > { %v1252_v27 = vsel %vm6735_vm3, %v1247_v16, %v1251_v4  ;;  %v619_v44 = vrot.slane %v614_v32, 4  ;;  %v1530_v52 = vrot.slane %v1528_v36, 4  ;;  %v1533_v53 = vrot.slane %v1531_v37, 5  ;;  %v6530_v5 = vld [vmem:[%s8456_s3 + $0x98] sm:$0xff]  }
  0x3e   : > { %v1262_v42 = vsel %vm6735_vm3, %v1257_v29, %v1261_v9  ;;  %v916_v54 = vsel %vm6798_vm11, %v609_v38, %v915_v21  ;;  %v618_v58 = vsel %vm6791_vm10, %v610_v40, %v617_v43  ;;  %v373_v0 = vmax.f32 %v341_v47, 0.0 }
  0x3f   : > { %v5671_v50 = vcombine.low %v1252_v27, %v1262_v42  ;;  %v1204_v51 = vld [vmem:[#allocation2 + $0xa0] sm:$0xf]  ;;  %6069 = vmatpush3.bf16.msra.mxu1 %v6523_v18  ;;  %917 = vst [vmem:[#allocation2 + $0x18] sm:$0xf] %v916_v54  ;;  %v920_v59 = vsel %vm6751_vm5, %v619_v44, %v919_v41  ;;  %v1534_v62 = vor.u32 %v1533_v53, %v1530_v52  ;;  %918 = vst [vmem:[#allocation2 + $0x1c] sm:$0xf] %v618_v58 }
  0x40   : > { %v1537_v56 = vshll.u32 %v1204_v51, 16  ;;  %v1541_v57 = vshrl.u32 %v1204_v51, 16  ;;  %v1205_v61 = vld [vmem:[#allocation2 + $0xa4] sm:$0x1]  ;;  %6070 = vmatprep.subr.bf16.mxu1 %v6524_v22  ;;  %921 = vst [vmem:[#allocation2 + $0x20] sm:$0x1] %v920_v59  ;;  %v281_v6 = vmul.f32 %v6728_v28, %v242_v49  ;;  %v5948_v10 = vpack.c.bf16 %v373_v0, %v373_v0 }
  0x41   : > { %4619 = vmatprep.mubr.bf16.mxu0 %v5671_v50  ;;  %v496_v1 = vsel %vm6761_vm7, 0, %v495_v48  ;;  %v1547_v4 = vshll.u32 %v1205_v61, 16  ;;  %v1535_v7 = vrot.slane %v1534_v62, 4  ;;  %v374_v9 = vmax.f32 %v342_v63, 0.0  ;;  %v265_v18 = vld [vmem:[%s6715_s22 + $0xe0] sm:$0xff] }
  0x42   : > { %4620 = vmatmul.mubr.bf16.gmra.mrb[4].mxu0 %v6521_v35  ;;  %v1539_v2 = vrot.slane %v1537_v56, 5  ;;  %v1543_v3 = vrot.slane %v1541_v57, 4  ;;  %497 = vst [vmem:[#allocation2 + $0xb0] sm:$0x1] %v496_v1  ;;  %v319_v11 = vadd.f32 %v6744_v34, %v280_v33  ;;  %v320_v16 = vadd.f32 %v6744_v34, %v281_v6  ;;  %v6525_v26 = vld [vmem:[#allocation2 + $0x9c] sm:$0xff]   ;;  %v6536_v56 = vld [vmem:[%s8456_s3 + $0xe8] sm:$0xff]  }
  0x43   : > { %v1549_v15 = vrot.slane %v1547_v4, 5  ;;  %6071 = vmatpush3.bf16.msra.mxu1 %v6526_v46  ;;  %v413_v17 = vsel %vm6751_vm5, 0, %v412_v60  ;;  %v5949_v21 = vpack.c.bf16 %v374_v9, %v374_v9  ;;  %v808_v22 = vshrl.u32 %v5948_v10, 16  ;;  %v999_v36 = vld [vmem:[#allocation2 + $0xa8] sm:$0xf]  ;;  %v6534_v51 = vld [vmem:[%s8456_s3 + $0xa0] sm:$0xff]  }
  0x44   : > { %v1544_v14 = vor.u32 %v1543_v3, %v1539_v2  ;;  %v1540_v20 = vsel %vm6735_vm3, %v1535_v7, %v1539_v2  ;;  %6072 = vmatprep.subr.bf16.mxu1 %v6528_v55  ;;  %v811_v24 = vshll.u32 %v5948_v10, 16  ;;  %414 = vst [vmem:[#allocation2 + $0x24] sm:$0x1] %v413_v17  ;;  %v351_v27 = vmax.f32 %v319_v11, 0.0  ;;  %v6539_v57 = vld [vmem:[%s8456_s3 + $0x150] sm:$0xff]   ;;  %v6537_v7 = vld [vmem:[%s8456_s3 + $0xa8] sm:$0xff]  }
  0x45   : > { %v352_v29 = vmax.f32 %v320_v16, 0.0  ;;  %v463_v31 = vsel %vm6761_vm7, 0, %v462_v12  ;;  %v6915_v33 = vrot.slane %v808_v22, 7  ;;  %v816_v35 = vshrl.u32 %v5949_v21, 16  ;;  %6182 = vmatprep.subr.bf16.mxu0 %v6539_v57  ;;  %v498_v16 = vld [vmem:[#allocation2 + $0xbc] sm:$0x1] }
  0x46   : > { %v1545_v25 = vrot.slane %v1544_v14, 4  ;;  %v1170_v32 = vld [vmem:[#allocation2 + $0x18] sm:$0xf]  ;;  %464 = vst [vmem:[#allocation2 + $0x2c] sm:$0x1] %v463_v31  ;;  %v304_v37 = vmul.f32 %v6728_v28, %v265_v18  ;;  %v305_v38 = vmul.f32 %v6728_v28, %v266_v19  ;;  %v5926_v46 = vpack.c.bf16 %v351_v27, %v351_v27  ;;  %v6538_v17 = vld [vmem:[%s8456_s3 + $0xf0] sm:$0xff]  }
  0x47   : > { %v1171_v41 = vld [vmem:[#allocation2 + $0x1c] sm:$0xf]  ;;  %v1172_v42 = vld [vmem:[#allocation2 + $0x20] sm:$0x1]  ;;  %v1264_v43 = vshrl.u32 %v1170_v32, 16  ;;  %v1267_v44 = vshll.u32 %v1170_v32, 16  ;;  %6073 = vmatpush3.bf16.msra.mxu1 %v6530_v5  ;;  %v813_v54 = vor.u32 %v811_v24, %v6915_v33  ;;  %v5927_v2 = vpack.c.bf16 %v352_v29, %v352_v29 }
  0x48   : > { %v1550_v40 = vsel %vm6735_vm3, %v1545_v25, %v1549_v15  ;;  %v1273_v48 = vshll.u32 %v1171_v41, 16  ;;  %v1277_v49 = vshrl.u32 %v1171_v41, 16  ;;  %v1283_v50 = vshll.u32 %v1172_v42, 16  ;;  %6074 = vmatprep.subr.bf16.mxu1 %v6532_v23  ;;  %v448_v15 = vld [vmem:[#allocation2 + $0xb4] sm:$0x1]  ;;  %v6527_v19 = vld [vmem:[#allocation2 + $0x18] sm:$0xff]  }
  0x49   : > { %v5683_v47 = vcombine.low %v1540_v20, %v1550_v40  ;;  %v1266_v52 = vrot.slane %v1264_v43, 4  ;;  %v1269_v53 = vrot.slane %v1267_v44, 5  ;;  %v814_v55 = vrot.slane %v6915_v33, 4  ;;  %v1003_v1 = vld [vmem:[#allocation2 + $0xb0] sm:$0x1]  ;;  %v244_v40 = vld [vmem:[%s6715_s22 + $0x38] sm:$0xff] }
  0x4a   : > { %v1275_v58 = vrot.slane %v1273_v48, 5  ;;  %v1279_v59 = vrot.slane %v1277_v49, 4  ;;  %v1285_v60 = vrot.slane %v1283_v50, 5  ;;  %v818_v61 = vrot.slane %v816_v35, 7  ;;  %v243_v23 = vld [vmem:[%s6715_s22 + $0x30] sm:$0xff]  ;;  %v6544_v50 = vld [vmem:[%s8456_s3 + $0xf8] sm:$0xff]  }
  0x4b   : > { %4715 = vmatprep.mubr.bf16.mxu1 %v5683_v47  ;;  %v1270_v62 = vor.u32 %v1269_v53, %v1266_v52  ;;  %v819_v63 = vshll.u32 %v5949_v21, 16  ;;  %v1000_v0 = vsel %vm6798_vm11, %v813_v54, %v999_v36  ;;  %v621_v5 = vshrl.u32 %v5926_v46, 16  ;;  %6075 = vmatpush3.bf16.msra.mxu1 %v6534_v51  ;;  %v922_v14 = vld [vmem:[#allocation2 + $0x24] sm:$0xf]  ;;  %v6541_v25 = vld [vmem:[%s8456_s3 + $0xb0] sm:$0xff]   ;;  %v6545_v51 = vld [vmem:[%s8456_s3 + $0xb8] sm:$0xff]  }
  0x4c   : > { %4716 = vmatmul.mubr.bf16.gmra.mrb[4].mxu1 %v6525_v26  ;;  %v1280_v3 = vor.u32 %v1279_v59, %v1275_v58  ;;  %v823_v4 = vrot.slane %v818_v61, 4  ;;  %1001 = vst [vmem:[#allocation2 + $0xa8] sm:$0xf] %v1000_v0  ;;  %v624_v6 = vshll.u32 %v5926_v46, 16  ;;  %v629_v11 = vshrl.u32 %v5927_v2, 16  ;;  %6076 = vmatprep.subr.bf16.mxu1 %v6536_v56  ;;  %v6542_v32 = vld [vmem:[%s8456_s3 + $0x110] sm:$0xff]  }
  0x4d   : > { %v1271_v9 = vrot.slane %v1270_v62, 4  ;;  %v821_v10 = vor.u32 %v819_v63, %v818_v61  ;;  %v632_v12 = vshll.u32 %v5927_v2, 16  ;;  %v623_v21 = vrot.slane %v621_v5, 7  ;;  %v926_v22 = vld [vmem:[#allocation2 + $0x2c] sm:$0x1]  ;;  %6183 = vmatpush3.bf16.msra.mxu0 %v6542_v32  ;;  %v6547_v0 = vld [vmem:[%s8456_s3 + $0x1c0] sm:$0xff]  }
  0x4e   : > { %v1281_v18 = vrot.slane %v1280_v3, 4  ;;  %v1004_v20 = vsel %vm6751_vm5, %v823_v4, %v1003_v1  ;;  %v343_v24 = vadd.f32 %v6744_v34, %v304_v37  ;;  %v631_v29 = vrot.slane %v629_v11, 7  ;;  %v415_v46 = vld [vmem:[#allocation2 + $0x30] sm:$0x1] }
  0x4f   : > { %v1276_v26 = vsel %vm6735_vm3, %v1271_v9, %v1275_v58  ;;  %v822_v27 = vsel %vm6791_vm10, %v814_v55, %v821_v10  ;;  %1005 = vst [vmem:[#allocation2 + $0xb0] sm:$0x1] %v1004_v20  ;;  %v344_v31 = vadd.f32 %v6744_v34, %v305_v38  ;;  %v626_v35 = vor.u32 %v624_v6, %v623_v21 }
  0x50   : > { %v1286_v33 = vsel %vm6735_vm3, %v1281_v18, %v1285_v60  ;;  %1002 = vst [vmem:[#allocation2 + $0xac] sm:$0xf] %v822_v27  ;;  %v627_v36 = vrot.slane %v623_v21, 4  ;;  %6077 = vmatpush3.bf16.msra.mxu1 %v6537_v7  ;;  %v375_v37 = vmax.f32 %v343_v24, 0.0  ;;  %v634_v42 = vor.u32 %v632_v12, %v631_v29 }
  0x51   : > { %v5672_v41 = vcombine.low %v1276_v26, %v1286_v33  ;;  %v636_v43 = vrot.slane %v631_v29, 4  ;;  %v376_v44 = vmax.f32 %v344_v31, 0.0  ;;  %6078 = vmatprep.subr.bf16.mxu1 %v6538_v17  ;;  %v923_v38 = vsel %vm6798_vm11, %v626_v35, %v922_v14 }
  0x52   : > { %v449_v47 = vsel %vm6751_vm5, 0, %v448_v15  ;;  %v499_v48 = vsel %vm6761_vm7, 0, %v498_v16  ;;  %v5950_v49 = vpack.c.bf16 %v375_v37, %v375_v37  ;;  %v635_v53 = vsel %vm6791_vm10, %v627_v36, %v634_v42  ;;  %924 = vst [vmem:[#allocation2 + $0x24] sm:$0xf] %v923_v38 }
  0x53   : > { %4627 = vmatprep.mubr.bf16.mxu0 %v5672_v41  ;;  %v1206_v52 = vld [vmem:[#allocation2 + $0xa8] sm:$0xf]  ;;  %v927_v54 = vsel %vm6751_vm5, %v636_v43, %v926_v22  ;;  %450 = vst [vmem:[#allocation2 + $0xb4] sm:$0x1] %v449_v47  ;;  %500 = vst [vmem:[#allocation2 + $0xbc] sm:$0x1] %v499_v48  ;;  %v5951_v55 = vpack.c.bf16 %v376_v44, %v376_v44  ;;  %v282_v56 = vmul.f32 %v6728_v28, %v243_v23 }
  0x54   : > { %4628 = vmatmul.mubr.bf16.gmra.mrb[8].mxu0 %v6527_v19  ;;  %v1552_v57 = vshrl.u32 %v1206_v52, 16  ;;  %v1555_v58 = vshll.u32 %v1206_v52, 16  ;;  %925 = vst [vmem:[#allocation2 + $0x28] sm:$0xf] %v635_v53  ;;  %928 = vst [vmem:[#allocation2 + $0x2c] sm:$0x1] %v927_v54  ;;  %6079 = vmatpush3.bf16.msra.mxu1 %v6541_v25  ;;  %v283_v62 = vmul.f32 %v6728_v28, %v244_v40 }
  0x55   : > { %v825_v59 = vshrl.u32 %v5950_v49, 16  ;;  %v828_v60 = vshll.u32 %v5950_v49, 16  ;;  %v833_v61 = vshrl.u32 %v5951_v55, 16  ;;  %v321_v63 = vadd.f32 %v6744_v34, %v282_v56  ;;  %6080 = vmatprep.subr.bf16.mxu1 %v6544_v50  ;;  %v465_v23 = vld [vmem:[#allocation2 + $0x38] sm:$0x1]  ;;  %v245_v53 = vld [vmem:[%s6715_s22 + $0x40] sm:$0xff] }
  0x56   : > { %v1208_v1 = vld [vmem:[#allocation2 + $0xb0] sm:$0x1]  ;;  %v1554_v2 = vrot.slane %v1552_v57, 4  ;;  %v1557_v3 = vrot.slane %v1555_v58, 5  ;;  %v416_v5 = vsel %vm6751_vm5, 0, %v415_v46  ;;  %v836_v9 = vshll.u32 %v5951_v55, 16 }
  0x57   : > { %v827_v4 = vrot.slane %v825_v59, 7  ;;  %v1207_v6 = vld [vmem:[#allocation2 + $0xac] sm:$0xf]  ;;  %v1571_v7 = vshll.u32 %v1208_v1, 16  ;;  %v322_v10 = vadd.f32 %v6744_v34, %v283_v62  ;;  %417 = vst [vmem:[#allocation2 + $0x30] sm:$0x1] %v416_v5 }
  0x58   : > { %v1558_v28 = vor.u32 %v1557_v3, %v1554_v2  ;;  %v1561_v11 = vshll.u32 %v1207_v6, 16  ;;  %v1565_v12 = vshrl.u32 %v1207_v6, 16  ;;  %6081 = vmatpush3.bf16.msra.mxu1 %v6545_v51  ;;  %v835_v17 = vrot.slane %v833_v61, 7  ;;  %v6533_v56 = vld [vmem:[#allocation2 + $0xa8] sm:$0xff]   ;;  %v468_v1 = vld [vmem:[#allocation2 + $0x44] sm:$0x1] }
  0x59   : > { %v830_v14 = vor.u32 %v828_v60, %v827_v4  ;;  %v1573_v15 = vrot.slane %v1571_v7, 5  ;;  %v831_v16 = vrot.slane %v827_v4, 4  ;;  %v353_v18 = vmax.f32 %v321_v63, 0.0  ;;  %6290 = vmatprep.subr.bf16.mxu1 %v6547_v0  ;;  %v1173_v22 = vld [vmem:[#allocation2 + $0x24] sm:$0xf]  ;;  %v246_v59 = vld [vmem:[%s6715_s22 + $0x48] sm:$0xff] }
  0x5a   : > { %v1559_v19 = vrot.slane %v1558_v28, 4  ;;  %v1563_v20 = vrot.slane %v1561_v11, 5  ;;  %v1567_v21 = vrot.slane %v1565_v12, 4  ;;  %v354_v24 = vmax.f32 %v322_v10, 0.0  ;;  %v1006_v43 = vld [vmem:[#allocation2 + $0xb4] sm:$0xf] }
  0x5b   : > { %v1174_v25 = vld [vmem:[#allocation2 + $0x28] sm:$0xf]  ;;  %v1175_v26 = vld [vmem:[#allocation2 + $0x2c] sm:$0x1]  ;;  %v1288_v34 = vshrl.u32 %v1173_v22, 16  ;;  %v1291_v27 = vshll.u32 %v1173_v22, 16  ;;  %v838_v29 = vor.u32 %v836_v9, %v835_v17  ;;  %v5928_v31 = vpack.c.bf16 %v353_v18, %v353_v18 }
  0x5c   : > { %v1564_v32 = vsel %vm6735_vm3, %v1559_v19, %v1563_v20  ;;  %v1568_v33 = vor.u32 %v1567_v21, %v1563_v20  ;;  %v1297_v35 = vshll.u32 %v1174_v25, 16  ;;  %v1301_v36 = vshrl.u32 %v1174_v25, 16  ;;  %v1010_v48 = vld [vmem:[#allocation2 + $0xbc] sm:$0x1]  ;;  %v6535_v3 = vld [vmem:[#allocation2 + $0x24] sm:$0xff]  }
  0x5d   : > { %v1290_v37 = vrot.slane %v1288_v34, 4  ;;  %v1293_v40 = vrot.slane %v1291_v27, 5  ;;  %v1307_v41 = vshll.u32 %v1175_v26, 16  ;;  %v839_v42 = vsel %vm6791_vm10, %v831_v16, %v838_v29  ;;  %v418_v60 = vld [vmem:[#allocation2 + $0x3c] sm:$0x1] }
  0x5e   : > { %v1569_v44 = vrot.slane %v1568_v33, 4  ;;  %v1299_v46 = vrot.slane %v1297_v35, 5  ;;  %v1303_v38 = vrot.slane %v1301_v36, 4  ;;  %v840_v47 = vrot.slane %v835_v17, 4  ;;  %1009 = vst [vmem:[#allocation2 + $0xb8] sm:$0xf] %v839_v42 }
  0x5f   : > { %v1294_v49 = vor.u32 %v1293_v40, %v1290_v37  ;;  %v1309_v50 = vrot.slane %v1307_v41, 5  ;;  %v1007_v51 = vsel %vm6798_vm11, %v830_v14, %v1006_v43  ;;  %v466_v52 = vsel %vm6761_vm7, 0, %v465_v23  ;;  %v929_v6 = vld [vmem:[#allocation2 + $0x30] sm:$0xf]  ;;  %v7000_v7 = vld [vmem:[%s8454_s1] ss:$0 sm:$0xff] }
  0x60   : > { %v1574_v54 = vsel %vm6735_vm3, %v1569_v44, %v1573_v15  ;;  %v1304_v55 = vor.u32 %v1303_v38, %v1299_v46  ;;  %1008 = vst [vmem:[#allocation2 + $0xb4] sm:$0xf] %v1007_v51  ;;  %v1011_v57 = vsel %vm6751_vm5, %v840_v47, %v1010_v48  ;;  %467 = vst [vmem:[#allocation2 + $0x38] sm:$0x1] %v466_v52  ;;  %v638_v63 = vshrl.u32 %v5928_v31, 16  ;;  %v6550_v10 = vld [vmem:[%s8456_s3 + $0x158] sm:$0xff]  }
  0x61   : > { %v5929_v58 = vpack.c.bf16 %v354_v24, %v354_v24  ;;  %v5684_v61 = vcombine.low %v1564_v32, %v1574_v54  ;;  %v1295_v62 = vrot.slane %v1294_v49, 4  ;;  %1012 = vst [vmem:[#allocation2 + $0xbc] sm:$0x1] %v1011_v57  ;;  %v641_v0 = vshll.u32 %v5928_v31, 16  ;;  %v7016_v17 = vld [vmem:[%s8455_s2] ss:$0 sm:$0xff]  ;;  %6184 = vmatprep.subr.bf16.mxu0 %v6550_v10 }
  0x62   : > { %v1305_v2 = vrot.slane %v1304_v55, 4  ;;  %v284_v9 = vmul.f32 %v7000_v7, %v245_v53  ;;  %v640_v11 = vrot.slane %v638_v63, 7  ;;  %v285_v12 = vmul.f32 %v7000_v7, %v246_v59  ;;  %v6551_v25 = vld [vmem:[%s8456_s3 + $0x118] sm:$0xff]   ;;  %v1679_v31 = vld [vmem:[#allocation2] sm:$0xe] }
  0x63   : > { %v646_v4 = vshrl.u32 %v5929_v58, 16  ;;  %v649_v5 = vshll.u32 %v5929_v58, 16  ;;  %4723 = vmatprep.mubr.bf16.mxu1 %v5684_v61  ;;  %v1300_v28 = vsel %vm6735_vm3, %v1295_v62, %v1299_v46  ;;  %v419_v14 = vsel %vm6751_vm5, 0, %v418_v60  ;;  %v1680_v32 = vld [vmem:[#allocation2 + $0x4] sm:$0xf]  ;;  %6185 = vmatpush3.bf16.msra.mxu0 %v6551_v25  ;;  %v247_v62 = vld [vmem:[%s6715_s22 + $0x50] sm:$0xff] }
  0x64   : > { %v1310_v15 = vsel %vm6735_vm3, %v1305_v2, %v1309_v50  ;;  %4724 = vmatmul.mubr.bf16.gmra.mrb[8].mxu1 %v6533_v56  ;;  %v323_v18 = vadd.f32 %v7016_v17, %v284_v9  ;;  %420 = vst [vmem:[#allocation2 + $0x3c] sm:$0x1] %v419_v14  ;;  %v469_v19 = vsel %vm6761_vm7, 0, %v468_v1  ;;  %v643_v22 = vor.u32 %v641_v0, %v640_v11  ;;  %v1681_v48 = vld [vmem:[#allocation2 + $0x8] sm:$0x1]  ;;  %v248_v63 = vld [vmem:[%s6715_s22 + $0x58] sm:$0xff] }
  0x65   : > { %v648_v16 = vrot.slane %v646_v4, 7  ;;  %v5673_v20 = vcombine.low %v1300_v28, %v1310_v15  ;;  %v1210_v21 = vld [vmem:[#allocation2 + $0xb8] sm:$0xf]  ;;  %v644_v24 = vrot.slane %v640_v11, 4  ;;  %v324_v23 = vadd.f32 %v7016_v17, %v285_v12  ;;  %470 = vst [vmem:[#allocation2 + $0x44] sm:$0x1] %v469_v19 }
  0x66   : > { %v1585_v26 = vshll.u32 %v1210_v21, 16  ;;  %v1589_v34 = vshrl.u32 %v1210_v21, 16  ;;  %v930_v35 = vsel %vm6798_vm11, %v643_v22, %v929_v6  ;;  %v355_v47 = vmax.f32 %v323_v18, 0.0  ;;  %v6555_v4 = vld [vmem:[%s8456_s3 + $0x160] sm:$0xff]   ;;  %v6546_v11 = vld [vmem:[#allocation2 + $0xc] sm:$0xff]  }
  0x67   : > { %v651_v27 = vor.u32 %v649_v5, %v648_v16  ;;  %v653_v29 = vrot.slane %v648_v16, 4  ;;  %4635 = vmatprep.mubr.bf16.mxu0 %v5673_v20  ;;  %v1209_v33 = vld [vmem:[#allocation2 + $0xb4] sm:$0xf]  ;;  %v933_v36 = vld [vmem:[#allocation2 + $0x38] sm:$0x1]  ;;  %v356_v52 = vmax.f32 %v324_v23, 0.0  ;;  %v286_v16 = vmul.f32 %v7000_v7, %v247_v62  ;;  %6186 = vmatprep.subr.bf16.mxu0 %v6555_v4 }
  0x68   : > { %4636 = vmatmul.mubr.bf16.gmra.mrb[12].mxu0 %v6535_v3  ;;  %v1211_v37 = vld [vmem:[#allocation2 + $0xbc] sm:$0x1]  ;;  %v1576_v40 = vshrl.u32 %v1209_v33, 16  ;;  %v1579_v41 = vshll.u32 %v1209_v33, 16  ;;  %v1587_v42 = vrot.slane %v1585_v26, 5  ;;  %v1591_v43 = vrot.slane %v1589_v34, 4 }
  0x69   : > { %931 = vst [vmem:[#allocation2 + $0x30] sm:$0xf] %v930_v35  ;;  %v1595_v44 = vshll.u32 %v1211_v37, 16  ;;  %v652_v46 = vsel %vm6791_vm10, %v644_v24, %v651_v27  ;;  %v934_v38 = vsel %vm6751_vm5, %v653_v29, %v933_v36  ;;  %v5930_v55 = vpack.c.bf16 %v355_v47, %v355_v47  ;;  %v6540_v22 = vld [vmem:[#allocation2 + $0xb4] sm:$0xff]  }
  0x6a   : > { %v1578_v49 = vrot.slane %v1576_v40, 4  ;;  %v1581_v50 = vrot.slane %v1579_v41, 5  ;;  %v1592_v51 = vor.u32 %v1591_v43, %v1587_v42  ;;  %932 = vst [vmem:[#allocation2 + $0x34] sm:$0xf] %v652_v46  ;;  %935 = vst [vmem:[#allocation2 + $0x38] sm:$0x1] %v934_v38  ;;  %v5931_v60 = vpack.c.bf16 %v356_v52, %v356_v52 }
  0x6b   : > { %v1597_v54 = vrot.slane %v1595_v44, 5  ;;  %v5686_v56 = vrot.slane %v1679_v31, 9  ;;  %v1780_v57 = vrot.slane %v1680_v32, 5  ;;  %v1783_v61 = vrot.slane %v1681_v48, 5  ;;  %v936_v14 = vld [vmem:[#allocation2 + $0x3c] sm:$0xf] }
  0x6c   : > { %v1582_v58 = vor.u32 %v1581_v50, %v1578_v49  ;;  %v1593_v59 = vrot.slane %v1592_v51, 4  ;;  %v655_v0 = vshrl.u32 %v5930_v55, 16  ;;  %v658_v1 = vshll.u32 %v5930_v55, 16  ;;  %v940_v23 = vld [vmem:[#allocation2 + $0x44] sm:$0x1] }
  0x6d   : > { %v7041_v2 = vsel %vm7033_vm14, %v5686_v56, %v1780_v57  ;;  %v1782_v3 = vrot.slane %v1780_v57, 4  ;;  %v663_v9 = vshrl.u32 %v5931_v60, 16  ;;  %v666_v10 = vshll.u32 %v5931_v60, 16  ;;  %v421_v32 = vld [vmem:[#allocation2 + $0x48] sm:$0x1]  ;;  %v6557_v43 = vld [vmem:[%s8456_s3 + $0x120] sm:$0xff]  }
  0x6e   : > { %v1583_v5 = vrot.slane %v1582_v58, 4  ;;  %v1598_v6 = vsel %vm6735_vm3, %v1593_v59, %v1597_v54  ;;  %v657_v12 = vrot.slane %v655_v0, 7  ;;  %v287_v18 = vmul.f32 %v7000_v7, %v248_v63  ;;  %v471_v40 = vld [vmem:[#allocation2 + $0x50] sm:$0x1]  ;;  %v1682_v41 = vld [vmem:[#allocation2 + $0xc] sm:$0xe]  ;;  %6187 = vmatpush3.bf16.msra.mxu0 %v6557_v43 }
  0x6f   : > { %v7050_v15 = vsel %vm7033_vm14, %v1782_v3, %v1783_v61  ;;  %v665_v24 = vrot.slane %v663_v9, 7  ;;  %v325_v31 = vadd.f32 %v7016_v17, %v286_v16  ;;  %v1684_v48 = vld [vmem:[#allocation2 + $0x14] sm:$0x1]  ;;  %v249_v58 = vld [vmem:[%s6715_s22 + $0x60] sm:$0xff]  ;;  %v422_v62 = vsel %vm6751_vm5, 0, %v421_v32  ;;  %v250_v63 = vld [vmem:[%s6715_s22 + $0x68] sm:$0xff] }
  0x70   : > { %v1176_v28 = vld [vmem:[#allocation2 + $0x30] sm:$0xf]  ;;  %v1588_v19 = vsel %vm6735_vm3, %v1583_v5, %v1587_v42  ;;  %v660_v27 = vor.u32 %v658_v1, %v657_v12  ;;  %v5702_v29 = vcombine.low %v7041_v2, %v7050_v15  ;;  %v661_v46 = vrot.slane %v657_v12, 4  ;;  %423 = vst [vmem:[#allocation2 + $0x48] sm:$0x1] %v422_v62  ;;  %v6548_v9 = vld [vmem:[%s8456_s3 + $0x180] sm:$0xff]  }
  0x71   : > { %v1312_v20 = vshrl.u32 %v1176_v28, 16  ;;  %v1315_v21 = vshll.u32 %v1176_v28, 16  ;;  %v5685_v25 = vcombine.low %v1588_v19, %v1598_v6  ;;  %v1177_v26 = vld [vmem:[#allocation2 + $0x34] sm:$0xf]  ;;  %v1178_v34 = vld [vmem:[#allocation2 + $0x38] sm:$0x1]  ;;  %v668_v38 = vor.u32 %v666_v10, %v665_v24 }
  0x72   : > { %v1321_v36 = vshll.u32 %v1177_v26, 16  ;;  %v1325_v37 = vshrl.u32 %v1177_v26, 16  ;;  %v1683_v42 = vld [vmem:[#allocation2 + $0x10] sm:$0xf]  ;;  %v1331_v44 = vshll.u32 %v1178_v34, 16  ;;  %v670_v47 = vrot.slane %v665_v24, 4 }
  0x73   : > { %v1314_v33 = vrot.slane %v1312_v20, 4  ;;  %v1317_v35 = vrot.slane %v1315_v21, 5  ;;  %4731 = vmatprep.mubr.bf16.mxu1 %v5685_v25  ;;  %v937_v52 = vsel %vm6798_vm11, %v660_v27, %v936_v14  ;;  %v669_v55 = vsel %vm6791_vm10, %v661_v46, %v668_v38  ;;  %v6552_v12 = vld [vmem:[#allocation2 + $0x18] sm:$0xff]   ;;  %v6556_v19 = vld [vmem:[%s8456_s3 + $0x1c8] sm:$0xff]   ;;  %v251_v25 = vld [vmem:[%s6715_s22 + $0x70] sm:$0xff] }
  0x74   : > { %v1323_v50 = vrot.slane %v1321_v36, 5  ;;  %v1327_v51 = vrot.slane %v1325_v37, 4  ;;  %4732 = vmatmul.mubr.bf16.gmra.mrb[12].mxu1 %v6540_v22  ;;  %v1333_v54 = vrot.slane %v1331_v44, 5  ;;  %938 = vst [vmem:[#allocation2 + $0x3c] sm:$0xf] %v937_v52  ;;  %v941_v56 = vsel %vm6751_vm5, %v670_v47, %v940_v23  ;;  %v252_v26 = vld [vmem:[%s6715_s22 + $0x78] sm:$0xff] }
  0x75   : > { %v1318_v49 = vor.u32 %v1317_v35, %v1314_v33  ;;  %4772 = vmatprep.mubr.bf16.mxu1 %v6546_v11  ;;  %v326_v57 = vadd.f32 %v7016_v17, %v287_v18  ;;  %939 = vst [vmem:[#allocation2 + $0x40] sm:$0xf] %v669_v55  ;;  %942 = vst [vmem:[#allocation2 + $0x44] sm:$0x1] %v941_v56  ;;  %v357_v61 = vmax.f32 %v325_v31, 0.0  ;;  %v472_v1 = vsel %vm6761_vm7, 0, %v471_v40 }
  0x76   : > { %v1328_v60 = vor.u32 %v1327_v51, %v1323_v50  ;;  %v5687_v3 = vrot.slane %v1682_v41, 9  ;;  %v1787_v4 = vrot.slane %v1683_v42, 5  ;;  %473 = vst [vmem:[#allocation2 + $0x50] sm:$0x1] %v472_v1  ;;  %v1790_v28 = vrot.slane %v1684_v48, 5  ;;  %v6543_v11 = vld [vmem:[#allocation2 + $0x30] sm:$0xff]  }
  0x77   : > { %v1319_v59 = vrot.slane %v1318_v49, 4  ;;  %v358_v0 = vmax.f32 %v326_v57, 0.0  ;;  %v5932_v10 = vpack.c.bf16 %v357_v61, %v357_v61  ;;  %v288_v20 = vmul.f32 %v7000_v7, %v249_v58  ;;  %v6558_v33 = vld [vmem:[%s8456_s3 + $0x188] sm:$0xff]   ;;  %v424_v2 = vld [vmem:[#allocation2 + $0x54] sm:$0x1] }
  0x78   : > { %v1329_v6 = vrot.slane %v1328_v60, 4  ;;  %v7082_v16 = vsel %vm7033_vm14, %v5687_v3, %v1787_v4  ;;  %v1789_v18 = vrot.slane %v1787_v4, 4  ;;  %v289_v23 = vmul.f32 %v7000_v7, %v250_v63  ;;  %v6562_v42 = vld [vmem:[%s8456_s3 + $0x168] sm:$0xff]   ;;  %v474_v15 = vld [vmem:[#allocation2 + $0x5c] sm:$0x1] }
  0x79   : > { %v1324_v5 = vsel %vm6735_vm3, %v1319_v59, %v1323_v50  ;;  %v5933_v14 = vpack.c.bf16 %v358_v0, %v358_v0  ;;  %v672_v22 = vshrl.u32 %v5932_v10, 16  ;;  %v675_v24 = vshll.u32 %v5932_v10, 16  ;;  %v943_v57 = vld [vmem:[#allocation2 + $0x48] sm:$0xf]  ;;  %v1685_v59 = vld [vmem:[#allocation2 + $0x18] sm:$0xe]  ;;  %6188 = vmatprep.subr.bf16.mxu0 %v6562_v42 }
  0x7a   : > { %v1334_v21 = vsel %vm6735_vm3, %v1329_v6, %v1333_v54  ;;  %v7095_v32 = vsel %vm7033_vm14, %v1789_v18, %v1790_v28  ;;  %v327_v40 = vadd.f32 %v7016_v17, %v288_v20  ;;  %v328_v41 = vadd.f32 %v7016_v17, %v289_v23  ;;  %v6554_v58 = vld [vmem:[#allocation2 + $0x24] sm:$0xff]   ;;  %v1686_v60 = vld [vmem:[#allocation2 + $0x1c] sm:$0xf]  ;;  %v7118_v3 = vld [vmem:[#allocation2 + $0x20] sm:$0x1] }
  0x7b   : > { %v5674_v34 = vcombine.low %v1324_v5, %v1334_v21  ;;  %v680_v27 = vshrl.u32 %v5933_v14, 16  ;;  %v683_v31 = vshll.u32 %v5933_v14, 16  ;;  %v1179_v35 = vld [vmem:[#allocation2 + $0x3c] sm:$0xf]  ;;  %v674_v36 = vrot.slane %v672_v22, 7  ;;  %v6563_v4 = vld [vmem:[%s8456_s3 + $0x128] sm:$0xff]  }
  0x7c   : > { %4773 = vmatmul.mubr.bf16.vlgmr.msra.gmra.mrb[16].mxu1 %v5702_v29  ;;  %v5703_v37 = vcombine.low %v7082_v16, %v7095_v32  ;;  %v1180_v43 = vld [vmem:[#allocation2 + $0x40] sm:$0xf]  ;;  %v1181_v44 = vld [vmem:[#allocation2 + $0x44] sm:$0x1]  ;;  %v1336_v46 = vshrl.u32 %v1179_v35, 16  ;;  %v1339_v38 = vshll.u32 %v1179_v35, 16  ;;  %v7111_v29 = vmul.f32 %v7000_v7, %v251_v25  ;;  %6189 = vmatpush3.bf16.msra.mxu0 %v6563_v4 }
  0x7d   : > { %4643 = vmatprep.mubr.bf16.mxu0 %v5674_v34  ;;  %6291 = vmatpush3.bf16.msra.mxu1 %v6548_v9  ;;  %v7114_v47 = vmul.f32 %v7000_v7, %v252_v26  ;;  %v1345_v48 = vshll.u32 %v1180_v43, 16  ;;  %v1349_v49 = vshrl.u32 %v1180_v43, 16  ;;  %v1355_v50 = vshll.u32 %v1181_v44, 16  ;;  %v947_v1 = vld [vmem:[#allocation2 + $0x50] sm:$0x1] }
  0x7e   : > { %4644 = vmatmul.mubr.bf16.gmra.mrb[16].mxu0 %v6543_v11  ;;  %4780 = vmatprep.mubr.bf16.mxu1 %v6552_v12  ;;  %v677_v51 = vor.u32 %v675_v24, %v674_v36  ;;  %v1338_v52 = vrot.slane %v1336_v46, 4  ;;  %v1341_v54 = vrot.slane %v1339_v38, 5  ;;  %v678_v55 = vrot.slane %v674_v36, 4  ;;  %v6565_v21 = vld [vmem:[%s8456_s3 + $0x1d0] sm:$0xff]   ;;  %v427_v32 = vld [vmem:[#allocation2 + $0x60] sm:$0x1] }
  0x7f   : > { %v682_v56 = vrot.slane %v680_v27, 7  ;;  %6292 = vmatprep.subr.bf16.mxu1 %v6556_v19  ;;  %v1347_v61 = vrot.slane %v1345_v48, 5  ;;  %v1351_v62 = vrot.slane %v1349_v49, 4  ;;  %v1357_v63 = vrot.slane %v1355_v50, 5  ;;  %v6549_v36 = vld [vmem:[#allocation2 + $0x3c] sm:$0xff]  }
  0x80   : > { %v944_v0 = vsel %vm6798_vm11, %v677_v51, %v943_v57  ;;  %v1342_v5 = vor.u32 %v1341_v54, %v1338_v52  ;;  %v359_v10 = vmax.f32 %v327_v40, 0.0  ;;  %v360_v11 = vmax.f32 %v328_v41, 0.0  ;;  %v477_v50 = vld [vmem:[#allocation2 + $0x68] sm:$0x1] }
  0x81   : > { %v685_v6 = vor.u32 %v683_v31, %v682_v56  ;;  %v687_v9 = vrot.slane %v682_v56, 4  ;;  %945 = vst [vmem:[#allocation2 + $0x48] sm:$0xf] %v944_v0  ;;  %6293 = vmatpush3.bf16.msra.mxu1 %v6558_v33  ;;  %v1352_v28 = vor.u32 %v1351_v62, %v1347_v61  ;;  %v425_v12 = vsel %vm6751_vm5, 0, %v424_v2  ;;  %v253_v33 = vld [vmem:[%s6715_s22 + $0x80] sm:$0xff] }
  0x82   : > { %v475_v14 = vsel %vm6761_vm7, 0, %v474_v15  ;;  %v1343_v16 = vrot.slane %v1342_v5, 4  ;;  %426 = vst [vmem:[#allocation2 + $0x54] sm:$0x1] %v425_v12  ;;  %v5934_v20 = vpack.c.bf16 %v359_v10, %v359_v10  ;;  %v5935_v24 = vpack.c.bf16 %v360_v11, %v360_v11  ;;  %6294 = vmatprep.subr.bf16.mxu1 %v6565_v21  ;;  %v6560_v15 = vld [vmem:[#allocation2 + $0x30] sm:$0xff]  }
  0x83   : > { %v686_v18 = vsel %vm6791_vm10, %v678_v55, %v685_v6  ;;  %v948_v19 = vsel %vm6751_vm5, %v687_v9, %v947_v1  ;;  %476 = vst [vmem:[#allocation2 + $0x5c] sm:$0x1] %v475_v14  ;;  %v1353_v22 = vrot.slane %v1352_v28, 4  ;;  %v5688_v23 = vrot.slane %v1685_v59, 9  ;;  %v1688_v62 = vld [vmem:[#allocation2 + $0x24] sm:$0xe] }
  0x84   : > { %946 = vst [vmem:[#allocation2 + $0x4c] sm:$0xf] %v686_v18  ;;  %949 = vst [vmem:[#allocation2 + $0x50] sm:$0x1] %v948_v19  ;;  %4781 = vmatmul.mubr.bf16.gmra.mrb[20].mxu1 %v5703_v37  ;;  %v1794_v25 = vrot.slane %v1686_v60, 5  ;;  %v1348_v26 = vsel %vm6735_vm3, %v1343_v16, %v1347_v61  ;;  %v689_v34 = vshrl.u32 %v5934_v20, 16  ;;  %v329_v46 = vadd.f32 %v7016_v17, %v7111_v29 }
  0x85   : > { %4788 = vmatprep.mubr.bf16.mxu1 %v6554_v58  ;;  %v692_v27 = vshll.u32 %v5934_v20, 16  ;;  %v1797_v31 = vrot.slane %v7118_v3, 5  ;;  %v1358_v35 = vsel %vm6735_vm3, %v1353_v22, %v1357_v63  ;;  %v697_v40 = vshrl.u32 %v5935_v24, 16  ;;  %v6566_v29 = vld [vmem:[%s8456_s3 + $0x190] sm:$0xff]   ;;  %v1689_v63 = vld [vmem:[#allocation2 + $0x28] sm:$0xf] }
  0x86   : > { %v700_v37 = vshll.u32 %v5935_v24, 16  ;;  %v1795_v41 = vsel %vm7033_vm14, %v5688_v23, %v1794_v25  ;;  %v5675_v42 = vcombine.low %v1348_v26, %v1358_v35  ;;  %v691_v43 = vrot.slane %v689_v34, 7  ;;  %v7158_v9 = vld [vmem:[#allocation2 + $0x2c] sm:$0x1]  ;;  %6295 = vmatpush3.bf16.msra.mxu1 %v6566_v29 }
  0x87   : > { %v1796_v44 = vrot.slane %v1794_v25, 4  ;;  %v699_v2 = vrot.slane %v697_v40, 7  ;;  %v330_v48 = vadd.f32 %v7016_v17, %v7114_v47  ;;  %v428_v49 = vsel %vm6751_vm5, 0, %v427_v32  ;;  %v254_v23 = vld [vmem:[%s6715_s22 + $0x88] sm:$0xff]  ;;  %v255_v40 = vld [vmem:[%s6715_s22 + $0x90] sm:$0xff] }
  0x88   : > { %v1182_v38 = vld [vmem:[#allocation2 + $0x48] sm:$0xf]  ;;  %v7149_v51 = vmul.f32 %v7000_v7, %v253_v33  ;;  %4651 = vmatprep.mubr.bf16.mxu0 %v5675_v42  ;;  %v694_v55 = vor.u32 %v692_v27, %v691_v43  ;;  %v695_v56 = vrot.slane %v691_v43, 4  ;;  %429 = vst [vmem:[#allocation2 + $0x60] sm:$0x1] %v428_v49  ;;  %v361_v61 = vmax.f32 %v329_v46, 0.0 }
  0x89   : > { %v1360_v52 = vshrl.u32 %v1182_v38, 16  ;;  %v1363_v54 = vshll.u32 %v1182_v38, 16  ;;  %4652 = vmatmul.mubr.bf16.gmra.mrb[20].mxu0 %v6549_v36  ;;  %v702_v57 = vor.u32 %v700_v37, %v699_v2  ;;  %v704_v47 = vrot.slane %v699_v2, 4  ;;  %v950_v58 = vld [vmem:[#allocation2 + $0x54] sm:$0xf] }
  0x8a   : > { %v954_v59 = vld [vmem:[#allocation2 + $0x5c] sm:$0x1]  ;;  %v1798_v60 = vsel %vm7033_vm14, %v1796_v44, %v1797_v31  ;;  %v951_v5 = vsel %vm6798_vm11, %v694_v55, %v950_v58  ;;  %v362_v18 = vmax.f32 %v330_v48, 0.0  ;;  %v478_v19 = vsel %vm6761_vm7, 0, %v477_v50  ;;  %v6569_v31 = vld [vmem:[%s8456_s3 + $0x170] sm:$0xff]  }
  0x8b   : > { %v1183_v0 = vld [vmem:[#allocation2 + $0x4c] sm:$0xf]  ;;  %v1184_v1 = vld [vmem:[#allocation2 + $0x50] sm:$0x1]  ;;  %v1362_v3 = vrot.slane %v1360_v52, 4  ;;  %v1365_v4 = vrot.slane %v1363_v54, 5  ;;  %v5704_v6 = vcombine.low %v1795_v41, %v1798_v60  ;;  %v703_v12 = vsel %vm6791_vm10, %v695_v56, %v702_v57  ;;  %6190 = vmatprep.subr.bf16.mxu0 %v6569_v31 }
  0x8c   : > { %v1369_v10 = vshll.u32 %v1183_v0, 16  ;;  %v1373_v28 = vshrl.u32 %v1183_v0, 16  ;;  %v1379_v11 = vshll.u32 %v1184_v1, 16  ;;  %952 = vst [vmem:[#allocation2 + $0x54] sm:$0xf] %v951_v5  ;;  %v955_v16 = vsel %vm6751_vm5, %v704_v47, %v954_v59  ;;  %v6553_v38 = vld [vmem:[#allocation2 + $0x48] sm:$0xff]  }
  0x8d   : > { %v1366_v14 = vor.u32 %v1365_v4, %v1362_v3  ;;  %953 = vst [vmem:[#allocation2 + $0x58] sm:$0xf] %v703_v12  ;;  %4789 = vmatmul.mubr.bf16.gmra.mrb[24].mxu1 %v5704_v6  ;;  %956 = vst [vmem:[#allocation2 + $0x5c] sm:$0x1] %v955_v16  ;;  %v5936_v24 = vpack.c.bf16 %v361_v61, %v361_v61  ;;  %v5937_v26 = vpack.c.bf16 %v362_v18, %v362_v18  ;;  %v430_v44 = vld [vmem:[#allocation2 + $0x6c] sm:$0x1] }
  0x8e   : > { %v1371_v20 = vrot.slane %v1369_v10, 5  ;;  %v1375_v21 = vrot.slane %v1373_v28, 4  ;;  %v1381_v22 = vrot.slane %v1379_v11, 5  ;;  %4796 = vmatprep.mubr.bf16.mxu1 %v6560_v15  ;;  %479 = vst [vmem:[#allocation2 + $0x68] sm:$0x1] %v478_v19  ;;  %v5689_v34 = vrot.slane %v1688_v62, 9 }
  0x8f   : > { %v1367_v25 = vrot.slane %v1366_v14, 4  ;;  %v1801_v27 = vrot.slane %v1689_v63, 5  ;;  %v706_v33 = vshrl.u32 %v5936_v24, 16  ;;  %v709_v35 = vshll.u32 %v5936_v24, 16  ;;  %v957_v15 = vld [vmem:[#allocation2 + $0x60] sm:$0xf] }
  0x90   : > { %v1376_v32 = vor.u32 %v1375_v21, %v1371_v20  ;;  %v1804_v36 = vrot.slane %v7158_v9, 5  ;;  %v714_v41 = vshrl.u32 %v5937_v26, 16  ;;  %v717_v42 = vshll.u32 %v5937_v26, 16  ;;  %v1691_v1 = vld [vmem:[#allocation2 + $0x30] sm:$0xe]  ;;  %v6564_v10 = vld [vmem:[#allocation2 + $0x3c] sm:$0xff]  }
  0x91   : > { %v1372_v37 = vsel %vm6735_vm3, %v1367_v25, %v1371_v20  ;;  %v1802_v43 = vsel %vm7033_vm14, %v5689_v34, %v1801_v27  ;;  %v708_v2 = vrot.slane %v706_v33, 7  ;;  %v1803_v48 = vrot.slane %v1801_v27, 4  ;;  %v6570_v28 = vld [vmem:[%s8456_s3 + $0x130] sm:$0xff]   ;;  %v256_v19 = vld [vmem:[%s6715_s22 + $0x98] sm:$0xff] }
  0x92   : > { %v1377_v46 = vrot.slane %v1376_v32, 4  ;;  %v293_v49 = vmul.f32 %v7000_v7, %v254_v23  ;;  %v716_v52 = vrot.slane %v714_v41, 7  ;;  %v331_v54 = vadd.f32 %v7016_v17, %v7149_v51  ;;  %v480_v51 = vld [vmem:[#allocation2 + $0x74] sm:$0x1]  ;;  %v1693_v23 = vld [vmem:[#allocation2 + $0x38] sm:$0x1]  ;;  %6191 = vmatpush3.bf16.msra.mxu0 %v6570_v28 }
  0x93   : > { %v1185_v50 = vld [vmem:[#allocation2 + $0x54] sm:$0xf]  ;;  %v431_v55 = vsel %vm6751_vm5, 0, %v430_v44  ;;  %v7182_v56 = vmul.f32 %v7000_v7, %v255_v40  ;;  %v711_v59 = vor.u32 %v709_v35, %v708_v2  ;;  %v712_v0 = vrot.slane %v708_v2, 4  ;;  %v6573_v25 = vld [vmem:[%s8456_s3 + $0x1d8] sm:$0xff]  }
  0x94   : > { %v1382_v29 = vsel %vm6735_vm3, %v1377_v46, %v1381_v22  ;;  %v1186_v57 = vld [vmem:[#allocation2 + $0x58] sm:$0xf]  ;;  %v1384_v47 = vshrl.u32 %v1185_v50, 16  ;;  %v1387_v58 = vshll.u32 %v1185_v50, 16  ;;  %432 = vst [vmem:[#allocation2 + $0x6c] sm:$0x1] %v431_v55  ;;  %v719_v6 = vor.u32 %v717_v42, %v716_v52  ;;  %6296 = vmatprep.subr.bf16.mxu1 %v6573_v25 }
  0x95   : > { %v5676_v60 = vcombine.low %v1372_v37, %v1382_v29  ;;  %v1187_v61 = vld [vmem:[#allocation2 + $0x5c] sm:$0x1]  ;;  %v1393_v62 = vshll.u32 %v1186_v57, 16  ;;  %v1397_v63 = vshrl.u32 %v1186_v57, 16  ;;  %v961_v9 = vld [vmem:[#allocation2 + $0x68] sm:$0x1]  ;;  %v958_v16 = vsel %vm6798_vm11, %v711_v59, %v957_v15 }
  0x96   : > { %v1386_v3 = vrot.slane %v1384_v47, 4  ;;  %v1389_v4 = vrot.slane %v1387_v58, 5  ;;  %v1403_v5 = vshll.u32 %v1187_v61, 16  ;;  %v721_v14 = vrot.slane %v716_v52, 4  ;;  %v1692_v18 = vld [vmem:[#allocation2 + $0x34] sm:$0xf] }
  0x97   : > { %4659 = vmatprep.mubr.bf16.mxu0 %v5676_v60  ;;  %v1395_v11 = vrot.slane %v1393_v62, 5  ;;  %v1399_v12 = vrot.slane %v1397_v63, 4  ;;  %v720_v22 = vsel %vm6791_vm10, %v712_v0, %v719_v6  ;;  %959 = vst [vmem:[#allocation2 + $0x60] sm:$0xf] %v958_v16  ;;  %v1805_v24 = vsel %vm7033_vm14, %v1803_v48, %v1804_v36  ;;  %v6559_v2 = vld [vmem:[#allocation2 + $0x54] sm:$0xff]   ;;  %v257_v50 = vld [vmem:[%s6715_s22 + $0xa0] sm:$0xff] }
  0x98   : > { %4660 = vmatmul.mubr.bf16.gmra.mrb[24].mxu0 %v6553_v38  ;;  %v1390_v20 = vor.u32 %v1389_v4, %v1386_v3  ;;  %v1405_v21 = vrot.slane %v1403_v5, 5  ;;  %960 = vst [vmem:[#allocation2 + $0x64] sm:$0xf] %v720_v22  ;;  %v962_v34 = vsel %vm6751_vm5, %v721_v14, %v961_v9  ;;  %v5705_v27 = vcombine.low %v1802_v43, %v1805_v24  ;;  %v6568_v29 = vld [vmem:[#allocation2 + $0x48] sm:$0xff]   ;;  %v433_v9 = vld [vmem:[#allocation2 + $0x78] sm:$0x1] }
  0x99   : > { %v1400_v26 = vor.u32 %v1399_v12, %v1395_v11  ;;  %v332_v31 = vadd.f32 %v7016_v17, %v293_v49  ;;  %963 = vst [vmem:[#allocation2 + $0x68] sm:$0x1] %v962_v34  ;;  %v363_v33 = vmax.f32 %v331_v54, 0.0  ;;  %v481_v35 = vsel %vm6761_vm7, 0, %v480_v51  ;;  %v483_v16 = vld [vmem:[#allocation2 + $0x80] sm:$0x1] }
  0x9a   : > { %v1391_v32 = vrot.slane %v1390_v20, 4  ;;  %v5690_v36 = vrot.slane %v1691_v1, 9  ;;  %4797 = vmatmul.mubr.bf16.gmra.mrb[28].mxu1 %v5705_v27  ;;  %482 = vst [vmem:[#allocation2 + $0x74] sm:$0x1] %v481_v35  ;;  %v1808_v41 = vrot.slane %v1692_v18, 5  ;;  %v1811_v42 = vrot.slane %v1693_v23, 5 }
  0x9b   : > { %v1401_v40 = vrot.slane %v1400_v26, 4  ;;  %v364_v37 = vmax.f32 %v332_v31, 0.0  ;;  %4804 = vmatprep.mubr.bf16.mxu1 %v6564_v10  ;;  %v5938_v44 = vpack.c.bf16 %v363_v33, %v363_v33  ;;  %v295_v46 = vmul.f32 %v7000_v7, %v256_v19  ;;  %v964_v51 = vld [vmem:[#allocation2 + $0x6c] sm:$0xf]  ;;  %v1694_v22 = vld [vmem:[#allocation2 + $0x3c] sm:$0xe] }
  0x9c   : > { %v1396_v43 = vsel %vm6735_vm3, %v1391_v32, %v1395_v11  ;;  %v1809_v48 = vsel %vm7033_vm14, %v5690_v36, %v1808_v41  ;;  %v1810_v49 = vrot.slane %v1808_v41, 4  ;;  %v333_v57 = vadd.f32 %v7016_v17, %v7182_v56  ;;  %v1695_v24 = vld [vmem:[#allocation2 + $0x40] sm:$0xf]  ;;  %v1696_v23 = vld [vmem:[#allocation2 + $0x44] sm:$0x1]  ;;  %v258_v41 = vld [vmem:[%s6715_s22 + $0xa8] sm:$0xff] }
  0x9d   : > { %v1406_v38 = vsel %vm6735_vm3, %v1401_v40, %v1405_v21  ;;  %v5939_v15 = vpack.c.bf16 %v364_v37, %v364_v37  ;;  %v723_v54 = vshrl.u32 %v5938_v44, 16  ;;  %v726_v55 = vshll.u32 %v5938_v44, 16 }
  0x9e   : > { %v5677_v52 = vcombine.low %v1396_v43, %v1406_v38  ;;  %v1188_v47 = vld [vmem:[#allocation2 + $0x60] sm:$0xf]  ;;  %v1812_v60 = vsel %vm7033_vm14, %v1810_v49, %v1811_v42  ;;  %v296_v61 = vmul.f32 %v7000_v7, %v257_v50  ;;  %v334_v3 = vadd.f32 %v7016_v17, %v295_v46 }
  0x9f   : > { %v731_v58 = vshrl.u32 %v5939_v15, 16  ;;  %v734_v59 = vshll.u32 %v5939_v15, 16  ;;  %v1189_v62 = vld [vmem:[#allocation2 + $0x64] sm:$0xf]  ;;  %v1408_v63 = vshrl.u32 %v1188_v47, 16  ;;  %v1411_v0 = vshll.u32 %v1188_v47, 16 }
  0xa0   : > { %4667 = vmatprep.mubr.bf16.mxu0 %v5677_v52  ;;  %v5706_v1 = vcombine.low %v1809_v48, %v1812_v60  ;;  %v1190_v4 = vld [vmem:[#allocation2 + $0x68] sm:$0x1]  ;;  %v1417_v5 = vshll.u32 %v1189_v62, 16  ;;  %v1421_v56 = vshrl.u32 %v1189_v62, 16  ;;  %v725_v6 = vrot.slane %v723_v54, 7  ;;  %v6561_v43 = vld [vmem:[#allocation2 + $0x60] sm:$0xff]  }
  0xa1   : > { %4668 = vmatmul.mubr.bf16.gmra.mrb[28].mxu0 %v6559_v2  ;;  %v7219_v10 = vadd.f32 %v7016_v17, %v296_v61  ;;  %v1410_v28 = vrot.slane %v1408_v63, 4  ;;  %v1413_v11 = vrot.slane %v1411_v0, 5  ;;  %v1427_v7 = vshll.u32 %v1190_v4, 16  ;;  %v968_v14 = vld [vmem:[#allocation2 + $0x74] sm:$0x1] }
  0xa2   : > { %v733_v12 = vrot.slane %v731_v58, 7  ;;  %v1419_v18 = vrot.slane %v1417_v5, 5  ;;  %v1423_v19 = vrot.slane %v1421_v56, 4  ;;  %v728_v20 = vor.u32 %v726_v55, %v725_v6  ;;  %4805 = vmatmul.mubr.bf16.gmra.mrb[32].mxu1 %v5706_v1  ;;  %v436_v2 = vld [vmem:[#allocation2 + $0x84] sm:$0x1]  ;;  %v6574_v55 = vld [vmem:[%s8456_s3 + $0x198] sm:$0xff]  }
  0xa3   : > { %v729_v21 = vrot.slane %v725_v6, 4  ;;  %v1414_v25 = vor.u32 %v1413_v11, %v1410_v28  ;;  %v1429_v26 = vrot.slane %v1427_v7, 5  ;;  %4812 = vmatprep.mubr.bf16.mxu1 %v6568_v29  ;;  %v365_v32 = vmax.f32 %v333_v57, 0.0  ;;  %v486_v15 = vld [vmem:[#allocation2 + $0x8c] sm:$0x1]  ;;  %6297 = vmatpush3.bf16.msra.mxu1 %v6574_v55  ;;  %v6577_v5 = vld [vmem:[%s8456_s3 + $0x138] sm:$0xff]  }
  0xa4   : > { %v736_v34 = vor.u32 %v734_v59, %v733_v12  ;;  %v738_v17 = vrot.slane %v733_v12, 4  ;;  %v1424_v27 = vor.u32 %v1423_v19, %v1419_v18  ;;  %v965_v31 = vsel %vm6798_vm11, %v728_v20, %v964_v51  ;;  %v7234_v54 = vld [vmem:[#allocation2 + $0x48] sm:$0xe]  ;;  %v6576_v59 = vld [vmem:[%s8456_s3 + $0x178] sm:$0xff]   ;;  %v7249_v1 = vld [vmem:[%s8454_s1] ss:$0 sm:$0xff] }
  0xa5   : > { %v366_v33 = vmax.f32 %v334_v3, 0.0  ;;  %v1415_v35 = vrot.slane %v1414_v25, 4  ;;  %966 = vst [vmem:[#allocation2 + $0x6c] sm:$0xf] %v965_v31  ;;  %v434_v37 = vsel %vm6751_vm5, 0, %v433_v9  ;;  %v484_v44 = vsel %vm6761_vm7, 0, %v483_v16  ;;  %6192 = vmatprep.subr.bf16.mxu0 %v6576_v59 }
  0xa6   : > { %v737_v36 = vsel %vm6791_vm10, %v729_v21, %v736_v34  ;;  %v969_v40 = vsel %vm6751_vm5, %v738_v17, %v968_v14  ;;  %v1425_v42 = vrot.slane %v1424_v27, 4  ;;  %435 = vst [vmem:[#allocation2 + $0x78] sm:$0x1] %v434_v37  ;;  %v5940_v46 = vpack.c.bf16 %v365_v32, %v365_v32  ;;  %485 = vst [vmem:[#allocation2 + $0x80] sm:$0x1] %v484_v44  ;;  %v6572_v6 = vld [vmem:[#allocation2 + $0x54] sm:$0xff]  }
  0xa7   : > { %967 = vst [vmem:[#allocation2 + $0x70] sm:$0xf] %v737_v36  ;;  %970 = vst [vmem:[#allocation2 + $0x74] sm:$0x1] %v969_v40  ;;  %v5941_v38 = vpack.c.bf16 %v366_v33, %v366_v33  ;;  %v1420_v48 = vsel %vm6735_vm3, %v1415_v35, %v1419_v18  ;;  %v5691_v49 = vrot.slane %v1694_v22, 9  ;;  %v1815_v50 = vrot.slane %v1695_v24, 5  ;;  %6193 = vmatpush3.bf16.msra.mxu0 %v6577_v5 }
  0xa8   : > { %v1818_v52 = vrot.slane %v1696_v23, 5  ;;  %v1430_v29 = vsel %vm6735_vm3, %v1425_v42, %v1429_v26  ;;  %v740_v57 = vshrl.u32 %v5940_v46, 16  ;;  %v743_v47 = vshll.u32 %v5940_v46, 16  ;;  %v7266_v24 = vld [vmem:[%s8455_s2] ss:$0 sm:$0xff] }
  0xa9   : > { %v748_v58 = vshrl.u32 %v5941_v38, 16  ;;  %v5678_v60 = vcombine.low %v1420_v48, %v1430_v29  ;;  %v751_v61 = vshll.u32 %v5941_v38, 16  ;;  %v1816_v62 = vsel %vm7033_vm14, %v5691_v49, %v1815_v50  ;;  %v1698_v25 = vld [vmem:[#allocation2 + $0x4c] sm:$0xf]  ;;  %v1699_v26 = vld [vmem:[#allocation2 + $0x50] sm:$0x1] }
  0xaa   : > { %v1817_v63 = vrot.slane %v1815_v50, 4  ;;  %v742_v0 = vrot.slane %v740_v57, 7  ;;  %v297_v3 = vmul.f32 %v7249_v1, %v258_v41  ;;  %v367_v4 = vmax.f32 %v7219_v10, 0.0  ;;  %v1700_v57 = vld [vmem:[#allocation2 + $0x54] sm:$0xe] }
  0xab   : > { %v750_v51 = vrot.slane %v748_v58, 7  ;;  %4675 = vmatprep.mubr.bf16.mxu0 %v5678_v60  ;;  %v437_v9 = vsel %vm6751_vm5, 0, %v436_v2  ;;  %v487_v28 = vsel %vm6761_vm7, 0, %v486_v15  ;;  %v5692_v11 = vrot.slane %v7234_v54, 9 }
  0xac   : > { %v1819_v56 = vsel %vm7033_vm14, %v1817_v63, %v1818_v52  ;;  %4676 = vmatmul.mubr.bf16.gmra.mrb[32].mxu0 %v6561_v43  ;;  %v1191_v10 = vld [vmem:[#allocation2 + $0x6c] sm:$0xf]  ;;  %v745_v7 = vor.u32 %v743_v47, %v742_v0  ;;  %v746_v12 = vrot.slane %v742_v0, 4  ;;  %438 = vst [vmem:[#allocation2 + $0x84] sm:$0x1] %v437_v9  ;;  %v336_v23 = vadd.f32 %v7266_v24, %v297_v3  ;;  %v6580_v52 = vld [vmem:[%s8456_s3 + $0x1e0] sm:$0xff]  }
  0xad   : > { %v753_v14 = vor.u32 %v751_v61, %v750_v51  ;;  %v755_v16 = vrot.slane %v750_v51, 4  ;;  %488 = vst [vmem:[#allocation2 + $0x8c] sm:$0x1] %v487_v28  ;;  %v1432_v20 = vshrl.u32 %v1191_v10, 16  ;;  %v1435_v21 = vshll.u32 %v1191_v10, 16  ;;  %6298 = vmatprep.subr.bf16.mxu1 %v6580_v52  ;;  %v6578_v51 = vld [vmem:[#allocation2 + $0x60] sm:$0xff]  }
  0xae   : > { %v1192_v18 = vld [vmem:[#allocation2 + $0x70] sm:$0xf]  ;;  %v1193_v19 = vld [vmem:[#allocation2 + $0x74] sm:$0x1]  ;;  %v5707_v22 = vcombine.low %v1816_v62, %v1819_v56  ;;  %v971_v35 = vld [vmem:[#allocation2 + $0x78] sm:$0xf]  ;;  %v5942_v40 = vpack.c.bf16 %v367_v4, %v367_v4 }
  0xaf   : > { %v1441_v34 = vshll.u32 %v1192_v18, 16  ;;  %v1445_v17 = vshrl.u32 %v1192_v18, 16  ;;  %v1451_v27 = vshll.u32 %v1193_v19, 16  ;;  %v754_v31 = vsel %vm6791_vm10, %v746_v12, %v753_v14  ;;  %v975_v36 = vld [vmem:[#allocation2 + $0x80] sm:$0x1]  ;;  %v6567_v60 = vld [vmem:[#allocation2 + $0x6c] sm:$0xff]  }
  0xb0   : > { %v1434_v32 = vrot.slane %v1432_v20, 4  ;;  %v1437_v33 = vrot.slane %v1435_v21, 5  ;;  %974 = vst [vmem:[#allocation2 + $0x7c] sm:$0xf] %v754_v31  ;;  %4813 = vmatmul.mubr.bf16.gmra.mrb[36].mxu1 %v5707_v22  ;;  %v972_v43 = vsel %vm6798_vm11, %v745_v7, %v971_v35  ;;  %v976_v46 = vsel %vm6751_vm5, %v755_v16, %v975_v36  ;;  %v1701_v3 = vld [vmem:[#allocation2 + $0x58] sm:$0xf] }
  0xb1   : > { %v1443_v37 = vrot.slane %v1441_v34, 5  ;;  %v1447_v41 = vrot.slane %v1445_v17, 4  ;;  %v1453_v42 = vrot.slane %v1451_v27, 5  ;;  %4820 = vmatprep.mubr.bf16.mxu1 %v6572_v6  ;;  %973 = vst [vmem:[#allocation2 + $0x78] sm:$0xf] %v972_v43  ;;  %v368_v38 = vmax.f32 %v336_v23, 0.0 }
  0xb2   : > { %v1438_v44 = vor.u32 %v1437_v33, %v1434_v32  ;;  %v757_v2 = vshrl.u32 %v5942_v40, 16  ;;  %977 = vst [vmem:[#allocation2 + $0x80] sm:$0x1] %v976_v46  ;;  %v760_v48 = vshll.u32 %v5942_v40, 16  ;;  %v1822_v49 = vrot.slane %v1698_v25, 5  ;;  %v6582_v43 = vld [vmem:[%s8456_s3 + $0x1a0] sm:$0xff]  }
  0xb3   : > { %v1448_v15 = vor.u32 %v1447_v41, %v1443_v37  ;;  %v1825_v50 = vrot.slane %v1699_v26, 5  ;;  %v5943_v55 = vpack.c.bf16 %v368_v38, %v368_v38  ;;  %v978_v63 = vld [vmem:[#allocation2 + $0x84] sm:$0xf]  ;;  %v5693_v9 = vrot.slane %v1700_v57, 9  ;;  %v1702_v16 = vld [vmem:[#allocation2 + $0x5c] sm:$0x1]  ;;  %6299 = vmatpush3.bf16.msra.mxu1 %v6582_v43 }
  0xb4   : > { %v1439_v54 = vrot.slane %v1438_v44, 4  ;;  %v759_v29 = vrot.slane %v757_v2, 7  ;;  %v1824_v58 = vrot.slane %v1822_v49, 4  ;;  %v1823_v0 = vsel %vm7033_vm14, %v5692_v11, %v1822_v49  ;;  %v982_v14 = vld [vmem:[#allocation2 + $0x8c] sm:$0x1]  ;;  %v7289_v11 = vld [vmem:[%s8456_s3 + $0x200] sm:$0xff]  }
  0xb5   : > { %v1449_v47 = vrot.slane %v1448_v15, 4  ;;  %v765_v62 = vshrl.u32 %v5943_v55, 16  ;;  %v768_v56 = vshll.u32 %v5943_v55, 16  ;;  %v1829_v22 = vrot.slane %v1701_v3, 5  ;;  %6426 = vmatprep.subr.bf16.mxu0 %v7289_v11  ;;  %v7296_v35 = vld [vmem:[#allocation2 + $0x10] sm:$0xf] }
  0xb6   : > { %v1444_v59 = vsel %vm6735_vm3, %v1439_v54, %v1443_v37  ;;  %v762_v61 = vor.u32 %v760_v48, %v759_v29  ;;  %v1826_v6 = vsel %vm7033_vm14, %v1824_v58, %v1825_v50  ;;  %v763_v19 = vrot.slane %v759_v29, 4  ;;  %v2626_v49 = vld [vmem:[#allocation2 + $0xc] sm:$0xe]  ;;  %v2115_v50 = vld [vmem:[#allocation2 + $0x10] sm:$0xf] }
  0xb7   : > { %v1454_v4 = vsel %vm6735_vm3, %v1449_v47, %v1453_v42  ;;  %v1195_v5 = vld [vmem:[#allocation2 + $0x7c] sm:$0xf]  ;;  %v767_v12 = vrot.slane %v765_v62, 7  ;;  %v5708_v21 = vcombine.low %v1823_v0, %v1826_v6  ;;  %v1830_v33 = vsel %vm7033_vm14, %v5693_v9, %v1829_v22  ;;  %v2114_v42 = vld [vmem:[#allocation2 + $0xc] sm:$0xf] }
  0xb8   : > { %v5679_v28 = vcombine.low %v1444_v59, %v1454_v4  ;;  %v1465_v10 = vshll.u32 %v1195_v5, 16  ;;  %v1469_v7 = vshrl.u32 %v1195_v5, 16  ;;  %v1194_v18 = vld [vmem:[#allocation2 + $0x78] sm:$0xf]  ;;  %v979_v20 = vsel %vm6798_vm11, %v762_v61, %v978_v63  ;;  %v2628_v54 = vld [vmem:[#allocation2 + $0x14] sm:$0x1] }
  0xb9   : > { %v1196_v23 = vld [vmem:[#allocation2 + $0x80] sm:$0x1]  ;;  %v1456_v25 = vshrl.u32 %v1194_v18, 16  ;;  %v1459_v26 = vshll.u32 %v1194_v18, 16  ;;  %980 = vst [vmem:[#allocation2 + $0x84] sm:$0xf] %v979_v20  ;;  %v770_v31 = vor.u32 %v768_v56, %v767_v12  ;;  %4821 = vmatmul.mubr.bf16.gmra.mrb[40].mxu1 %v5708_v21 }
  0xba   : > { %4683 = vmatprep.mubr.bf16.mxu0 %v5679_v28  ;;  %v1467_v34 = vrot.slane %v1465_v10, 5  ;;  %v1471_v17 = vrot.slane %v1469_v7, 4  ;;  %v1475_v27 = vshll.u32 %v1196_v23, 16  ;;  %v772_v32 = vrot.slane %v767_v12, 4  ;;  %4828 = vmatprep.mubr.bf16.mxu1 %v6578_v51  ;;  %v6579_v57 = vld [vmem:[#allocation2 + $0x6c] sm:$0xff]   ;;  %v6571_v51 = vld [vmem:[#allocation2 + $0x78] sm:$0xff]  }
  0xbb   : > { %4684 = vmatmul.mubr.bf16.gmra.mrb[36].mxu0 %v6567_v60  ;;  %v1458_v36 = vrot.slane %v1456_v25, 4  ;;  %v1461_v40 = vrot.slane %v1459_v26, 5  ;;  %v1831_v41 = vrot.slane %v1829_v22, 4  ;;  %v771_v46 = vsel %vm6791_vm10, %v763_v19, %v770_v31  ;;  %v6585_v47 = vld [vmem:[%s8456_s3 + $0x1e8] sm:$0xff]   ;;  %v2116_v28 = vld [vmem:[#allocation2 + $0x14] sm:$0x1] }
  0xbc   : > { %v1472_v37 = vor.u32 %v1471_v17, %v1467_v34  ;;  %v1477_v44 = vrot.slane %v1475_v27, 5  ;;  %v983_v38 = vsel %vm6751_vm5, %v772_v32, %v982_v14  ;;  %v1832_v2 = vrot.slane %v1702_v16, 5  ;;  %981 = vst [vmem:[#allocation2 + $0x88] sm:$0xf] %v771_v46  ;;  %6300 = vmatprep.subr.bf16.mxu1 %v6585_v47  ;;  %v6587_v56 = vld [vmem:[%s8456_s3 + $0x1a8] sm:$0xff]  }
  0xbd   : > { %v1462_v15 = vor.u32 %v1461_v40, %v1458_v36  ;;  %984 = vst [vmem:[#allocation2 + $0x8c] sm:$0x1] %v983_v38  ;;  %v2163_v55 = vshrl.u32 %v2114_v42, 16  ;;  %v2166_v29 = vshll.u32 %v2114_v42, 16  ;;  %v2724_v61 = vrot.slane %v7296_v35, 5  ;;  %6301 = vmatpush3.bf16.msra.mxu1 %v6587_v56 }
  0xbe   : > { %v1473_v48 = vrot.slane %v1472_v37, 4  ;;  %v1833_v52 = vsel %vm7033_vm14, %v1831_v41, %v1832_v2  ;;  %v5750_v9 = vrot.slane %v2626_v49, 9  ;;  %v2172_v10 = vshll.u32 %v2115_v50, 16  ;;  %v1703_v19 = vld [vmem:[#allocation2 + $0x60] sm:$0xe] }
  0xbf   : > { %v1463_v58 = vrot.slane %v1462_v15, 4  ;;  %v5709_v60 = vcombine.low %v1830_v33, %v1833_v52  ;;  %v2165_v63 = vrot.slane %v2163_v55, 4  ;;  %v2168_v5 = vrot.slane %v2166_v29, 5  ;;  %v1704_v23 = vld [vmem:[#allocation2 + $0x64] sm:$0xf] }
  0xc0   : > { %v1478_v59 = vsel %vm6735_vm3, %v1473_v48, %v1477_v44  ;;  %v1197_v62 = vld [vmem:[#allocation2 + $0x84] sm:$0xf]  ;;  %v2176_v7 = vshrl.u32 %v2115_v50, 16  ;;  %v2726_v16 = vrot.slane %v2724_v61, 4  ;;  %v2727_v18 = vrot.slane %v2628_v54, 5 }
  0xc1   : > { %v1468_v0 = vsel %vm6735_vm3, %v1463_v58, %v1467_v34  ;;  %v1480_v3 = vshrl.u32 %v1197_v62, 16  ;;  %v1483_v4 = vshll.u32 %v1197_v62, 16  ;;  %4829 = vmatmul.mubr.bf16.gmra.mrb[44].mxu1 %v5709_v60  ;;  %v2169_v22 = vor.u32 %v2168_v5, %v2165_v63  ;;  %v1705_v25 = vld [vmem:[#allocation2 + $0x68] sm:$0x1]  ;;  %v2629_v31 = vld [vmem:[#allocation2 + $0x18] sm:$0xe] }
  0xc2   : > { %v5680_v6 = vcombine.low %v1468_v0, %v1478_v59  ;;  %4836 = vmatprep.mubr.bf16.mxu1 %v6579_v57  ;;  %v2630_v32 = vld [vmem:[#allocation2 + $0x1c] sm:$0xf]  ;;  %v7320_v33 = vsel %vm7033_vm14, %v5750_v9, %v2724_v61  ;;  %v2174_v35 = vrot.slane %v2172_v10, 5  ;;  %v2178_v36 = vrot.slane %v2176_v7, 4  ;;  %v2631_v44 = vld [vmem:[#allocation2 + $0x20] sm:$0x1] }
  0xc3   : > { %v1482_v12 = vrot.slane %v1480_v3, 4  ;;  %v1485_v14 = vrot.slane %v1483_v4, 5  ;;  %v1198_v20 = vld [vmem:[#allocation2 + $0x88] sm:$0xf]  ;;  %v2182_v40 = vshll.u32 %v2116_v28, 16  ;;  %v2728_v43 = vsel %vm7033_vm14, %v2726_v16, %v2727_v18  ;;  %v6583_v0 = vld [vmem:[#allocation2 + $0x78] sm:$0xff]  }
  0xc4   : > { %4691 = vmatprep.mubr.bf16.mxu0 %v5680_v6  ;;  %v1199_v21 = vld [vmem:[#allocation2 + $0x8c] sm:$0x1]  ;;  %v1489_v34 = vshll.u32 %v1198_v20, 16  ;;  %v1493_v17 = vshrl.u32 %v1198_v20, 16  ;;  %v2170_v38 = vrot.slane %v2169_v22, 4  ;;  %v2179_v2 = vor.u32 %v2178_v36, %v2174_v35  ;;  %v6575_v59 = vld [vmem:[#allocation2 + $0x84] sm:$0xff]  }
  0xc5   : > { %4692 = vmatmul.mubr.bf16.gmra.mrb[40].mxu0 %v6571_v51  ;;  %v1486_v26 = vor.u32 %v1485_v14, %v1482_v12  ;;  %v1499_v27 = vshll.u32 %v1199_v21, 16  ;;  %v5694_v15 = vrot.slane %v1703_v19, 9  ;;  %v2117_v48 = vld [vmem:[#allocation2 + $0x18] sm:$0xf]  ;;  %v2184_v50 = vrot.slane %v2182_v40, 5 }
  0xc6   : > { %v1491_v41 = vrot.slane %v1489_v34, 5  ;;  %v1495_v42 = vrot.slane %v1493_v17, 4  ;;  %v1836_v52 = vrot.slane %v1704_v23, 5  ;;  %v1839_v54 = vrot.slane %v1705_v25, 5  ;;  %v2118_v62 = vld [vmem:[#allocation2 + $0x1c] sm:$0xf] }
  0xc7   : > { %v1487_v37 = vrot.slane %v1486_v26, 4  ;;  %v1501_v46 = vrot.slane %v1499_v27, 5  ;;  %v2180_v29 = vrot.slane %v2179_v2, 4  ;;  %v5751_v57 = vrot.slane %v2629_v31, 9  ;;  %v2119_v5 = vld [vmem:[#allocation2 + $0x20] sm:$0x1] }
  0xc8   : > { %v1496_v49 = vor.u32 %v1495_v42, %v1491_v41  ;;  %v2731_v47 = vrot.slane %v2630_v32, 5  ;;  %v1837_v60 = vsel %vm7033_vm14, %v5694_v15, %v1836_v52  ;;  %v1838_v61 = vrot.slane %v1836_v52, 4  ;;  %v1706_v6 = vld [vmem:[#allocation2 + $0x6c] sm:$0xe]  ;;  %v1707_v12 = vld [vmem:[#allocation2 + $0x70] sm:$0xf] }
  0xc9   : > { %v1492_v55 = vsel %vm6735_vm3, %v1487_v37, %v1491_v41  ;;  %v2187_v63 = vshrl.u32 %v2117_v48, 16  ;;  %v5766_v51 = vcombine.low %v7320_v33, %v2728_v43  ;;  %v2175_v3 = vsel %vm6735_vm3, %v2170_v38, %v2174_v35  ;;  %v1708_v14 = vld [vmem:[#allocation2 + $0x74] sm:$0x1]  ;;  %v7337_v21 = vld [vmem:[#allocation2 + $0x24] sm:$0xe] }
  0xca   : > { %v1497_v58 = vrot.slane %v1496_v49, 4  ;;  %v2734_v4 = vrot.slane %v2631_v44, 5  ;;  %v2190_v56 = vshll.u32 %v2117_v48, 16  ;;  %v1840_v28 = vsel %vm7033_vm14, %v1838_v61, %v1839_v54  ;;  %v7339_v22 = vld [vmem:[#allocation2 + $0x28] sm:$0xf]  ;;  %v6590_v27 = vld [vmem:[%s8456_s3 + $0x1f0] sm:$0xff]  }
  0xcb   : > { %v2733_v10 = vrot.slane %v2731_v47, 4  ;;  %v2189_v7 = vrot.slane %v2187_v63, 4  ;;  %v2185_v18 = vsel %vm6735_vm3, %v2180_v29, %v2184_v50  ;;  %v5710_v19 = vcombine.low %v1837_v60, %v1840_v28  ;;  %v7345_v17 = vld [vmem:[#allocation2 + $0x2c] sm:$0x1]  ;;  %v2120_v36 = vld [vmem:[#allocation2 + $0x24] sm:$0xf]  ;;  %6302 = vmatprep.subr.bf16.mxu1 %v6590_v27 }
  0xcc   : > { %v1502_v9 = vsel %vm6735_vm3, %v1497_v58, %v1501_v46  ;;  %v2192_v20 = vrot.slane %v2190_v56, 5  ;;  %v7343_v23 = vsel %vm7033_vm14, %v5751_v57, %v2731_v47  ;;  %v2196_v25 = vshll.u32 %v2118_v62, 16  ;;  %v2121_v43 = vld [vmem:[#allocation2 + $0x28] sm:$0xf]  ;;  %v2122_v44 = vld [vmem:[#allocation2 + $0x2c] sm:$0x1] }
  0xcd   : > { %v5681_v16 = vcombine.low %v1492_v55, %v1502_v9  ;;  %v2200_v26 = vshrl.u32 %v2118_v62, 16  ;;  %v2206_v34 = vshll.u32 %v2119_v5, 16  ;;  %4837 = vmatmul.mubr.bf16.gmra.mrb[48].mxu1 %v5710_v19  ;;  %v5695_v32 = vrot.slane %v1706_v6, 9  ;;  %v6592_v48 = vld [vmem:[%s8456_s3 + $0x1b0] sm:$0xff]   ;;  %v6584_v55 = vld [vmem:[#allocation2 + $0x84] sm:$0xff]  }
  0xce   : > { %v2193_v31 = vor.u32 %v2192_v20, %v2189_v7  ;;  %v1843_v33 = vrot.slane %v1707_v12, 5  ;;  %v1846_v35 = vrot.slane %v1708_v14, 5  ;;  %v5734_v40 = vcombine.low %v2175_v3, %v2185_v18  ;;  %4844 = vmatprep.mubr.bf16.mxu1 %v6583_v0  ;;  %6303 = vmatpush3.bf16.msra.mxu1 %v6592_v48  ;;  %v6586_v63 = vld [vmem:[%s8456_s3 + $0x208] sm:$0xff]   ;;  %v6595_v0 = vld [vmem:[%s8456_s3 + $0x1f8] sm:$0xff]   ;;  %v1711_v28 = vld [vmem:[#allocation2 + $0x80] sm:$0x1] }
  0xcf   : > { %4699 = vmatprep.mubr.bf16.mxu0 %v5681_v16  ;;  %v2735_v37 = vsel %vm7033_vm14, %v2733_v10, %v2734_v4  ;;  %v7352_v41 = vrot.slane %v2196_v25, 5  ;;  %v2202_v42 = vrot.slane %v2200_v26, 4  ;;  %v7354_v46 = vrot.slane %v2206_v34, 5  ;;  %v1709_v56 = vld [vmem:[#allocation2 + $0x78] sm:$0xe]  ;;  %6304 = vmatprep.subr.bf16.mxu1 %v6595_v0  ;;  %v6591_v25 = vld [vmem:[%s8456_s3 + $0x210] sm:$0xff]  }
  0xd0   : > { %4700 = vmatmul.mubr.bf16.gmra.mrb[44].mxu0 %v6575_v59  ;;  %v1844_v38 = vsel %vm7033_vm14, %v5695_v32, %v1843_v33  ;;  %v1845_v2 = vrot.slane %v1843_v33, 4  ;;  %v2738_v15 = vrot.slane %v7339_v22, 5  ;;  %v5752_v50 = vrot.slane %v7337_v21, 9  ;;  %v1710_v9 = vld [vmem:[#allocation2 + $0x7c] sm:$0xf]  ;;  %v267_v32 = vld [vmem:[%s6715_s22 + $0xf0] sm:$0xff] }
  0xd1   : > { %4933 = vmatprep.mubr.bf16.mxu0 %v5766_v51  ;;  %v2203_v49 = vor.u32 %v2202_v42, %v7352_v41  ;;  %v2211_v52 = vshrl.u32 %v2120_v36, 16  ;;  %v2214_v54 = vshll.u32 %v2120_v36, 16  ;;  %v5767_v29 = vcombine.low %v7343_v23, %v2735_v37  ;;  %v6597_v7 = vld [vmem:[%s8456_s3 + $0x1b8] sm:$0xff]   ;;  %v2635_v18 = vld [vmem:[#allocation2 + $0x30] sm:$0xe] }
  0xd2   : > { %v2194_v57 = vrot.slane %v2193_v31, 4  ;;  %v1847_v47 = vsel %vm7033_vm14, %v1845_v2, %v1846_v35  ;;  %v2741_v58 = vrot.slane %v7345_v17, 5  ;;  %v2740_v51 = vrot.slane %v2738_v15, 4  ;;  %v2636_v23 = vld [vmem:[#allocation2 + $0x34] sm:$0xf]  ;;  %6305 = vmatpush3.bf16.msra.mxu1 %v6597_v7 }
  0xd3   : > { %v2204_v59 = vrot.slane %v2203_v49, 4  ;;  %v5711_v60 = vcombine.low %v1844_v38, %v1847_v47  ;;  %v2213_v61 = vrot.slane %v2211_v52, 4  ;;  %v2216_v62 = vrot.slane %v2214_v54, 5  ;;  %v2637_v27 = vld [vmem:[#allocation2 + $0x38] sm:$0x1]  ;;  %v6588_v37 = vld [vmem:[#allocation2 + $0x90] sm:$0xff]  }
  0xd4   : > { %v2220_v3 = vshll.u32 %v2121_v43, 16  ;;  %v2224_v4 = vshrl.u32 %v2121_v43, 16  ;;  %v2230_v5 = vshll.u32 %v2122_v44, 16  ;;  %v5696_v10 = vrot.slane %v1709_v56, 9  ;;  %v2124_v44 = vld [vmem:[#allocation2 + $0x34] sm:$0xf] }
  0xd5   : > { %v2217_v6 = vor.u32 %v2216_v62, %v2213_v61  ;;  %v2199_v12 = vsel %vm6735_vm3, %v2194_v57, %v7352_v41  ;;  %4845 = vmatmul.mubr.bf16.gmra.mrb[52].mxu1 %v5711_v60  ;;  %v2209_v19 = vsel %vm6735_vm3, %v2204_v59, %v7354_v46  ;;  %v1850_v21 = vrot.slane %v1710_v9, 5  ;;  %v2125_v46 = vld [vmem:[#allocation2 + $0x38] sm:$0x1]  ;;  %v1713_v59 = vld [vmem:[#allocation2 + $0x88] sm:$0xf] }
  0xd6   : > { %v7380_v14 = vrot.slane %v2220_v3, 5  ;;  %v2226_v16 = vrot.slane %v2224_v4, 4  ;;  %v7385_v20 = vrot.slane %v2230_v5, 5  ;;  %4852 = vmatprep.mubr.bf16.mxu1 %v6584_v55  ;;  %v1853_v22 = vrot.slane %v1711_v28, 5  ;;  %v6596_v49 = vld [vmem:[%s8456_s3 + $0x218] sm:$0xff]  }
  0xd7   : > { %v2739_v26 = vsel %vm7033_vm14, %v5752_v50, %v2738_v15  ;;  %v7393_v34 = vrot.slane %v2217_v6, 4  ;;  %v2745_v31 = vrot.slane %v2636_v23, 5  ;;  %v2742_v33 = vsel %vm7033_vm14, %v2740_v51, %v2741_v58  ;;  %v1714_v60 = vld [vmem:[#allocation2 + $0x8c] sm:$0x1]  ;;  %v2638_v3 = vld [vmem:[#allocation2 + $0x3c] sm:$0xe] }
  0xd8   : > { %4934 = vmatmul.mubr.bf16.vlgmr.msra.gmra.mrb[48].mxu0 %v5734_v40  ;;  %v2227_v17 = vor.u32 %v2226_v16, %v7380_v14  ;;  %v1851_v35 = vsel %vm7033_vm14, %v5696_v10, %v1850_v21  ;;  %v1852_v36 = vrot.slane %v1850_v21, 4  ;;  %v5753_v40 = vrot.slane %v2635_v18, 9  ;;  %v2639_v9 = vld [vmem:[#allocation2 + $0x40] sm:$0xf]  ;;  %v2640_v28 = vld [vmem:[#allocation2 + $0x44] sm:$0x1] }
  0xd9   : > { %4941 = vmatprep.mubr.bf16.mxu0 %v5767_v29  ;;  %6427 = vmatpush3.bf16.msra.mxu0 %v7289_v11  ;;  %v2123_v11 = vld [vmem:[#allocation2 + $0x30] sm:$0xf]  ;;  %v5735_v41 = vcombine.low %v2199_v12, %v2209_v19  ;;  %v2748_v43 = vrot.slane %v2637_v27, 5  ;;  %v2244_v48 = vshll.u32 %v2124_v44, 16  ;;  %v5768_v50 = vcombine.low %v2739_v26, %v2742_v33  ;;  %v1712_v29 = vld [vmem:[#allocation2 + $0x84] sm:$0xe] }
  0xda   : > { %6428 = vmatprep.subr.bf16.mxu0 %v6586_v63  ;;  %v2228_v42 = vrot.slane %v2227_v17, 4  ;;  %v1854_v38 = vsel %vm7033_vm14, %v1852_v36, %v1853_v22  ;;  %v2235_v2 = vshrl.u32 %v2123_v11, 16  ;;  %v2238_v15 = vshll.u32 %v2123_v11, 16  ;;  %v2126_v16 = vld [vmem:[#allocation2 + $0x3c] sm:$0xf] }
  0xdb   : > { %v5712_v52 = vcombine.low %v1851_v35, %v1854_v38  ;;  %v2747_v54 = vrot.slane %v2745_v31, 4  ;;  %v2248_v55 = vshrl.u32 %v2124_v44, 16  ;;  %v2223_v57 = vsel %vm6735_vm3, %v7393_v34, %v7380_v14  ;;  %v2127_v23 = vld [vmem:[#allocation2 + $0x40] sm:$0xf]  ;;  %v2654_v8 = vld [vmem:[#allocation2 + $0x7c] sm:$0xf] }
  0xdc   : > { %v2237_v47 = vrot.slane %v2235_v2, 4  ;;  %v2240_v58 = vrot.slane %v2238_v15, 5  ;;  %v306_v61 = vmul.f32 %v7249_v1, %v267_v32  ;;  %v7411_v62 = vrot.slane %v2244_v48, 5  ;;  %v6589_v26 = vld [vmem:[#allocation2 + $0x9c] sm:$0xff]  }
  0xdd   : > { %6429 = vmatpush3.bf16.msra.mxu0 %v6586_v63  ;;  %4853 = vmatmul.mubr.bf16.gmra.mrb[56].mxu1 %v5712_v52  ;;  %v2250_v0 = vrot.slane %v2248_v55, 4  ;;  %v2254_v51 = vshll.u32 %v2125_v46, 16  ;;  %v5697_v63 = vrot.slane %v1712_v29, 9  ;;  %v2746_v4 = vsel %vm7033_vm14, %v5753_v40, %v2745_v31  ;;  %v2128_v31 = vld [vmem:[#allocation2 + $0x44] sm:$0x1]  ;;  %v6602_v40 = vld [vmem:[%s8456_s3 + $0x228] sm:$0xff]  }
  0xde   : > { %6430 = vmatprep.subr.bf16.mxu0 %v6591_v25  ;;  %v2241_v5 = vor.u32 %v2240_v58, %v2237_v47  ;;  %4860 = vmatprep.mubr.bf16.mxu1 %v6588_v37  ;;  %v1857_v56 = vrot.slane %v1713_v59, 5  ;;  %v1860_v6 = vrot.slane %v1714_v60, 5  ;;  %v2233_v10 = vsel %vm6735_vm3, %v2228_v42, %v7385_v20  ;;  %v6599_v20 = vld [vmem:[%s8456_s3 + $0x220] sm:$0xff]   ;;  %v1717_v55 = vld [vmem:[#allocation2 + $0x98] sm:$0x1] }
  0xdf   : > { %v2749_v7 = vsel %vm7033_vm14, %v2747_v54, %v2748_v43  ;;  %v2251_v12 = vor.u32 %v2250_v0, %v7411_v62  ;;  %v2752_v14 = vrot.slane %v2639_v9, 5  ;;  %v2256_v18 = vrot.slane %v2254_v51, 5  ;;  %v2641_v47 = vld [vmem:[#allocation2 + $0x48] sm:$0xe] }
  0xe0   : > { %4942 = vmatmul.mubr.bf16.gmra.mrb[52].mxu0 %v5735_v41  ;;  %v1858_v19 = vsel %vm7033_vm14, %v5697_v63, %v1857_v56  ;;  %v1859_v21 = vrot.slane %v1857_v56, 4  ;;  %v5754_v22 = vrot.slane %v2638_v3, 9  ;;  %v2242_v34 = vrot.slane %v2241_v5, 4  ;;  %v2643_v63 = vld [vmem:[#allocation2 + $0x50] sm:$0x1]  ;;  %v6593_v5 = vld [vmem:[#allocation2 + $0xa8] sm:$0xff]  }
  0xe1   : > { %4949 = vmatprep.mubr.bf16.mxu0 %v5768_v50  ;;  %6431 = vmatpush3.bf16.msra.mxu0 %v6591_v25  ;;  %v2252_v17 = vrot.slane %v2251_v12, 4  ;;  %v2755_v27 = vrot.slane %v2640_v28, 5  ;;  %v2259_v32 = vshrl.u32 %v2126_v16, 16  ;;  %v5736_v33 = vcombine.low %v2223_v57, %v2233_v10  ;;  %v1715_v50 = vld [vmem:[#allocation2 + $0x90] sm:$0xe]  ;;  %v268_v56 = vld [vmem:[%s6715_s22 + $0xf8] sm:$0xff] }
  0xe2   : > { %6432 = vmatprep.subr.bf16.mxu0 %v6596_v49  ;;  %v1861_v25 = vsel %vm7033_vm14, %v1859_v21, %v1860_v6  ;;  %v2262_v35 = vshll.u32 %v2126_v16, 16  ;;  %v2268_v36 = vshll.u32 %v2127_v23, 16  ;;  %v5769_v11 = vcombine.low %v2746_v4, %v2749_v7  ;;  %v6605_v6 = vld [vmem:[%s8456_s3 + $0x230] sm:$0xff]  }
  0xe3   : > { %v5713_v37 = vcombine.low %v1858_v19, %v1861_v25  ;;  %v2754_v41 = vrot.slane %v2752_v14, 4  ;;  %v2261_v42 = vrot.slane %v2259_v32, 4  ;;  %v7434_v46 = vadd.f32 %v7266_v24, %v306_v61  ;;  %v2130_v19 = vld [vmem:[#allocation2 + $0x4c] sm:$0xf]  ;;  %v6608_v32 = vld [vmem:[%s8456_s3 + $0x238] sm:$0xff]  }
  0xe4   : > { %v2264_v43 = vrot.slane %v2262_v35, 5  ;;  %v7431_v44 = vrot.slane %v2268_v36, 5  ;;  %v2247_v38 = vsel %vm6735_vm3, %v2242_v34, %v7411_v62  ;;  %v7441_v2 = vsel %vm7033_vm14, %v5754_v22, %v2752_v14  ;;  %v2642_v62 = vld [vmem:[#allocation2 + $0x4c] sm:$0xf]  ;;  %v1718_v36 = vld [vmem:[#allocation2 + $0x9c] sm:$0xe] }
  0xe5   : > { %6433 = vmatpush3.bf16.msra.mxu0 %v6596_v49  ;;  %4861 = vmatmul.mubr.bf16.gmra.mrb[60].mxu1 %v5713_v37  ;;  %v2272_v15 = vshrl.u32 %v2127_v23, 16  ;;  %v2278_v48 = vshll.u32 %v2128_v31, 16  ;;  %v1716_v49 = vld [vmem:[#allocation2 + $0x94] sm:$0xf]  ;;  %v2257_v52 = vsel %vm6735_vm3, %v2252_v17, %v2256_v18  ;;  %v5698_v29 = vrot.slane %v1715_v50, 9 }
  0xe6   : > { %6434 = vmatprep.subr.bf16.mxu0 %v6599_v20  ;;  %v2265_v54 = vor.u32 %v2264_v43, %v2261_v42  ;;  %4868 = vmatprep.mubr.bf16.mxu1 %v6589_v26  ;;  %v1864_v57 = vrot.slane %v1716_v49, 5  ;;  %v2756_v58 = vsel %vm7033_vm14, %v2754_v41, %v2755_v27  ;;  %v1867_v61 = vrot.slane %v1717_v55, 5  ;;  %v2129_v18 = vld [vmem:[#allocation2 + $0x48] sm:$0xf]  ;;  %v2131_v26 = vld [vmem:[#allocation2 + $0x50] sm:$0x1] }
  0xe7   : > { %v2274_v59 = vrot.slane %v2272_v15, 4  ;;  %v7447_v60 = vrot.slane %v2278_v48, 5  ;;  %v5755_v3 = vrot.slane %v2641_v47, 9  ;;  %v2759_v4 = vrot.slane %v2642_v62, 5  ;;  %v1719_v43 = vld [vmem:[#allocation2 + $0xa0] sm:$0xf] }
  0xe8   : > { %4950 = vmatmul.mubr.bf16.gmra.mrb[56].mxu0 %v5736_v33  ;;  %v1865_v0 = vsel %vm7033_vm14, %v5698_v29, %v1864_v57  ;;  %v1866_v51 = vrot.slane %v1864_v57, 4  ;;  %v5737_v9 = vcombine.low %v2247_v38, %v2257_v52  ;;  %v2266_v28 = vrot.slane %v2265_v54, 4  ;;  %v1720_v38 = vld [vmem:[#allocation2 + $0xa4] sm:$0x1]  ;;  %v2644_v15 = vld [vmem:[#allocation2 + $0x54] sm:$0xe] }
  0xe9   : > { %4957 = vmatprep.mubr.bf16.mxu0 %v5769_v11  ;;  %6435 = vmatpush3.bf16.msra.mxu0 %v6599_v20  ;;  %v2275_v10 = vor.u32 %v2274_v59, %v7431_v44  ;;  %v2762_v7 = vrot.slane %v2643_v63, 5  ;;  %v5770_v12 = vcombine.low %v7441_v2, %v2756_v58  ;;  %v2761_v16 = vrot.slane %v2759_v4, 4  ;;  %v2645_v52 = vld [vmem:[#allocation2 + $0x58] sm:$0xf]  ;;  %v2646_v54 = vld [vmem:[#allocation2 + $0x5c] sm:$0x1] }
  0xea   : > { %6436 = vmatprep.subr.bf16.mxu0 %v6602_v40  ;;  %v1868_v14 = vsel %vm7033_vm14, %v1866_v51, %v1867_v61  ;;  %v377_v21 = vmax.f32 %v7434_v46, 0.0  ;;  %v2283_v20 = vshrl.u32 %v2129_v18, 16  ;;  %v2286_v34 = vshll.u32 %v2129_v18, 16  ;;  %v2132_v59 = vld [vmem:[#allocation2 + $0x54] sm:$0xf] }
  0xeb   : > { %v2276_v22 = vrot.slane %v2275_v10, 4  ;;  %v5714_v23 = vcombine.low %v1865_v0, %v1868_v14  ;;  %v2292_v17 = vshll.u32 %v2130_v19, 16  ;;  %v2296_v27 = vshrl.u32 %v2130_v19, 16  ;;  %v2133_v51 = vld [vmem:[#allocation2 + $0x58] sm:$0xf] }
  0xec   : > { %v2302_v31 = vshll.u32 %v2131_v26, 16  ;;  %v2271_v33 = vsel %vm6735_vm3, %v2266_v28, %v7431_v44  ;;  %v2285_v25 = vrot.slane %v2283_v20, 4  ;;  %v2288_v35 = vrot.slane %v2286_v34, 5  ;;  %v2134_v63 = vld [vmem:[#allocation2 + $0x5c] sm:$0x1] }
  0xed   : > { %6437 = vmatpush3.bf16.msra.mxu0 %v6602_v40  ;;  %4869 = vmatmul.mubr.bf16.gmra.mrb[64].mxu1 %v5714_v23  ;;  %v307_v11 = vmul.f32 %v7249_v1, %v268_v56  ;;  %v2760_v40 = vsel %vm7033_vm14, %v5755_v3, %v2759_v4  ;;  %v7469_v37 = vrot.slane %v2292_v17, 5  ;;  %v2298_v41 = vrot.slane %v2296_v27, 4  ;;  %v1722_v27 = vld [vmem:[#allocation2 + $0xac] sm:$0xf] }
  0xee   : > { %6438 = vmatprep.subr.bf16.mxu0 %v6605_v6  ;;  %v7471_v42 = vrot.slane %v2302_v31, 5  ;;  %4876 = vmatprep.mubr.bf16.mxu1 %v6593_v5  ;;  %v2281_v44 = vsel %vm6735_vm3, %v2276_v22, %v7447_v60  ;;  %v2289_v46 = vor.u32 %v2288_v35, %v2285_v25  ;;  %v5699_v2 = vrot.slane %v1718_v36, 9  ;;  %v6594_v60 = vld [vmem:[#allocation2 + $0xb4] sm:$0xff]   ;;  %v1723_v31 = vld [vmem:[#allocation2 + $0xb0] sm:$0x1] }
  0xef   : > { %v1871_v1 = vrot.slane %v1719_v43, 5  ;;  %v2763_v48 = vsel %vm7033_vm14, %v2761_v16, %v2762_v7  ;;  %v2299_v50 = vor.u32 %v2298_v41, %v7469_v37  ;;  %v1874_v49 = vrot.slane %v1720_v38, 5  ;;  %v2648_v43 = vld [vmem:[#allocation2 + $0x64] sm:$0xf] }
  0xf0   : > { %4958 = vmatmul.mubr.bf16.gmra.mrb[60].mxu0 %v5737_v9  ;;  %v5756_v55 = vrot.slane %v2644_v15, 9  ;;  %v2290_v29 = vrot.slane %v2289_v46, 4  ;;  %v2766_v58 = vrot.slane %v2645_v52, 5  ;;  %v5738_v61 = vcombine.low %v2271_v33, %v2281_v44  ;;  %v2649_v44 = vld [vmem:[#allocation2 + $0x68] sm:$0x1] }
  0xf1   : > { %4965 = vmatprep.mubr.bf16.mxu0 %v5770_v12  ;;  %6439 = vmatpush3.bf16.msra.mxu0 %v6605_v6  ;;  %v1872_v57 = vsel %vm7033_vm14, %v5699_v2, %v1871_v1  ;;  %v1873_v47 = vrot.slane %v1871_v1, 4  ;;  %v2300_v62 = vrot.slane %v2299_v50, 4  ;;  %v2769_v0 = vrot.slane %v2646_v54, 5  ;;  %v2135_v54 = vld [vmem:[#allocation2 + $0x60] sm:$0xf] }
  0xf2   : > { %6440 = vmatprep.subr.bf16.mxu0 %v6608_v32  ;;  %v5771_v3 = vcombine.low %v2760_v40, %v2763_v48  ;;  %v2768_v5 = vrot.slane %v2766_v58, 4  ;;  %v7484_v56 = vadd.f32 %v7266_v24, %v307_v11  ;;  %v2307_v28 = vshrl.u32 %v2132_v59, 16  ;;  %v2647_v11 = vld [vmem:[#allocation2 + $0x60] sm:$0xe] }
  0xf3   : > { %v1875_v4 = vsel %vm7033_vm14, %v1873_v47, %v1874_v49  ;;  %v2310_v10 = vshll.u32 %v2132_v59, 16  ;;  %v7486_v7 = vpack.c.bf16 %v377_v21, %v377_v21  ;;  %v2295_v12 = vsel %vm6735_vm3, %v2290_v29, %v7469_v37  ;;  %v1721_v21 = vld [vmem:[#allocation2 + $0xa8] sm:$0xe]  ;;  %v2136_v59 = vld [vmem:[#allocation2 + $0x64] sm:$0xf] }
  0xf4   : > { %v5715_v9 = vcombine.low %v1872_v57, %v1875_v4  ;;  %v2767_v14 = vsel %vm7033_vm14, %v5756_v55, %v2766_v58  ;;  %v2316_v16 = vshll.u32 %v2133_v51, 16  ;;  %v2320_v18 = vshrl.u32 %v2133_v51, 16 }
  0xf5   : > { %6441 = vmatpush3.bf16.msra.mxu0 %v6608_v32  ;;  %v2305_v24 = vsel %vm6735_vm3, %v2300_v62, %v7471_v42  ;;  %v2309_v19 = vrot.slane %v2307_v28, 4  ;;  %v2312_v22 = vrot.slane %v2310_v10, 5  ;;  %v2326_v23 = vshll.u32 %v2134_v63, 16  ;;  %v451_v63 = vld [vmem:[#allocation2 + $0xc0] sm:$0x1] }
  0xf6   : > { %4877 = vmatmul.mubr.bf16.gmra.mrb[68].mxu1 %v5715_v9  ;;  %v2770_v20 = vsel %vm7033_vm14, %v2768_v5, %v2769_v0  ;;  %v2318_v34 = vrot.slane %v2316_v16, 5  ;;  %v2322_v17 = vrot.slane %v2320_v18, 4  ;;  %v5700_v35 = vrot.slane %v1721_v21, 9  ;;  %v1724_v9 = vld [vmem:[#allocation2 + $0xb4] sm:$0xe] }
  0xf7   : > { %4884 = vmatprep.mubr.bf16.mxu1 %v6594_v60  ;;  %v2313_v33 = vor.u32 %v2312_v22, %v2309_v19  ;;  %v2328_v25 = vrot.slane %v2326_v23, 5  ;;  %v1878_v36 = vrot.slane %v1722_v27, 5  ;;  %v5739_v37 = vcombine.low %v2295_v12, %v2305_v24  ;;  %v2137_v60 = vld [vmem:[#allocation2 + $0x68] sm:$0x1]  ;;  %v1725_v28 = vld [vmem:[#allocation2 + $0xb8] sm:$0xf] }
  0xf8   : > { %4966 = vmatmul.mubr.bf16.gmra.mrb[64].mxu0 %v5738_v61  ;;  %v2323_v41 = vor.u32 %v2322_v17, %v2318_v34  ;;  %v1881_v42 = vrot.slane %v1723_v31, 5  ;;  %v5757_v46 = vrot.slane %v2647_v11, 9  ;;  %v2773_v15 = vrot.slane %v2648_v43, 5  ;;  %v1726_v18 = vld [vmem:[#allocation2 + $0xbc] sm:$0x1] }
  0xf9   : > { %4973 = vmatprep.mubr.bf16.mxu0 %v5771_v3  ;;  %v2314_v38 = vrot.slane %v2313_v33, 4  ;;  %v1879_v2 = vsel %vm7033_vm14, %v5700_v35, %v1878_v36  ;;  %v1880_v1 = vrot.slane %v1878_v36, 4  ;;  %v5772_v50 = vcombine.low %v2767_v14, %v2770_v20  ;;  %v2650_v21 = vld [vmem:[#allocation2 + $0x6c] sm:$0xe]  ;;  %v2651_v35 = vld [vmem:[#allocation2 + $0x70] sm:$0xf] }
  0xfa   : > { %v2324_v49 = vrot.slane %v2323_v41, 4  ;;  %v2776_v52 = vrot.slane %v2649_v44, 5  ;;  %v2774_v47 = vsel %vm7033_vm14, %v5757_v46, %v2773_v15  ;;  %v2775_v58 = vrot.slane %v2773_v15, 4  ;;  %v2138_v46 = vld [vmem:[#allocation2 + $0x6c] sm:$0xf] }
  0xfb   : > { %v2319_v29 = vsel %vm6735_vm3, %v2314_v38, %v2318_v34  ;;  %v1882_v57 = vsel %vm7033_vm14, %v1880_v1, %v1881_v42  ;;  %v2331_v0 = vshrl.u32 %v2135_v54, 16  ;;  %v2334_v51 = vshll.u32 %v2135_v54, 16  ;;  %v2139_v15 = vld [vmem:[#allocation2 + $0x70] sm:$0xf] }
  0xfc   : > { %v2329_v61 = vsel %vm6735_vm3, %v2324_v49, %v2328_v25  ;;  %v5716_v62 = vcombine.low %v1879_v2, %v1882_v57  ;;  %v2777_v4 = vsel %vm7033_vm14, %v2775_v58, %v2776_v52  ;;  %v2340_v5 = vshll.u32 %v2136_v59, 16 }
  0xfd   : > { %v5740_v3 = vcombine.low %v2319_v29, %v2329_v61  ;;  %v5773_v10 = vcombine.low %v2774_v47, %v2777_v4  ;;  %v2333_v12 = vrot.slane %v2331_v0, 4  ;;  %v2336_v14 = vrot.slane %v2334_v51, 5 }
  0xfe   : > { %4885 = vmatmul.mubr.bf16.gmra.mrb[72].mxu1 %v5716_v62  ;;  %v2350_v16 = vshll.u32 %v2137_v60, 16  ;;  %v2342_v24 = vrot.slane %v2340_v5, 5  ;;  %v378_v22 = vmax.f32 %v7484_v56, 0.0  ;;  %v452_v23 = vsel %vm6751_vm5, 0, %v451_v63  ;;  %v2652_v56 = vld [vmem:[#allocation2 + $0x74] sm:$0x1] }
  0xff   : > { %453 = vst [vmem:[#allocation2 + $0xc0] sm:$0x1] %v452_v23  ;;  %v842_v34 = vshrl.u32 %v7486_v7, 16  ;;  %v845_v17 = vshll.u32 %v7486_v7, 16  ;;  %v5701_v33 = vrot.slane %v1724_v9, 9  ;;  %v1885_v25 = vrot.slane %v1725_v28, 5 }
 0x100   : > { %4974 = vmatmul.mubr.bf16.gmra.mrb[68].mxu0 %v5739_v37  ;;  %v2352_v20 = vrot.slane %v2350_v16, 5  ;;  %v5953_v31 = vpack.c.bf16 %v378_v22, %v378_v22  ;;  %v5758_v37 = vrot.slane %v2650_v21, 9  ;;  %v2780_v52 = vrot.slane %v2651_v35, 5  ;;  %v3060_v63 = vld [vmem:[#allocation2 + $0x1c] sm:$0xf] }
 0x101   : > { %v5970_v6 = vpop.f32.mrb[0].mxu0  ;;  %4981 = vmatprep.mubr.bf16.mxu0 %v5772_v50  ;;  %v844_v11 = vrot.slane %v842_v34, 7  ;;  %v7521_v44 = vsel %vm7033_vm14, %v5701_v33, %v1885_v25  ;;  %v1887_v1 = vrot.slane %v1885_v25, 4  ;;  %v2783_v54 = vrot.slane %v2652_v56, 5  ;;  %v3061_v9 = vld [vmem:[#allocation2 + $0x20] sm:$0x1] }
 0x102   : > { %v5971_v26 = vpop.f32.mrb[1].mxu0  ;;  %v850_v42 = vshrl.u32 %v5953_v31, 16  ;;  %v853_v43 = vshll.u32 %v5953_v31, 16  ;;  %v2355_v47 = vshrl.u32 %v2138_v46, 16  ;;  %v2358_v58 = vshll.u32 %v2138_v46, 16 }
 0x103   : > { %v7498_v32 = vadd.f32 %v5971_v26, %v5970_v6  ;;  %v5973_v40 = vpop.f32.mrb[2].mxu0  ;;  %v2344_v6 = vshrl.u32 %v2136_v59, 16  ;;  %v2337_v26 = vor.u32 %v2336_v14, %v2333_v12  ;;  %v847_v38 = vor.u32 %v845_v17, %v844_v11  ;;  %v3059_v59 = vld [vmem:[#allocation2 + $0x18] sm:$0xf]  ;;  %v2655_v35 = vld [vmem:[#allocation2 + $0x80] sm:$0x1] }
 0x104   : > { %v5974_v48 = vpop.f32.mrb[3].mxu0  ;;  %v848_v2 = vrot.slane %v844_v11, 4  ;;  %v7527_v49 = vrot.slane %v850_v42, 7  ;;  %v2781_v51 = vsel %vm7033_vm14, %v5758_v37, %v2780_v52  ;;  %v2782_v4 = vrot.slane %v2780_v52, 4  ;;  %v2653_v23 = vld [vmem:[#allocation2 + $0x78] sm:$0xe] }
 0x105   : > { %v7502_v55 = vadd.f32 %v5974_v48, %v5973_v40  ;;  %v2346_v19 = vrot.slane %v2344_v6, 4  ;;  %v2338_v36 = vrot.slane %v2337_v26, 4  ;;  %v1888_v40 = vrot.slane %v1726_v18, 5  ;;  %v2140_v48 = vld [vmem:[#allocation2 + $0x74] sm:$0x1] }
 0x106   : > { %v855_v60 = vor.u32 %v853_v43, %v7527_v49  ;;  %v857_v61 = vrot.slane %v7527_v49, 4  ;;  %v1013_v62 = vld [vmem:[#allocation2 + $0xc0] sm:$0xf]  ;;  %v2357_v5 = vrot.slane %v2355_v47, 4  ;;  %v2360_v6 = vrot.slane %v2358_v58, 5 }
 0x107   : > { %v2347_v27 = vor.u32 %v2346_v19, %v2342_v24  ;;  %v2343_v7 = vsel %vm6735_vm3, %v2338_v36, %v2342_v24  ;;  %v7531_v57 = vsel %vm7033_vm14, %v1887_v1, %v1888_v40  ;;  %v2364_v12 = vshll.u32 %v2139_v15, 16  ;;  %v2141_v37 = vld [vmem:[#allocation2 + $0x78] sm:$0xf]  ;;  %v3062_v52 = vld [vmem:[#allocation2 + $0x24] sm:$0xf] }
 0x108   : > { %4982 = vmatmul.mubr.bf16.gmra.mrb[72].mxu0 %v5740_v3  ;;  %v5717_v0 = vcombine.low %v7521_v44, %v7531_v57  ;;  %v1014_v3 = vsel %vm6798_vm11, %v847_v38, %v1013_v62  ;;  %v2368_v14 = vshrl.u32 %v2139_v15, 16  ;;  %v2374_v16 = vshll.u32 %v2140_v48, 16  ;;  %v2142_v38 = vld [vmem:[#allocation2 + $0x7c] sm:$0xf]  ;;  %v2658_v44 = vld [vmem:[#allocation2 + $0x8c] sm:$0x1] }
 0x109   : > { %v2348_v41 = vrot.slane %v2347_v27, 4  ;;  %4989 = vmatprep.mubr.bf16.mxu0 %v5773_v10  ;;  %v856_v10 = vsel %vm6791_vm10, %v848_v2, %v855_v60  ;;  %1015 = vst [vmem:[#allocation2 + $0xc0] sm:$0xf] %v1014_v3  ;;  %v2784_v13 = vsel %vm7033_vm14, %v2782_v4, %v2783_v54  ;;  %v2361_v24 = vor.u32 %v2360_v6, %v2357_v5 }
 0x10a   : > { %1016 = vst [vmem:[#allocation2 + $0xc4] sm:$0xf] %v856_v10  ;;  %v3108_v19 = vshrl.u32 %v3059_v59, 16  ;;  %v3111_v22 = vshll.u32 %v3059_v59, 16  ;;  %v5774_v21 = vcombine.low %v2781_v51, %v2784_v13  ;;  %v2366_v26 = vrot.slane %v2364_v12, 5 }
 0x10b   : > { %v2353_v50 = vsel %vm6735_vm3, %v2348_v41, %v2352_v20  ;;  %v2370_v20 = vrot.slane %v2368_v14, 4  ;;  %v2376_v34 = vrot.slane %v2374_v16, 5  ;;  %v2362_v27 = vrot.slane %v2361_v24, 4  ;;  %v3063_v12 = vld [vmem:[#allocation2 + $0x28] sm:$0xf] }
 0x10c   : > { %v5741_v29 = vcombine.low %v2343_v7, %v2353_v50  ;;  %v3110_v31 = vrot.slane %v3108_v19, 4  ;;  %v3113_v33 = vrot.slane %v3111_v22, 5  ;;  %v3117_v25 = vshll.u32 %v3060_v63, 16  ;;  %v2143_v50 = vld [vmem:[#allocation2 + $0x80] sm:$0x1] }
 0x10d   : > { %v7541_v28 = vpop.f32.mrb[0].mxu1  ;;  %v2371_v36 = vor.u32 %v2370_v20, %v2366_v26  ;;  %v3121_v11 = vshrl.u32 %v3060_v63, 16  ;;  %v3127_v40 = vshll.u32 %v3061_v9, 16  ;;  %v5759_v56 = vrot.slane %v2653_v23, 9  ;;  %v3064_v22 = vld [vmem:[#allocation2 + $0x2c] sm:$0x1] }
 0x10e   : > { %v7545_v18 = vpop.f32.mrb[1].mxu1  ;;  %v2367_v42 = vsel %vm6735_vm3, %v2362_v27, %v2366_v26  ;;  %v3114_v43 = vor.u32 %v3113_v33, %v3110_v31  ;;  %v3119_v46 = vrot.slane %v3117_v25, 5  ;;  %v2787_v7 = vrot.slane %v2654_v8, 5  ;;  %v2656_v25 = vld [vmem:[#allocation2 + $0x84] sm:$0xe] }
 0x10f   : > { %v7549_v17 = vpop.f32.mrb[2].mxu1  ;;  %v2372_v2 = vrot.slane %v2371_v36, 4  ;;  %v3123_v1 = vrot.slane %v3121_v11, 4  ;;  %v3129_v15 = vrot.slane %v3127_v40, 5  ;;  %v2790_v48 = vrot.slane %v2655_v35, 5 }
 0x110   : > { %4990 = vmatmul.mubr.bf16.gmra.mrb[76].mxu0 %v5741_v29  ;;  %v7551_v41 = vpop.f32.mrb[3].mxu1  ;;  %v3115_v54 = vrot.slane %v3114_v43, 4  ;;  %v2788_v29 = vsel %vm7033_vm14, %v5759_v56, %v2787_v7  ;;  %v2789_v47 = vrot.slane %v2787_v7, 4  ;;  %v2379_v58 = vshrl.u32 %v2141_v37, 16  ;;  %v2657_v35 = vld [vmem:[#allocation2 + $0x88] sm:$0xf] }
 0x111   : > { %4997 = vmatprep.mubr.bf16.mxu0 %v5774_v21  ;;  %v6598_v60 = vld [vmem:[#allocation2 + $0xc0] sm:$0xff]   ;;  %v2377_v62 = vsel %vm6735_vm3, %v2372_v2, %v2376_v34  ;;  %v3124_v51 = vor.u32 %v3123_v1, %v3119_v46  ;;  %v2382_v63 = vshll.u32 %v2141_v37, 16  ;;  %v2388_v3 = vshll.u32 %v2142_v38, 16  ;;  %v6600_v43 = vld [vmem:[#allocation2 + $0x18] sm:$0xff]  }
 0x112   : > { %v5742_v5 = vcombine.low %v2367_v42, %v2377_v62  ;;  %v3120_v6 = vsel %vm6735_vm3, %v3115_v54, %v3119_v46  ;;  %v2791_v9 = vsel %vm7033_vm14, %v2789_v47, %v2790_v48  ;;  %v2381_v10 = vrot.slane %v2379_v58, 4  ;;  %4892 = vmatprep.mubr.bf16.mxu1 %v6598_v60  ;;  %v2144_v1 = vld [vmem:[#allocation2 + $0x84] sm:$0xf]  ;;  %v2145_v54 = vld [vmem:[#allocation2 + $0x88] sm:$0xf] }
 0x113   : > { %v3125_v16 = vrot.slane %v3124_v51, 4  ;;  %v5775_v13 = vcombine.low %v2788_v29, %v2791_v9  ;;  %v2384_v24 = vrot.slane %v2382_v63, 5  ;;  %v2390_v19 = vrot.slane %v2388_v3, 5  ;;  %4893 = vmatmul.mubr.bf16.gmra.mrb[76].mxu1 %v5717_v0  ;;  %v2160_v45 = vld [vmem:[#allocation2 + $0xc4] sm:$0xf] }
 0x114   : > { %v2392_v21 = vshrl.u32 %v2142_v38, 16  ;;  %v2398_v26 = vshll.u32 %v2143_v50, 16  ;;  %v3132_v20 = vshrl.u32 %v3062_v52, 16  ;;  %v3135_v34 = vshll.u32 %v3062_v52, 16 }
 0x115   : > { %v7557_v59 = vpop.f32.mrb[4].mxu0  ;;  %v3130_v8 = vsel %vm6735_vm3, %v3125_v16, %v3129_v15  ;;  %v2385_v27 = vor.u32 %v2384_v24, %v2381_v10  ;;  %v3141_v31 = vshll.u32 %v3063_v12, 16  ;;  %v3145_v33 = vshrl.u32 %v3063_v12, 16  ;;  %v3065_v24 = vld [vmem:[#allocation2 + $0x30] sm:$0xf] }
 0x116   : > { %v7561_v4 = vpop.f32.mrb[5].mxu0  ;;  %v5798_v36 = vcombine.low %v3120_v6, %v3130_v8  ;;  %v2394_v11 = vrot.slane %v2392_v21, 4  ;;  %v2400_v40 = vrot.slane %v2398_v26, 5  ;;  %v3134_v56 = vrot.slane %v3132_v20, 4 }
 0x117   : > { %v7567_v14 = vpop.f32.mrb[6].mxu0  ;;  %v2386_v57 = vrot.slane %v2385_v27, 4  ;;  %v3137_v0 = vrot.slane %v3135_v34, 5  ;;  %v3143_v37 = vrot.slane %v3141_v31, 5  ;;  %v3147_v42 = vrot.slane %v3145_v33, 4  ;;  %v6601_v27 = vld [vmem:[#allocation2 + $0x24] sm:$0xff]  }
 0x118   : > { %v7569_v23 = vpop.f32.mrb[7].mxu0  ;;  %4998 = vmatmul.mubr.bf16.gmra.mrb[80].mxu0 %v5742_v5  ;;  %5094 = vmatprep.mubr.bf16.mxu1 %v5798_v36  ;;  %v2395_v46 = vor.u32 %v2394_v11, %v2390_v19  ;;  %v3151_v7 = vshll.u32 %v3064_v22, 16  ;;  %v5760_v38 = vrot.slane %v2656_v25, 9  ;;  %v2794_v2 = vrot.slane %v2657_v35, 5  ;;  %v2146_v5 = vld [vmem:[#allocation2 + $0x8c] sm:$0x1] }
 0x119   : > { %5005 = vmatprep.mubr.bf16.mxu0 %v5775_v13  ;;  %v2391_v15 = vsel %vm6735_vm3, %v2386_v57, %v2390_v19  ;;  %v3138_v48 = vor.u32 %v3137_v0, %v3134_v56  ;;  %v3148_v50 = vor.u32 %v3147_v42, %v3143_v37  ;;  %v2797_v52 = vrot.slane %v2658_v44, 5  ;;  %v3066_v19 = vld [vmem:[#allocation2 + $0x34] sm:$0xf]  ;;  %v3067_v34 = vld [vmem:[#allocation2 + $0x38] sm:$0x1] }
 0x11a   : > { %v2396_v47 = vrot.slane %v2395_v46, 4  ;;  %v3153_v58 = vrot.slane %v3151_v7, 5  ;;  %v2795_v60 = vsel %vm7033_vm14, %v5760_v38, %v2794_v2  ;;  %v2796_v62 = vrot.slane %v2794_v2, 4  ;;  %v2659_v35 = vld [vmem:[#allocation2 + $0x90] sm:$0xe] }
 0x11b   : > { %v3139_v63 = vrot.slane %v3138_v48, 4  ;;  %v3149_v3 = vrot.slane %v3148_v50, 4  ;;  %v2403_v6 = vshrl.u32 %v2144_v1, 16  ;;  %v2406_v9 = vshll.u32 %v2144_v1, 16  ;;  %5095 = vmatmul.mubr.bf16.vlgmr.msra.gmra.mrb[80].mxu1 %v6600_v43  ;;  %v2660_v57 = vld [vmem:[#allocation2 + $0x94] sm:$0xf] }
 0x11c   : > { %v2401_v10 = vsel %vm6735_vm3, %v2396_v47, %v2400_v40  ;;  %v2798_v12 = vsel %vm7033_vm14, %v2796_v62, %v2797_v52  ;;  %v2412_v16 = vshll.u32 %v2145_v54, 16  ;;  %v2416_v13 = vshrl.u32 %v2145_v54, 16  ;;  %v2661_v46 = vld [vmem:[#allocation2 + $0x98] sm:$0x1]  ;;  %v2147_v48 = vld [vmem:[#allocation2 + $0x90] sm:$0xf] }
 0x11d   : > { %v5743_v22 = vcombine.low %v2391_v15, %v2401_v10  ;;  %v3144_v21 = vsel %vm6735_vm3, %v3139_v63, %v3143_v37  ;;  %v3154_v26 = vsel %vm6735_vm3, %v3149_v3, %v3153_v58  ;;  %v5776_v20 = vcombine.low %v2795_v60, %v2798_v12  ;;  %v2148_v10 = vld [vmem:[#allocation2 + $0x94] sm:$0xf]  ;;  %v2149_v12 = vld [vmem:[#allocation2 + $0x98] sm:$0x1] }
 0x11e   : > { %v5799_v8 = vcombine.low %v3144_v21, %v3154_v26  ;;  %v2405_v31 = vrot.slane %v2403_v6, 4  ;;  %v2408_v33 = vrot.slane %v2406_v9, 5  ;;  %v2414_v25 = vrot.slane %v2412_v16, 5 }
 0x11f   : > { %v7578_v29 = vpop.f32.mrb[4].mxu1  ;;  %v2418_v11 = vrot.slane %v2416_v13, 4  ;;  %v2422_v40 = vshll.u32 %v2146_v5, 16  ;;  %v3156_v56 = vshrl.u32 %v3065_v24, 16  ;;  %v3159_v44 = vshll.u32 %v3065_v24, 16 }
 0x120   : > { %v7582_v51 = vpop.f32.mrb[5].mxu1  ;;  %5006 = vmatmul.mubr.bf16.gmra.mrb[84].mxu0 %v5743_v22  ;;  %5102 = vmatprep.mubr.bf16.mxu1 %v5799_v8  ;;  %v2409_v0 = vor.u32 %v2408_v33, %v2405_v31  ;;  %v3165_v37 = vshll.u32 %v3066_v19, 16  ;;  %v3169_v42 = vshrl.u32 %v3066_v19, 16  ;;  %v3175_v43 = vshll.u32 %v3067_v34, 16 }
 0x121   : > { %v7592_v36 = vpop.f32.mrb[6].mxu1  ;;  %5013 = vmatprep.mubr.bf16.mxu0 %v5776_v20  ;;  %v2419_v38 = vor.u32 %v2418_v11, %v2414_v25  ;;  %v2424_v2 = vrot.slane %v2422_v40, 5  ;;  %v3158_v1 = vrot.slane %v3156_v56, 4  ;;  %v3161_v15 = vrot.slane %v3159_v44, 5  ;;  %v6603_v20 = vld [vmem:[#allocation2 + $0x30] sm:$0xff]  }
 0x122   : > { %v7594_v7 = vpop.f32.mrb[7].mxu1  ;;  %v2410_v50 = vrot.slane %v2409_v0, 4  ;;  %v3167_v52 = vrot.slane %v3165_v37, 5  ;;  %v3171_v54 = vrot.slane %v3169_v42, 4  ;;  %v3177_v47 = vrot.slane %v3175_v43, 5 }
 0x123   : > { %v2420_v58 = vrot.slane %v2419_v38, 4  ;;  %v3162_v60 = vor.u32 %v3161_v15, %v3158_v1  ;;  %v5761_v62 = vrot.slane %v2659_v35, 9  ;;  %v2801_v63 = vrot.slane %v2660_v57, 5  ;;  %5103 = vmatmul.mubr.bf16.gmra.mrb[84].mxu1 %v6601_v27  ;;  %v3068_v27 = vld [vmem:[#allocation2 + $0x3c] sm:$0xf] }
 0x124   : > { %v2415_v5 = vsel %vm6735_vm3, %v2410_v50, %v2414_v25  ;;  %v3172_v6 = vor.u32 %v3171_v54, %v3167_v52  ;;  %v2804_v9 = vrot.slane %v2661_v46, 5  ;;  %v2427_v16 = vshrl.u32 %v2147_v48, 16  ;;  %v3069_v40 = vld [vmem:[#allocation2 + $0x40] sm:$0xf]  ;;  %v3070_v56 = vld [vmem:[#allocation2 + $0x44] sm:$0x1] }
 0x125   : > { %v2425_v13 = vsel %vm6735_vm3, %v2420_v58, %v2424_v2  ;;  %v3163_v24 = vrot.slane %v3162_v60, 4  ;;  %v2802_v19 = vsel %vm7033_vm14, %v5761_v62, %v2801_v63  ;;  %v2803_v22 = vrot.slane %v2801_v63, 4  ;;  %v2662_v42 = vld [vmem:[#allocation2 + $0x9c] sm:$0xe]  ;;  %v2663_v43 = vld [vmem:[#allocation2 + $0xa0] sm:$0xf] }
 0x126   : > { %v5744_v21 = vcombine.low %v2415_v5, %v2425_v13  ;;  %v3173_v26 = vrot.slane %v3172_v6, 4  ;;  %v2429_v34 = vrot.slane %v2427_v16, 4  ;;  %v2430_v8 = vshll.u32 %v2147_v48, 16  ;;  %v2664_v15 = vld [vmem:[#allocation2 + $0xa4] sm:$0x1] }
 0x127   : > { %v7596_v3 = vpop.f32.mrb[8].mxu0  ;;  %v3168_v33 = vsel %vm6735_vm3, %v3163_v24, %v3167_v52  ;;  %v2805_v25 = vsel %vm7033_vm14, %v2803_v22, %v2804_v9  ;;  %v2436_v35 = vshll.u32 %v2148_v10, 16  ;;  %v2440_v11 = vshrl.u32 %v2148_v10, 16  ;;  %v2150_v48 = vld [vmem:[#allocation2 + $0x9c] sm:$0xf] }
 0x128   : > { %v7604_v31 = vpop.f32.mrb[9].mxu0  ;;  %5014 = vmatmul.mubr.bf16.gmra.mrb[88].mxu0 %v5744_v21  ;;  %v3178_v44 = vsel %vm6735_vm3, %v3173_v26, %v3177_v47  ;;  %v5777_v57 = vcombine.low %v2802_v19, %v2805_v25  ;;  %v2432_v0 = vrot.slane %v2430_v8, 5  ;;  %v2446_v37 = vshll.u32 %v2149_v12, 16  ;;  %v2151_v8 = vld [vmem:[#allocation2 + $0xa0] sm:$0xf] }
 0x129   : > { %v5800_v46 = vcombine.low %v3168_v33, %v3178_v44  ;;  %v2438_v38 = vrot.slane %v2436_v35, 5  ;;  %v2442_v2 = vrot.slane %v2440_v11, 4  ;;  %v3180_v1 = vshrl.u32 %v3068_v27, 16  ;;  %v7612_v50 = vpop.f32.mrb[10].mxu0  ;;  %v2152_v11 = vld [vmem:[#allocation2 + $0xa4] sm:$0x1] }
 0x12a   : > { %5021 = vmatprep.mubr.bf16.mxu0 %v5777_v57  ;;  %v2433_v52 = vor.u32 %v2432_v0, %v2429_v34  ;;  %v2448_v54 = vrot.slane %v2446_v37, 5  ;;  %v3183_v58 = vshll.u32 %v3068_v27, 16  ;;  %v3189_v60 = vshll.u32 %v3069_v40, 16  ;;  %v7614_v62 = vpop.f32.mrb[11].mxu0  ;;  %v3071_v0 = vld [vmem:[#allocation2 + $0x48] sm:$0xf] }
 0x12b   : > { %5110 = vmatprep.mubr.bf16.mxu1 %v5800_v46  ;;  %v2443_v47 = vor.u32 %v2442_v2, %v2438_v38  ;;  %v3182_v63 = vrot.slane %v3180_v1, 4  ;;  %v3193_v5 = vshrl.u32 %v3069_v40, 16  ;;  %v3199_v6 = vshll.u32 %v3070_v56, 16 }
 0x12c   : > { %5111 = vmatmul.mubr.bf16.gmra.mrb[88].mxu1 %v6603_v20  ;;  %v2434_v9 = vrot.slane %v2433_v52, 4  ;;  %v3185_v10 = vrot.slane %v3183_v58, 5  ;;  %v3191_v12 = vrot.slane %v3189_v60, 5  ;;  %v5762_v16 = vrot.slane %v2662_v42, 9  ;;  %v3073_v58 = vld [vmem:[#allocation2 + $0x50] sm:$0x1] }
 0x12d   : > { %v2444_v13 = vrot.slane %v2443_v47, 4  ;;  %v3195_v24 = vrot.slane %v3193_v5, 4  ;;  %v3201_v19 = vrot.slane %v3199_v6, 5  ;;  %v2808_v22 = vrot.slane %v2663_v43, 5  ;;  %v6604_v43 = vld [vmem:[#allocation2 + $0x3c] sm:$0xff]  }
 0x12e   : > { %v2439_v21 = vsel %vm6735_vm3, %v2434_v9, %v2438_v38  ;;  %v3186_v26 = vor.u32 %v3185_v10, %v3182_v63  ;;  %v2811_v34 = vrot.slane %v2664_v15, 5  ;;  %v2451_v27 = vshrl.u32 %v2150_v48, 16  ;;  %v2665_v5 = vld [vmem:[#allocation2 + $0xa8] sm:$0xe] }
 0x12f   : > { %v2449_v33 = vsel %vm6735_vm3, %v2444_v13, %v2448_v54  ;;  %v3196_v25 = vor.u32 %v3195_v24, %v3191_v12  ;;  %v2809_v20 = vsel %vm7033_vm14, %v5762_v16, %v2808_v22  ;;  %v2810_v35 = vrot.slane %v2808_v22, 4  ;;  %v3072_v54 = vld [vmem:[#allocation2 + $0x4c] sm:$0xf]  ;;  %v2667_v24 = vld [vmem:[#allocation2 + $0xb0] sm:$0x1] }
 0x130   : > { %v5745_v40 = vcombine.low %v2439_v21, %v2449_v33  ;;  %v3187_v56 = vrot.slane %v3186_v26, 4  ;;  %v2453_v44 = vrot.slane %v2451_v27, 4  ;;  %v2454_v57 = vshll.u32 %v2150_v48, 16 }
 0x131   : > { %v3197_v37 = vrot.slane %v3196_v25, 4  ;;  %v2812_v42 = vsel %vm7033_vm14, %v2810_v35, %v2811_v34  ;;  %v2460_v46 = vshll.u32 %v2151_v8, 16  ;;  %v2464_v38 = vshrl.u32 %v2151_v8, 16  ;;  %v2153_v8 = vld [vmem:[#allocation2 + $0xa8] sm:$0xf] }
 0x132   : > { %5022 = vmatmul.mubr.bf16.gmra.mrb[92].mxu0 %v5745_v40  ;;  %v3192_v2 = vsel %vm6735_vm3, %v3187_v56, %v3191_v12  ;;  %v5778_v1 = vcombine.low %v2809_v20, %v2812_v42  ;;  %v2456_v15 = vrot.slane %v2454_v57, 5  ;;  %v2470_v52 = vshll.u32 %v2152_v11, 16  ;;  %v2666_v12 = vld [vmem:[#allocation2 + $0xac] sm:$0xf] }
 0x133   : > { %v3202_v48 = vsel %vm6735_vm3, %v3197_v37, %v3201_v19  ;;  %v2462_v60 = vrot.slane %v2460_v46, 5  ;;  %v2466_v47 = vrot.slane %v2464_v38, 4  ;;  %v3204_v63 = vshrl.u32 %v3071_v0, 16  ;;  %v2154_v42 = vld [vmem:[#allocation2 + $0xac] sm:$0xf] }
 0x134   : > { %v5801_v9 = vcombine.low %v3192_v2, %v3202_v48  ;;  %5029 = vmatprep.mubr.bf16.mxu0 %v5778_v1  ;;  %v2457_v10 = vor.u32 %v2456_v15, %v2453_v44  ;;  %v2472_v16 = vrot.slane %v2470_v52, 5  ;;  %v3207_v13 = vshll.u32 %v3071_v0, 16  ;;  %v3074_v15 = vld [vmem:[#allocation2 + $0x54] sm:$0xf] }
 0x135   : > { %v2467_v22 = vor.u32 %v2466_v47, %v2462_v60  ;;  %v3206_v21 = vrot.slane %v3204_v63, 4  ;;  %v3213_v26 = vshll.u32 %v3072_v54, 16  ;;  %v3217_v34 = vshrl.u32 %v3072_v54, 16  ;;  %v3075_v47 = vld [vmem:[#allocation2 + $0x58] sm:$0xf] }
 0x136   : > { %5118 = vmatprep.mubr.bf16.mxu1 %v5801_v9  ;;  %v2458_v19 = vrot.slane %v2457_v10, 4  ;;  %v3209_v33 = vrot.slane %v3207_v13, 5  ;;  %v3223_v25 = vshll.u32 %v3073_v58, 16  ;;  %v5763_v20 = vrot.slane %v2665_v5, 9  ;;  %v6606_v10 = vld [vmem:[#allocation2 + $0x48] sm:$0xff]  }
 0x137   : > { %v7628_v6 = vpop.f32.mrb[8].mxu1  ;;  %5119 = vmatmul.mubr.bf16.gmra.mrb[92].mxu1 %v6604_v43  ;;  %v2468_v35 = vrot.slane %v2467_v22, 4  ;;  %v3215_v11 = vrot.slane %v3213_v26, 5  ;;  %v3219_v40 = vrot.slane %v3217_v34, 4  ;;  %v2815_v56 = vrot.slane %v2666_v12, 5 }
 0x138   : > { %v7630_v27 = vpop.f32.mrb[9].mxu1  ;;  %v2463_v44 = vsel %vm6735_vm3, %v2458_v19, %v2462_v60  ;;  %v3210_v57 = vor.u32 %v3209_v33, %v3206_v21  ;;  %v3225_v0 = vrot.slane %v3223_v25, 5  ;;  %v2818_v37 = vrot.slane %v2667_v24, 5  ;;  %v2155_v43 = vld [vmem:[#allocation2 + $0xb0] sm:$0x1] }
 0x139   : > { %v2473_v46 = vsel %vm6735_vm3, %v2468_v35, %v2472_v16  ;;  %v3220_v38 = vor.u32 %v3219_v40, %v3215_v11  ;;  %v2816_v2 = vsel %vm7033_vm14, %v5763_v20, %v2815_v56  ;;  %v2817_v1 = vrot.slane %v2815_v56, 4  ;;  %v7638_v52 = vpop.f32.mrb[10].mxu1  ;;  %v3076_v12 = vld [vmem:[#allocation2 + $0x5c] sm:$0x1]  ;;  %v2669_v35 = vld [vmem:[#allocation2 + $0xb8] sm:$0xf] }
 0x13a   : > { %v5746_v54 = vcombine.low %v2463_v44, %v2473_v46  ;;  %v3211_v58 = vrot.slane %v3210_v57, 4  ;;  %v2475_v48 = vshrl.u32 %v2153_v8, 16  ;;  %v2478_v60 = vshll.u32 %v2153_v8, 16  ;;  %v7640_v63 = vpop.f32.mrb[11].mxu1  ;;  %v2668_v8 = vld [vmem:[#allocation2 + $0xb4] sm:$0xe] }
 0x13b   : > { %v3221_v5 = vrot.slane %v3220_v38, 4  ;;  %v2819_v9 = vsel %vm7033_vm14, %v2817_v1, %v2818_v37  ;;  %v2484_v16 = vshll.u32 %v2154_v42, 16  ;;  %v2488_v13 = vshrl.u32 %v2154_v42, 16  ;;  %v7644_v24 = vpop.f32.mrb[12].mxu0  ;;  %v2670_v42 = vld [vmem:[#allocation2 + $0xbc] sm:$0x1] }
 0x13c   : > { %5030 = vmatmul.mubr.bf16.gmra.mrb[96].mxu0 %v5746_v54  ;;  %v3216_v22 = vsel %vm6735_vm3, %v3211_v58, %v3215_v11  ;;  %v5779_v21 = vcombine.low %v2816_v2, %v2819_v9  ;;  %v2477_v26 = vrot.slane %v2475_v48, 4  ;;  %v2480_v34 = vrot.slane %v2478_v60, 5  ;;  %v7650_v40 = vpop.f32.mrb[13].mxu0  ;;  %v2156_v11 = vld [vmem:[#allocation2 + $0xb4] sm:$0xf] }
 0x13d   : > { %v3226_v19 = vsel %vm6735_vm3, %v3221_v5, %v3225_v0  ;;  %v2486_v33 = vrot.slane %v2484_v16, 5  ;;  %v2490_v25 = vrot.slane %v2488_v13, 4  ;;  %v2494_v20 = vshll.u32 %v2155_v43, 16  ;;  %v7652_v54 = vpop.f32.mrb[14].mxu0 }
 0x13e   : > { %v5802_v56 = vcombine.low %v3216_v22, %v3226_v19  ;;  %5037 = vmatprep.mubr.bf16.mxu0 %v5779_v21  ;;  %v2481_v44 = vor.u32 %v2480_v34, %v2477_v26  ;;  %v3228_v57 = vshrl.u32 %v3074_v15, 16  ;;  %v3231_v37 = vshll.u32 %v3074_v15, 16  ;;  %v2157_v26 = vld [vmem:[#allocation2 + $0xb8] sm:$0xf] }
 0x13f   : > { %v2491_v46 = vor.u32 %v2490_v25, %v2486_v33  ;;  %v2496_v38 = vrot.slane %v2494_v20, 5  ;;  %v3237_v2 = vshll.u32 %v3075_v47, 16  ;;  %v3241_v1 = vshrl.u32 %v3075_v47, 16  ;;  %v2158_v25 = vld [vmem:[#allocation2 + $0xbc] sm:$0x1] }
 0x140   : > { %5126 = vmatprep.mubr.bf16.mxu1 %v5802_v56  ;;  %v2482_v0 = vrot.slane %v2481_v44, 4  ;;  %v3230_v58 = vrot.slane %v3228_v57, 4  ;;  %v3233_v43 = vrot.slane %v3231_v37, 5  ;;  %v3247_v48 = vshll.u32 %v3076_v12, 16 }
 0x141   : > { %5127 = vmatmul.mubr.bf16.gmra.mrb[96].mxu1 %v6606_v10  ;;  %v2492_v60 = vrot.slane %v2491_v46, 4  ;;  %v3239_v5 = vrot.slane %v3237_v2, 5  ;;  %v3243_v9 = vrot.slane %v3241_v1, 4  ;;  %v5764_v16 = vrot.slane %v2668_v8, 9  ;;  %v3077_v46 = vld [vmem:[#allocation2 + $0x60] sm:$0xf] }
 0x142   : > { %v2487_v15 = vsel %vm6735_vm3, %v2482_v0, %v2486_v33  ;;  %v3234_v13 = vor.u32 %v3233_v43, %v3230_v58  ;;  %v3249_v22 = vrot.slane %v3247_v48, 5  ;;  %v2822_v21 = vrot.slane %v2669_v35, 5  ;;  %v3078_v0 = vld [vmem:[#allocation2 + $0x64] sm:$0xf] }
 0x143   : > { %v2497_v47 = vsel %vm6735_vm3, %v2492_v60, %v2496_v38  ;;  %v3244_v34 = vor.u32 %v3243_v9, %v3239_v5  ;;  %v2825_v19 = vrot.slane %v2670_v42, 5  ;;  %v2499_v20 = vshrl.u32 %v2156_v11, 16  ;;  %v6607_v38 = vld [vmem:[#allocation2 + $0x54] sm:$0xff]   ;;  %v501_v9 = vld [vmem:[#allocation2 + $0xc8] sm:$0x1] }
 0x144   : > { %v5747_v12 = vcombine.low %v2487_v15, %v2497_v47  ;;  %v3235_v10 = vrot.slane %v3234_v13, 4  ;;  %v2823_v56 = vsel %vm7033_vm14, %v5764_v16, %v2822_v21  ;;  %v2824_v8 = vrot.slane %v2822_v21, 4  ;;  %v7666_v47 = vpop.f32.mrb[15].mxu0 }
 0x145   : > { %v3245_v44 = vrot.slane %v3244_v34, 4  ;;  %v2501_v57 = vrot.slane %v2499_v20, 4  ;;  %v2502_v33 = vshll.u32 %v2156_v11, 16  ;;  %v2508_v37 = vshll.u32 %v2157_v26, 16  ;;  %v3079_v11 = vld [vmem:[#allocation2 + $0x68] sm:$0x1] }
 0x146   : > { %5038 = vmatmul.mubr.bf16.gmra.mrb[100].mxu0 %v5747_v12  ;;  %v3240_v35 = vsel %vm6735_vm3, %v3235_v10, %v3239_v5  ;;  %v2826_v42 = vsel %vm7033_vm14, %v2824_v8, %v2825_v19  ;;  %v2512_v2 = vshrl.u32 %v2157_v26, 16  ;;  %v2518_v1 = vshll.u32 %v2158_v25, 16  ;;  %v2671_v5 = vld [vmem:[#allocation2 + $0xc0] sm:$0xe]  ;;  %v2672_v20 = vld [vmem:[#allocation2 + $0xc4] sm:$0xf] }
 0x147   : > { %v3250_v58 = vsel %vm6735_vm3, %v3245_v44, %v3249_v22  ;;  %v5780_v43 = vcombine.low %v2823_v56, %v2826_v42  ;;  %v2504_v48 = vrot.slane %v2502_v33, 5  ;;  %v2510_v60 = vrot.slane %v2508_v37, 5  ;;  %v7668_v12 = vpop.f32.mrb[12].mxu1  ;;  %v2159_v44 = vld [vmem:[#allocation2 + $0xc0] sm:$0xf] }
 0x148   : > { %v5803_v16 = vcombine.low %v3240_v35, %v3250_v58  ;;  %v2514_v15 = vrot.slane %v2512_v2, 4  ;;  %v2520_v13 = vrot.slane %v2518_v1, 5  ;;  %v3252_v21 = vshrl.u32 %v3077_v46, 16  ;;  %v7672_v33 = vpop.f32.mrb[13].mxu1 }
 0x149   : > { %5045 = vmatprep.mubr.bf16.mxu0 %v5780_v43  ;;  %v2505_v34 = vor.u32 %v2504_v48, %v2501_v57  ;;  %v3255_v26 = vshll.u32 %v3077_v46, 16  ;;  %v3261_v19 = vshll.u32 %v3078_v0, 16  ;;  %v3265_v25 = vshrl.u32 %v3078_v0, 16 }
 0x14a   : > { %5134 = vmatprep.mubr.bf16.mxu1 %v5803_v16  ;;  %v2515_v22 = vor.u32 %v2514_v15, %v2510_v60  ;;  %v3254_v10 = vrot.slane %v3252_v21, 4  ;;  %v3271_v56 = vshll.u32 %v3079_v11, 16  ;;  %v502_v8 = vsel %vm6761_vm7, 0, %v501_v9  ;;  %v7676_v9 = vpop.f32.mrb[14].mxu1 }
 0x14b   : > { %5135 = vmatmul.mubr.bf16.gmra.mrb[100].mxu1 %v6607_v38  ;;  %v2506_v37 = vrot.slane %v2505_v34, 4  ;;  %v3257_v35 = vrot.slane %v3255_v26, 5  ;;  %v3263_v57 = vrot.slane %v3261_v19, 5  ;;  %v3267_v46 = vrot.slane %v3265_v25, 4  ;;  %503 = vst [vmem:[#allocation2 + $0xc8] sm:$0x1] %v502_v8 }
 0x14c   : > { %v2516_v42 = vrot.slane %v2515_v22, 4  ;;  %v3273_v2 = vrot.slane %v3271_v56, 5  ;;  %v5765_v1 = vrot.slane %v2671_v5, 9  ;;  %v2829_v0 = vrot.slane %v2672_v20, 5  ;;  %v3080_v5 = vld [vmem:[#allocation2 + $0x6c] sm:$0xf] }
 0x14d   : > { %v2511_v58 = vsel %vm6735_vm3, %v2506_v37, %v2510_v60  ;;  %v3258_v43 = vor.u32 %v3257_v35, %v3254_v10  ;;  %v3268_v48 = vor.u32 %v3267_v46, %v3263_v57  ;;  %v2523_v11 = vshrl.u32 %v2159_v44, 16  ;;  %v6609_v19 = vld [vmem:[#allocation2 + $0x60] sm:$0xff]   ;;  %v3081_v20 = vld [vmem:[#allocation2 + $0x70] sm:$0xf]  ;;  %v7686_v22 = vpop.f32.mrb[15].mxu1 }
 0x14e   : > { %v2521_v38 = vsel %vm6735_vm3, %v2516_v42, %v2520_v13  ;;  %v7682_v16 = vsel %vm7033_vm14, %v5765_v1, %v2829_v0  ;;  %v7684_v15 = vrot.slane %v2829_v0, 4  ;;  %v2526_v21 = vshll.u32 %v2159_v44, 16  ;;  %v3082_v37 = vld [vmem:[#allocation2 + $0x74] sm:$0x1]  ;;  %v3571_v0 = vld [vmem:[#allocation2 + $0x18] sm:$0xe] }
 0x14f   : > { %v5748_v34 = vcombine.low %v2511_v58, %v2521_v38  ;;  %v3259_v26 = vrot.slane %v3258_v43, 4  ;;  %v3269_v60 = vrot.slane %v3268_v48, 4  ;;  %v2525_v25 = vrot.slane %v2523_v11, 4  ;;  %v3572_v58 = vld [vmem:[#allocation2 + $0x1c] sm:$0xf] }
 0x150   : > { %v2528_v10 = vrot.slane %v2526_v21, 5  ;;  %v2532_v56 = vshll.u32 %v2160_v45, 16  ;;  %v2536_v8 = vshrl.u32 %v2160_v45, 16  ;;  %v7690_v13 = vadd.f32 %v7545_v18, %v7541_v28  ;;  %v3573_v38 = vld [vmem:[#allocation2 + $0x20] sm:$0x1] }
 0x151   : > { %v7692_v35 = vpop.f32.mrb[16].mxu0  ;;  %5046 = vmatmul.mubr.bf16.gmra.mrb[104].mxu0 %v5748_v34  ;;  %v3264_v44 = vsel %vm6735_vm3, %v3259_v26, %v3263_v57  ;;  %v3274_v46 = vsel %vm6735_vm3, %v3269_v60, %v3273_v2  ;;  %v7700_v42 = vadd.f32 %v7551_v41, %v7549_v17  ;;  %v3276_v1 = vshrl.u32 %v3080_v5, 16  ;;  %v3574_v21 = vld [vmem:[#allocation2 + $0x24] sm:$0xe]  ;;  %v3575_v34 = vld [vmem:[#allocation2 + $0x28] sm:$0xf] }
 0x152   : > { %8471 = vst [vmem:[#allocation4_spill] sm:$0xff] %v7690_v13  ;;  %v7702_v43 = vpop.f32.mrb[17].mxu0  ;;  %v5804_v28 = vcombine.low %v3264_v44, %v3274_v46  ;;  %v1017_v18 = vld [vmem:[#allocation2 + $0xc8] sm:$0x1]  ;;  %v2529_v48 = vor.u32 %v2528_v10, %v2525_v25  ;;  %v7704_v45 = vrot.slane %v2532_v56, 5  ;;  %v2538_v11 = vrot.slane %v2536_v8, 4 }
 0x153   : > { %8472 = vst [vmem:[#allocation5_spill] sm:$0xff] %v7700_v42  ;;  %v1018_v57 = vsel %vm6751_vm5, %v857_v61, %v1017_v18  ;;  %v3278_v2 = vrot.slane %v3276_v1, 4  ;;  %v3279_v17 = vshll.u32 %v3080_v5, 16  ;;  %v3285_v41 = vshll.u32 %v3081_v20, 16  ;;  %v7710_v26 = vpop.f32.mrb[18].mxu0 }
 0x154   : > { %5142 = vmatprep.mubr.bf16.mxu1 %v5804_v28  ;;  %1019 = vst [vmem:[#allocation2 + $0xc8] sm:$0x1] %v1018_v57  ;;  %v7712_v60 = vrot.slane %v2529_v48, 4  ;;  %v2539_v25 = vor.u32 %v2538_v11, %v7704_v45  ;;  %v3289_v10 = vshrl.u32 %v3081_v20, 16  ;;  %v3295_v56 = vshll.u32 %v3082_v37, 16  ;;  %v7715_v8 = vpop.f32.mrb[19].mxu0 }
 0x155   : > { %5143 = vmatmul.mubr.bf16.gmra.mrb[104].mxu1 %v6609_v19  ;;  %v3281_v39 = vrot.slane %v3279_v17, 5  ;;  %v3287_v49 = vrot.slane %v3285_v41, 5  ;;  %v5814_v61 = vrot.slane %v3571_v0, 9  ;;  %v3669_v5 = vrot.slane %v3572_v58, 5  ;;  %v3576_v18 = vld [vmem:[#allocation2 + $0x2c] sm:$0x1] }
 0x156   : > { %v7721_v46 = vrot.slane %v2539_v25, 4  ;;  %v3291_v1 = vrot.slane %v3289_v10, 4  ;;  %v3297_v28 = vrot.slane %v3295_v56, 5  ;;  %v7723_v48 = vpop.f32.mrb[16].mxu1  ;;  %v3672_v0 = vrot.slane %v3573_v38, 5 }
 0x157   : > { %v3282_v20 = vor.u32 %v3281_v39, %v3278_v2  ;;  %v7727_v19 = vsel %vm7033_vm14, %v5814_v61, %v3669_v5  ;;  %v3671_v37 = vrot.slane %v3669_v5, 4  ;;  %v7731_v11 = vadd.f32 %v7561_v4, %v7557_v59  ;;  %v3083_v41 = vld [vmem:[#allocation2 + $0x78] sm:$0xf]  ;;  %v3084_v39 = vld [vmem:[#allocation2 + $0x7c] sm:$0xf]  ;;  %v6610_v61 = vld [vmem:[#allocation2 + $0x6c] sm:$0xff]  }
 0x158   : > { %v3292_v58 = vor.u32 %v3291_v1, %v3287_v49  ;;  %v5815_v57 = vrot.slane %v3574_v21, 9  ;;  %v3676_v17 = vrot.slane %v3575_v34, 5  ;;  %v3679_v2 = vrot.slane %v3576_v18, 5  ;;  %v3085_v34 = vld [vmem:[#allocation2 + $0x80] sm:$0x1] }
 0x159   : > { %v3283_v25 = vrot.slane %v3282_v20, 4  ;;  %v7735_v10 = vsel %vm7033_vm14, %v3671_v37, %v3672_v0  ;;  %v7739_v56 = vadd.f32 %v7569_v23, %v7567_v14  ;;  %v3577_v5 = vld [vmem:[#allocation2 + $0x30] sm:$0xe]  ;;  %v7751_v14 = vadd.f32 %v7582_v51, %v7578_v29  ;;  %v7757_v37 = vpop.f32.mrb[17].mxu1 }
 0x15a   : > { %v3293_v38 = vrot.slane %v3292_v58, 4  ;;  %v5830_v59 = vcombine.low %v7727_v19, %v7735_v10  ;;  %v7745_v4 = vsel %vm7033_vm14, %v5815_v57, %v3676_v17  ;;  %v3678_v21 = vrot.slane %v3676_v17, 4 }
 0x15b   : > { %v2673_v1 = vld [vmem:[#allocation2 + $0xc8] sm:$0x1]  ;;  %v3288_v18 = vsel %vm6735_vm3, %v3283_v25, %v3287_v49  ;;  %8473 = vst [vmem:[#allocation6_spill] sm:$0xff] %v7751_v14  ;;  %v7755_v23 = vadd.f32 %v7594_v7, %v7592_v36  ;;  %v3300_v19 = vshrl.u32 %v3083_v41, 16  ;;  %v3303_v25 = vshll.u32 %v3083_v41, 16 }
 0x15c   : > { %v2161_v20 = vld [vmem:[#allocation2 + $0xc8] sm:$0x1]  ;;  %v2832_v0 = vrot.slane %v2673_v1, 5  ;;  %v3298_v57 = vsel %vm6735_vm3, %v3293_v38, %v3297_v28  ;;  %v7763_v17 = vsel %vm7033_vm14, %v3678_v21, %v3679_v2  ;;  %v3578_v36 = vld [vmem:[#allocation2 + $0x34] sm:$0xf]  ;;  %v3313_v44 = vshrl.u32 %v3084_v39, 16 }
 0x15d   : > { %8474 = vst [vmem:[#allocation7_spill] sm:$0xff] %v7755_v23  ;;  %v2542_v58 = vshll.u32 %v2161_v20, 16  ;;  %v5805_v49 = vcombine.low %v3288_v18, %v3298_v57  ;;  %v3302_v51 = vrot.slane %v3300_v19, 4  ;;  %v3579_v7 = vld [vmem:[#allocation2 + $0x38] sm:$0x1]  ;;  %v3309_v20 = vshll.u32 %v3084_v39, 16 }
 0x15e   : > { %v2833_v10 = vsel %vm7033_vm14, %v7684_v15, %v2832_v0  ;;  %v3580_v28 = vld [vmem:[#allocation2 + $0x3c] sm:$0xe]  ;;  %v7770_v38 = vpop.f32.mrb[18].mxu1  ;;  %v3305_v21 = vrot.slane %v3303_v25, 5  ;;  %v3319_v18 = vshll.u32 %v3085_v34, 16  ;;  %v5816_v57 = vrot.slane %v3577_v5, 9 }
 0x15f   : > { %v2544_v1 = vrot.slane %v2542_v58, 5  ;;  %v5781_v2 = vcombine.low %v7682_v16, %v2833_v10  ;;  %5150 = vmatprep.mubr.bf16.mxu1 %v5805_v49  ;;  %v3581_v19 = vld [vmem:[#allocation2 + $0x40] sm:$0xf]  ;;  %v7773_v41 = vpop.f32.mrb[19].mxu1  ;;  %v3311_v15 = vrot.slane %v3309_v20, 5  ;;  %v3315_v0 = vrot.slane %v3313_v44, 4 }
 0x160   : > { %5151 = vmatmul.mubr.bf16.gmra.mrb[108].mxu1 %v6610_v61  ;;  %v3683_v39 = vrot.slane %v3578_v36, 5  ;;  %v3582_v58 = vld [vmem:[#allocation2 + $0x44] sm:$0x1]  ;;  %v7778_v23 = vpop.f32.mrb[20].mxu0  ;;  %v8475_v16 = vsel %vm6735_vm3, %v7712_v60, %v7704_v45  ;;  %v3306_v5 = vor.u32 %v3305_v21, %v3302_v51  ;;  %v3321_v49 = vrot.slane %v3319_v18, 5 }
 0x161   : > { %v2545_v29 = vsel %vm6735_vm3, %v7721_v46, %v2544_v1  ;;  %5053 = vmatprep.mubr.bf16.mxu0 %v5781_v2  ;;  %v3686_v25 = vrot.slane %v3579_v7, 5  ;;  %v3316_v10 = vor.u32 %v3315_v0, %v3311_v15  ;;  %v7791_v61 = vadd.f32 %v7604_v31, %v7596_v3  ;;  %v3086_v36 = vld [vmem:[#allocation2 + $0x84] sm:$0xf]  ;;  %v3087_v1 = vld [vmem:[#allocation2 + $0x88] sm:$0xf]  ;;  %v7793_v20 = vpop.f32.mrb[21].mxu0 }
 0x162   : > { %v5749_v34 = vcombine.low %v8475_v16, %v2545_v29  ;;  %v7787_v46 = vsel %vm7033_vm14, %v5816_v57, %v3683_v39  ;;  %v3685_v44 = vrot.slane %v3683_v39, 4  ;;  %v3307_v45 = vrot.slane %v3306_v5, 4  ;;  %v6611_v2 = vld [vmem:[#allocation2 + $0x78] sm:$0xff]   ;;  %v3088_v31 = vld [vmem:[#allocation2 + $0x8c] sm:$0x1]  ;;  %v7805_v57 = vpop.f32.mrb[22].mxu0 }
 0x163   : > { %v5817_v60 = vrot.slane %v3580_v28, 9  ;;  %v3690_v29 = vrot.slane %v3581_v19, 5  ;;  %v3693_v51 = vrot.slane %v3582_v58, 5  ;;  %v3317_v7 = vrot.slane %v3316_v10, 4  ;;  %v3583_v39 = vld [vmem:[#allocation2 + $0x48] sm:$0xe] }
 0x164   : > { %5054 = vmatmul.mubr.bf16.gmra.mrb[108].mxu0 %v5749_v34  ;;  %v3687_v21 = vsel %vm7033_vm14, %v3685_v44, %v3686_v25  ;;  %v7799_v18 = vadd.f32 %v7614_v62, %v7612_v50  ;;  %v7803_v3 = vadd.f32 %v7630_v27, %v7628_v6  ;;  %v3312_v28 = vsel %vm6735_vm3, %v3307_v45, %v3311_v15  ;;  %v3584_v50 = vld [vmem:[#allocation2 + $0x4c] sm:$0xf]  ;;  %v7814_v62 = vpop.f32.mrb[23].mxu0  ;;  %v3585_v16 = vld [vmem:[#allocation2 + $0x50] sm:$0x1]  ;;  %v7826_v45 = vpop.f32.mrb[20].mxu1 }
 0x165   : > { %6442 = vmatprep.mubr.bf16.mxu0 %v5830_v59  ;;  %v5832_v59 = vcombine.low %v7787_v46, %v3687_v21  ;;  %v7812_v19 = vsel %vm7033_vm14, %v5817_v60, %v3690_v29  ;;  %v3692_v0 = vrot.slane %v3690_v29, 4  ;;  %v3322_v6 = vsel %vm6735_vm3, %v3317_v7, %v3321_v49  ;;  %v3586_v34 = vld [vmem:[#allocation2 + $0x54] sm:$0xe]  ;;  %v3587_v44 = vld [vmem:[#allocation2 + $0x58] sm:$0xf]  ;;  %v7832_v7 = vpop.f32.mrb[21].mxu1 }
 0x166   : > { %8476 = vst [vmem:[#allocation8_spill] sm:$0xff] %v7803_v3  ;;  %v7820_v27 = vadd.f32 %v7640_v63, %v7638_v52  ;;  %v3324_v58 = vshrl.u32 %v3086_v36, 16  ;;  %v3327_v15 = vshll.u32 %v3086_v36, 16  ;;  %v5806_v5 = vcombine.low %v3312_v28, %v3322_v6  ;;  %v3588_v29 = vld [vmem:[#allocation2 + $0x5c] sm:$0x1] }
 0x167   : > { %v7824_v25 = vsel %vm7033_vm14, %v3692_v0, %v3693_v51  ;;  %v3333_v10 = vshll.u32 %v3087_v1, 16  ;;  %v3337_v46 = vshrl.u32 %v3087_v1, 16  ;;  %v3343_v36 = vshll.u32 %v3088_v31, 16  ;;  %v7834_v1 = vpop.f32.mrb[22].mxu1  ;;  %v3089_v31 = vld [vmem:[#allocation2 + $0x90] sm:$0xf] }
 0x168   : > { %8477 = vst [vmem:[#allocation9_spill] sm:$0xff] %v7820_v27  ;;  %v3326_v63 = vrot.slane %v3324_v58, 4  ;;  %v3329_v49 = vrot.slane %v3327_v15, 5  ;;  %5158 = vmatprep.mubr.bf16.mxu1 %v5806_v5  ;;  %v5818_v28 = vrot.slane %v3583_v39, 9  ;;  %v3697_v0 = vrot.slane %v3584_v50, 5  ;;  %v7842_v15 = vpop.f32.mrb[23].mxu1 }
 0x169   : > { %v3335_v21 = vrot.slane %v3333_v10, 5  ;;  %v3339_v51 = vrot.slane %v3337_v46, 4  ;;  %5159 = vmatmul.mubr.bf16.gmra.mrb[112].mxu1 %v6611_v2  ;;  %v3345_v3 = vrot.slane %v3343_v36, 5  ;;  %v3700_v14 = vrot.slane %v3585_v16, 5  ;;  %v3090_v16 = vld [vmem:[#allocation2 + $0x94] sm:$0xf] }
 0x16a   : > { %v3330_v27 = vor.u32 %v3329_v49, %v3326_v63  ;;  %v7840_v58 = vadd.f32 %v7650_v40, %v7644_v24  ;;  %v8478_v39 = vcombine.low %v7745_v4, %v7763_v17  ;;  %v3698_v2 = vsel %vm7033_vm14, %v5818_v28, %v3697_v0  ;;  %v6612_v4 = vld [vmem:[#allocation2 + $0x84] sm:$0xff]  }
 0x16b   : > { %v7828_v60 = vpop.f32.mrb[24].mxu0  ;;  %v3340_v50 = vor.u32 %v3339_v51, %v3335_v21  ;;  %v3699_v10 = vrot.slane %v3697_v0, 4  ;;  %v5819_v46 = vrot.slane %v3586_v34, 9  ;;  %v3704_v24 = vrot.slane %v3587_v44, 5  ;;  %v7867_v34 = vpop.f32.mrb[24].mxu1 }
 0x16c   : > { %v7836_v6 = vpop.f32.mrb[25].mxu0  ;;  %6443 = vmatmul.mubr.bf16.vlgmr.msra.gmra.mrb[112].mxu0 %v8478_v39  ;;  %v3331_v63 = vrot.slane %v3330_v27, 4  ;;  %v3707_v40 = vrot.slane %v3588_v29, 5  ;;  %v7853_v49 = vadd.f32 %v7666_v47, %v7652_v54  ;;  %v7861_v51 = vadd.f32 %v7672_v33, %v7668_v12  ;;  %v3091_v27 = vld [vmem:[#allocation2 + $0x98] sm:$0x1]  ;;  %v7875_v12 = vpop.f32.mrb[25].mxu1 }
 0x16d   : > { %v7844_v5 = vpop.f32.mrb[26].mxu0  ;;  %6446 = vmatprep.mubr.bf16.mxu0 %v5832_v59  ;;  %v3341_v52 = vrot.slane %v3340_v50, 4  ;;  %v3701_v17 = vsel %vm7033_vm14, %v3699_v10, %v3700_v14  ;;  %v7865_v59 = vadd.f32 %v7686_v22, %v7676_v9  ;;  %v7873_v44 = vsel %vm7033_vm14, %v5819_v46, %v3704_v24  ;;  %v3589_v29 = vld [vmem:[#allocation2 + $0x60] sm:$0xe]  ;;  %v3590_v28 = vld [vmem:[#allocation2 + $0x64] sm:$0xf] }
 0x16e   : > { %8479 = vst [vmem:[#allocation10_spill] sm:$0xff] %v7853_v49  ;;  %v7855_v36 = vpop.f32.mrb[27].mxu0  ;;  %8480 = vst [vmem:[#allocation11_spill] sm:$0xff] %v7861_v51  ;;  %v3336_v54 = vsel %vm6735_vm3, %v3331_v63, %v3335_v21  ;;  %v5834_v47 = vcombine.low %v3698_v2, %v3701_v17  ;;  %v3706_v14 = vrot.slane %v3704_v24, 4  ;;  %v3348_v9 = vshrl.u32 %v3089_v31, 16  ;;  %v7879_v50 = vpop.f32.mrb[26].mxu1 }
 0x16f   : > { %8481 = vst [vmem:[#allocation12_spill] sm:$0xff] %v7865_v59  ;;  %v3346_v33 = vsel %vm6735_vm3, %v3341_v52, %v3345_v3  ;;  %v3351_v22 = vshll.u32 %v3089_v31, 16  ;;  %v3357_v0 = vshll.u32 %v3090_v16, 16  ;;  %v3591_v39 = vld [vmem:[#allocation2 + $0x68] sm:$0x1]  ;;  %v3361_v10 = vshrl.u32 %v3090_v16, 16 }
 0x170   : > { %v5807_v21 = vcombine.low %v3336_v54, %v3346_v33  ;;  %v7883_v2 = vsel %vm7033_vm14, %v3706_v14, %v3707_v40  ;;  %v3367_v46 = vshll.u32 %v3091_v27, 16  ;;  %v3592_v63 = vld [vmem:[#allocation2 + $0x6c] sm:$0xe]  ;;  %v7885_v24 = vpop.f32.mrb[27].mxu1  ;;  %v3350_v52 = vrot.slane %v3348_v9, 4 }
 0x171   : > { %v5835_v3 = vcombine.low %v7873_v44, %v7883_v2  ;;  %v3353_v31 = vrot.slane %v3351_v22, 5  ;;  %v3359_v59 = vrot.slane %v3357_v0, 5  ;;  %v3593_v51 = vld [vmem:[#allocation2 + $0x70] sm:$0xf]  ;;  %v3363_v54 = vrot.slane %v3361_v10, 4 }
 0x172   : > { %5166 = vmatprep.mubr.bf16.mxu1 %v5807_v21  ;;  %v3369_v40 = vrot.slane %v3367_v46, 5  ;;  %v5820_v14 = vrot.slane %v3589_v29, 9  ;;  %v3711_v16 = vrot.slane %v3590_v28, 5  ;;  %v3594_v27 = vld [vmem:[#allocation2 + $0x74] sm:$0x1]  ;;  %v8482_v33 = vcombine.low %v7812_v19, %v7824_v25 }
 0x173   : > { %5167 = vmatmul.mubr.bf16.gmra.mrb[116].mxu1 %v6612_v4  ;;  %v3354_v13 = vor.u32 %v3353_v31, %v3350_v52  ;;  %v3714_v49 = vrot.slane %v3591_v39, 5  ;;  %v7898_v44 = vadd.f32 %v7702_v43, %v7692_v35  ;;  %v5821_v9 = vrot.slane %v3592_v63, 9  ;;  %v3092_v4 = vld [vmem:[#allocation2 + $0x9c] sm:$0xf]  ;;  %v3093_v35 = vld [vmem:[#allocation2 + $0xa0] sm:$0xf] }
 0x174   : > { %v7887_v17 = vpop.f32.mrb[28].mxu0  ;;  %6447 = vmatmul.mubr.bf16.gmra.mrb[116].mxu0 %v8482_v33  ;;  %v3364_v22 = vor.u32 %v3363_v54, %v3359_v59  ;;  %v3712_v0 = vsel %vm7033_vm14, %v5820_v14, %v3711_v16  ;;  %v3713_v29 = vrot.slane %v3711_v16, 4  ;;  %v3718_v28 = vrot.slane %v3593_v51, 5  ;;  %v6613_v39 = vld [vmem:[#allocation2 + $0x90] sm:$0xff]   ;;  %v3094_v51 = vld [vmem:[#allocation2 + $0xa4] sm:$0x1] }
 0x175   : > { %v7891_v42 = vpop.f32.mrb[29].mxu0  ;;  %6450 = vmatprep.mubr.bf16.mxu0 %v5834_v47  ;;  %v3355_v21 = vrot.slane %v3354_v13, 4  ;;  %v3721_v2 = vrot.slane %v3594_v27, 5  ;;  %v7904_v19 = vadd.f32 %v7715_v8, %v7710_v26  ;;  %v6084_v25 = vadd.f32 %v7757_v37, %v7723_v48  ;;  %v3595_v46 = vld [vmem:[#allocation2 + $0x78] sm:$0xe]  ;;  %v7923_v31 = vpop.f32.mrb[28].mxu1 }
 0x176   : > { %v3365_v43 = vrot.slane %v3364_v22, 4  ;;  %v3715_v47 = vsel %vm7033_vm14, %v3713_v29, %v3714_v49  ;;  %v7912_v10 = vsel %vm7033_vm14, %v5821_v9, %v3718_v28  ;;  %v3720_v13 = vrot.slane %v3718_v28, 4  ;;  %v3596_v63 = vld [vmem:[#allocation2 + $0x7c] sm:$0xf]  ;;  %v3597_v52 = vld [vmem:[#allocation2 + $0x80] sm:$0x1] }
 0x177   : > { %v3360_v26 = vsel %vm6735_vm3, %v3355_v21, %v3359_v59  ;;  %v5836_v8 = vcombine.low %v3712_v0, %v3715_v47  ;;  %v7917_v48 = vadd.f32 %v6084_v25, %v7498_v32  ;;  %v6087_v37 = vadd.f32 %v7773_v41, %v7770_v38  ;;  %v7921_v49 = vpop.f32.mrb[30].mxu0  ;;  %v3598_v32 = vld [vmem:[#allocation2 + $0x84] sm:$0xe]  ;;  %v3599_v27 = vld [vmem:[#allocation2 + $0x88] sm:$0xf]  ;;  %v7933_v38 = vpop.f32.mrb[29].mxu1 }
 0x178   : > { %v3370_v54 = vsel %vm6735_vm3, %v3365_v43, %v3369_v40  ;;  %v7929_v14 = vsel %vm7033_vm14, %v3720_v13, %v3721_v2  ;;  %v3372_v59 = vshrl.u32 %v3092_v4, 16  ;;  %v3375_v16 = vshll.u32 %v3092_v4, 16  ;;  %v7931_v33 = vpop.f32.mrb[31].mxu0  ;;  %v3600_v0 = vld [vmem:[#allocation2 + $0x8c] sm:$0x1]  ;;  %v7940_v29 = vpop.f32.mrb[30].mxu1 }
 0x179   : > { %8483 = vst [vmem:[#allocation13_spill] sm:$0xff] %v7917_v48  ;;  %v5808_v41 = vcombine.low %v3360_v26, %v3370_v54  ;;  %v7938_v22 = vadd.f32 %v6087_v37, %v7502_v55  ;;  %v3381_v40 = vshll.u32 %v3093_v35, 16  ;;  %v3385_v2 = vshrl.u32 %v3093_v35, 16  ;;  %v7942_v4 = vpop.f32.mrb[31].mxu1 }
 0x17a   : > { %v3374_v28 = vrot.slane %v3372_v59, 4  ;;  %v3377_v21 = vrot.slane %v3375_v16, 5  ;;  %v3391_v25 = vshll.u32 %v3094_v51, 16  ;;  %v5822_v47 = vrot.slane %v3595_v46, 9  ;;  %v7946_v55 = vpop.f32.mrb[32].mxu1 }
 0x17b   : > { %8484 = vst [vmem:[#allocation14_spill] sm:$0xff] %v7938_v22  ;;  %5174 = vmatprep.mubr.bf16.mxu1 %v5808_v41  ;;  %v3383_v43 = vrot.slane %v3381_v40, 5  ;;  %v3725_v13 = vrot.slane %v3596_v63, 5  ;;  %v3728_v26 = vrot.slane %v3597_v52, 5  ;;  %v3387_v9 = vrot.slane %v3385_v2, 4 }
 0x17c   : > { %6451 = vmatmul.mubr.bf16.gmra.mrb[120].mxu0 %v5835_v3  ;;  %5175 = vmatmul.mubr.bf16.gmra.mrb[120].mxu1 %v6613_v39  ;;  %v3378_v37 = vor.u32 %v3377_v21, %v3374_v28  ;;  %v3393_v59 = vrot.slane %v3391_v25, 5  ;;  %v7950_v35 = vadd.f32 %v7793_v20, %v7778_v23  ;;  %v7954_v3 = vpop.f32.mrb[33].mxu1  ;;  %v5823_v52 = vrot.slane %v3598_v32, 9  ;;  %v3095_v23 = vld [vmem:[#allocation2 + $0xa8] sm:$0xf] }
 0x17d   : > { %6454 = vmatprep.mubr.bf16.mxu0 %v5836_v8  ;;  %v3726_v46 = vsel %vm7033_vm14, %v5822_v47, %v3725_v13  ;;  %v3727_v63 = vrot.slane %v3725_v13, 4  ;;  %v3732_v16 = vrot.slane %v3599_v27, 5  ;;  %v3388_v8 = vor.u32 %v3387_v9, %v3383_v43  ;;  %v7966_v21 = vpop.f32.mrb[34].mxu1  ;;  %v3097_v25 = vld [vmem:[#allocation2 + $0xb0] sm:$0x1]  ;;  %v6614_v13 = vld [vmem:[#allocation2 + $0x9c] sm:$0xff]  }
 0x17e   : > { %8485 = vst [vmem:[#allocation15_spill] sm:$0xff] %v7950_v35  ;;  %v3379_v39 = vrot.slane %v3378_v37, 4  ;;  %v3735_v40 = vrot.slane %v3600_v0, 5  ;;  %v7962_v28 = vadd.f32 %v7814_v62, %v7805_v57  ;;  %v6090_v9 = vadd.f32 %v7832_v7, %v7826_v45  ;;  %v3096_v0 = vld [vmem:[#allocation2 + $0xac] sm:$0xf]  ;;  %v7976_v57 = vpop.f32.mrb[35].mxu1 }
 0x17f   : > { %v7944_v54 = vpop.f32.mrb[32].mxu0  ;;  %v3729_v2 = vsel %vm7033_vm14, %v3727_v63, %v3728_v26  ;;  %v7972_v32 = vsel %vm7033_vm14, %v5823_v52, %v3732_v16  ;;  %v3734_v27 = vrot.slane %v3732_v16, 4  ;;  %v3389_v47 = vrot.slane %v3388_v8, 4  ;;  %v3601_v63 = vld [vmem:[#allocation2 + $0x90] sm:$0xe] }
 0x180   : > { %v7952_v51 = vpop.f32.mrb[33].mxu0  ;;  %8486 = vst [vmem:[#allocation16_spill] sm:$0xff] %v7962_v28  ;;  %v3384_v62 = vsel %vm6735_vm3, %v3379_v39, %v3383_v43  ;;  %v5838_v37 = vcombine.low %v3726_v46, %v3729_v2  ;;  %v6093_v26 = vadd.f32 %v7842_v15, %v7834_v1  ;;  %v3602_v52 = vld [vmem:[#allocation2 + $0x94] sm:$0xf]  ;;  %v7987_v7 = vadd.f32 %v6090_v9, %v7731_v11  ;;  %v3603_v28 = vld [vmem:[#allocation2 + $0x98] sm:$0x1] }
 0x181   : > { %v7958_v41 = vpop.f32.mrb[34].mxu0  ;;  %v3736_v45 = vsel %vm7033_vm14, %v3734_v27, %v3735_v40  ;;  %v3396_v16 = vshrl.u32 %v3095_v23, 16  ;;  %v3399_v48 = vshll.u32 %v3095_v23, 16  ;;  %v3604_v43 = vld [vmem:[#allocation2 + $0x9c] sm:$0xe]  ;;  %v3394_v46 = vsel %vm6735_vm3, %v3389_v47, %v3393_v59 }
 0x182   : > { %v7964_v20 = vpop.f32.mrb[35].mxu0  ;;  %8487 = vst [vmem:[#allocation17_spill] sm:$0xff] %v7987_v7  ;;  %v5839_v39 = vcombine.low %v7972_v32, %v3736_v45  ;;  %v7993_v1 = vadd.f32 %v6093_v26, %v7739_v56  ;;  %v3405_v15 = vshll.u32 %v3096_v0, 16  ;;  %v3605_v8 = vld [vmem:[#allocation2 + $0xa0] sm:$0xf]  ;;  %v8490_v11 = vcombine.low %v7912_v10, %v7929_v14 }
 0x183   : > { %v7982_v22 = vpop.f32.mrb[36].mxu1  ;;  %v7995_v2 = vld [vmem:[#allocation2 + $0xa4] sm:$0x1]  ;;  %v5809_v23 = vcombine.low %v3384_v62, %v3394_v46  ;;  %v3398_v27 = vrot.slane %v3396_v16, 4  ;;  %v3401_v9 = vrot.slane %v3399_v48, 5  ;;  %v3409_v7 = vshrl.u32 %v3096_v0, 16 }
 0x184   : > { %8488 = vst [vmem:[#allocation18_spill] sm:$0xff] %v7993_v1  ;;  %v7997_v40 = vpop.f32.mrb[37].mxu1  ;;  %6455 = vmatmul.mubr.bf16.gmra.mrb[124].mxu0 %v8490_v11  ;;  %v3407_v32 = vrot.slane %v3405_v15, 5  ;;  %v3415_v56 = vshll.u32 %v3097_v25, 16  ;;  %v5824_v47 = vrot.slane %v3601_v63, 9  ;;  %v3739_v26 = vrot.slane %v3602_v52, 5 }
 0x185   : > { %8489 = vst [vmem:[#allocation19_spill] sm:$0xff] %v7997_v40  ;;  %v8002_v59 = vpop.f32.mrb[38].mxu1  ;;  %6458 = vmatprep.mubr.bf16.mxu0 %v5838_v37  ;;  %5182 = vmatprep.mubr.bf16.mxu1 %v5809_v23  ;;  %v3402_v1 = vor.u32 %v3401_v9, %v3398_v27  ;;  %v3411_v35 = vrot.slane %v3409_v7, 4  ;;  %v3742_v40 = vrot.slane %v3603_v28, 5  ;;  %v8008_v10 = vadd.f32 %v7836_v6, %v7828_v60  ;;  %v3098_v16 = vld [vmem:[#allocation2 + $0xb4] sm:$0xf] }
 0x186   : > { %v8004_v45 = vpop.f32.mrb[39].mxu1  ;;  %5183 = vmatmul.mubr.bf16.gmra.mrb[124].mxu1 %v6614_v13  ;;  %v3417_v48 = vrot.slane %v3415_v56, 5  ;;  %v3740_v14 = vsel %vm7033_vm14, %v5824_v47, %v3739_v26  ;;  %v3741_v0 = vrot.slane %v3739_v26, 4  ;;  %v5825_v62 = vrot.slane %v3604_v43, 9  ;;  %v3099_v7 = vld [vmem:[#allocation2 + $0xb8] sm:$0xf] }
 0x187   : > { %v3403_v25 = vrot.slane %v3402_v1, 4  ;;  %v3412_v37 = vor.u32 %v3411_v35, %v3407_v32  ;;  %v3746_v63 = vrot.slane %v3605_v8, 5  ;;  %v3749_v52 = vrot.slane %v7995_v2, 5  ;;  %v3100_v43 = vld [vmem:[#allocation2 + $0xbc] sm:$0x1] }
 0x188   : > { %v3743_v28 = vsel %vm7033_vm14, %v3741_v0, %v3742_v40  ;;  %v8017_v60 = vadd.f32 %v7855_v36, %v7844_v5  ;;  %v6096_v6 = vadd.f32 %v7875_v12, %v7867_v34  ;;  %v6099_v13 = vadd.f32 %v7885_v24, %v7879_v50  ;;  %v3607_v8 = vld [vmem:[#allocation2 + $0xa8] sm:$0xe]  ;;  %v3608_v2 = vld [vmem:[#allocation2 + $0xac] sm:$0xf]  ;;  %v3609_v5 = vld [vmem:[#allocation2 + $0xb0] sm:$0x1] }
 0x189   : > { %v3408_v35 = vsel %vm6735_vm3, %v3403_v25, %v3407_v32  ;;  %v3413_v46 = vrot.slane %v3412_v37, 4  ;;  %v5840_v1 = vcombine.low %v3740_v14, %v3743_v28  ;;  %v3747_v15 = vsel %vm7033_vm14, %v5825_v62, %v3746_v63  ;;  %v3610_v11 = vld [vmem:[#allocation2 + $0xb4] sm:$0xe]  ;;  %v6615_v32 = vld [vmem:[#allocation2 + $0xa8] sm:$0xff]   ;;  %v3611_v37 = vld [vmem:[#allocation2 + $0xb8] sm:$0xf] }
 0x18a   : > { %v3748_v34 = vrot.slane %v3746_v63, 4  ;;  %v8032_v12 = vadd.f32 %v6096_v6, %v7791_v61  ;;  %v8035_v50 = vadd.f32 %v6099_v13, %v7799_v18  ;;  %v3420_v24 = vshrl.u32 %v3098_v16, 16  ;;  %v3612_v13 = vld [vmem:[#allocation2 + $0xbc] sm:$0x1] }
 0x18b   : > { %v3418_v9 = vsel %vm6735_vm3, %v3413_v46, %v3417_v48  ;;  %v3423_v56 = vshll.u32 %v3098_v16, 16  ;;  %v3429_v47 = vshll.u32 %v3099_v7, 16  ;;  %v3433_v26 = vshrl.u32 %v3099_v7, 16 }
 0x18c   : > { %v8029_v40 = vpop.f32.mrb[40].mxu1  ;;  %6459 = vmatmul.mubr.bf16.gmra.mrb[128].mxu0 %v5839_v39  ;;  %v5810_v18 = vcombine.low %v3408_v35, %v3418_v9  ;;  %v3750_v0 = vsel %vm7033_vm14, %v3748_v34, %v3749_v52  ;;  %v3422_v62 = vrot.slane %v3420_v24, 4  ;;  %v3439_v25 = vshll.u32 %v3100_v43, 16 }
 0x18d   : > { %v8039_v27 = vpop.f32.mrb[41].mxu1  ;;  %6462 = vmatprep.mubr.bf16.mxu0 %v5840_v1  ;;  %v5841_v48 = vcombine.low %v3747_v15, %v3750_v0  ;;  %v3425_v16 = vrot.slane %v3423_v56, 5  ;;  %v3431_v28 = vrot.slane %v3429_v47, 5  ;;  %v3435_v6 = vrot.slane %v3433_v26, 4  ;;  %v3101_v26 = vld [vmem:[#allocation2 + $0xc0] sm:$0xf] }
 0x18e   : > { %v8027_v36 = vpop.f32.mrb[36].mxu0  ;;  %v8045_v61 = vpop.f32.mrb[42].mxu1  ;;  %5190 = vmatprep.mubr.bf16.mxu1 %v5810_v18  ;;  %v3441_v7 = vrot.slane %v3439_v25, 5  ;;  %v5826_v46 = vrot.slane %v3607_v8, 9  ;;  %v3753_v35 = vrot.slane %v3608_v2, 5  ;;  %v3756_v1 = vrot.slane %v3609_v5, 5 }
 0x18f   : > { %v8037_v23 = vpop.f32.mrb[37].mxu0  ;;  %v8051_v63 = vpop.f32.mrb[43].mxu1  ;;  %5191 = vmatmul.mubr.bf16.gmra.mrb[128].mxu1 %v6615_v32  ;;  %v3426_v9 = vor.u32 %v3425_v16, %v3422_v62  ;;  %v3436_v52 = vor.u32 %v3435_v6, %v3431_v28  ;;  %v8055_v43 = vadd.f32 %v7891_v42, %v7887_v17  ;;  %v5827_v34 = vrot.slane %v3610_v11, 9  ;;  %v3102_v5 = vld [vmem:[#allocation2 + $0xc4] sm:$0xf] }
 0x190   : > { %v8043_v14 = vpop.f32.mrb[38].mxu0  ;;  %v3754_v15 = vsel %vm7033_vm14, %v5826_v46, %v3753_v35  ;;  %v3755_v24 = vrot.slane %v3753_v35, 4  ;;  %v3760_v56 = vrot.slane %v3611_v37, 5  ;;  %v3763_v47 = vrot.slane %v3612_v13, 5  ;;  %v3103_v25 = vld [vmem:[#allocation2 + $0xc8] sm:$0x1] }
 0x191   : > { %v8049_v39 = vpop.f32.mrb[39].mxu0  ;;  %v3427_v18 = vrot.slane %v3426_v9, 4  ;;  %v3437_v0 = vrot.slane %v3436_v52, 4  ;;  %v8061_v8 = vadd.f32 %v7931_v33, %v7921_v49  ;;  %v6102_v2 = vadd.f32 %v7933_v38, %v7923_v31  ;;  %v3613_v37 = vld [vmem:[#allocation2 + $0xc0] sm:$0xe]  ;;  %v6616_v38 = vld [vmem:[#allocation2 + $0xb4] sm:$0xff]  }
 0x192   : > { %v3757_v17 = vsel %vm7033_vm14, %v3755_v24, %v3756_v1  ;;  %v3761_v11 = vsel %vm7033_vm14, %v5827_v34, %v3760_v56  ;;  %v3762_v32 = vrot.slane %v3760_v56, 4  ;;  %v6105_v62 = vadd.f32 %v7942_v4, %v7940_v29  ;;  %v3614_v13 = vld [vmem:[#allocation2 + $0xc4] sm:$0xf]  ;;  %v3615_v46 = vld [vmem:[#allocation2 + $0xc8] sm:$0x1] }
 0x193   : > { %v3432_v31 = vsel %vm6735_vm3, %v3427_v18, %v3431_v28  ;;  %v3442_v33 = vsel %vm6735_vm3, %v3437_v0, %v3441_v7  ;;  %v5842_v16 = vcombine.low %v3754_v15, %v3757_v17  ;;  %v8080_v6 = vadd.f32 %v6102_v2, %v7840_v58  ;;  %v3616_v9 = vld [vmem:[#allocation2 + $0xcc] sm:$0xe]  ;;  %v3617_v56 = vld [vmem:[#allocation2 + $0xd0] sm:$0xf] }
 0x194   : > { %v8065_v42 = vpop.f32.mrb[44].mxu1  ;;  %6463 = vmatmul.mubr.bf16.gmra.mrb[132].mxu0 %v5841_v48  ;;  %v5811_v29 = vcombine.low %v3432_v31, %v3442_v33  ;;  %v3764_v4 = vsel %vm7033_vm14, %v3762_v32, %v3763_v47  ;;  %v8491_v48 = vld [vmem:[#allocation10_spill] sm:$0xff]  ;;  %v3444_v28 = vshrl.u32 %v3101_v26, 16  ;;  %v3447_v34 = vshll.u32 %v3101_v26, 16  ;;  %v3618_v32 = vld [vmem:[#allocation2 + $0xd4] sm:$0x1] }
 0x195   : > { %v8073_v49 = vpop.f32.mrb[45].mxu1  ;;  %v8087_v1 = vadd.f32 %v6105_v62, %v8491_v48  ;;  %6466 = vmatprep.mubr.bf16.mxu0 %v5842_v16  ;;  %v5843_v58 = vcombine.low %v3761_v11, %v3764_v4  ;;  %v3453_v15 = vshll.u32 %v3102_v5, 16  ;;  %v3457_v24 = vshrl.u32 %v3102_v5, 16 }
 0x196   : > { %v8082_v35 = vpop.f32.mrb[46].mxu1  ;;  %5198 = vmatprep.mubr.bf16.mxu1 %v5811_v29  ;;  %v3446_v0 = vrot.slane %v3444_v28, 4  ;;  %v3463_v47 = vshll.u32 %v3103_v25, 16  ;;  %v8097_v2 = vadd.f32 %v7952_v51, %v7944_v54  ;;  %v8101_v17 = vadd.f32 %v7964_v20, %v7958_v41  ;;  %v3104_v20 = vld [vmem:[#allocation2 + $0xcc] sm:$0xf] }
 0x197   : > { %v8091_v7 = vpop.f32.mrb[47].mxu1  ;;  %5199 = vmatmul.mubr.bf16.gmra.mrb[132].mxu1 %v6616_v38  ;;  %v3449_v26 = vrot.slane %v3447_v34, 5  ;;  %v3455_v5 = vrot.slane %v3453_v15, 5  ;;  %v3459_v11 = vrot.slane %v3457_v24, 4  ;;  %v5828_v31 = vrot.slane %v3613_v37, 9 }
 0x198   : > { %v8089_v52 = vpop.f32.mrb[40].mxu0  ;;  %v3465_v16 = vrot.slane %v3463_v47, 5  ;;  %v3767_v29 = vrot.slane %v3614_v13, 5  ;;  %v3770_v25 = vrot.slane %v3615_v46, 5  ;;  %v6108_v54 = vadd.f32 %v7954_v3, %v7946_v55  ;;  %v3105_v24 = vld [vmem:[#allocation2 + $0xd0] sm:$0xf] }
 0x199   : > { %v8093_v18 = vpop.f32.mrb[41].mxu0  ;;  %v3450_v51 = vor.u32 %v3449_v26, %v3446_v0  ;;  %v3460_v4 = vor.u32 %v3459_v11, %v3455_v5  ;;  %v5829_v48 = vrot.slane %v3616_v9, 9  ;;  %v3774_v41 = vrot.slane %v3617_v56, 5  ;;  %v3106_v56 = vld [vmem:[#allocation2 + $0xd4] sm:$0x1] }
 0x19a   : > { %v8103_v62 = vpop.f32.mrb[42].mxu0  ;;  %v3768_v28 = vsel %vm7033_vm14, %v5828_v31, %v3767_v29  ;;  %v3769_v38 = vrot.slane %v3767_v29, 4  ;;  %v8110_v34 = vadd.f32 %v6108_v54, %v7898_v44  ;;  %v3777_v37 = vrot.slane %v3618_v32, 5  ;;  %v6617_v32 = vld [vmem:[#allocation2 + $0xc0] sm:$0xff]  }
 0x19b   : > { %v6034_v33 = vpop.f32.mrb[43].mxu0  ;;  %v3451_v15 = vrot.slane %v3450_v51, 4  ;;  %v3461_v13 = vrot.slane %v3460_v4, 4  ;;  %v3775_v46 = vsel %vm7033_vm14, %v5829_v48, %v3774_v41  ;;  %v3776_v55 = vrot.slane %v3774_v41, 4  ;;  %v8492_v48 = vld [vmem:[#allocation19_spill] sm:$0xff] }
 0x19c   : > { %6467 = vmatmul.mubr.bf16.gmra.mrb[136].mxu0 %v5843_v58  ;;  %v3771_v3 = vsel %vm7033_vm14, %v3769_v38, %v3770_v25  ;;  %v6111_v9 = vadd.f32 %v7976_v57, %v7966_v21  ;;  %v3468_v0 = vshrl.u32 %v3104_v20, 16  ;;  %v3471_v47 = vshll.u32 %v3104_v20, 16 }
 0x19d   : > { %v3456_v44 = vsel %vm6735_vm3, %v3451_v15, %v3455_v5  ;;  %v3466_v58 = vsel %vm6735_vm3, %v3461_v13, %v3465_v16  ;;  %v5844_v26 = vcombine.low %v3768_v28, %v3771_v3  ;;  %v3778_v11 = vsel %vm7033_vm14, %v3776_v55, %v3777_v37  ;;  %v8493_v3 = vld [vmem:[#allocation15_spill] sm:$0xff] }
 0x19e   : > { %v5812_v31 = vcombine.low %v3456_v44, %v3466_v58  ;;  %v5845_v29 = vcombine.low %v3775_v46, %v3778_v11  ;;  %v8125_v25 = vadd.f32 %v6111_v9, %v7904_v19  ;;  %v3470_v21 = vrot.slane %v3468_v0, 4 }
 0x19f   : > { %6470 = vmatprep.mubr.bf16.mxu0 %v5844_v26  ;;  %v3473_v57 = vrot.slane %v3471_v47, 5  ;;  %v3477_v54 = vshll.u32 %v3105_v24, 16  ;;  %v3481_v51 = vshrl.u32 %v3105_v24, 16  ;;  %v3487_v4 = vshll.u32 %v3106_v56, 16 }
 0x1a0   : > { %v6130_v5 = vpop.f32.mrb[48].mxu1  ;;  %5206 = vmatprep.mubr.bf16.mxu1 %v5812_v31  ;;  %v6026_v16 = vadd.f32 %v8037_v23, %v8027_v36  ;;  %v6029_v53 = vadd.f32 %v8049_v39, %v8043_v14  ;;  %v6114_v41 = vadd.f32 %v8492_v48, %v7982_v22  ;;  %v6117_v19 = vadd.f32 %v8004_v45, %v8002_v59  ;;  %v8494_v23 = vld [vmem:[#allocation16_spill] sm:$0xff] }
 0x1a1   : > { %v6131_v28 = vpop.f32.mrb[49].mxu1  ;;  %5207 = vmatmul.mubr.bf16.gmra.mrb[136].mxu1 %v6617_v32  ;;  %v3474_v38 = vor.u32 %v3473_v57, %v3470_v21  ;;  %v3479_v37 = vrot.slane %v3477_v54, 5  ;;  %v3483_v15 = vrot.slane %v3481_v51, 4  ;;  %v3489_v13 = vrot.slane %v3487_v4, 5 }
 0x1a2   : > { %v6133_v55 = vpop.f32.mrb[50].mxu1  ;;  %v8136_v36 = vadd.f32 %v6114_v41, %v8493_v3  ;;  %v8139_v14 = vadd.f32 %v6117_v19, %v8494_v23  ;;  %v6032_v22 = vadd.f32 %v8093_v18, %v8089_v52  ;;  %v6035_v59 = vadd.f32 %v6034_v33, %v8103_v62 }
 0x1a3   : > { %v6036_v20 = vpop.f32.mrb[44].mxu0  ;;  %v6134_v39 = vpop.f32.mrb[51].mxu1  ;;  %v3475_v9 = vrot.slane %v3474_v38, 4  ;;  %v3484_v24 = vor.u32 %v3483_v15, %v3479_v37  ;;  %v6120_v56 = vadd.f32 %v8039_v27, %v8029_v40  ;;  %v6123_v0 = vadd.f32 %v8051_v63, %v8045_v61 }
 0x1a4   : > { %v6037_v46 = vpop.f32.mrb[45].mxu0  ;;  %6471 = vmatmul.mubr.bf16.gmra.mrb[140].mxu0 %v5845_v29  ;;  %v6126_v52 = vadd.f32 %v8073_v49, %v8065_v42  ;;  %v6129_v18 = vadd.f32 %v8091_v7, %v8082_v35  ;;  %v6132_v63 = vadd.f32 %v6131_v28, %v6130_v5  ;;  %v6135_v42 = vadd.f32 %v6134_v39, %v6133_v55  ;;  %v6618_v35 = vld [vmem:[#allocation2 + $0xcc] sm:$0xff]   ;;  %v8495_v5 = vld [vmem:[#allocation13_spill] sm:$0xff] }
 0x1a5   : > { %v6039_v45 = vpop.f32.mrb[46].mxu0  ;;  %v6038_v44 = vadd.f32 %v6037_v46, %v6036_v20  ;;  %v3480_v62 = vsel %vm6735_vm3, %v3475_v9, %v3479_v37  ;;  %v3485_v33 = vrot.slane %v3484_v24, 4  ;;  %v8157_v32 = vadd.f32 %v6120_v56, %v8008_v10  ;;  %v8497_v39 = vld [vmem:[#allocation17_spill] sm:$0xff]  ;;  %v8498_v56 = vld [vmem:[#allocation18_spill] sm:$0xff] }
 0x1a6   : > { %v6040_v47 = vpop.f32.mrb[47].mxu0  ;;  %v8160_v40 = vadd.f32 %v6123_v0, %v8017_v60  ;;  %v8163_v27 = vadd.f32 %v6126_v52, %v8055_v43  ;;  %v8166_v61 = vadd.f32 %v6129_v18, %v8061_v8  ;;  %v8171_v10 = vadd.f32 %v6132_v63, %v8097_v2 }
 0x1a7   : > { %v8148_v58 = vadd.f32 %v6040_v47, %v6039_v45  ;;  %v3490_v49 = vsel %vm6735_vm3, %v3485_v33, %v3489_v13  ;;  %v8174_v60 = vadd.f32 %v6135_v42, %v8101_v17  ;;  %v8496_v17 = vld [vmem:[#allocation14_spill] sm:$0xff] }
 0x1a8   : > { %v6136_v7 = vpop.f32.mrb[52].mxu1  ;;  %v5813_v26 = vcombine.low %v3480_v62, %v3490_v49 }
 0x1a9   : > { %v6137_v43 = vpop.f32.mrb[53].mxu1 }
 0x1aa   : > { %v6138_v29 = vadd.f32 %v6137_v43, %v6136_v7  ;;  %v6139_v8 = vpop.f32.mrb[54].mxu1  ;;  %5214 = vmatprep.mubr.bf16.mxu1 %v5813_v26 }
 0x1ab   : > { %v6194_v11 = vpop.f32.mrb[48].mxu0  ;;  %v6140_v54 = vpop.f32.mrb[55].mxu1  ;;  %5215 = vmatmul.mubr.bf16.gmra.mrb[140].mxu1 %v6618_v35 }
 0x1ac   : > { %v6195_v31 = vpop.f32.mrb[49].mxu0  ;;  %v8176_v51 = vadd.f32 %v6138_v29, %v6026_v16  ;;  %v6141_v4 = vadd.f32 %v6140_v54, %v6139_v8 }
 0x1ad   : > { %v6196_v21 = vadd.f32 %v6195_v31, %v6194_v11  ;;  %v6197_v57 = vpop.f32.mrb[50].mxu0 }
 0x1ae   : > { %v6198_v30 = vpop.f32.mrb[51].mxu0  ;;  %v8181_v41 = vadd.f32 %v6141_v4, %v6029_v53 }
 0x1af   : > { %v8179_v48 = vadd.f32 %v6196_v21, %v8495_v5  ;;  %v6199_v2 = vadd.f32 %v6198_v30, %v6197_v57 }
 0x1b0   : > { %v6142_v20 = vpop.f32.mrb[56].mxu1 }
 0x1b1   : > { %v8184_v19 = vadd.f32 %v6199_v2, %v8496_v17  ;;  %v6143_v38 = vpop.f32.mrb[57].mxu1  ;;  %v8499_v17 = vld [vmem:[#allocation4_spill] sm:$0xff] }
 0x1b2   : > { %v6144_v15 = vadd.f32 %v6143_v38, %v6142_v20  ;;  %v6145_v13 = vpop.f32.mrb[58].mxu1 }
 0x1b3   : > { %v6200_v28 = vpop.f32.mrb[52].mxu0  ;;  %v6146_v16 = vpop.f32.mrb[59].mxu1 }
 0x1b4   : > { %v6201_v37 = vpop.f32.mrb[53].mxu0  ;;  %v8186_v23 = vadd.f32 %v6144_v15, %v6032_v22  ;;  %v6147_v45 = vadd.f32 %v6146_v16, %v6145_v13 }
 0x1b5   : > { %v6202_v46 = vadd.f32 %v6201_v37, %v6200_v28  ;;  %v6203_v55 = vpop.f32.mrb[54].mxu0 }
 0x1b6   : > { %v6204_v3 = vpop.f32.mrb[55].mxu0  ;;  %v8191_v24 = vadd.f32 %v6147_v45, %v6035_v59 }
 0x1b7   : > { %v8189_v9 = vadd.f32 %v6202_v46, %v8497_v39  ;;  %v6205_v53 = vadd.f32 %v6204_v3, %v6203_v55 }
 0x1b8   : > { %v6148_v47 = vpop.f32.mrb[60].mxu1 }
 0x1b9   : > { %v8194_v0 = vadd.f32 %v6205_v53, %v8498_v56  ;;  %v6149_v18 = vpop.f32.mrb[61].mxu1 }
 0x1ba   : > { %v6150_v33 = vadd.f32 %v6149_v18, %v6148_v47  ;;  %v6151_v63 = vpop.f32.mrb[62].mxu1 }
 0x1bb   : > { %v6206_v52 = vpop.f32.mrb[56].mxu0  ;;  %v6152_v22 = vpop.f32.mrb[63].mxu1 }
 0x1bc   : > { %v6207_v62 = vpop.f32.mrb[57].mxu0  ;;  %v8196_v7 = vadd.f32 %v6150_v33, %v6038_v44  ;;  %v6153_v26 = vadd.f32 %v6152_v22, %v6151_v63  ;;  %v8502_v33 = vld [vmem:[#allocation7_spill] sm:$0xff] }
 0x1bd   : > { %v6208_v42 = vadd.f32 %v6207_v62, %v6206_v52  ;;  %v6209_v49 = vpop.f32.mrb[58].mxu0  ;;  %v8501_v52 = vld [vmem:[#allocation6_spill] sm:$0xff] }
 0x1be   : > { %v6210_v35 = vpop.f32.mrb[59].mxu0  ;;  %v8202_v43 = vadd.f32 %v6153_v26, %v8148_v58 }
 0x1bf   : > { %v8199_v11 = vadd.f32 %v6208_v42, %v8032_v12  ;;  %v6211_v59 = vadd.f32 %v6210_v35, %v6209_v49 }
 0x1c0   : > { %v6154_v29 = vpop.f32.mrb[64].mxu1 }
 0x1c1   : > { %v8205_v31 = vadd.f32 %v6211_v59, %v8035_v50  ;;  %v6155_v21 = vpop.f32.mrb[65].mxu1  ;;  %v8500_v50 = vld [vmem:[#allocation5_spill] sm:$0xff] }
 0x1c2   : > { %v6156_v54 = vadd.f32 %v6155_v21, %v6154_v29  ;;  %v6157_v30 = vpop.f32.mrb[66].mxu1 }
 0x1c3   : > { %v6212_v8 = vpop.f32.mrb[60].mxu0  ;;  %v6158_v5 = vpop.f32.mrb[67].mxu1 }
 0x1c4   : > { %v6213_v57 = vpop.f32.mrb[61].mxu0  ;;  %v8208_v12 = vadd.f32 %v6156_v54, %v8499_v17  ;;  %v6159_v20 = vadd.f32 %v6158_v5, %v6157_v30  ;;  %v8503_v30 = vld [vmem:[#allocation8_spill] sm:$0xff]  ;;  %v8504_v5 = vld [vmem:[#allocation9_spill] sm:$0xff] }
 0x1c5   : > { %v6214_v4 = vadd.f32 %v6213_v57, %v6212_v8  ;;  %v6215_v44 = vpop.f32.mrb[62].mxu0 }
 0x1c6   : > { %v6216_v2 = vpop.f32.mrb[63].mxu0  ;;  %v8214_v38 = vadd.f32 %v6159_v20, %v8500_v50 }
 0x1c7   : > { %v8211_v58 = vadd.f32 %v6214_v4, %v8080_v6  ;;  %v6217_v28 = vadd.f32 %v6216_v2, %v6215_v44 }
 0x1c9   : > { %v8217_v37 = vadd.f32 %v6217_v28, %v8087_v1  ;;  %v6160_v13 = vpop.f32.mrb[68].mxu1 }
 0x1ca   : > { %v6161_v55 = vpop.f32.mrb[69].mxu1 }
 0x1cb   : > { %v6218_v15 = vpop.f32.mrb[64].mxu0  ;;  %v6162_v45 = vadd.f32 %v6161_v55, %v6160_v13  ;;  %v6163_v39 = vpop.f32.mrb[70].mxu1 }
 0x1cc   : > { %v6219_v46 = vpop.f32.mrb[65].mxu0  ;;  %v6164_v56 = vpop.f32.mrb[71].mxu1 }
 0x1cd   : > { %v6220_v16 = vadd.f32 %v6219_v46, %v6218_v15  ;;  %v6221_v3 = vpop.f32.mrb[66].mxu0  ;;  %v8223_v18 = vadd.f32 %v6162_v45, %v8501_v52  ;;  %v6165_v62 = vadd.f32 %v6164_v56, %v6163_v39 }
 0x1ce   : > { %v6222_v53 = vpop.f32.mrb[67].mxu0 }
 0x1cf   : > { %v8220_v6 = vadd.f32 %v6220_v16, %v8110_v34  ;;  %v6223_v47 = vadd.f32 %v6222_v53, %v6221_v3  ;;  %v8229_v63 = vadd.f32 %v6165_v62, %v8502_v33 }
 0x1d1   : > { %v8226_v1 = vadd.f32 %v6223_v47, %v8125_v25  ;;  %v6166_v22 = vpop.f32.mrb[72].mxu1 }
 0x1d2   : > { %v6167_v59 = vpop.f32.mrb[73].mxu1 }
 0x1d3   : > { %v6224_v42 = vpop.f32.mrb[68].mxu0  ;;  %v6168_v34 = vadd.f32 %v6167_v59, %v6166_v22  ;;  %v6169_v8 = vpop.f32.mrb[74].mxu1 }
 0x1d4   : > { %v6225_v49 = vpop.f32.mrb[69].mxu0  ;;  %v6170_v54 = vpop.f32.mrb[75].mxu1 }
 0x1d5   : > { %v6226_v35 = vadd.f32 %v6225_v49, %v6224_v42  ;;  %v6227_v26 = vpop.f32.mrb[70].mxu0  ;;  %v8235_v25 = vadd.f32 %v6168_v34, %v8503_v30  ;;  %v6171_v4 = vadd.f32 %v6170_v54, %v6169_v8 }
 0x1d6   : > { %v6228_v29 = vpop.f32.mrb[71].mxu0 }
 0x1d7   : > { %v8232_v21 = vadd.f32 %v6226_v35, %v8136_v36  ;;  %v6229_v57 = vadd.f32 %v6228_v29, %v6227_v26  ;;  %v8241_v2 = vadd.f32 %v6171_v4, %v8504_v5  ;;  %v8505_v35 = vld [vmem:[#allocation11_spill] sm:$0xff] }
 0x1d9   : > { %v8238_v44 = vadd.f32 %v6229_v57, %v8139_v14 }
 0x1db   : > { %v6230_v17 = vpop.f32.mrb[72].mxu0 }
 0x1dc   : > { %v6231_v20 = vpop.f32.mrb[73].mxu0 }
 0x1dd   : > { %v6232_v28 = vadd.f32 %v6231_v20, %v6230_v17  ;;  %v6233_v50 = vpop.f32.mrb[74].mxu0 }
 0x1de   : > { %v6234_v15 = vpop.f32.mrb[75].mxu0 }
 0x1df   : > { %v8244_v36 = vadd.f32 %v6232_v28, %v8157_v32  ;;  %v6235_v13 = vadd.f32 %v6234_v15, %v6233_v50 }
 0x1e1   : > { %v8247_v46 = vadd.f32 %v6235_v13, %v8160_v40 }
 0x1e3   : > { %v6236_v55 = vpop.f32.mrb[76].mxu0 }
 0x1e4   : > { %v6237_v16 = vpop.f32.mrb[77].mxu0 }
 0x1e5   : > { %v6238_v3 = vadd.f32 %v6237_v16, %v6236_v55  ;;  %v6239_v14 = vpop.f32.mrb[78].mxu0 }
 0x1e6   : > { %v6240_v45 = vpop.f32.mrb[79].mxu0  ;;  %v6172_v47 = vpop.f32.mrb[76].mxu1 }
 0x1e7   : > { %v8250_v39 = vadd.f32 %v6238_v3, %v8163_v27  ;;  %v6241_v53 = vadd.f32 %v6240_v45, %v6239_v14  ;;  %v6173_v52 = vpop.f32.mrb[77].mxu1 }
 0x1e8   : > { %v6174_v62 = vadd.f32 %v6173_v52, %v6172_v47  ;;  %v6175_v33 = vpop.f32.mrb[78].mxu1 }
 0x1e9   : > { %v8253_v56 = vadd.f32 %v6241_v53, %v8166_v61  ;;  %v6176_v49 = vpop.f32.mrb[79].mxu1  ;;  %v8506_v61 = vld [vmem:[#allocation12_spill] sm:$0xff] }
 0x1ea   : > { %v8256_v26 = vadd.f32 %v6174_v62, %v8505_v35  ;;  %v6177_v59 = vadd.f32 %v6176_v49, %v6175_v33 }
 0x1eb   : > { %v6242_v32 = vpop.f32.mrb[80].mxu0 }
 0x1ec   : > { %v6243_v42 = vpop.f32.mrb[81].mxu0  ;;  %v8262_v8 = vadd.f32 %v6177_v59, %v8506_v61 }
 0x1ed   : > { %v6244_v40 = vadd.f32 %v6243_v42, %v6242_v32  ;;  %v6245_v22 = vpop.f32.mrb[82].mxu0 }
 0x1ee   : > { %v6246_v29 = vpop.f32.mrb[83].mxu0  ;;  %v6306_v54 = vpop.f32.mrb[80].mxu1 }
 0x1ef   : > { %v8259_v27 = vadd.f32 %v6244_v40, %v8171_v10  ;;  %v6247_v34 = vadd.f32 %v6246_v29, %v6245_v22  ;;  %v6307_v30 = vpop.f32.mrb[81].mxu1 }
 0x1f0   : > { %v6308_v4 = vadd.f32 %v6307_v30, %v6306_v54  ;;  %v6309_v5 = vpop.f32.mrb[82].mxu1 }
 0x1f1   : > { %v8265_v57 = vadd.f32 %v6247_v34, %v8174_v60  ;;  %v6310_v20 = vpop.f32.mrb[83].mxu1 }
 0x1f2   : > { %v6311_v50 = vadd.f32 %v6310_v20, %v6309_v5  ;;  %v8268_v15 = vadd.f32 %v6308_v4, %v8179_v48 }
 0x1f3   : > { %v6248_v17 = vpop.f32.mrb[84].mxu0 }
 0x1f4   : > { %v6249_v28 = vpop.f32.mrb[85].mxu0  ;;  %v8271_v16 = vadd.f32 %v6311_v50, %v8184_v19 }
 0x1f5   : > { %v6250_v10 = vadd.f32 %v6249_v28, %v6248_v17  ;;  %v6251_v13 = vpop.f32.mrb[86].mxu0 }
 0x1f6   : > { %v6252_v55 = vpop.f32.mrb[87].mxu0  ;;  %v6312_v14 = vpop.f32.mrb[84].mxu1 }
 0x1f7   : > { %v8274_v60 = vadd.f32 %v6250_v10, %v8176_v51  ;;  %v6253_v3 = vadd.f32 %v6252_v55, %v6251_v13  ;;  %v6313_v53 = vpop.f32.mrb[85].mxu1 }
 0x1f8   : > { %v6314_v47 = vadd.f32 %v6313_v53, %v6312_v14  ;;  %v6315_v52 = vpop.f32.mrb[86].mxu1 }
 0x1f9   : > { %v8277_v45 = vadd.f32 %v6253_v3, %v8181_v41  ;;  %v6316_v32 = vpop.f32.mrb[87].mxu1 }
 0x1fa   : > { %v6317_v62 = vadd.f32 %v6316_v32, %v6315_v52  ;;  %v8280_v33 = vadd.f32 %v6314_v47, %v8189_v9 }
 0x1fb   : > { %v6254_v48 = vpop.f32.mrb[88].mxu0 }
 0x1fc   : > { %v6255_v42 = vpop.f32.mrb[89].mxu0  ;;  %v8283_v51 = vadd.f32 %v6317_v62, %v8194_v0 }
 0x1fd   : > { %v6256_v19 = vadd.f32 %v6255_v42, %v6254_v48  ;;  %v6257_v40 = vpop.f32.mrb[90].mxu0 }
 0x1fe   : > { %v6258_v49 = vpop.f32.mrb[91].mxu0 }
 0x1ff   : > { %v8286_v22 = vadd.f32 %v6256_v19, %v8186_v23  ;;  %v6259_v41 = vadd.f32 %v6258_v49, %v6257_v40  ;;  %v6318_v35 = vpop.f32.mrb[88].mxu1 }
 0x200   : > { %v6319_v59 = vpop.f32.mrb[89].mxu1 }
 0x201   : > { %v8289_v29 = vadd.f32 %v6259_v41, %v8191_v24  ;;  %v6320_v34 = vadd.f32 %v6319_v59, %v6318_v35  ;;  %v6321_v61 = vpop.f32.mrb[90].mxu1 }
 0x202   : > { %v6322_v9 = vpop.f32.mrb[91].mxu1 }
 0x203   : > { %v6323_v54 = vadd.f32 %v6322_v9, %v6321_v61  ;;  %v8292_v30 = vadd.f32 %v6320_v34, %v8199_v11 }
 0x205   : > { %v6260_v4 = vpop.f32.mrb[92].mxu0  ;;  %v8295_v0 = vadd.f32 %v6323_v54, %v8205_v31 }
 0x206   : > { %v6261_v5 = vpop.f32.mrb[93].mxu0 }
 0x207   : > { %v6262_v23 = vadd.f32 %v6261_v5, %v6260_v4  ;;  %v6263_v17 = vpop.f32.mrb[94].mxu0 }
 0x208   : > { %v6264_v20 = vpop.f32.mrb[95].mxu0 }
 0x209   : > { %v8298_v28 = vadd.f32 %v6262_v23, %v8196_v7  ;;  %v6265_v24 = vadd.f32 %v6264_v20, %v6263_v17 }
 0x20a   : > { %v6324_v50 = vpop.f32.mrb[92].mxu1 }
 0x20b   : > { %v8301_v10 = vadd.f32 %v6265_v24, %v8202_v43  ;;  %v6325_v13 = vpop.f32.mrb[93].mxu1 }
 0x20c   : > { %v6326_v55 = vadd.f32 %v6325_v13, %v6324_v50  ;;  %v6327_v11 = vpop.f32.mrb[94].mxu1 }
 0x20d   : > { %v6328_v3 = vpop.f32.mrb[95].mxu1 }
 0x20e   : > { %v6329_v14 = vadd.f32 %v6328_v3, %v6327_v11  ;;  %v8304_v31 = vadd.f32 %v6326_v55, %v8211_v58 }
 0x20f   : > { %v6266_v53 = vpop.f32.mrb[96].mxu0 }
 0x210   : > { %v6267_v47 = vpop.f32.mrb[97].mxu0  ;;  %v8307_v52 = vadd.f32 %v6329_v14, %v8217_v37 }
 0x211   : > { %v6268_v7 = vadd.f32 %v6267_v47, %v6266_v53  ;;  %v6269_v32 = vpop.f32.mrb[98].mxu0 }
 0x212   : > { %v6270_v48 = vpop.f32.mrb[99].mxu0 }
 0x213   : > { %v8310_v62 = vadd.f32 %v6268_v7, %v8208_v12  ;;  %v6271_v43 = vadd.f32 %v6270_v48, %v6269_v32 }
 0x214   : > { %v6330_v42 = vpop.f32.mrb[96].mxu1 }
 0x215   : > { %v8313_v19 = vadd.f32 %v6271_v43, %v8214_v38  ;;  %v6331_v40 = vpop.f32.mrb[97].mxu1 }
 0x216   : > { %v6332_v49 = vadd.f32 %v6331_v40, %v6330_v42  ;;  %v6333_v58 = vpop.f32.mrb[98].mxu1 }
 0x217   : > { %v6334_v41 = vpop.f32.mrb[99].mxu1 }
 0x218   : > { %v6335_v35 = vadd.f32 %v6334_v41, %v6333_v58  ;;  %v8316_v59 = vadd.f32 %v6332_v49, %v8220_v6 }
 0x219   : > { %v6272_v37 = vpop.f32.mrb[100].mxu0 }
 0x21a   : > { %v6273_v34 = vpop.f32.mrb[101].mxu0  ;;  %v8319_v61 = vadd.f32 %v6335_v35, %v8226_v1 }
 0x21b   : > { %v6274_v12 = vadd.f32 %v6273_v34, %v6272_v37  ;;  %v6275_v9 = vpop.f32.mrb[102].mxu0 }
 0x21c   : > { %v6276_v54 = vpop.f32.mrb[103].mxu0 }
 0x21d   : > { %v8322_v4 = vadd.f32 %v6274_v12, %v8223_v18  ;;  %v6277_v38 = vadd.f32 %v6276_v54, %v6275_v9 }
 0x21e   : > { %v6336_v5 = vpop.f32.mrb[100].mxu1 }
 0x21f   : > { %v8325_v23 = vadd.f32 %v6277_v38, %v8229_v63  ;;  %v6337_v17 = vpop.f32.mrb[101].mxu1 }
 0x220   : > { %v6338_v20 = vadd.f32 %v6337_v17, %v6336_v5  ;;  %v6339_v6 = vpop.f32.mrb[102].mxu1 }
 0x221   : > { %v6340_v24 = vpop.f32.mrb[103].mxu1 }
 0x222   : > { %v6341_v50 = vadd.f32 %v6340_v24, %v6339_v6  ;;  %v8328_v13 = vadd.f32 %v6338_v20, %v8232_v21 }
 0x224   : > { %v6278_v1 = vpop.f32.mrb[104].mxu0  ;;  %v8331_v55 = vadd.f32 %v6341_v50, %v8238_v44 }
 0x225   : > { %v6279_v11 = vpop.f32.mrb[105].mxu0 }
 0x226   : > { %v6280_v18 = vadd.f32 %v6279_v11, %v6278_v1  ;;  %v6281_v3 = vpop.f32.mrb[106].mxu0 }
 0x227   : > { %v6282_v14 = vpop.f32.mrb[107].mxu0 }
 0x228   : > { %v8334_v53 = vadd.f32 %v6280_v18, %v8235_v25  ;;  %v6283_v63 = vadd.f32 %v6282_v14, %v6281_v3  ;;  %v6342_v47 = vpop.f32.mrb[104].mxu1 }
 0x229   : > { %v6343_v7 = vpop.f32.mrb[105].mxu1 }
 0x22a   : > { %v8337_v32 = vadd.f32 %v6283_v63, %v8241_v2  ;;  %v6344_v48 = vadd.f32 %v6343_v7, %v6342_v47  ;;  %v6345_v21 = vpop.f32.mrb[106].mxu1 }
 0x22b   : > { %v6346_v43 = vpop.f32.mrb[107].mxu1 }
 0x22c   : > { %v6347_v42 = vadd.f32 %v6346_v43, %v6345_v21  ;;  %v8340_v44 = vadd.f32 %v6344_v48, %v8244_v36 }
 0x22e   : > { %v8343_v40 = vadd.f32 %v6347_v42, %v8247_v46 }
 0x233   : > { %v6348_v49 = vpop.f32.mrb[108].mxu1 }
 0x234   : > { %v6349_v58 = vpop.f32.mrb[109].mxu1 }
 0x235   : > { %v6350_v25 = vadd.f32 %v6349_v58, %v6348_v49  ;;  %v6351_v41 = vpop.f32.mrb[110].mxu1 }
 0x236   : > { %v6352_v37 = vpop.f32.mrb[111].mxu1 }
 0x237   : > { %v6284_v35 = vpop.f32.mrb[108].mxu0  ;;  %v6353_v2 = vadd.f32 %v6352_v37, %v6351_v41  ;;  %v8346_v12 = vadd.f32 %v6350_v25, %v8250_v39 }
 0x238   : > { %v6285_v34 = vpop.f32.mrb[109].mxu0 }
 0x239   : > { %v6286_v9 = vadd.f32 %v6285_v34, %v6284_v35  ;;  %v6287_v54 = vpop.f32.mrb[110].mxu0  ;;  %v8349_v36 = vadd.f32 %v6353_v2, %v8253_v56 }
 0x23a   : > { %v6288_v38 = vpop.f32.mrb[111].mxu0 }
 0x23b   : > { %v8352_v46 = vadd.f32 %v6286_v9, %v8256_v26  ;;  %v6289_v5 = vadd.f32 %v6288_v38, %v6287_v54 }
 0x23c   : > { %v6354_v20 = vpop.f32.mrb[112].mxu1 }
 0x23d   : > { %v8355_v17 = vadd.f32 %v6289_v5, %v8262_v8  ;;  %v6355_v56 = vpop.f32.mrb[113].mxu1 }
 0x23e   : > { %v6356_v24 = vadd.f32 %v6355_v56, %v6354_v20  ;;  %v6357_v50 = vpop.f32.mrb[114].mxu1 }
 0x23f   : > { %v6444_v39 = vpop.f32.mrb[112].mxu0  ;;  %v6358_v11 = vpop.f32.mrb[115].mxu1 }
 0x240   : > { %v5266_v6 = vadd.f32 %v6444_v39, %v8280_v33  ;;  %v5257_v26 = vpop.f32.mrb[113].mxu0  ;;  %v6359_v14 = vadd.f32 %v6358_v11, %v6357_v50  ;;  %v8369_v63 = vadd.f32 %v6356_v24, %v8259_v27 }
 0x241   : > { %v5258_v8 = vadd.f32 %v5257_v26, %v8268_v15  ;;  %v6445_v1 = vpop.f32.mrb[114].mxu0 }
 0x242   : > { %5494 = vst [vmem:[%s8362_s7 + $0x10] sm:$0xff] %v5266_v6  ;;  %v5269_v18 = vadd.f32 %v6445_v1, %v8283_v51  ;;  %v5260_v3 = vpop.f32.mrb[115].mxu0  ;;  %v8375_v33 = vadd.f32 %v6359_v14, %v8265_v57  ;;  %v5424_v21 = vmul.f32 %v5266_v6, %v5266_v6 }
 0x243   : > { %5492 = vst [vmem:[%s8362_s7] sm:$0xff] %v5258_v8  ;;  %v5261_v47 = vadd.f32 %v5260_v3, %v8271_v16  ;;  %v5422_v7 = vmul.f32 %v5258_v8, %v5258_v8 }
 0x244   : > { %5495 = vst [vmem:[%s8362_s7 + $0x18] sm:$0xff] %v5269_v18  ;;  %v5425_v58 = vmul.f32 %v5269_v18, %v5269_v18 }
 0x245   : > { %v5384_v48 = vadd.f32 %v5261_v47, %v5258_v8  ;;  %v5423_v15 = vmul.f32 %v5261_v47, %v5261_v47  ;;  %5493 = vst [vmem:[%s8362_s7 + $0x8] sm:$0xff] %v5261_v47 }
 0x246   : > { %v6360_v49 = vpop.f32.mrb[116].mxu1 }
 0x247   : > { %v5385_v43 = vadd.f32 %v5384_v48, %v5266_v6  ;;  %v5454_v51 = vadd.f32 %v5423_v15, %v5422_v7  ;;  %v6448_v42 = vpop.f32.mrb[116].mxu0  ;;  %v6361_v16 = vpop.f32.mrb[117].mxu1 }
 0x248   : > { %v5282_v27 = vadd.f32 %v6448_v42, %v8304_v31  ;;  %v5273_v25 = vpop.f32.mrb[117].mxu0  ;;  %v6362_v34 = vadd.f32 %v6361_v16, %v6360_v49  ;;  %v6363_v2 = vpop.f32.mrb[118].mxu1 }
 0x249   : > { %v5455_v41 = vadd.f32 %v5454_v51, %v5424_v21  ;;  %v5274_v57 = vadd.f32 %v5273_v25, %v8292_v30  ;;  %v5386_v35 = vadd.f32 %v5385_v43, %v5269_v18  ;;  %v6449_v37 = vpop.f32.mrb[118].mxu0  ;;  %v6364_v38 = vpop.f32.mrb[119].mxu1 }
 0x24a   : > { %5498 = vst [vmem:[%s8362_s7 + $0x30] sm:$0xff] %v5282_v27  ;;  %v5285_v9 = vadd.f32 %v6449_v37, %v8307_v52  ;;  %v5276_v54 = vpop.f32.mrb[119].mxu0  ;;  %v6365_v56 = vadd.f32 %v6364_v38, %v6363_v2  ;;  %v8386_v30 = vadd.f32 %v6362_v34, %v8274_v60  ;;  %v5428_v50 = vmul.f32 %v5282_v27, %v5282_v27 }
 0x24b   : > { %v5387_v5 = vadd.f32 %v5386_v35, %v5274_v57  ;;  %v5426_v20 = vmul.f32 %v5274_v57, %v5274_v57  ;;  %v5456_v31 = vadd.f32 %v5455_v41, %v5425_v58  ;;  %5496 = vst [vmem:[%s8362_s7 + $0x20] sm:$0xff] %v5274_v57  ;;  %v5277_v39 = vadd.f32 %v5276_v54, %v8295_v0 }
 0x24c   : > { %5499 = vst [vmem:[%s8362_s7 + $0x38] sm:$0xff] %v5285_v9  ;;  %v8390_v52 = vadd.f32 %v6365_v56, %v8277_v45  ;;  %v5429_v14 = vmul.f32 %v5285_v9, %v5285_v9 }
 0x24d   : > { %v5457_v6 = vadd.f32 %v5456_v31, %v5426_v20  ;;  %v5388_v26 = vadd.f32 %v5387_v5, %v5277_v39  ;;  %v5427_v24 = vmul.f32 %v5277_v39, %v5277_v39  ;;  %5497 = vst [vmem:[%s8362_s7 + $0x28] sm:$0xff] %v5277_v39 }
 0x24f   : > { %v5389_v8 = vadd.f32 %v5388_v26, %v5282_v27  ;;  %v5458_v1 = vadd.f32 %v5457_v6, %v5427_v24  ;;  %v6452_v11 = vpop.f32.mrb[120].mxu0  ;;  %v6366_v3 = vpop.f32.mrb[120].mxu1 }
 0x250   : > { %v5298_v18 = vadd.f32 %v6452_v11, %v8328_v13  ;;  %v5289_v0 = vpop.f32.mrb[121].mxu0  ;;  %v6367_v15 = vpop.f32.mrb[121].mxu1 }
 0x251   : > { %v5459_v60 = vadd.f32 %v5458_v1, %v5428_v50  ;;  %v5290_v47 = vadd.f32 %v5289_v0, %v8316_v59  ;;  %v5390_v7 = vadd.f32 %v5389_v8, %v5285_v9  ;;  %v6453_v48 = vpop.f32.mrb[122].mxu0  ;;  %v6368_v43 = vadd.f32 %v6367_v15, %v6366_v3  ;;  %v6369_v51 = vpop.f32.mrb[122].mxu1 }
 0x252   : > { %5502 = vst [vmem:[%s8362_s7 + $0x50] sm:$0xff] %v5298_v18  ;;  %v5301_v45 = vadd.f32 %v6453_v48, %v8331_v55  ;;  %v5292_v21 = vpop.f32.mrb[123].mxu0  ;;  %v6370_v27 = vpop.f32.mrb[123].mxu1  ;;  %v5432_v35 = vmul.f32 %v5298_v18, %v5298_v18 }
 0x253   : > { %v5391_v42 = vadd.f32 %v5390_v7, %v5290_v47  ;;  %v5430_v13 = vmul.f32 %v5290_v47, %v5290_v47  ;;  %v5460_v49 = vadd.f32 %v5459_v60, %v5429_v14  ;;  %5500 = vst [vmem:[%s8362_s7 + $0x40] sm:$0xff] %v5290_v47  ;;  %v5293_v58 = vadd.f32 %v5292_v21, %v8319_v61 }
 0x254   : > { %5503 = vst [vmem:[%s8362_s7 + $0x58] sm:$0xff] %v5301_v45  ;;  %v6371_v25 = vadd.f32 %v6370_v27, %v6369_v51  ;;  %v8400_v59 = vadd.f32 %v6368_v43, %v8286_v22  ;;  %v5433_v54 = vmul.f32 %v5301_v45, %v5301_v45 }
 0x255   : > { %v5461_v16 = vadd.f32 %v5460_v49, %v5430_v13  ;;  %v5392_v41 = vadd.f32 %v5391_v42, %v5293_v58  ;;  %v5431_v55 = vmul.f32 %v5293_v58, %v5293_v58  ;;  %5501 = vst [vmem:[%s8362_s7 + $0x48] sm:$0xff] %v5293_v58 }
 0x256   : > { %v8404_v57 = vadd.f32 %v6371_v25, %v8289_v29 }
 0x257   : > { %v5393_v37 = vadd.f32 %v5392_v41, %v5298_v18  ;;  %v5462_v34 = vadd.f32 %v5461_v16, %v5431_v55  ;;  %v6456_v2 = vpop.f32.mrb[124].mxu0 }
 0x258   : > { %v5314_v61 = vadd.f32 %v6456_v2, %v8346_v12  ;;  %v5305_v9 = vpop.f32.mrb[125].mxu0 }
 0x259   : > { %v5463_v22 = vadd.f32 %v5462_v34, %v5432_v35  ;;  %v5306_v38 = vadd.f32 %v5305_v9, %v8340_v44  ;;  %v5394_v5 = vadd.f32 %v5393_v37, %v5301_v45  ;;  %v6457_v20 = vpop.f32.mrb[126].mxu0  ;;  %v6372_v39 = vpop.f32.mrb[124].mxu1 }
 0x25a   : > { %5506 = vst [vmem:[%s8362_s7 + $0x70] sm:$0xff] %v5314_v61  ;;  %v5317_v29 = vadd.f32 %v6457_v20, %v8349_v36  ;;  %v5308_v31 = vpop.f32.mrb[127].mxu0  ;;  %v6373_v24 = vpop.f32.mrb[125].mxu1  ;;  %v5436_v3 = vmul.f32 %v5314_v61, %v5314_v61 }
 0x25b   : > { %v5395_v56 = vadd.f32 %v5394_v5, %v5306_v38  ;;  %v5434_v6 = vmul.f32 %v5306_v38, %v5306_v38  ;;  %v5464_v26 = vadd.f32 %v5463_v22, %v5433_v54  ;;  %5504 = vst [vmem:[%s8362_s7 + $0x60] sm:$0xff] %v5306_v38  ;;  %v5309_v12 = vadd.f32 %v5308_v31, %v8343_v40  ;;  %v6375_v8 = vpop.f32.mrb[126].mxu1 }
 0x25c   : > { %5507 = vst [vmem:[%s8362_s7 + $0x78] sm:$0xff] %v5317_v29  ;;  %v6374_v50 = vadd.f32 %v6373_v24, %v6372_v39  ;;  %v6376_v18 = vpop.f32.mrb[127].mxu1  ;;  %v5437_v15 = vmul.f32 %v5317_v29, %v5317_v29 }
 0x25d   : > { %v5465_v1 = vadd.f32 %v5464_v26, %v5434_v6  ;;  %v5396_v44 = vadd.f32 %v5395_v56, %v5309_v12  ;;  %v5435_v11 = vmul.f32 %v5309_v12, %v5309_v12  ;;  %5505 = vst [vmem:[%s8362_s7 + $0x68] sm:$0xff] %v5309_v12  ;;  %v6377_v0 = vadd.f32 %v6376_v18, %v6375_v8 }
 0x25e   : > { %v5185_v36 = vadd.f32 %v6374_v50, %v8298_v28 }
 0x25f   : > { %v5397_v14 = vadd.f32 %v5396_v44, %v5314_v61  ;;  %v5466_v60 = vadd.f32 %v5465_v1, %v5435_v11  ;;  %v6460_v47 = vpop.f32.mrb[128].mxu0  ;;  %v5188_v48 = vadd.f32 %v6377_v0, %v8301_v10 }
 0x260   : > { %v5330_v40 = vadd.f32 %v6460_v47, %v8386_v30  ;;  %v5321_v7 = vpop.f32.mrb[129].mxu0 }
 0x261   : > { %v5467_v45 = vadd.f32 %v5466_v60, %v5436_v3  ;;  %v5322_v21 = vadd.f32 %v5321_v7, %v8369_v63  ;;  %v5398_v43 = vadd.f32 %v5397_v14, %v5317_v29  ;;  %v6461_v51 = vpop.f32.mrb[130].mxu0 }
 0x262   : > { %5510 = vst [vmem:[%s8362_s7 + $0x90] sm:$0xff] %v5330_v40  ;;  %v5333_v28 = vadd.f32 %v6461_v51, %v8390_v52  ;;  %v5324_v42 = vpop.f32.mrb[131].mxu0  ;;  %v6378_v27 = vpop.f32.mrb[128].mxu1  ;;  %v5440_v35 = vmul.f32 %v5330_v40, %v5330_v40 }
 0x263   : > { %v5399_v13 = vadd.f32 %v5398_v43, %v5322_v21  ;;  %v5438_v49 = vmul.f32 %v5322_v21, %v5322_v21  ;;  %v5468_v58 = vadd.f32 %v5467_v45, %v5437_v15  ;;  %5508 = vst [vmem:[%s8362_s7 + $0x80] sm:$0xff] %v5322_v21  ;;  %v5325_v30 = vadd.f32 %v5324_v42, %v8375_v33  ;;  %v6379_v10 = vpop.f32.mrb[129].mxu1 }
 0x264   : > { %5511 = vst [vmem:[%s8362_s7 + $0x98] sm:$0xff] %v5333_v28  ;;  %v6380_v63 = vadd.f32 %v6379_v10, %v6378_v27  ;;  %v6381_v55 = vpop.f32.mrb[130].mxu1  ;;  %v5441_v33 = vmul.f32 %v5333_v28, %v5333_v28 }
 0x265   : > { %v5469_v25 = vadd.f32 %v5468_v58, %v5438_v49  ;;  %v5400_v16 = vadd.f32 %v5399_v13, %v5325_v30  ;;  %v5439_v41 = vmul.f32 %v5325_v30, %v5325_v30  ;;  %5509 = vst [vmem:[%s8362_s7 + $0x88] sm:$0xff] %v5325_v30  ;;  %v6382_v37 = vpop.f32.mrb[131].mxu1 }
 0x266   : > { %v6383_v61 = vadd.f32 %v6382_v37, %v6381_v55  ;;  %v5193_v9 = vadd.f32 %v6380_v63, %v8310_v62 }
 0x267   : > { %v5401_v52 = vadd.f32 %v5400_v16, %v5330_v40  ;;  %v5470_v34 = vadd.f32 %v5469_v25, %v5439_v41  ;;  %v6464_v2 = vpop.f32.mrb[132].mxu0 }
 0x268   : > { %v5346_v54 = vadd.f32 %v6464_v2, %v5185_v36  ;;  %v5337_v22 = vpop.f32.mrb[133].mxu0  ;;  %v5196_v31 = vadd.f32 %v6383_v61, %v8313_v19 }
 0x269   : > { %v5471_v38 = vadd.f32 %v5470_v34, %v5440_v35  ;;  %v5338_v5 = vadd.f32 %v5337_v22, %v8400_v59  ;;  %v5402_v20 = vadd.f32 %v5401_v52, %v5333_v28  ;;  %v6465_v29 = vpop.f32.mrb[134].mxu0 }
 0x26a   : > { %5514 = vst [vmem:[%s8362_s7 + $0xb0] sm:$0xff] %v5346_v54  ;;  %v5349_v39 = vadd.f32 %v6465_v29, %v5188_v48  ;;  %v5340_v56 = vpop.f32.mrb[135].mxu0  ;;  %v6384_v24 = vpop.f32.mrb[132].mxu1  ;;  %v5444_v18 = vmul.f32 %v5346_v54, %v5346_v54 }
 0x26b   : > { %v5403_v6 = vadd.f32 %v5402_v20, %v5338_v5  ;;  %v5442_v26 = vmul.f32 %v5338_v5, %v5338_v5  ;;  %v5472_v12 = vadd.f32 %v5471_v38, %v5441_v33  ;;  %5512 = vst [vmem:[%s8362_s7 + $0xa0] sm:$0xff] %v5338_v5  ;;  %v5341_v62 = vadd.f32 %v5340_v56, %v8404_v57  ;;  %v6385_v50 = vpop.f32.mrb[133].mxu1 }
 0x26c   : > { %5515 = vst [vmem:[%s8362_s7 + $0xb8] sm:$0xff] %v5349_v39  ;;  %v6386_v44 = vadd.f32 %v6385_v50, %v6384_v24  ;;  %v6387_v11 = vpop.f32.mrb[134].mxu1  ;;  %v5445_v57 = vmul.f32 %v5349_v39, %v5349_v39 }
 0x26d   : > { %v5473_v8 = vadd.f32 %v5472_v12, %v5442_v26  ;;  %v5404_v1 = vadd.f32 %v5403_v6, %v5341_v62  ;;  %v5443_v59 = vmul.f32 %v5341_v62, %v5341_v62  ;;  %5513 = vst [vmem:[%s8362_s7 + $0xa8] sm:$0xff] %v5341_v62  ;;  %v6388_v19 = vpop.f32.mrb[135].mxu1 }
 0x26e   : > { %v5201_v3 = vadd.f32 %v6386_v44, %v8322_v4  ;;  %v6389_v60 = vadd.f32 %v6388_v19, %v6387_v11 }
 0x26f   : > { %v5405_v0 = vadd.f32 %v5404_v1, %v5346_v54  ;;  %v5474_v36 = vadd.f32 %v5473_v8, %v5443_v59  ;;  %v6468_v14 = vpop.f32.mrb[136].mxu0 }
 0x270   : > { %v5353_v47 = vpop.f32.mrb[137].mxu0  ;;  %v5362_v7 = vadd.f32 %v6468_v14, %v5201_v3  ;;  %v5204_v21 = vadd.f32 %v6389_v60, %v8325_v23 }
 0x271   : > { %v5475_v40 = vadd.f32 %v5474_v36, %v5444_v18  ;;  %v5354_v48 = vadd.f32 %v5353_v47, %v5193_v9  ;;  %v5406_v15 = vadd.f32 %v5405_v0, %v5349_v39  ;;  %v6469_v45 = vpop.f32.mrb[138].mxu0 }
 0x272   : > { %v5356_v43 = vpop.f32.mrb[139].mxu0  ;;  %5518 = vst [vmem:[%s8362_s7 + $0xd0] sm:$0xff] %v5362_v7  ;;  %v5365_v4 = vadd.f32 %v6469_v45, %v5204_v21  ;;  %v5448_v30 = vmul.f32 %v5362_v7, %v5362_v7 }
 0x273   : > { %v5407_v51 = vadd.f32 %v5406_v15, %v5354_v48  ;;  %v5446_v28 = vmul.f32 %v5354_v48, %v5354_v48  ;;  %v5476_v42 = vadd.f32 %v5475_v40, %v5445_v57  ;;  %5516 = vst [vmem:[%s8362_s7 + $0xc0] sm:$0xff] %v5354_v48  ;;  %v5357_v13 = vadd.f32 %v5356_v43, %v5196_v31 }
 0x274   : > { %v6390_v58 = vpop.f32.mrb[136].mxu1  ;;  %5519 = vst [vmem:[%s8362_s7 + $0xd8] sm:$0xff] %v5365_v4  ;;  %v5449_v23 = vmul.f32 %v5365_v4, %v5365_v4 }
 0x275   : > { %v5477_v49 = vadd.f32 %v5476_v42, %v5446_v28  ;;  %v5408_v27 = vadd.f32 %v5407_v51, %v5357_v13  ;;  %v5447_v10 = vmul.f32 %v5357_v13, %v5357_v13  ;;  %5517 = vst [vmem:[%s8362_s7 + $0xc8] sm:$0xff] %v5357_v13  ;;  %v6391_v25 = vpop.f32.mrb[137].mxu1 }
 0x276   : > { %v6392_v16 = vadd.f32 %v6391_v25, %v6390_v58  ;;  %v6393_v41 = vpop.f32.mrb[138].mxu1 }
 0x277   : > { %v6472_v63 = vpop.f32.mrb[140].mxu0  ;;  %v5409_v55 = vadd.f32 %v5408_v27, %v5362_v7  ;;  %v5478_v35 = vadd.f32 %v5477_v49, %v5447_v10  ;;  %v6394_v37 = vpop.f32.mrb[139].mxu1 }
 0x278   : > { %v5369_v52 = vpop.f32.mrb[141].mxu0  ;;  %v6395_v34 = vadd.f32 %v6394_v37, %v6393_v41  ;;  %v5209_v2 = vadd.f32 %v6392_v16, %v8334_v53 }
 0x279   : > { %v6473_v61 = vpop.f32.mrb[142].mxu0  ;;  %v5479_v9 = vadd.f32 %v5478_v35, %v5448_v30  ;;  %v5410_v33 = vadd.f32 %v5409_v55, %v5365_v4 }
 0x27a   : > { %v5372_v54 = vpop.f32.mrb[143].mxu0  ;;  %v5370_v22 = vadd.f32 %v5369_v52, %v5209_v2  ;;  %v5212_v38 = vadd.f32 %v6395_v34, %v8337_v32 }
 0x27b   : > { %v5480_v5 = vadd.f32 %v5479_v9, %v5449_v23 }
 0x27c   : > { %v5411_v20 = vadd.f32 %v5410_v33, %v5370_v22  ;;  %v5450_v29 = vmul.f32 %v5370_v22, %v5370_v22  ;;  %5520 = vst [vmem:[%s8362_s7 + $0xe0] sm:$0xff] %v5370_v22  ;;  %v5373_v31 = vadd.f32 %v5372_v54, %v5212_v38 }
 0x27e   : > { %v5481_v39 = vadd.f32 %v5480_v5, %v5450_v29  ;;  %v5412_v56 = vadd.f32 %v5411_v20, %v5373_v31  ;;  %v5451_v6 = vmul.f32 %v5373_v31, %v5373_v31  ;;  %5521 = vst [vmem:[%s8362_s7 + $0xe8] sm:$0xff] %v5373_v31  ;;  %v6396_v26 = vpop.f32.mrb[140].mxu1 }
 0x27f   : > { %v6397_v12 = vpop.f32.mrb[141].mxu1 }
 0x280   : > { %v5482_v53 = vadd.f32 %v5481_v39, %v5451_v6  ;;  %v6398_v62 = vadd.f32 %v6397_v12, %v6396_v26  ;;  %v6399_v24 = vpop.f32.mrb[142].mxu1 }
 0x281   : > { %v6400_v50 = vpop.f32.mrb[143].mxu1 }
 0x282   : > { %v5217_v8 = vadd.f32 %v6398_v62, %v8352_v46  ;;  %v6401_v32 = vadd.f32 %v6400_v50, %v6399_v24 }
 0x284   : > { %v5378_v1 = vadd.f32 %v6472_v63, %v5217_v8  ;;  %v5220_v59 = vadd.f32 %v6401_v32, %v8355_v17 }
 0x286   : > { %v5413_v44 = vadd.f32 %v5412_v56, %v5378_v1  ;;  %v5452_v11 = vmul.f32 %v5378_v1, %v5378_v1  ;;  %5522 = vst [vmem:[%s8362_s7 + $0xf0] sm:$0xff] %v5378_v1  ;;  %v5381_v18 = vadd.f32 %v6473_v61, %v5220_v59 }
 0x288   : > { %v5483_v19 = vadd.f32 %v5482_v53, %v5452_v11  ;;  %v5414_v0 = vadd.f32 %v5413_v44, %v5381_v18  ;;  %v5453_v36 = vmul.f32 %v5381_v18, %v5381_v18  ;;  %5523 = vst [vmem:[%s8362_s7 + $0xf8] sm:$0xff] %v5381_v18 }
 0x28a   : > { %v5415_v3 = vrot.slane %v5414_v0, 4  ;;  %v5484_v14 = vadd.f32 %v5483_v19, %v5453_v36 }
 0x28c   : > { %v5416_v60 = vadd.f32 %v5415_v3, %v5414_v0  ;;  %v5485_v57 = vrot.slane %v5484_v14, 4 }
 0x28e   : > { %v5417_v47 = vrot.slane %v5416_v60, 2  ;;  %v5486_v40 = vadd.f32 %v5485_v57, %v5484_v14 }
 0x290   : > { %v5418_v46 = vadd.f32 %v5417_v47, %v5416_v60  ;;  %v5487_v7 = vrot.slane %v5486_v40, 2 }
 0x292   : > { %v5419_v48 = vrot.slane %v5418_v46, 1  ;;  %v5488_v15 = vadd.f32 %v5487_v7, %v5486_v40 }
 0x294   : > { %v5420_v17 = vadd.f32 %v5419_v48, %v5418_v46  ;;  %v5489_v45 = vrot.slane %v5488_v15, 1 }
 0x296   : > { %5421 = vst [vmem:[%s235_s10] sm:$0x1] %v5420_v17  ;;  %v5490_v21 = vadd.f32 %v5489_v45, %v5488_v15 }
 0x298   : > { %5491 = vst [vmem:[%s235_s10 + $0x1] sm:$0x1] %v5490_v21 }
 0x299 PF: > { %s16_s18 = sadd.s32 1, %s6629_s18  }
 0x29a   : > { %p13_p4 = scmp.ge.s32.totalorder %s16_s18, 4  }
 0x29c   :  { %15 = sbr.rel (!%p13_p4) target bundleno = 1 (0x1), region = 81 }

// kernel: basic_block_forward.3
= control target key start
LH: loop header
LB: loop body
LE: loop exit
PB: predicated region body
PF: predicated region fallthrough
CT: control target
= control target key end

     0   :  { %s7107_s21 = smov 0   ;;  %s8696_s0 = inlined_call_operand.vmem [shape: bf16[2,16,16,128], index: 0, kind: input, shape index: {}]   ;;  %s8697_s1 = inlined_call_operand.vmem [shape: bf16[1152,128], index: 1, kind: input, shape index: {}]   ;;  %s8698_s2 = inlined_call_operand.vmem [shape: bf16[128,128], index: 2, kind: input, shape index: {}]   ;;  %s8699_s3 = inlined_call_operand.vmem [shape: f32[2,16,16,128], index: 3, kind: output, shape index: {0}]   ;;  %s8700_s4 = inlined_call_operand.vmem [shape: f32[2,2,128], index: 4, kind: output, shape index: {1}]   ;;  %s8701_s5 = inlined_call_operand.vmem [shape: f32[2,16,16,128], index: 5, kind: output, shape index: {2}]   ;;  %s8702_s6 = inlined_call_operand.vmem [shape: f32[2,2,128], index: 6, kind: output, shape index: {3}]  }
   0x1 LB: > { %s6010_s22 = sadd.s32 4294967295, %s7069_s21   ;;  %p6014_p0 = scmp.ge.s32.totalorder %s7069_s21, 1  ;;  %s7069_s21 = sphi %s7107_s21, %s17_s21  }
   0x2   : > { %p219_p1 = scmp.lt.s32.totalorder %s7069_s21, 3 }
   0x4   : > { %p220_p2 = pnand %p6014_p0, %p219_p1 }
   0x6   : > { %223 = sbr.rel (%p220_p2) target bundleno = 695 (0x2b7), region = 32 }
   0xd   : > { %v6917_v0 = vld [vmem:[%s8697_s1 + $0x40] sm:$0xff]   ;;  %v7071_v2 = vmov 0   ;;  %v6921_v5 = vld [vmem:[%s8697_s1 + $0x48] sm:$0xff]   ;;  %v6925_v9 = vld [vmem:[%s8697_s1 + $0x50] sm:$0xff]   ;;  %p262_p3 = scmp.lt.s32.totalorder %s6010_s22, 1  ;;  %vm294_vm0 = vcmask 1040384  }
   0xe   : > { %v6918_v1 = vld [vmem:[%s8697_s1 + $0xc0] sm:$0xff]   ;;  %286 = vst [vmem:[#allocation2] sm:$0xf] %v7071_v2  ;;  %287 = vst [vmem:[#allocation2 + $0x4] sm:$0xf] %v7071_v2  ;;  %6316 = vmatprep.subr.bf16.mxu0 %v6917_v0  ;;  %v6922_v6 = vld [vmem:[%s8697_s1 + $0xc8] sm:$0xff]  }
   0xf   : > { %288 = vst [vmem:[#allocation2 + $0x8] sm:$0x1] %v7071_v2  ;;  %290 = vst [vmem:[#allocation2 + $0xcc] sm:$0xf] %v7071_v2  ;;  %v6919_v3 = vld [vmem:[%s8697_s1] sm:$0xff]   ;;  %6428 = vmatprep.subr.bf16.mxu1 %v6918_v1  ;;  %v6923_v7 = vld [vmem:[%s8697_s1 + $0x8] sm:$0xff]  }
  0x10   : > { %291 = vst [vmem:[#allocation2 + $0xd0] sm:$0xf] %v7071_v2  ;;  %292 = vst [vmem:[#allocation2 + $0xd4] sm:$0x1] %v7071_v2  ;;  %v6920_v4 = vld [vmem:[%s8697_s1 + $0x80] sm:$0xff]   ;;  %6317 = vmatpush3.bf16.msra.mxu0 %v6919_v3  ;;  %v6924_v8 = vld [vmem:[%s8697_s1 + $0x88] sm:$0xff]  }
  0x11   : > { %6429 = vmatpush3.bf16.msra.mxu1 %v6920_v4  ;;  %6318 = vmatprep.subr.bf16.mxu0 %v6921_v5  ;;  %v6926_v10 = vld [vmem:[%s8697_s1 + $0xd0] sm:$0xff]   ;;  %v6929_v13 = vld [vmem:[%s8697_s1 + $0x58] sm:$0xff]   ;;  %v6933_v17 = vld [vmem:[%s8697_s1 + $0x60] sm:$0xff]   ;;  %s8749_s22 = smov (!%p262_p3, %s6010_s22), 1  ;;  %vm749_vm1 = vcmask 1043456   ;;  %vm1650_vm5 = vcmask 1042432  }
  0x12   : > { %6430 = vmatprep.subr.bf16.mxu1 %v6922_v6  ;;  %v6927_v11 = vld [vmem:[%s8697_s1 + $0x10] sm:$0xff]   ;;  %v6930_v14 = vld [vmem:[%s8697_s1 + $0xd8] sm:$0xff]   ;;  %v6934_v18 = vld [vmem:[%s8697_s1 + $0xe0] sm:$0xff]   ;;  %s6313_s17 = sshll.u32 %s8749_s22, 7  ;;  %vm1087_vm2 = vsmask.f32 3328 }
  0x13   : > { %v6928_v12 = vld [vmem:[%s8697_s1 + $0x90] sm:$0xff]   ;;  %v6931_v15 = vld [vmem:[%s8697_s1 + $0x18] sm:$0xff]   ;;  %v6935_v19 = vld [vmem:[%s8697_s1 + $0x20] sm:$0xff]   ;;  %vm1088_vm3 = vsmask.f32 7440  ;;  %s7221_s24 = scalar_lea.vmem %s8696_s0, %s6313_s17  ;;  %v8706_v43 = vmov 0 }
  0x14   : > { %6319 = vmatpush3.bf16.msra.mxu0 %v6923_v7  ;;  %v6932_v16 = vld [vmem:[%s8697_s1 + $0x98] sm:$0xff]   ;;  %v6936_v20 = vld [vmem:[%s8697_s1 + $0xa0] sm:$0xff]   ;;  %v6937_v21 = vld [vmem:[%s8697_s1 + $0x68] sm:$0xff]   ;;  %vm295_vm4 = vsmask.f32 256  ;;  %v8711_v59 = vmov 0 }
  0x15   : > { %6431 = vmatpush3.bf16.msra.mxu1 %v6924_v8  ;;  %6320 = vmatprep.subr.bf16.mxu0 %v6925_v9  ;;  %v6938_v22 = vld [vmem:[%s8697_s1 + $0xe8] sm:$0xff]   ;;  %v6941_v25 = vld [vmem:[%s8697_s1 + $0x70] sm:$0xff]   ;;  %v6945_v29 = vld [vmem:[%s8697_s1 + $0x78] sm:$0xff]   ;;  %vm345_vm7 = vsmask.f32 7938  ;;  %vm1651_vm13 = vcmask 1046532  }
  0x16   : > { %6432 = vmatprep.subr.bf16.mxu1 %v6926_v10  ;;  %v6939_v23 = vld [vmem:[%s8697_s1 + $0x28] sm:$0xff]   ;;  %v6942_v26 = vld [vmem:[%s8697_s1 + $0xf0] sm:$0xff]   ;;  %v6946_v30 = vld [vmem:[%s8697_s1 + $0xf8] sm:$0xff]   ;;  %vm427_vm8 = vsmask.f32 4368  ;;  %s6019_s26 = sshll.u32 %s8749_s22, 1 }
  0x17   : > { %v6940_v24 = vld [vmem:[%s8697_s1 + $0xa8] sm:$0xff]   ;;  %v6943_v27 = vld [vmem:[%s8697_s1 + $0x30] sm:$0xff]   ;;  %v6947_v31 = vld [vmem:[%s8697_s1 + $0x38] sm:$0xff]   ;;  %s275_s29 = scalar_lea.vmem %s8700_s4, %s6019_s26  ;;  %s284_s8 = scalar_lea.vmem %s8702_s6, %s6019_s26 }
  0x18   : > { %6321 = vmatpush3.bf16.msra.mxu0 %v6927_v11  ;;  %v6944_v28 = vld [vmem:[%s8697_s1 + $0xb0] sm:$0xff]   ;;  %v6948_v32 = vld [vmem:[%s8697_s1 + $0xb8] sm:$0xff]   ;;  %v1039_v33 = vld [vmem:[#allocation2] sm:$0xf] }
  0x19   : > { %6433 = vmatpush3.bf16.msra.mxu1 %v6928_v12  ;;  %6322 = vmatprep.subr.bf16.mxu0 %v6929_v13  ;;  %v1040_v34 = vld [vmem:[#allocation2 + $0x4] sm:$0xf]  ;;  %v1041_v35 = vld [vmem:[#allocation2 + $0x8] sm:$0x1]  ;;  %v1091_v36 = vshrl.u32 %v1039_v33, 16  ;;  %v1094_v37 = vshll.u32 %v1039_v33, 16  ;;  %vm7225_vm6 = vmand %vm294_vm0, %vm295_vm4 }
  0x1a   : > { %6434 = vmatprep.subr.bf16.mxu1 %v6930_v14  ;;  %v1100_v38 = vshll.u32 %v1040_v34, 16  ;;  %v1104_v39 = vshrl.u32 %v1040_v34, 16  ;;  %v1110_v40 = vshll.u32 %v1041_v35, 16  ;;  %v8707_v43 = vsel %vm7225_vm6, 4294967295, %v8706_v43  ;;  %v297_v44 = vld [vmem:[#allocation2 + $0xc] sm:$0x1]  ;;  %vm7235_vm9 = vmor %vm1087_vm2, %vm1088_vm3 }
  0x1b   : > { %v1093_v41 = vrot.slane %v1091_v36, 4  ;;  %v1096_v42 = vrot.slane %v1094_v37, 5  ;;  %8708 = vst [vmem:[#allocation4_spill] sm:$0xff] %v8707_v43  ;;  %v298_v48 = vsel %vm7225_vm6, 0, %v297_v44  ;;  %v395_v49 = vld [vmem:[%s7221_s24] sm:$0xf]  ;;  %vm7241_vm10 = vmand %vm294_vm0, %vm345_vm7 }
  0x1c   : > { %6323 = vmatpush3.bf16.msra.mxu0 %v6931_v15  ;;  %v1102_v45 = vrot.slane %v1100_v38, 5  ;;  %v1106_v46 = vrot.slane %v1104_v39, 4  ;;  %v1112_v47 = vrot.slane %v1110_v40, 5  ;;  %299 = vst [vmem:[#allocation2 + $0xc] sm:$0x1] %v298_v48  ;;  %v430_v52 = vshrl.u32 %v395_v49, 16  ;;  %vm7249_vm11 = vmand %vm749_vm1, %vm345_vm7 }
  0x1d   : > { %6435 = vmatpush3.bf16.msra.mxu1 %v6932_v16  ;;  %6324 = vmatprep.subr.bf16.mxu0 %v6933_v17  ;;  %v1097_v50 = vor.u32 %v1096_v42, %v1093_v41  ;;  %v396_v51 = vld [vmem:[%s7221_s24 + $0x4] sm:$0xf]  ;;  %v433_v53 = vshll.u32 %v395_v49, 16  ;;  %v8712_v59 = vsel %vm7241_vm10, 4294967295, %v8711_v59  ;;  %v1554_v61 = vld [vmem:[#allocation2] sm:$0xe]  ;;  %vm7257_vm12 = vmor %vm295_vm4, %vm427_vm8 }
  0x1e   : > { %6436 = vmatprep.subr.bf16.mxu1 %v6934_v18  ;;  %v1107_v55 = vor.u32 %v1106_v46, %v1102_v45  ;;  %v438_v56 = vshrl.u32 %v396_v51, 16  ;;  %v441_v57 = vshll.u32 %v396_v51, 16  ;;  %8713 = vst [vmem:[#allocation5_spill] sm:$0xff] %v8712_v59  ;;  %v432_v60 = vrot.slane %v430_v52, 7  ;;  %v1555_v62 = vld [vmem:[#allocation2 + $0x4] sm:$0xf]  ;;  %vm7279_vm14 = vmor %vm1650_vm5, %vm1651_vm13 }
  0x1f   : > { %v1098_v58 = vrot.slane %v1097_v50, 4  ;;  %v6950_v2 = vld [vmem:[#allocation2] sm:$0xff]   ;;  %v1556_v3 = vld [vmem:[#allocation2 + $0x8] sm:$0x1]  ;;  %v1655_v4 = vrot.slane %v1555_v62, 5  ;;  %v6055_v11 = vrot.slane %v1554_v61, 9 }
  0x20   : > { %6325 = vmatpush3.bf16.msra.mxu0 %v6935_v19  ;;  %v1108_v63 = vrot.slane %v1107_v55, 4  ;;  %v7245_v0 = vrot.slane %v438_v56, 7  ;;  %v435_v7 = vor.u32 %v433_v53, %v432_v60  ;;  %v436_v8 = vrot.slane %v432_v60, 4  ;;  %v6951_v12 = vld [vmem:[%s8697_s1 + $0x140] sm:$0xff]   ;;  %v399_v41 = vld [vmem:[%s7221_s24 + $0x10] sm:$0xf] }
  0x21   : > { %6437 = vmatpush3.bf16.msra.mxu1 %v6936_v20  ;;  %6326 = vmatprep.subr.bf16.mxu0 %v6937_v21  ;;  %v1103_v5 = vsel %vm7235_vm9, %v1098_v58, %v1102_v45  ;;  %v1658_v14 = vrot.slane %v1556_v3, 5  ;;  %v6952_v15 = vld [vmem:[%s8697_s1 + $0x100] sm:$0xff]   ;;  %v1657_v18 = vrot.slane %v1655_v4, 4  ;;  %v400_v45 = vld [vmem:[%s7221_s24 + $0x14] sm:$0xf]  ;;  %v464_v46 = vshrl.u32 %v399_v41, 16 }
  0x22   : > { %6438 = vmatprep.subr.bf16.mxu1 %v6938_v22  ;;  %v1113_v9 = vsel %vm7235_vm9, %v1108_v63, %v1112_v47  ;;  %v443_v10 = vor.u32 %v441_v57, %v7245_v0  ;;  %v6953_v19 = vld [vmem:[%s8697_s1 + $0x1c0] sm:$0xff]   ;;  %v347_v22 = vld [vmem:[#allocation2 + $0x14] sm:$0x1]  ;;  %v445_v42 = vrot.slane %v7245_v0, 4  ;;  %v467_v50 = vshll.u32 %v399_v41, 16 }
  0x23   : > { %v6039_v13 = vcombine.low %v1103_v5, %v1113_v9  ;;  %v751_v17 = vld [vmem:[#allocation2 + $0xc] sm:$0xf]  ;;  %v1659_v33 = vsel %vm7279_vm14, %v1657_v18, %v1658_v14  ;;  %v350_v36 = vld [vmem:[#allocation2 + $0x20] sm:$0x1]  ;;  %v303_v37 = vld [vmem:[#allocation2 + $0x24] sm:$0x1] }
  0x24   : > { %6327 = vmatpush3.bf16.msra.mxu0 %v6939_v23  ;;  %v444_v16 = vsel %vm7257_vm12, %v436_v8, %v443_v10  ;;  %v752_v20 = vsel %vm7249_vm11, %v435_v7, %v751_v17  ;;  %v348_v23 = vsel %vm7241_vm10, 0, %v347_v22  ;;  %v351_v39 = vsel %vm7241_vm10, 0, %v350_v36  ;;  %v6954_v48 = vld [vmem:[%s8697_s1 + $0x180] sm:$0xff]   ;;  %v6967_v52 = vld [vmem:[%s8697_s1 + $0x150] sm:$0xff]   ;;  %v6961_v5 = vld [vmem:[%s8697_s1 + $0x1c8] sm:$0xff]  }
  0x25   : > { %6439 = vmatpush3.bf16.msra.mxu1 %v6940_v24  ;;  %6328 = vmatprep.subr.bf16.mxu0 %v6941_v25  ;;  %754 = vst [vmem:[#allocation2 + $0x10] sm:$0xf] %v444_v16  ;;  %753 = vst [vmem:[#allocation2 + $0xc] sm:$0xf] %v752_v20  ;;  %v300_v24 = vld [vmem:[#allocation2 + $0x18] sm:$0x1] }
  0x26   : > { %6440 = vmatprep.subr.bf16.mxu1 %v6942_v26  ;;  %4486 = vmatprep.mubr.bf16.mxu0 %v6039_v13  ;;  %v397_v25 = vld [vmem:[%s7221_s24 + $0x8] sm:$0xf]  ;;  %349 = vst [vmem:[#allocation2 + $0x14] sm:$0x1] %v348_v23  ;;  %v304_v40 = vsel %vm7225_vm6, 0, %v303_v37  ;;  %v472_v51 = vshrl.u32 %v400_v45, 16 }
  0x27   : > { %v6959_v26 = vld [vmem:[%s8697_s1 + $0x148] sm:$0xff]   ;;  %352 = vst [vmem:[#allocation2 + $0x20] sm:$0x1] %v351_v39  ;;  %305 = vst [vmem:[#allocation2 + $0x24] sm:$0x1] %v304_v40  ;;  %v466_v57 = vrot.slane %v464_v46, 7 }
  0x28   : > { %6329 = vmatpush3.bf16.msra.mxu0 %v6943_v27  ;;  %v301_v27 = vsel %vm7225_vm6, 0, %v300_v24  ;;  %v475_v58 = vshll.u32 %v400_v45, 16  ;;  %v6968_v17 = vld [vmem:[%s8697_s1 + $0x110] sm:$0xff]   ;;  %v6975_v36 = vld [vmem:[%s8697_s1 + $0x158] sm:$0xff]  }
  0x29   : > { %6441 = vmatpush3.bf16.msra.mxu1 %v6944_v28  ;;  %6330 = vmatprep.subr.bf16.mxu0 %v6945_v29  ;;  %v398_v28 = vld [vmem:[%s7221_s24 + $0xc] sm:$0xf]  ;;  %v447_v29 = vshrl.u32 %v397_v25, 16  ;;  %302 = vst [vmem:[#allocation2 + $0x18] sm:$0x1] %v301_v27  ;;  %v470_v24 = vrot.slane %v466_v57, 4 }
  0x2a   : > { %6442 = vmatprep.subr.bf16.mxu1 %v6946_v30  ;;  %v450_v30 = vshll.u32 %v397_v25, 16  ;;  %v455_v34 = vshrl.u32 %v398_v28, 16  ;;  %v458_v35 = vshll.u32 %v398_v28, 16  ;;  %v7331_v27 = vrot.slane %v472_v51, 7 }
  0x2b   : > { %v449_v38 = vrot.slane %v447_v29, 7  ;;  %v6969_v29 = vld [vmem:[%s8697_s1 + $0x1d0] sm:$0xff]  }
  0x2c   : > { %6331 = vmatpush3.bf16.msra.mxu0 %v6947_v31  ;;  %v6960_v31 = vld [vmem:[%s8697_s1 + $0x108] sm:$0xff]   ;;  %v457_v44 = vrot.slane %v455_v34, 7  ;;  %v1043_v53 = vld [vmem:[#allocation2 + $0x10] sm:$0xf] }
  0x2d   : > { %6443 = vmatpush3.bf16.msra.mxu1 %v6948_v32  ;;  %6540 = vmatprep.subr.bf16.mxu0 %v6951_v12  ;;  %v1656_v32 = vsel %vm7279_vm14, %v6055_v11, %v1655_v4  ;;  %v453_v49 = vrot.slane %v449_v38, 4  ;;  %v452_v55 = vor.u32 %v450_v30, %v449_v38  ;;  %v6949_v60 = vld [vmem:[#allocation2 + $0xc] sm:$0xff]   ;;  %v1124_v62 = vshll.u32 %v1043_v53, 16  ;;  %v755_v63 = vld [vmem:[#allocation2 + $0x14] sm:$0x1] }
  0x2e   : > { %6652 = vmatprep.subr.bf16.mxu1 %v6953_v19  ;;  %v6071_v47 = vcombine.low %v1656_v32, %v1659_v33  ;;  %v460_v56 = vor.u32 %v458_v35, %v457_v44  ;;  %v1042_v61 = vld [vmem:[#allocation2 + $0xc] sm:$0xf]  ;;  %v1128_v3 = vshrl.u32 %v1043_v53, 16  ;;  %4647 = vmatprep.mubr.bf16.mxu1 %v6949_v60  ;;  %v756_v7 = vsel %vm7225_vm6, %v445_v42, %v755_v63  ;;  %v1558_v19 = vld [vmem:[#allocation2 + $0x10] sm:$0xf] }
  0x2f   : > { %4487 = vmatmul.mubr.bf16.vlgmr.msra.gmra.mrb[0].mxu0 %v6950_v2  ;;  %v1115_v0 = vshrl.u32 %v1042_v61, 16  ;;  %v1118_v2 = vshll.u32 %v1042_v61, 16  ;;  %v7319_v8 = vrot.slane %v1124_v62, 5  ;;  %v462_v9 = vrot.slane %v457_v44, 4  ;;  %v6962_v12 = vld [vmem:[%s8697_s1 + $0x188] sm:$0xff]   ;;  %v6970_v33 = vld [vmem:[%s8697_s1 + $0x190] sm:$0xff]  }
  0x30   : > { %6541 = vmatpush3.bf16.msra.mxu0 %v6952_v15  ;;  %v461_v4 = vsel %vm7257_vm12, %v453_v49, %v460_v56  ;;  %v758_v10 = vld [vmem:[#allocation2 + $0x18] sm:$0xf]  ;;  %v469_v11 = vor.u32 %v467_v50, %v466_v57  ;;  %4648 = vmatmul.mubr.bf16.vlgmr.msra.gmra.mrb[0].mxu1 %v6071_v47  ;;  %757 = vst [vmem:[#allocation2 + $0x14] sm:$0x1] %v756_v7  ;;  %v1130_v15 = vrot.slane %v1128_v3, 4  ;;  %v1662_v23 = vrot.slane %v1558_v19, 5 }
  0x31   : > { %6542 = vmatprep.subr.bf16.mxu0 %v6959_v26  ;;  %761 = vst [vmem:[#allocation2 + $0x1c] sm:$0xf] %v461_v4  ;;  %v1117_v13 = vrot.slane %v1115_v0, 4  ;;  %v1120_v14 = vrot.slane %v1118_v2, 5  ;;  %v759_v16 = vsel %vm7249_vm11, %v452_v55, %v758_v10  ;;  %6653 = vmatpush3.bf16.msra.mxu1 %v6954_v48  ;;  %v1557_v18 = vld [vmem:[#allocation2 + $0xc] sm:$0xe]  ;;  %v477_v35 = vor.u32 %v475_v58, %v7331_v27 }
  0x32   : > { %760 = vst [vmem:[#allocation2 + $0x18] sm:$0xf] %v759_v16  ;;  %v762_v20 = vld [vmem:[#allocation2 + $0x20] sm:$0x1]  ;;  %v765_v25 = vld [vmem:[#allocation2 + $0x24] sm:$0xf]  ;;  %6654 = vmatprep.subr.bf16.mxu1 %v6961_v5 }
  0x33   : > { %v1121_v22 = vor.u32 %v1120_v14, %v1117_v13  ;;  %v763_v26 = vsel %vm7225_vm6, %v462_v9, %v762_v20  ;;  %v766_v28 = vsel %vm7249_vm11, %v469_v11, %v765_v25  ;;  %v6056_v32 = vrot.slane %v1557_v18, 9  ;;  %v6956_v55 = vld [vmem:[#allocation2 + $0xc] sm:$0xff]   ;;  %v6976_v61 = vld [vmem:[%s8697_s1 + $0x118] sm:$0xff]  }
  0x34   : > { %6543 = vmatpush3.bf16.msra.mxu0 %v6960_v31  ;;  %v1131_v31 = vor.u32 %v1130_v15, %v7319_v8  ;;  %764 = vst [vmem:[#allocation2 + $0x20] sm:$0x1] %v763_v26  ;;  %767 = vst [vmem:[#allocation2 + $0x24] sm:$0xf] %v766_v28  ;;  %v1664_v34 = vrot.slane %v1662_v23, 4  ;;  %v478_v42 = vsel %vm7257_vm12, %v470_v24, %v477_v35  ;;  %v6977_v9 = vld [vmem:[%s8697_s1 + $0x1d8] sm:$0xff]  }
  0x35   : > { %6544 = vmatprep.subr.bf16.mxu0 %v6967_v52  ;;  %v1122_v30 = vrot.slane %v1121_v22, 4  ;;  %6655 = vmatpush3.bf16.msra.mxu1 %v6962_v12  ;;  %v1663_v47 = vsel %vm7279_vm14, %v6056_v32, %v1662_v23  ;;  %768 = vst [vmem:[#allocation2 + $0x28] sm:$0xf] %v478_v42  ;;  %v6978_v14 = vld [vmem:[%s8697_s1 + $0x198] sm:$0xff]   ;;  %v353_v18 = vld [vmem:[#allocation2 + $0x2c] sm:$0x1] }
  0x36   : > { %6656 = vmatprep.subr.bf16.mxu1 %v6969_v29  ;;  %v1132_v44 = vrot.slane %v1131_v31, 4  ;;  %v354_v24 = vsel %vm7241_vm10, 0, %v353_v18  ;;  %v306_v31 = vld [vmem:[#allocation2 + $0x30] sm:$0x1] }
  0x37   : > { %v1044_v38 = vld [vmem:[#allocation2 + $0x14] sm:$0x1]  ;;  %v1127_v49 = vsel %vm7235_vm9, %v1122_v30, %v7319_v8  ;;  %355 = vst [vmem:[#allocation2 + $0x2c] sm:$0x1] %v354_v24 }
  0x38   : > { %6545 = vmatpush3.bf16.msra.mxu0 %v6968_v17  ;;  %v1046_v37 = vld [vmem:[#allocation2 + $0x1c] sm:$0xf]  ;;  %v1559_v39 = vld [vmem:[#allocation2 + $0x14] sm:$0x1]  ;;  %v1134_v45 = vshll.u32 %v1044_v38, 16 }
  0x39   : > { %v1148_v40 = vshll.u32 %v1046_v37, 16  ;;  %v1152_v41 = vshrl.u32 %v1046_v37, 16  ;;  %6546 = vmatprep.subr.bf16.mxu0 %v6975_v36  ;;  %v6955_v46 = vld [vmem:[#allocation2 + $0x18] sm:$0xff]   ;;  %v1665_v48 = vrot.slane %v1559_v39, 5  ;;  %6657 = vmatpush3.bf16.msra.mxu1 %v6970_v33 }
  0x3a   : > { %v1045_v50 = vld [vmem:[#allocation2 + $0x18] sm:$0xf]  ;;  %v1136_v53 = vrot.slane %v1134_v45, 5  ;;  %4655 = vmatprep.mubr.bf16.mxu1 %v6955_v46  ;;  %v1561_v2 = vld [vmem:[#allocation2 + $0x1c] sm:$0xf]  ;;  %6658 = vmatprep.subr.bf16.mxu1 %v6977_v9 }
  0x3b   : > { %v1150_v51 = vrot.slane %v1148_v40, 5  ;;  %v1154_v52 = vrot.slane %v1152_v41, 4  ;;  %v1666_v56 = vsel %vm7279_vm14, %v1664_v34, %v1665_v48  ;;  %v1139_v57 = vshrl.u32 %v1045_v50, 16  ;;  %v1560_v60 = vld [vmem:[#allocation2 + $0x18] sm:$0xe] }
  0x3c   : > { %v1142_v58 = vshll.u32 %v1045_v50, 16  ;;  %v6072_v62 = vcombine.low %v1663_v47, %v1666_v56  ;;  %v1047_v63 = vld [vmem:[#allocation2 + $0x20] sm:$0x1]  ;;  %v1137_v3 = vsel %vm7235_vm9, %v1132_v44, %v1136_v53  ;;  %6547 = vmatpush3.bf16.msra.mxu0 %v6976_v61  ;;  %v6057_v12 = vrot.slane %v1560_v60, 9  ;;  %v1048_v19 = vld [vmem:[#allocation2 + $0x24] sm:$0xf] }
  0x3d   : > { %v1155_v0 = vor.u32 %v1154_v52, %v1150_v51  ;;  %v1141_v4 = vrot.slane %v1139_v57, 4  ;;  %v1158_v7 = vshll.u32 %v1047_v63, 16  ;;  %v1562_v8 = vld [vmem:[#allocation2 + $0x20] sm:$0x1]  ;;  %v6040_v10 = vcombine.low %v1127_v49, %v1137_v3  ;;  %v6957_v20 = vld [vmem:[#allocation2 + $0x24] sm:$0xff]   ;;  %6659 = vmatpush3.bf16.msra.mxu1 %v6978_v14  ;;  %v6958_v45 = vld [vmem:[#allocation2 + $0x18] sm:$0xff]  }
  0x3e   : > { %v1144_v5 = vrot.slane %v1142_v58, 5  ;;  %4656 = vmatmul.mubr.bf16.gmra.mrb[4].mxu1 %v6072_v62  ;;  %v1669_v13 = vrot.slane %v1561_v2, 5  ;;  %v1672_v17 = vrot.slane %v1562_v8, 5  ;;  %v1163_v25 = vshrl.u32 %v1048_v19, 16  ;;  %v1049_v29 = vld [vmem:[#allocation2 + $0x28] sm:$0xf] }
  0x3f   : > { %v1156_v11 = vrot.slane %v1155_v0, 4  ;;  %v1160_v16 = vrot.slane %v1158_v7, 5  ;;  %4494 = vmatprep.mubr.bf16.mxu0 %v6040_v10  ;;  %v1166_v30 = vshll.u32 %v1048_v19, 16  ;;  %4663 = vmatprep.mubr.bf16.mxu1 %v6957_v20  ;;  %v1172_v34 = vshll.u32 %v1049_v29, 16  ;;  %v401_v36 = vld [vmem:[%s7221_s24 + $0x18] sm:$0xf] }
  0x40   : > { %v1145_v15 = vor.u32 %v1144_v5, %v1141_v4  ;;  %v1670_v22 = vsel %vm7279_vm14, %v6057_v12, %v1669_v13  ;;  %v1671_v23 = vrot.slane %v1669_v13, 4  ;;  %4495 = vmatmul.mubr.bf16.gmra.mrb[4].mxu0 %v6956_v55  ;;  %v1165_v33 = vrot.slane %v1163_v25, 4  ;;  %v402_v41 = vld [vmem:[%s7221_s24 + $0x1c] sm:$0xf]  ;;  %v6983_v47 = vld [vmem:[%s8697_s1 + $0x160] sm:$0xff]   ;;  %v6992_v25 = vld [vmem:[%s8697_s1 + $0x128] sm:$0xff]  }
  0x41   : > { %v1161_v28 = vsel %vm7235_vm9, %v1156_v11, %v1160_v16  ;;  %v1176_v35 = vshrl.u32 %v1049_v29, 16  ;;  %v1168_v39 = vrot.slane %v1166_v30, 5  ;;  %v307_v40 = vsel %vm7225_vm6, 0, %v306_v31  ;;  %v7384_v52 = vld [vmem:[#allocation2 + $0x24] sm:$0xe]  ;;  %6548 = vmatprep.subr.bf16.mxu0 %v6983_v47 }
  0x42   : > { %v1146_v26 = vrot.slane %v1145_v15, 4  ;;  %v1673_v32 = vsel %vm7279_vm14, %v1671_v23, %v1672_v17  ;;  %v479_v44 = vrot.slane %v7331_v27, 4  ;;  %308 = vst [vmem:[#allocation2 + $0x30] sm:$0x1] %v307_v40  ;;  %v481_v46 = vshrl.u32 %v401_v36, 16  ;;  %v6984_v53 = vld [vmem:[%s8697_s1 + $0x120] sm:$0xff]  }
  0x43   : > { %v6073_v38 = vcombine.low %v1670_v22, %v1673_v32  ;;  %v1169_v48 = vor.u32 %v1168_v39, %v1165_v33  ;;  %v484_v49 = vshll.u32 %v401_v36, 16  ;;  %v489_v50 = vshrl.u32 %v402_v41, 16  ;;  %v7391_v56 = vld [vmem:[#allocation2 + $0x28] sm:$0xf]  ;;  %v356_v57 = vld [vmem:[#allocation2 + $0x38] sm:$0x1]  ;;  %6549 = vmatpush3.bf16.msra.mxu0 %v6984_v53 }
  0x44   : > { %v1151_v37 = vsel %vm7235_vm9, %v1146_v26, %v1150_v51  ;;  %v492_v51 = vshll.u32 %v402_v41, 16  ;;  %v7389_v27 = vrot.slane %v1172_v34, 5  ;;  %v483_v55 = vrot.slane %v481_v46, 7  ;;  %v309_v63 = vld [vmem:[#allocation2 + $0x3c] sm:$0x1]  ;;  %v6985_v7 = vld [vmem:[%s8697_s1 + $0x1e0] sm:$0xff]  }
  0x45   : > { %v6041_v42 = vcombine.low %v1151_v37, %v1161_v28  ;;  %v7393_v58 = vrot.slane %v1176_v35, 4  ;;  %v491_v60 = vrot.slane %v489_v50, 7  ;;  %v6058_v61 = vrot.slane %v7384_v52, 9  ;;  %v769_v0 = vld [vmem:[#allocation2 + $0x2c] sm:$0x1]  ;;  %v6986_v13 = vld [vmem:[%s8697_s1 + $0x1a0] sm:$0xff]   ;;  %6660 = vmatprep.subr.bf16.mxu1 %v6985_v7 }
  0x46   : > { %4664 = vmatmul.mubr.bf16.gmra.mrb[8].mxu1 %v6073_v38  ;;  %v357_v62 = vsel %vm7241_vm10, 0, %v356_v57  ;;  %v7398_v2 = vrot.slane %v1169_v48, 4  ;;  %v486_v3 = vor.u32 %v484_v49, %v483_v55  ;;  %v487_v4 = vrot.slane %v483_v55, 4  ;;  %v403_v11 = vld [vmem:[%s7221_s24 + $0x20] sm:$0xf]  ;;  %v6991_v17 = vld [vmem:[%s8697_s1 + $0x168] sm:$0xff]  }
  0x47   : > { %4502 = vmatprep.mubr.bf16.mxu0 %v6041_v42  ;;  %358 = vst [vmem:[#allocation2 + $0x38] sm:$0x1] %v357_v62  ;;  %v310_v5 = vsel %vm7225_vm6, 0, %v309_v63  ;;  %v770_v8 = vsel %vm7225_vm6, %v479_v44, %v769_v0  ;;  %v494_v9 = vor.u32 %v492_v51, %v491_v60  ;;  %v1676_v10 = vrot.slane %v7391_v56, 5  ;;  %v404_v12 = vld [vmem:[%s7221_s24 + $0x24] sm:$0xf]  ;;  %6661 = vmatpush3.bf16.msra.mxu1 %v6986_v13 }
  0x48   : > { %4503 = vmatmul.mubr.bf16.gmra.mrb[8].mxu0 %v6958_v45  ;;  %311 = vst [vmem:[#allocation2 + $0x3c] sm:$0x1] %v310_v5  ;;  %771 = vst [vmem:[#allocation2 + $0x2c] sm:$0x1] %v770_v8  ;;  %v496_v14 = vrot.slane %v491_v60, 4  ;;  %v498_v15 = vshrl.u32 %v403_v11, 16  ;;  %6550 = vmatprep.subr.bf16.mxu0 %v6991_v17  ;;  %v1179_v29 = vor.u32 %v7393_v58, %v7389_v27 }
  0x49   : > { %v501_v16 = vshll.u32 %v403_v11, 16  ;;  %v495_v18 = vsel %vm7257_vm12, %v487_v4, %v494_v9  ;;  %v772_v19 = vld [vmem:[#allocation2 + $0x30] sm:$0xf]  ;;  %v506_v20 = vshrl.u32 %v404_v12, 16  ;;  %v509_v22 = vshll.u32 %v404_v12, 16  ;;  %v6993_v28 = vld [vmem:[%s8697_s1 + $0x1e8] sm:$0xff]   ;;  %6551 = vmatpush3.bf16.msra.mxu0 %v6992_v25 }
  0x4a   : > { %v773_v23 = vsel %vm7249_vm11, %v486_v3, %v772_v19  ;;  %775 = vst [vmem:[#allocation2 + $0x34] sm:$0xf] %v495_v18  ;;  %v500_v24 = vrot.slane %v498_v15, 7  ;;  %v6994_v32 = vld [vmem:[%s8697_s1 + $0x1a8] sm:$0xff]   ;;  %v1678_v33 = vrot.slane %v1676_v10, 4  ;;  %6662 = vmatprep.subr.bf16.mxu1 %v6993_v28  ;;  %v6999_v37 = vld [vmem:[%s8697_s1 + $0x170] sm:$0xff]   ;;  %v1677_v53 = vsel %vm7279_vm14, %v6058_v61, %v1676_v10 }
  0x4b   : > { %774 = vst [vmem:[#allocation2 + $0x30] sm:$0xf] %v773_v23  ;;  %v7423_v26 = vrot.slane %v506_v20, 7  ;;  %v359_v36 = vld [vmem:[#allocation2 + $0x44] sm:$0x1]  ;;  %6663 = vmatpush3.bf16.msra.mxu1 %v6994_v32  ;;  %v7000_v42 = vld [vmem:[%s8697_s1 + $0x130] sm:$0xff]   ;;  %6552 = vmatprep.subr.bf16.mxu0 %v6999_v37  ;;  %v1175_v58 = vsel %vm7235_vm9, %v7398_v2, %v7389_v27 }
  0x4c   : > { %v503_v30 = vor.u32 %v501_v16, %v500_v24  ;;  %v504_v31 = vrot.slane %v500_v24, 4  ;;  %v360_v40 = vsel %vm7241_vm10, 0, %v359_v36  ;;  %v312_v41 = vld [vmem:[#allocation2 + $0x48] sm:$0x1]  ;;  %v7001_v49 = vld [vmem:[%s8697_s1 + $0x1f0] sm:$0xff]   ;;  %v1180_v50 = vrot.slane %v1179_v29, 4 }
  0x4d   : > { %v511_v35 = vor.u32 %v509_v22, %v7423_v26  ;;  %361 = vst [vmem:[#allocation2 + $0x44] sm:$0x1] %v360_v40  ;;  %v313_v48 = vsel %vm7225_vm6, 0, %v312_v41  ;;  %v7458_v56 = vld [vmem:[%s7221_s24 + $0x28] sm:$0xf]  ;;  %6553 = vmatpush3.bf16.msra.mxu0 %v7000_v42  ;;  %6664 = vmatprep.subr.bf16.mxu1 %v7001_v49  ;;  %v513_v9 = vrot.slane %v7423_v26, 4 }
  0x4e   : > { %v776_v34 = vld [vmem:[#allocation2 + $0x38] sm:$0x1]  ;;  %314 = vst [vmem:[#allocation2 + $0x48] sm:$0x1] %v313_v48  ;;  %v6964_v7 = vld [vmem:[#allocation2 + $0x24] sm:$0xff]   ;;  %v515_v27 = vshrl.u32 %v7458_v56, 16 }
  0x4f   : > { %v777_v38 = vsel %vm7225_vm6, %v496_v14, %v776_v34  ;;  %v779_v39 = vld [vmem:[#allocation2 + $0x3c] sm:$0xf]  ;;  %v1050_v44 = vld [vmem:[#allocation2 + $0x2c] sm:$0x1]  ;;  %v512_v46 = vsel %vm7257_vm12, %v504_v31, %v511_v35  ;;  %v7002_v15 = vld [vmem:[%s8697_s1 + $0x1b0] sm:$0xff]  }
  0x50   : > { %v1565_v45 = vld [vmem:[#allocation2 + $0x2c] sm:$0x1]  ;;  %778 = vst [vmem:[#allocation2 + $0x38] sm:$0x1] %v777_v38  ;;  %v780_v47 = vsel %vm7249_vm11, %v503_v30, %v779_v39  ;;  %v1182_v51 = vshll.u32 %v1050_v44, 16  ;;  %6665 = vmatpush3.bf16.msra.mxu1 %v7002_v15  ;;  %v7007_v41 = vld [vmem:[%s8697_s1 + $0x178] sm:$0xff]  }
  0x51   : > { %v1679_v55 = vrot.slane %v1565_v45, 5  ;;  %781 = vst [vmem:[#allocation2 + $0x3c] sm:$0xf] %v780_v47  ;;  %782 = vst [vmem:[#allocation2 + $0x40] sm:$0xf] %v512_v46  ;;  %v7008_v47 = vld [vmem:[%s8697_s1 + $0x138] sm:$0xff]   ;;  %6554 = vmatprep.subr.bf16.mxu0 %v7007_v41 }
  0x52   : > { %v1052_v57 = vld [vmem:[#allocation2 + $0x34] sm:$0xf]  ;;  %v1184_v60 = vrot.slane %v1182_v51, 5  ;;  %v1051_v61 = vld [vmem:[#allocation2 + $0x30] sm:$0xf]  ;;  %v517_v51 = vrot.slane %v515_v27, 7  ;;  %6555 = vmatpush3.bf16.msra.mxu0 %v7008_v47 }
  0x53   : > { %v6963_v62 = vld [vmem:[#allocation2 + $0x30] sm:$0xff]   ;;  %v1680_v52 = vsel %vm7279_vm14, %v1678_v33, %v1679_v55  ;;  %v1187_v0 = vshrl.u32 %v1051_v61, 16  ;;  %v1190_v3 = vshll.u32 %v1051_v61, 16  ;;  %v1196_v4 = vshll.u32 %v1052_v57, 16  ;;  %v406_v35 = vld [vmem:[%s7221_s24 + $0x2c] sm:$0xf] }
  0x54   : > { %v6074_v63 = vcombine.low %v1677_v53, %v1680_v52  ;;  %v1185_v5 = vsel %vm7235_vm9, %v1180_v50, %v1184_v60  ;;  %4671 = vmatprep.mubr.bf16.mxu1 %v6963_v62  ;;  %v1200_v8 = vshrl.u32 %v1052_v57, 16  ;;  %v1566_v10 = vld [vmem:[#allocation2 + $0x30] sm:$0xe]  ;;  %v1567_v14 = vld [vmem:[#allocation2 + $0x34] sm:$0xf] }
  0x55   : > { %v6042_v2 = vcombine.low %v1175_v58, %v1185_v5  ;;  %v1189_v11 = vrot.slane %v1187_v0, 4  ;;  %v1192_v12 = vrot.slane %v1190_v3, 5  ;;  %v1198_v13 = vrot.slane %v1196_v4, 5  ;;  %v783_v28 = vld [vmem:[#allocation2 + $0x44] sm:$0x1]  ;;  %v6966_v37 = vld [vmem:[#allocation2 + $0x30] sm:$0xff]  }
  0x56   : > { %4672 = vmatmul.mubr.bf16.gmra.mrb[12].mxu1 %v6074_v63  ;;  %v1202_v17 = vrot.slane %v1200_v8, 4  ;;  %v6059_v19 = vrot.slane %v1566_v10, 9  ;;  %v1683_v25 = vrot.slane %v1567_v14, 5  ;;  %v784_v32 = vsel %vm7225_vm6, %v513_v9, %v783_v28  ;;  %v362_v52 = vld [vmem:[#allocation2 + $0x50] sm:$0x1]  ;;  %v7009_v8 = vld [vmem:[%s8697_s1 + $0x1f8] sm:$0xff]  }
  0x57   : > { %v1053_v16 = vld [vmem:[#allocation2 + $0x38] sm:$0x1]  ;;  %4510 = vmatprep.mubr.bf16.mxu0 %v6042_v2  ;;  %v1193_v20 = vor.u32 %v1192_v12, %v1189_v11  ;;  %785 = vst [vmem:[#allocation2 + $0x44] sm:$0x1] %v784_v32  ;;  %v518_v63 = vshll.u32 %v7458_v56, 16  ;;  %v521_v0 = vrot.slane %v517_v51, 4  ;;  %6666 = vmatprep.subr.bf16.mxu1 %v7009_v8 }
  0x58   : > { %v1568_v18 = vld [vmem:[#allocation2 + $0x38] sm:$0x1]  ;;  %v1206_v22 = vshll.u32 %v1053_v16, 16  ;;  %v6965_v23 = vld [vmem:[#allocation2 + $0x3c] sm:$0xff]   ;;  %4511 = vmatmul.mubr.bf16.gmra.mrb[12].mxu0 %v6964_v7  ;;  %v1203_v24 = vor.u32 %v1202_v17, %v1198_v13  ;;  %v1684_v38 = vsel %vm7279_vm14, %v6059_v19, %v1683_v25  ;;  %v1685_v39 = vrot.slane %v1683_v25, 4 }
  0x59   : > { %v1686_v26 = vrot.slane %v1568_v18, 5  ;;  %v1054_v29 = vld [vmem:[#allocation2 + $0x3c] sm:$0xf]  ;;  %v1194_v30 = vrot.slane %v1193_v20, 4  ;;  %4679 = vmatprep.mubr.bf16.mxu1 %v6965_v23  ;;  %v1055_v33 = vld [vmem:[#allocation2 + $0x40] sm:$0xf] }
  0x5a   : > { %v1208_v31 = vrot.slane %v1206_v22, 5  ;;  %v1211_v34 = vshrl.u32 %v1054_v29, 16  ;;  %v1204_v36 = vrot.slane %v1203_v24, 4  ;;  %v1214_v40 = vshll.u32 %v1054_v29, 16  ;;  %v1569_v53 = vld [vmem:[#allocation2 + $0x3c] sm:$0xe] }
  0x5b   : > { %v1199_v42 = vsel %vm7235_vm9, %v1194_v30, %v1198_v13  ;;  %v1220_v45 = vshll.u32 %v1055_v33, 16  ;;  %v1224_v46 = vshrl.u32 %v1055_v33, 16  ;;  %v1687_v49 = vsel %vm7279_vm14, %v1685_v39, %v1686_v26  ;;  %v1570_v62 = vld [vmem:[#allocation2 + $0x40] sm:$0xf]  ;;  %v786_v4 = vld [vmem:[#allocation2 + $0x48] sm:$0xf] }
  0x5c   : > { %v1213_v44 = vrot.slane %v1211_v34, 4  ;;  %v1209_v48 = vsel %vm7235_vm9, %v1204_v36, %v1208_v31  ;;  %v1216_v50 = vrot.slane %v1214_v40, 5  ;;  %v6075_v57 = vcombine.low %v1684_v38, %v1687_v49  ;;  %v315_v5 = vld [vmem:[#allocation2 + $0x54] sm:$0x1]  ;;  %v407_v7 = vld [vmem:[%s7221_s24 + $0x30] sm:$0xf] }
  0x5d   : > { %v6043_v55 = vcombine.low %v1199_v42, %v1209_v48  ;;  %v1222_v58 = vrot.slane %v1220_v45, 5  ;;  %v1226_v60 = vrot.slane %v1224_v46, 4  ;;  %v523_v3 = vshrl.u32 %v406_v35, 16  ;;  %v408_v11 = vld [vmem:[%s7221_s24 + $0x34] sm:$0xf]  ;;  %v7010_v56 = vld [vmem:[%s8697_s1 + $0x1b8] sm:$0xff]  }
  0x5e   : > { %v1217_v61 = vor.u32 %v1216_v50, %v1213_v44  ;;  %4680 = vmatmul.mubr.bf16.gmra.mrb[16].mxu1 %v6075_v57  ;;  %v526_v10 = vshll.u32 %v406_v35, 16  ;;  %v6060_v27 = vrot.slane %v1569_v53, 9  ;;  %v1690_v2 = vrot.slane %v1570_v62, 5  ;;  %v1056_v16 = vld [vmem:[#allocation2 + $0x44] sm:$0x1] }
  0x5f   : > { %4518 = vmatprep.mubr.bf16.mxu0 %v6043_v55  ;;  %v1227_v9 = vor.u32 %v1226_v60, %v1222_v58  ;;  %v520_v13 = vor.u32 %v518_v63, %v517_v51  ;;  %v525_v14 = vrot.slane %v523_v3, 7  ;;  %v363_v15 = vsel %vm7241_vm10, 0, %v362_v52  ;;  %v1571_v18 = vld [vmem:[#allocation2 + $0x44] sm:$0x1]  ;;  %6667 = vmatpush3.bf16.msra.mxu1 %v7010_v56  ;;  %v365_v39 = vld [vmem:[#allocation2 + $0x5c] sm:$0x1] }
  0x60   : > { %4519 = vmatmul.mubr.bf16.gmra.mrb[16].mxu0 %v6966_v37  ;;  %v1218_v12 = vrot.slane %v1217_v61, 4  ;;  %v1692_v19 = vrot.slane %v1690_v2, 4  ;;  %364 = vst [vmem:[#allocation2 + $0x50] sm:$0x1] %v363_v15  ;;  %v1230_v22 = vshll.u32 %v1056_v16, 16  ;;  %v1693_v26 = vrot.slane %v1571_v18, 5 }
  0x61   : > { %v1228_v17 = vrot.slane %v1227_v9, 4  ;;  %v528_v23 = vor.u32 %v526_v10, %v525_v14  ;;  %v530_v24 = vrot.slane %v525_v14, 4  ;;  %v787_v25 = vsel %vm7249_vm11, %v520_v13, %v786_v4  ;;  %v6972_v37 = vld [vmem:[#allocation2 + $0x3c] sm:$0xff]   ;;  %v409_v46 = vld [vmem:[%s7221_s24 + $0x38] sm:$0xf] }
  0x62   : > { %v1223_v20 = vsel %vm7235_vm9, %v1218_v12, %v1222_v58  ;;  %v316_v28 = vsel %vm7225_vm6, 0, %v315_v5  ;;  %v532_v29 = vshrl.u32 %v407_v7, 16  ;;  %v1232_v30 = vrot.slane %v1230_v22, 5  ;;  %788 = vst [vmem:[#allocation2 + $0x48] sm:$0xf] %v787_v25  ;;  %v7014_v25 = vld [vmem:[%s8697_s1 + $0x200] sm:$0xff]  }
  0x63   : > { %v529_v31 = vsel %vm7257_vm12, %v521_v0, %v528_v23  ;;  %317 = vst [vmem:[#allocation2 + $0x54] sm:$0x1] %v316_v28  ;;  %v535_v32 = vshll.u32 %v407_v7, 16  ;;  %v540_v33 = vshrl.u32 %v408_v11, 16  ;;  %v543_v35 = vshll.u32 %v408_v11, 16  ;;  %6812 = vmatprep.subr.bf16.mxu0 %v7014_v25 }
  0x64   : > { %789 = vst [vmem:[#allocation2 + $0x4c] sm:$0xf] %v529_v31  ;;  %v534_v34 = vrot.slane %v532_v29, 7  ;;  %v1233_v36 = vsel %vm7235_vm9, %v1228_v17, %v1232_v30  ;;  %v1691_v41 = vsel %vm7279_vm14, %v6060_v27, %v1690_v2  ;;  %v366_v44 = vsel %vm7241_vm10, 0, %v365_v39  ;;  %v318_v45 = vld [vmem:[#allocation2 + $0x60] sm:$0x1] }
  0x65   : > { %v7511_v38 = vrot.slane %v540_v33, 7  ;;  %v6044_v40 = vcombine.low %v1223_v20, %v1233_v36  ;;  %v1694_v47 = vsel %vm7279_vm14, %v1692_v19, %v1693_v26  ;;  %367 = vst [vmem:[#allocation2 + $0x5c] sm:$0x1] %v366_v44  ;;  %v319_v51 = vsel %vm7225_vm6, 0, %v318_v45  ;;  %v410_v53 = vld [vmem:[%s7221_s24 + $0x3c] sm:$0xf] }
  0x66   : > { %v538_v42 = vrot.slane %v534_v34, 4  ;;  %v537_v49 = vor.u32 %v535_v32, %v534_v34  ;;  %320 = vst [vmem:[#allocation2 + $0x60] sm:$0x1] %v319_v51  ;;  %v549_v58 = vshrl.u32 %v409_v46, 16  ;;  %v368_v60 = vld [vmem:[#allocation2 + $0x68] sm:$0x1]  ;;  %v6076_v0 = vcombine.low %v1691_v41, %v1694_v47 }
  0x67   : > { %v790_v48 = vld [vmem:[#allocation2 + $0x50] sm:$0x1]  ;;  %v545_v50 = vor.u32 %v543_v35, %v7511_v38  ;;  %4526 = vmatprep.mubr.bf16.mxu0 %v6044_v40  ;;  %v547_v57 = vrot.slane %v7511_v38, 4  ;;  %v552_v52 = vshll.u32 %v409_v46, 16  ;;  %v557_v61 = vshrl.u32 %v410_v53, 16 }
  0x68   : > { %v791_v55 = vsel %vm7225_vm6, %v530_v24, %v790_v48  ;;  %4527 = vmatmul.mubr.bf16.gmra.mrb[20].mxu0 %v6972_v37  ;;  %v369_v63 = vsel %vm7241_vm10, 0, %v368_v60  ;;  %v560_v11 = vshll.u32 %v410_v53, 16  ;;  %v551_v13 = vrot.slane %v549_v58, 7  ;;  %v7015_v37 = vld [vmem:[%s8698_s2] sm:$0xff]   ;;  %v321_v44 = vld [vmem:[#allocation2 + $0x6c] sm:$0x1] }
  0x69   : > { %792 = vst [vmem:[#allocation2 + $0x50] sm:$0x1] %v791_v55  ;;  %v546_v62 = vsel %vm7257_vm12, %v538_v42, %v545_v50  ;;  %v1057_v3 = vld [vmem:[#allocation2 + $0x48] sm:$0xf]  ;;  %370 = vst [vmem:[#allocation2 + $0x68] sm:$0x1] %v369_v63  ;;  %6860 = vmatprep.subr.bf16.mxu1 %v7015_v37 }
  0x6a   : > { %v793_v4 = vld [vmem:[#allocation2 + $0x54] sm:$0xf]  ;;  %796 = vst [vmem:[#allocation2 + $0x58] sm:$0xf] %v546_v62  ;;  %v1235_v8 = vshrl.u32 %v1057_v3, 16  ;;  %v1238_v10 = vshll.u32 %v1057_v3, 16  ;;  %v554_v22 = vor.u32 %v552_v52, %v551_v13 }
  0x6b   : > { %v6971_v5 = vld [vmem:[#allocation2 + $0x48] sm:$0xff]   ;;  %v794_v9 = vsel %vm7249_vm11, %v537_v49, %v793_v4  ;;  %v555_v23 = vrot.slane %v551_v13, 4  ;;  %v559_v24 = vrot.slane %v557_v61, 7  ;;  %v411_v63 = vld [vmem:[%s7221_s24 + $0x40] sm:$0xf] }
  0x6c   : > { %v1058_v7 = vld [vmem:[#allocation2 + $0x4c] sm:$0xf]  ;;  %795 = vst [vmem:[#allocation2 + $0x54] sm:$0xf] %v794_v9  ;;  %4687 = vmatprep.mubr.bf16.mxu1 %v6971_v5  ;;  %v1237_v56 = vrot.slane %v1235_v8, 4  ;;  %v1240_v14 = vrot.slane %v1238_v10, 5 }
  0x6d   : > { %v1244_v27 = vshll.u32 %v1058_v7, 16  ;;  %v1248_v2 = vshrl.u32 %v1058_v7, 16  ;;  %v1572_v12 = vld [vmem:[#allocation2 + $0x48] sm:$0xe]  ;;  %4688 = vmatmul.mubr.bf16.gmra.mrb[20].mxu1 %v6076_v0  ;;  %v1573_v17 = vld [vmem:[#allocation2 + $0x4c] sm:$0xf]  ;;  %v562_v41 = vor.u32 %v560_v11, %v559_v24 }
  0x6e   : > { %v6061_v18 = vrot.slane %v1572_v12, 9  ;;  %v1697_v19 = vrot.slane %v1573_v17, 5  ;;  %v797_v20 = vld [vmem:[#allocation2 + $0x5c] sm:$0x1]  ;;  %v1241_v28 = vor.u32 %v1240_v14, %v1237_v56  ;;  %v800_v32 = vld [vmem:[#allocation2 + $0x60] sm:$0xf] }
  0x6f   : > { %v1246_v15 = vrot.slane %v1244_v27, 5  ;;  %v1250_v16 = vrot.slane %v1248_v2, 4  ;;  %v798_v31 = vsel %vm7225_vm6, %v547_v57, %v797_v20  ;;  %v564_v42 = vrot.slane %v559_v24, 4  ;;  %v6974_v58 = vld [vmem:[#allocation2 + $0x48] sm:$0xff]  }
  0x70   : > { %v1059_v26 = vld [vmem:[#allocation2 + $0x50] sm:$0x1]  ;;  %v1698_v34 = vsel %vm7279_vm14, %v6061_v18, %v1697_v19  ;;  %v1699_v35 = vrot.slane %v1697_v19, 4  ;;  %799 = vst [vmem:[#allocation2 + $0x5c] sm:$0x1] %v798_v31  ;;  %v1242_v38 = vrot.slane %v1241_v28, 4  ;;  %v801_v49 = vsel %vm7249_vm11, %v554_v22, %v800_v32 }
  0x71   : > { %v1251_v29 = vor.u32 %v1250_v16, %v1246_v15  ;;  %v1574_v30 = vld [vmem:[#allocation2 + $0x50] sm:$0x1]  ;;  %v1254_v33 = vshll.u32 %v1059_v26, 16  ;;  %v1061_v40 = vld [vmem:[#allocation2 + $0x58] sm:$0xf]  ;;  %v563_v52 = vsel %vm7257_vm12, %v555_v23, %v562_v41  ;;  %v322_v2 = vsel %vm7225_vm6, 0, %v321_v44 }
  0x72   : > { %v1700_v36 = vrot.slane %v1574_v30, 5  ;;  %v1247_v50 = vsel %vm7235_vm9, %v1242_v38, %v1246_v15  ;;  %802 = vst [vmem:[#allocation2 + $0x60] sm:$0xf] %v801_v49  ;;  %v1268_v60 = vshll.u32 %v1061_v40, 16  ;;  %v1272_v62 = vshrl.u32 %v1061_v40, 16 }
  0x73   : > { %v1252_v39 = vrot.slane %v1251_v29, 4  ;;  %v1256_v45 = vrot.slane %v1254_v33, 5  ;;  %v6973_v46 = vld [vmem:[#allocation2 + $0x54] sm:$0xff]   ;;  %803 = vst [vmem:[#allocation2 + $0x64] sm:$0xf] %v563_v52  ;;  %v566_v20 = vshrl.u32 %v411_v63, 16 }
  0x74   : > { %v1701_v47 = vsel %vm7279_vm14, %v1699_v35, %v1700_v36  ;;  %v1060_v48 = vld [vmem:[#allocation2 + $0x54] sm:$0xf]  ;;  %4695 = vmatprep.mubr.bf16.mxu1 %v6973_v46  ;;  %v1576_v5 = vld [vmem:[#allocation2 + $0x58] sm:$0xf]  ;;  %v1270_v8 = vrot.slane %v1268_v60, 5  ;;  %v1274_v9 = vrot.slane %v1272_v62, 4 }
  0x75   : > { %v6077_v51 = vcombine.low %v1698_v34, %v1701_v47  ;;  %v1259_v53 = vshrl.u32 %v1060_v48, 16  ;;  %v1262_v55 = vshll.u32 %v1060_v48, 16  ;;  %v1257_v57 = vsel %vm7235_vm9, %v1252_v39, %v1256_v45  ;;  %v1575_v61 = vld [vmem:[#allocation2 + $0x54] sm:$0xe]  ;;  %v804_v27 = vld [vmem:[#allocation2 + $0x68] sm:$0x1] }
  0x76   : > { %v6045_v0 = vcombine.low %v1247_v50, %v1257_v57  ;;  %v6062_v7 = vrot.slane %v1575_v61, 9  ;;  %v1704_v10 = vrot.slane %v1576_v5, 5  ;;  %v805_v13 = vsel %vm7225_vm6, %v564_v42, %v804_v27  ;;  %323 = vst [vmem:[#allocation2 + $0x6c] sm:$0x1] %v322_v2  ;;  %v6980_v25 = vld [vmem:[#allocation2 + $0x54] sm:$0xff]  }
  0x77   : > { %4696 = vmatmul.mubr.bf16.gmra.mrb[24].mxu1 %v6077_v51  ;;  %v1261_v3 = vrot.slane %v1259_v53, 4  ;;  %v1264_v4 = vrot.slane %v1262_v55, 5  ;;  %v1062_v11 = vld [vmem:[#allocation2 + $0x5c] sm:$0x1]  ;;  %v1275_v14 = vor.u32 %v1274_v9, %v1270_v8  ;;  %806 = vst [vmem:[#allocation2 + $0x68] sm:$0x1] %v805_v13 }
  0x78   : > { %4534 = vmatprep.mubr.bf16.mxu0 %v6045_v0  ;;  %v1577_v12 = vld [vmem:[#allocation2 + $0x5c] sm:$0x1]  ;;  %v1278_v15 = vshll.u32 %v1062_v11, 16  ;;  %v1705_v16 = vsel %vm7279_vm14, %v6062_v7, %v1704_v10  ;;  %v1706_v17 = vrot.slane %v1704_v10, 4  ;;  %v569_v22 = vshll.u32 %v411_v63, 16 }
  0x79   : > { %v1265_v56 = vor.u32 %v1264_v4, %v1261_v3  ;;  %4535 = vmatmul.mubr.bf16.gmra.mrb[24].mxu0 %v6974_v58  ;;  %v1707_v19 = vrot.slane %v1577_v12, 5  ;;  %v1276_v23 = vrot.slane %v1275_v14, 4  ;;  %v1063_v26 = vld [vmem:[#allocation2 + $0x60] sm:$0xf]  ;;  %v412_v32 = vld [vmem:[%s7221_s24 + $0x44] sm:$0xf] }
  0x7a   : > { %v1280_v24 = vrot.slane %v1278_v15, 5  ;;  %v1283_v30 = vshrl.u32 %v1063_v26, 16  ;;  %v1286_v31 = vshll.u32 %v1063_v26, 16  ;;  %v6979_v34 = vld [vmem:[#allocation2 + $0x60] sm:$0xff]   ;;  %v568_v37 = vrot.slane %v566_v20, 7 }
  0x7b   : > { %v1266_v18 = vrot.slane %v1265_v56, 4  ;;  %v1708_v29 = vsel %vm7279_vm14, %v1706_v17, %v1707_v19  ;;  %v1064_v36 = vld [vmem:[#allocation2 + $0x64] sm:$0xf]  ;;  %v1578_v38 = vld [vmem:[#allocation2 + $0x60] sm:$0xe]  ;;  %4703 = vmatprep.mubr.bf16.mxu1 %v6979_v34  ;;  %v574_v47 = vshrl.u32 %v412_v32, 16 }
  0x7c   : > { %v1281_v33 = vsel %vm7235_vm9, %v1276_v23, %v1280_v24  ;;  %v6078_v35 = vcombine.low %v1705_v16, %v1708_v29  ;;  %v1285_v40 = vrot.slane %v1283_v30, 4  ;;  %v1288_v41 = vrot.slane %v1286_v31, 5  ;;  %v1579_v55 = vld [vmem:[#allocation2 + $0x64] sm:$0xf]  ;;  %v371_v11 = vld [vmem:[#allocation2 + $0x74] sm:$0x1] }
  0x7d   : > { %v1271_v28 = vsel %vm7235_vm9, %v1266_v18, %v1270_v8  ;;  %v1292_v42 = vshll.u32 %v1064_v36, 16  ;;  %v1296_v44 = vshrl.u32 %v1064_v36, 16  ;;  %v571_v45 = vor.u32 %v569_v22, %v568_v37  ;;  %v807_v48 = vld [vmem:[#allocation2 + $0x6c] sm:$0xf]  ;;  %v6982_v2 = vld [vmem:[#allocation2 + $0x60] sm:$0xff]  }
  0x7e   : > { %v6046_v39 = vcombine.low %v1271_v28, %v1281_v33  ;;  %v572_v46 = vrot.slane %v568_v37, 4  ;;  %v1065_v49 = vld [vmem:[#allocation2 + $0x68] sm:$0x1]  ;;  %v1289_v50 = vor.u32 %v1288_v41, %v1285_v40  ;;  %v577_v53 = vshll.u32 %v412_v32, 16  ;;  %v324_v56 = vld [vmem:[#allocation2 + $0x78] sm:$0x1] }
  0x7f   : > { %4704 = vmatmul.mubr.bf16.gmra.mrb[28].mxu1 %v6078_v35  ;;  %v1294_v51 = vrot.slane %v1292_v42, 5  ;;  %v1298_v57 = vrot.slane %v1296_v44, 4  ;;  %v1302_v58 = vshll.u32 %v1065_v49, 16  ;;  %v7567_v60 = vrot.slane %v574_v47, 7  ;;  %v1580_v52 = vld [vmem:[#allocation2 + $0x68] sm:$0x1] }
  0x80   : > { %4542 = vmatprep.mubr.bf16.mxu0 %v6046_v39  ;;  %v808_v62 = vsel %vm7249_vm11, %v571_v45, %v807_v48  ;;  %v1290_v61 = vrot.slane %v1289_v50, 4  ;;  %v6063_v63 = vrot.slane %v1578_v38, 9  ;;  %v1711_v0 = vrot.slane %v1579_v55, 5  ;;  %v413_v15 = vld [vmem:[%s7221_s24 + $0x48] sm:$0xf] }
  0x81   : > { %4543 = vmatmul.mubr.bf16.gmra.mrb[28].mxu0 %v6980_v25  ;;  %809 = vst [vmem:[#allocation2 + $0x6c] sm:$0xf] %v808_v62  ;;  %v1299_v3 = vor.u32 %v1298_v57, %v1294_v51  ;;  %v1304_v4 = vrot.slane %v1302_v58, 5  ;;  %v579_v5 = vor.u32 %v577_v53, %v7567_v60  ;;  %v1714_v7 = vrot.slane %v1580_v52, 5  ;;  %v414_v16 = vld [vmem:[%s7221_s24 + $0x4c] sm:$0xf] }
  0x82   : > { %v1713_v8 = vrot.slane %v1711_v0, 4  ;;  %v1295_v9 = vsel %vm7235_vm9, %v1290_v61, %v1294_v51  ;;  %v1712_v12 = vsel %vm7279_vm14, %v6063_v63, %v1711_v0  ;;  %v372_v13 = vsel %vm7241_vm10, 0, %v371_v11  ;;  %v374_v22 = vld [vmem:[#allocation2 + $0x80] sm:$0x1]  ;;  %v327_v23 = vld [vmem:[#allocation2 + $0x84] sm:$0x1] }
  0x83   : > { %v1300_v10 = vrot.slane %v1299_v3, 4  ;;  %v580_v27 = vsel %vm7257_vm12, %v572_v46, %v579_v5  ;;  %v325_v14 = vsel %vm7225_vm6, 0, %v324_v56  ;;  %373 = vst [vmem:[#allocation2 + $0x74] sm:$0x1] %v372_v13  ;;  %v583_v19 = vshrl.u32 %v413_v15, 16 }
  0x84   : > { %810 = vst [vmem:[#allocation2 + $0x70] sm:$0xf] %v580_v27  ;;  %v1715_v18 = vsel %vm7279_vm14, %v1713_v8, %v1714_v7  ;;  %326 = vst [vmem:[#allocation2 + $0x78] sm:$0x1] %v325_v14  ;;  %v586_v20 = vshll.u32 %v413_v15, 16  ;;  %v591_v25 = vshrl.u32 %v414_v16, 16 }
  0x85   : > { %v1305_v17 = vsel %vm7235_vm9, %v1300_v10, %v1304_v4  ;;  %v594_v26 = vshll.u32 %v414_v16, 16  ;;  %v375_v28 = vsel %vm7241_vm10, 0, %v374_v22  ;;  %v415_v29 = vld [vmem:[%s7221_s24 + $0x50] sm:$0xf]  ;;  %v585_v31 = vrot.slane %v583_v19, 7 }
  0x86   : > { %v6047_v24 = vcombine.low %v1295_v9, %v1305_v17  ;;  %376 = vst [vmem:[#allocation2 + $0x80] sm:$0x1] %v375_v28  ;;  %v328_v32 = vsel %vm7225_vm6, 0, %v327_v23  ;;  %v581_v33 = vrot.slane %v7567_v60, 4  ;;  %v593_v36 = vrot.slane %v591_v25, 7 }
  0x87   : > { %329 = vst [vmem:[#allocation2 + $0x84] sm:$0x1] %v328_v32  ;;  %v6079_v37 = vcombine.low %v1712_v12, %v1715_v18  ;;  %v588_v38 = vor.u32 %v586_v20, %v585_v31  ;;  %v589_v39 = vrot.slane %v585_v31, 4  ;;  %v600_v40 = vshrl.u32 %v415_v29, 16  ;;  %v416_v45 = vld [vmem:[%s7221_s24 + $0x54] sm:$0xf] }
  0x88   : > { %v1066_v30 = vld [vmem:[#allocation2 + $0x6c] sm:$0xf]  ;;  %4550 = vmatprep.mubr.bf16.mxu0 %v6047_v24  ;;  %v596_v44 = vor.u32 %v594_v26, %v593_v36  ;;  %v603_v46 = vshll.u32 %v415_v29, 16  ;;  %v598_v49 = vrot.slane %v593_v36, 4  ;;  %v608_v9 = vshrl.u32 %v416_v45, 16 }
  0x89   : > { %v1307_v34 = vshrl.u32 %v1066_v30, 16  ;;  %v1310_v35 = vshll.u32 %v1066_v30, 16  ;;  %4551 = vmatmul.mubr.bf16.gmra.mrb[32].mxu0 %v6982_v2  ;;  %v602_v52 = vrot.slane %v600_v40, 7  ;;  %v1581_v3 = vld [vmem:[#allocation2 + $0x6c] sm:$0xe]  ;;  %v611_v56 = vshll.u32 %v416_v45, 16 }
  0x8a   : > { %v811_v50 = vld [vmem:[#allocation2 + $0x74] sm:$0x1]  ;;  %v597_v55 = vsel %vm7257_vm12, %v589_v39, %v596_v44  ;;  %v7603_v11 = vrot.slane %v608_v9, 7  ;;  %v6064_v13 = vrot.slane %v1581_v3, 9  ;;  %v330_v45 = vld [vmem:[#allocation2 + $0x90] sm:$0x1] }
  0x8b   : > { %v1309_v41 = vrot.slane %v1307_v34, 4  ;;  %v1312_v42 = vrot.slane %v1310_v35, 5  ;;  %v6981_v47 = vld [vmem:[#allocation2 + $0x6c] sm:$0xff]   ;;  %v814_v57 = vld [vmem:[#allocation2 + $0x78] sm:$0xf]  ;;  %v812_v58 = vsel %vm7225_vm6, %v581_v33, %v811_v50  ;;  %v605_v8 = vor.u32 %v603_v46, %v602_v52 }
  0x8c   : > { %v1067_v48 = vld [vmem:[#allocation2 + $0x70] sm:$0xf]  ;;  %4711 = vmatprep.mubr.bf16.mxu1 %v6981_v47  ;;  %v815_v60 = vsel %vm7249_vm11, %v588_v38, %v814_v57  ;;  %817 = vst [vmem:[#allocation2 + $0x7c] sm:$0xf] %v597_v55  ;;  %813 = vst [vmem:[#allocation2 + $0x74] sm:$0x1] %v812_v58  ;;  %v613_v17 = vor.u32 %v611_v56, %v7603_v11 }
  0x8d   : > { %v1316_v51 = vshll.u32 %v1067_v48, 16  ;;  %v1320_v53 = vshrl.u32 %v1067_v48, 16  ;;  %v1582_v62 = vld [vmem:[#allocation2 + $0x70] sm:$0xf]  ;;  %4712 = vmatmul.mubr.bf16.gmra.mrb[32].mxu1 %v6079_v37  ;;  %v1313_v61 = vor.u32 %v1312_v42, %v1309_v41  ;;  %816 = vst [vmem:[#allocation2 + $0x78] sm:$0xf] %v815_v60 }
  0x8e   : > { %v818_v4 = vld [vmem:[#allocation2 + $0x80] sm:$0x1]  ;;  %v1718_v5 = vrot.slane %v1582_v62, 5  ;;  %v821_v10 = vld [vmem:[#allocation2 + $0x84] sm:$0xf]  ;;  %v606_v2 = vrot.slane %v602_v52, 4 }
  0x8f   : > { %v1318_v63 = vrot.slane %v1316_v51, 5  ;;  %v1322_v0 = vrot.slane %v1320_v53, 4  ;;  %v819_v7 = vsel %vm7225_vm6, %v598_v49, %v818_v4  ;;  %v822_v12 = vsel %vm7249_vm11, %v605_v8, %v821_v10  ;;  %v377_v35 = vld [vmem:[#allocation2 + $0x8c] sm:$0x1]  ;;  %v417_v52 = vld [vmem:[%s7221_s24 + $0x58] sm:$0xf] }
  0x90   : > { %820 = vst [vmem:[#allocation2 + $0x80] sm:$0x1] %v819_v7  ;;  %823 = vst [vmem:[#allocation2 + $0x84] sm:$0xf] %v822_v12  ;;  %v1314_v14 = vrot.slane %v1313_v61, 4  ;;  %v1720_v16 = vrot.slane %v1718_v5, 4  ;;  %v614_v23 = vsel %vm7257_vm12, %v606_v2, %v613_v17  ;;  %v1719_v26 = vsel %vm7279_vm14, %v6064_v13, %v1718_v5 }
  0x91   : > { %v1323_v27 = vor.u32 %v1322_v0, %v1318_v63  ;;  %824 = vst [vmem:[#allocation2 + $0x88] sm:$0xf] %v614_v23  ;;  %v6988_v47 = vld [vmem:[#allocation2 + $0x6c] sm:$0xff]   ;;  %v378_v0 = vsel %vm7241_vm10, 0, %v377_v35  ;;  %v331_v2 = vsel %vm7225_vm6, 0, %v330_v45  ;;  %v617_v12 = vshrl.u32 %v417_v52, 16 }
  0x92   : > { %v1319_v36 = vsel %vm7235_vm9, %v1314_v14, %v1318_v63  ;;  %379 = vst [vmem:[#allocation2 + $0x8c] sm:$0x1] %v378_v0  ;;  %v418_v56 = vld [vmem:[%s7221_s24 + $0x5c] sm:$0xf]  ;;  %v615_v14 = vrot.slane %v7603_v11, 4 }
  0x93   : > { %v1324_v15 = vrot.slane %v1323_v27, 4  ;;  %v1070_v18 = vld [vmem:[#allocation2 + $0x7c] sm:$0xf]  ;;  %v1068_v19 = vld [vmem:[#allocation2 + $0x74] sm:$0x1] }
  0x94   : > { %v6987_v20 = vld [vmem:[#allocation2 + $0x78] sm:$0xff]   ;;  %v1340_v22 = vshll.u32 %v1070_v18, 16  ;;  %v1326_v24 = vshll.u32 %v1068_v19, 16  ;;  %v1583_v25 = vld [vmem:[#allocation2 + $0x74] sm:$0x1]  ;;  %v1344_v29 = vshrl.u32 %v1070_v18, 16 }
  0x95   : > { %v1069_v28 = vld [vmem:[#allocation2 + $0x78] sm:$0xf]  ;;  %4719 = vmatprep.mubr.bf16.mxu1 %v6987_v20  ;;  %v1721_v30 = vrot.slane %v1583_v25, 5  ;;  %v1585_v51 = vld [vmem:[#allocation2 + $0x7c] sm:$0xf]  ;;  %v620_v25 = vshll.u32 %v417_v52, 16 }
  0x96   : > { %v1331_v32 = vshrl.u32 %v1069_v28, 16  ;;  %v1334_v33 = vshll.u32 %v1069_v28, 16  ;;  %v1342_v34 = vrot.slane %v1340_v22, 5  ;;  %v1328_v37 = vrot.slane %v1326_v24, 5  ;;  %v1584_v44 = vld [vmem:[#allocation2 + $0x78] sm:$0xe] }
  0x97   : > { %v1071_v31 = vld [vmem:[#allocation2 + $0x80] sm:$0x1]  ;;  %v1346_v38 = vrot.slane %v1344_v29, 4  ;;  %v1722_v40 = vsel %vm7279_vm14, %v1720_v16, %v1721_v30  ;;  %v6065_v58 = vrot.slane %v1584_v44, 9  ;;  %v1725_v60 = vrot.slane %v1585_v51, 5  ;;  %v6990_v18 = vld [vmem:[#allocation2 + $0x78] sm:$0xff]  }
  0x98   : > { %v1350_v39 = vshll.u32 %v1071_v31, 16  ;;  %v1333_v41 = vrot.slane %v1331_v32, 4  ;;  %v1336_v42 = vrot.slane %v1334_v33, 5  ;;  %v1329_v46 = vsel %vm7235_vm9, %v1324_v15, %v1328_v37  ;;  %v1586_v53 = vld [vmem:[#allocation2 + $0x80] sm:$0x1]  ;;  %v6989_v5 = vld [vmem:[#allocation2 + $0x84] sm:$0xff]  }
  0x99   : > { %v6080_v48 = vcombine.low %v1719_v26, %v1722_v40  ;;  %v1347_v49 = vor.u32 %v1346_v38, %v1342_v34  ;;  %v6048_v55 = vcombine.low %v1319_v36, %v1329_v46  ;;  %v1072_v62 = vld [vmem:[#allocation2 + $0x84] sm:$0xf]  ;;  %v1728_v63 = vrot.slane %v1586_v53, 5  ;;  %v1073_v27 = vld [vmem:[#allocation2 + $0x88] sm:$0xf] }
  0x9a   : > { %v1352_v50 = vrot.slane %v1350_v39, 5  ;;  %v1337_v57 = vor.u32 %v1336_v42, %v1333_v41  ;;  %v1355_v3 = vshrl.u32 %v1072_v62, 16  ;;  %v1726_v7 = vsel %vm7279_vm14, %v6065_v58, %v1725_v60  ;;  %332 = vst [vmem:[#allocation2 + $0x90] sm:$0x1] %v331_v2  ;;  %v380_v28 = vld [vmem:[#allocation2 + $0x98] sm:$0x1] }
  0x9b   : > { %4720 = vmatmul.mubr.bf16.gmra.mrb[36].mxu1 %v6080_v48  ;;  %v1348_v61 = vrot.slane %v1347_v49, 4  ;;  %4558 = vmatprep.mubr.bf16.mxu0 %v6048_v55  ;;  %v1727_v8 = vrot.slane %v1725_v60, 4  ;;  %v1358_v9 = vshll.u32 %v1072_v62, 16  ;;  %v1364_v16 = vshll.u32 %v1073_v27, 16  ;;  %v1588_v30 = vld [vmem:[#allocation2 + $0x88] sm:$0xf] }
  0x9c   : > { %v1338_v4 = vrot.slane %v1337_v57, 4  ;;  %4559 = vmatmul.mubr.bf16.gmra.mrb[36].mxu0 %v6988_v47  ;;  %4727 = vmatprep.mubr.bf16.mxu1 %v6989_v5  ;;  %v1368_v20 = vshrl.u32 %v1073_v27, 16  ;;  %v619_v22 = vrot.slane %v617_v12, 7  ;;  %v1357_v23 = vrot.slane %v1355_v3, 4  ;;  %v333_v31 = vld [vmem:[#allocation2 + $0x9c] sm:$0x1] }
  0x9d   : > { %v1353_v10 = vsel %vm7235_vm9, %v1348_v61, %v1352_v50  ;;  %v1729_v15 = vsel %vm7279_vm14, %v1727_v8, %v1728_v63  ;;  %v1360_v24 = vrot.slane %v1358_v9, 5  ;;  %v625_v26 = vshrl.u32 %v418_v56, 16  ;;  %v419_v36 = vld [vmem:[%s7221_s24 + $0x60] sm:$0xf]  ;;  %v825_v37 = vld [vmem:[#allocation2 + $0x8c] sm:$0x1] }
  0x9e   : > { %v1343_v13 = vsel %vm7235_vm9, %v1338_v4, %v1342_v34  ;;  %v6081_v19 = vcombine.low %v1726_v7, %v1729_v15  ;;  %v7633_v11 = vrot.slane %v1364_v16, 5  ;;  %v628_v29 = vshll.u32 %v418_v56, 16  ;;  %v420_v40 = vld [vmem:[%s7221_s24 + $0x64] sm:$0xf]  ;;  %v336_v3 = vld [vmem:[#allocation2 + $0xa8] sm:$0x1] }
  0x9f   : > { %v6049_v17 = vcombine.low %v1343_v13, %v1353_v10  ;;  %v1370_v32 = vrot.slane %v1368_v20, 4  ;;  %v622_v33 = vor.u32 %v620_v25, %v619_v22  ;;  %v623_v34 = vrot.slane %v619_v22, 4  ;;  %v1587_v46 = vld [vmem:[#allocation2 + $0x84] sm:$0xe]  ;;  %v383_v0 = vld [vmem:[#allocation2 + $0xa4] sm:$0x1] }
  0xa0   : > { %v627_v35 = vrot.slane %v625_v26, 7  ;;  %v381_v38 = vsel %vm7241_vm10, 0, %v380_v28  ;;  %v334_v39 = vsel %vm7225_vm6, 0, %v333_v31  ;;  %v826_v41 = vsel %vm7225_vm6, %v615_v14, %v825_v37  ;;  %v7656_v9 = vld [vmem:[%s7221_s24 + $0x68] sm:$0xf] }
  0xa1   : > { %4566 = vmatprep.mubr.bf16.mxu0 %v6049_v17  ;;  %382 = vst [vmem:[#allocation2 + $0x98] sm:$0x1] %v381_v38  ;;  %335 = vst [vmem:[#allocation2 + $0x9c] sm:$0x1] %v334_v39  ;;  %v1361_v44 = vor.u32 %v1360_v24, %v1357_v23  ;;  %v828_v45 = vld [vmem:[#allocation2 + $0x90] sm:$0xf]  ;;  %v1371_v55 = vor.u32 %v1370_v32, %v7633_v11 }
  0xa2   : > { %v630_v42 = vor.u32 %v628_v29, %v627_v35  ;;  %827 = vst [vmem:[#allocation2 + $0x8c] sm:$0x1] %v826_v41  ;;  %v1732_v47 = vrot.slane %v1588_v30, 5  ;;  %v634_v48 = vshrl.u32 %v419_v36, 16  ;;  %v829_v50 = vsel %vm7249_vm11, %v622_v33, %v828_v45  ;;  %v7669_v23 = vld [vmem:[%s7221_s24 + $0x6c] sm:$0xf] }
  0xa3   : > { %4728 = vmatmul.mubr.bf16.gmra.mrb[40].mxu1 %v6081_v19  ;;  %v637_v51 = vshll.u32 %v419_v36, 16  ;;  %v642_v53 = vshrl.u32 %v420_v40, 16  ;;  %830 = vst [vmem:[#allocation2 + $0x90] sm:$0xf] %v829_v50  ;;  %v645_v58 = vshll.u32 %v420_v40, 16  ;;  %v632_v60 = vrot.slane %v627_v35, 4 }
  0xa4   : > { %4567 = vmatmul.mubr.bf16.gmra.mrb[40].mxu0 %v6990_v18  ;;  %v631_v49 = vsel %vm7257_vm12, %v623_v34, %v630_v42  ;;  %v636_v57 = vrot.slane %v634_v48, 7  ;;  %v6066_v52 = vrot.slane %v1587_v46, 9  ;;  %v1362_v4 = vrot.slane %v1361_v44, 4  ;;  %v6996_v33 = vld [vmem:[#allocation2 + $0x84] sm:$0xff]  }
  0xa5   : > { %831 = vst [vmem:[#allocation2 + $0x94] sm:$0xf] %v631_v49  ;;  %v7648_v62 = vrot.slane %v642_v53, 7  ;;  %v384_v7 = vsel %vm7241_vm10, 0, %v383_v0  ;;  %v337_v8 = vsel %vm7225_vm6, 0, %v336_v3  ;;  %v1372_v10 = vrot.slane %v1371_v55, 4 }
  0xa6   : > { %v639_v61 = vor.u32 %v637_v51, %v636_v57  ;;  %v640_v63 = vrot.slane %v636_v57, 4  ;;  %v1734_v27 = vrot.slane %v1732_v47, 4  ;;  %385 = vst [vmem:[#allocation2 + $0xa4] sm:$0x1] %v384_v7  ;;  %338 = vst [vmem:[#allocation2 + $0xa8] sm:$0x1] %v337_v8  ;;  %v1733_v19 = vsel %vm7279_vm14, %v6066_v52, %v1732_v47 }
  0xa7   : > { %v647_v5 = vor.u32 %v645_v58, %v7648_v62  ;;  %v651_v17 = vshrl.u32 %v7656_v9, 16  ;;  %v649_v22 = vrot.slane %v7648_v62, 4  ;;  %v654_v25 = vshll.u32 %v7656_v9, 16 }
  0xa8   : > { %v832_v2 = vld [vmem:[#allocation2 + $0x98] sm:$0x1]  ;;  %v835_v56 = vld [vmem:[#allocation2 + $0x9c] sm:$0xf]  ;;  %v1367_v26 = vsel %vm7235_vm9, %v1362_v4, %v7633_v11  ;;  %v659_v11 = vshrl.u32 %v7669_v23, 16 }
  0xa9   : > { %v1074_v12 = vld [vmem:[#allocation2 + $0x8c] sm:$0x1]  ;;  %v833_v14 = vsel %vm7225_vm6, %v632_v60, %v832_v2  ;;  %v648_v15 = vsel %vm7257_vm12, %v640_v63, %v647_v5  ;;  %v836_v16 = vsel %vm7249_vm11, %v639_v61, %v835_v56  ;;  %v7677_v32 = vrot.slane %v651_v17, 7 }
  0xaa   : > { %v1589_v13 = vld [vmem:[#allocation2 + $0x8c] sm:$0x1]  ;;  %v1374_v18 = vshll.u32 %v1074_v12, 16  ;;  %834 = vst [vmem:[#allocation2 + $0x98] sm:$0x1] %v833_v14  ;;  %v7685_v63 = vrot.slane %v659_v11, 7 }
  0xab   : > { %v1735_v20 = vrot.slane %v1589_v13, 5  ;;  %837 = vst [vmem:[#allocation2 + $0x9c] sm:$0xf] %v836_v16  ;;  %838 = vst [vmem:[#allocation2 + $0xa0] sm:$0xf] %v648_v15  ;;  %v657_v51 = vrot.slane %v7677_v32, 4  ;;  %v656_v8 = vor.u32 %v654_v25, %v7677_v32 }
  0xac   : > { %v6995_v24 = vld [vmem:[#allocation2 + $0x90] sm:$0xff]   ;;  %v1376_v28 = vrot.slane %v1374_v18, 5  ;;  %v666_v32 = vrot.slane %v7685_v63, 4 }
  0xad   : > { %v1736_v29 = vsel %vm7279_vm14, %v1734_v27, %v1735_v20  ;;  %v1075_v30 = vld [vmem:[#allocation2 + $0x90] sm:$0xf]  ;;  %v1076_v31 = vld [vmem:[#allocation2 + $0x94] sm:$0xf]  ;;  %4735 = vmatprep.mubr.bf16.mxu1 %v6995_v24  ;;  %v839_v50 = vld [vmem:[#allocation2 + $0xa4] sm:$0x1] }
  0xae   : > { %v6082_v34 = vcombine.low %v1733_v19, %v1736_v29  ;;  %v1379_v35 = vshrl.u32 %v1075_v30, 16  ;;  %v1382_v36 = vshll.u32 %v1075_v30, 16  ;;  %v1388_v37 = vshll.u32 %v1076_v31, 16  ;;  %v1590_v40 = vld [vmem:[#allocation2 + $0x90] sm:$0xe] }
  0xaf   : > { %v1377_v38 = vsel %vm7235_vm9, %v1372_v10, %v1376_v28  ;;  %v1392_v39 = vshrl.u32 %v1076_v31, 16  ;;  %v1591_v46 = vld [vmem:[#allocation2 + $0x94] sm:$0xf]  ;;  %v6067_v48 = vrot.slane %v1590_v40, 9  ;;  %v840_v57 = vsel %vm7225_vm6, %v649_v22, %v839_v50  ;;  %v842_v12 = vld [vmem:[#allocation2 + $0xa8] sm:$0xf] }
  0xb0   : > { %v6050_v41 = vcombine.low %v1367_v26, %v1377_v38  ;;  %4736 = vmatmul.mubr.bf16.gmra.mrb[44].mxu1 %v6082_v34  ;;  %v1381_v42 = vrot.slane %v1379_v35, 4  ;;  %v1384_v44 = vrot.slane %v1382_v36, 5  ;;  %v1390_v45 = vrot.slane %v1388_v37, 5  ;;  %841 = vst [vmem:[#allocation2 + $0xa4] sm:$0x1] %v840_v57  ;;  %v6998_v27 = vld [vmem:[#allocation2 + $0x90] sm:$0xff]  }
  0xb1   : > { %v1394_v47 = vrot.slane %v1392_v39, 4  ;;  %v1739_v49 = vrot.slane %v1591_v46, 5  ;;  %v1077_v53 = vld [vmem:[#allocation2 + $0x98] sm:$0x1]  ;;  %v386_v13 = vld [vmem:[#allocation2 + $0xb0] sm:$0x1]  ;;  %v843_v34 = vsel %vm7249_vm11, %v656_v8, %v842_v12 }
  0xb2   : > { %4574 = vmatprep.mubr.bf16.mxu0 %v6050_v41  ;;  %v1385_v55 = vor.u32 %v1384_v44, %v1381_v42  ;;  %v1398_v60 = vshll.u32 %v1077_v53, 16  ;;  %v6997_v62 = vld [vmem:[#allocation2 + $0x9c] sm:$0xff]   ;;  %v1592_v52 = vld [vmem:[#allocation2 + $0x98] sm:$0x1]  ;;  %v662_v30 = vshll.u32 %v7669_v23, 16  ;;  %v387_v23 = vsel %vm7241_vm10, 0, %v386_v13 }
  0xb3   : > { %4575 = vmatmul.mubr.bf16.gmra.mrb[44].mxu0 %v6996_v33  ;;  %v1395_v58 = vor.u32 %v1394_v47, %v1390_v45  ;;  %v1741_v61 = vrot.slane %v1739_v49, 4  ;;  %v1740_v3 = vsel %vm7279_vm14, %v6067_v48, %v1739_v49  ;;  %v1742_v4 = vrot.slane %v1592_v52, 5  ;;  %v1078_v5 = vld [vmem:[#allocation2 + $0x9c] sm:$0xf]  ;;  %v1079_v7 = vld [vmem:[#allocation2 + $0xa0] sm:$0xf]  ;;  %4743 = vmatprep.mubr.bf16.mxu1 %v6997_v62 }
  0xb4   : > { %v1386_v0 = vrot.slane %v1385_v55, 4  ;;  %v1400_v10 = vrot.slane %v1398_v60, 5  ;;  %v1403_v2 = vshrl.u32 %v1078_v5, 16  ;;  %v1406_v56 = vshll.u32 %v1078_v5, 16  ;;  %v1593_v24 = vld [vmem:[#allocation2 + $0x9c] sm:$0xe] }
  0xb5   : > { %v1396_v9 = vrot.slane %v1395_v58, 4  ;;  %v1743_v15 = vsel %vm7279_vm14, %v1741_v61, %v1742_v4  ;;  %v1412_v16 = vshll.u32 %v1079_v7, 16  ;;  %v1416_v17 = vshrl.u32 %v1079_v7, 16  ;;  %v1594_v25 = vld [vmem:[#allocation2 + $0xa0] sm:$0xf] }
  0xb6   : > { %v1391_v14 = vsel %vm7235_vm9, %v1386_v0, %v1390_v45  ;;  %v6083_v19 = vcombine.low %v1740_v3, %v1743_v15  ;;  %v1405_v20 = vrot.slane %v1403_v2, 4  ;;  %v1408_v22 = vrot.slane %v1406_v56, 5  ;;  %v339_v31 = vld [vmem:[#allocation2 + $0xb4] sm:$0x1]  ;;  %v423_v36 = vld [vmem:[%s7221_s24 + $0x70] sm:$0xf] }
  0xb7   : > { %v1401_v18 = vsel %vm7235_vm9, %v1396_v9, %v1400_v10  ;;  %v1414_v28 = vrot.slane %v1412_v16, 5  ;;  %v1418_v29 = vrot.slane %v1416_v17, 4  ;;  %v6068_v35 = vrot.slane %v1593_v24, 9  ;;  %v424_v37 = vld [vmem:[%s7221_s24 + $0x74] sm:$0xf]  ;;  %v7004_v55 = vld [vmem:[#allocation2 + $0x9c] sm:$0xff]  }
  0xb8   : > { %v6051_v26 = vcombine.low %v1391_v14, %v1401_v18  ;;  %4744 = vmatmul.mubr.bf16.gmra.mrb[48].mxu1 %v6083_v19  ;;  %v1409_v33 = vor.u32 %v1408_v22, %v1405_v20  ;;  %v1080_v38 = vld [vmem:[#allocation2 + $0xa4] sm:$0x1]  ;;  %v664_v40 = vor.u32 %v662_v30, %v7685_v63  ;;  %844 = vst [vmem:[#allocation2 + $0xa8] sm:$0xf] %v843_v34  ;;  %v1746_v41 = vrot.slane %v1594_v25, 5 }
  0xb9   : > { %v1419_v39 = vor.u32 %v1418_v29, %v1414_v28  ;;  %v1595_v11 = vld [vmem:[#allocation2 + $0xa4] sm:$0x1]  ;;  %v1422_v44 = vshll.u32 %v1080_v38, 16  ;;  %388 = vst [vmem:[#allocation2 + $0xb0] sm:$0x1] %v387_v23  ;;  %v340_v46 = vsel %vm7225_vm6, 0, %v339_v31 }
  0xba   : > { %4582 = vmatprep.mubr.bf16.mxu0 %v6051_v26  ;;  %v1410_v42 = vrot.slane %v1409_v33, 4  ;;  %v1749_v45 = vrot.slane %v1595_v11, 5  ;;  %v665_v48 = vsel %vm7257_vm12, %v657_v51, %v664_v40  ;;  %v1748_v49 = vrot.slane %v1746_v41, 4  ;;  %341 = vst [vmem:[#allocation2 + $0xb4] sm:$0x1] %v340_v46 }
  0xbb   : > { %4583 = vmatmul.mubr.bf16.gmra.mrb[48].mxu0 %v6998_v27  ;;  %v1420_v47 = vrot.slane %v1419_v39, 4  ;;  %v1424_v53 = vrot.slane %v1422_v44, 5  ;;  %845 = vst [vmem:[#allocation2 + $0xac] sm:$0xf] %v665_v48  ;;  %v668_v57 = vshrl.u32 %v423_v36, 16  ;;  %v671_v58 = vshll.u32 %v423_v36, 16 }
  0xbc   : > { %v1415_v50 = vsel %vm7235_vm9, %v1410_v42, %v1414_v28  ;;  %v676_v60 = vshrl.u32 %v424_v37, 16  ;;  %v679_v62 = vshll.u32 %v424_v37, 16  ;;  %v1747_v51 = vsel %vm7279_vm14, %v6068_v35, %v1746_v41  ;;  %v389_v5 = vld [vmem:[#allocation2 + $0xbc] sm:$0x1]  ;;  %v342_v12 = vld [vmem:[#allocation2 + $0xc0] sm:$0x1] }
  0xbd   : > { %v1425_v52 = vsel %vm7235_vm9, %v1420_v47, %v1424_v53  ;;  %v670_v61 = vrot.slane %v668_v57, 7  ;;  %v1750_v3 = vsel %vm7279_vm14, %v1748_v49, %v1749_v45  ;;  %v390_v10 = vsel %vm7241_vm10, 0, %v389_v5  ;;  %v425_v31 = vld [vmem:[%s7221_s24 + $0x78] sm:$0xf]  ;;  %v426_v37 = vld [vmem:[%s7221_s24 + $0x7c] sm:$0xf] }
  0xbe   : > { %v6052_v0 = vcombine.low %v1415_v50, %v1425_v52  ;;  %v678_v4 = vrot.slane %v676_v60, 7  ;;  %391 = vst [vmem:[#allocation2 + $0xbc] sm:$0x1] %v390_v10  ;;  %v6084_v13 = vcombine.low %v1747_v51, %v1750_v3  ;;  %v343_v30 = vsel %vm7225_vm6, 0, %v342_v12  ;;  %v2501_v41 = vld [vmem:[#allocation2 + $0xc] sm:$0xe] }
  0xbf   : > { %v1081_v7 = vld [vmem:[#allocation2 + $0xa8] sm:$0xf]  ;;  %v673_v8 = vor.u32 %v671_v58, %v670_v61  ;;  %v674_v9 = vrot.slane %v670_v61, 4  ;;  %344 = vst [vmem:[#allocation2 + $0xc0] sm:$0x1] %v343_v30  ;;  %v685_v39 = vshrl.u32 %v425_v31, 16 }
  0xc0   : > { %4590 = vmatprep.mubr.bf16.mxu0 %v6052_v0  ;;  %v846_v27 = vld [vmem:[#allocation2 + $0xb0] sm:$0x1]  ;;  %v1427_v2 = vshrl.u32 %v1081_v7, 16  ;;  %v1430_v63 = vshll.u32 %v1081_v7, 16  ;;  %v681_v56 = vor.u32 %v679_v62, %v678_v4  ;;  %v1596_v16 = vld [vmem:[#allocation2 + $0xa8] sm:$0xe] }
  0xc1   : > { %v847_v14 = vsel %vm7225_vm6, %v666_v32, %v846_v27  ;;  %v849_v15 = vld [vmem:[#allocation2 + $0xb4] sm:$0xf]  ;;  %v683_v28 = vrot.slane %v678_v4, 4  ;;  %v6069_v38 = vrot.slane %v1596_v16, 9  ;;  %v693_v40 = vshrl.u32 %v426_v37, 16 }
  0xc2   : > { %v7003_v17 = vld [vmem:[#allocation2 + $0xa8] sm:$0xff]   ;;  %848 = vst [vmem:[#allocation2 + $0xb0] sm:$0x1] %v847_v14  ;;  %v1429_v19 = vrot.slane %v1427_v2, 4  ;;  %v682_v20 = vsel %vm7257_vm12, %v674_v9, %v681_v56  ;;  %v850_v22 = vsel %vm7249_vm11, %v673_v8, %v849_v15  ;;  %v1432_v24 = vrot.slane %v1430_v63, 5 }
  0xc3   : > { %4591 = vmatmul.mubr.bf16.gmra.mrb[52].mxu0 %v7004_v55  ;;  %v1082_v18 = vld [vmem:[#allocation2 + $0xac] sm:$0xf]  ;;  %851 = vst [vmem:[#allocation2 + $0xb4] sm:$0xf] %v850_v22  ;;  %852 = vst [vmem:[#allocation2 + $0xb8] sm:$0xf] %v682_v20  ;;  %4751 = vmatprep.mubr.bf16.mxu1 %v7003_v17 }
  0xc4   : > { %v1436_v25 = vshll.u32 %v1082_v18, 16  ;;  %v1440_v26 = vshrl.u32 %v1082_v18, 16  ;;  %v1597_v29 = vld [vmem:[#allocation2 + $0xac] sm:$0xf]  ;;  %4752 = vmatmul.mubr.bf16.gmra.mrb[52].mxu1 %v6084_v13  ;;  %v1433_v33 = vor.u32 %v1432_v24, %v1429_v19  ;;  %v696_v11 = vshll.u32 %v426_v37, 16 }
  0xc5   : > { %v1753_v36 = vrot.slane %v1597_v29, 5  ;;  %v853_v44 = vld [vmem:[#allocation2 + $0xbc] sm:$0x1]  ;;  %v688_v45 = vshll.u32 %v425_v31, 16  ;;  %v687_v48 = vrot.slane %v685_v39, 7  ;;  %v7733_v49 = vrot.slane %v693_v40, 7 }
  0xc6   : > { %v1438_v34 = vrot.slane %v1436_v25, 5  ;;  %v1442_v35 = vrot.slane %v1440_v26, 4  ;;  %v1434_v23 = vrot.slane %v1433_v33, 4  ;;  %v854_v47 = vsel %vm7225_vm6, %v683_v28, %v853_v44  ;;  %v2502_v50 = vld [vmem:[#allocation2 + $0x10] sm:$0xf]  ;;  %v7006_v8 = vld [vmem:[#allocation2 + $0xa8] sm:$0xff]  }
  0xc7   : > { %v1755_v46 = vrot.slane %v1753_v36, 4  ;;  %8720 = vst [vmem:[#allocation6_spill] sm:$0xff] %v7733_v49  ;;  %855 = vst [vmem:[#allocation2 + $0xbc] sm:$0x1] %v854_v47  ;;  %v6119_v58 = vrot.slane %v2501_v41, 9  ;;  %v1754_v52 = vsel %vm7279_vm14, %v6069_v38, %v1753_v36  ;;  %v698_v32 = vor.u32 %v696_v11, %v7733_v49 }
  0xc8   : > { %v1443_v42 = vor.u32 %v1442_v35, %v1438_v34  ;;  %v1439_v61 = vsel %vm7235_vm9, %v1434_v23, %v1438_v34  ;;  %v690_v4 = vor.u32 %v688_v45, %v687_v48  ;;  %v691_v5 = vrot.slane %v687_v48, 4  ;;  %v856_v2 = vld [vmem:[#allocation2 + $0xc0] sm:$0xf]  ;;  %v2503_v19 = vld [vmem:[#allocation2 + $0x14] sm:$0x1] }
  0xc9   : > { %v1083_v53 = vld [vmem:[#allocation2 + $0xb0] sm:$0x1]  ;;  %v2599_v13 = vrot.slane %v2502_v50, 5  ;;  %v2934_v28 = vld [vmem:[#allocation2 + $0x18] sm:$0xf]  ;;  %v2602_v41 = vrot.slane %v2503_v19, 5 }
  0xca   : > { %v1444_v55 = vrot.slane %v1443_v42, 4  ;;  %v1598_v57 = vld [vmem:[#allocation2 + $0xb0] sm:$0x1]  ;;  %v1446_v60 = vshll.u32 %v1083_v53, 16  ;;  %v7005_v62 = vld [vmem:[#allocation2 + $0xb4] sm:$0xff]   ;;  %v699_v12 = vsel %vm7257_vm12, %v691_v5, %v698_v32  ;;  %v857_v25 = vsel %vm7249_vm11, %v690_v4, %v856_v2 }
  0xcb   : > { %v1756_v0 = vrot.slane %v1598_v57, 5  ;;  %v1084_v51 = vld [vmem:[#allocation2 + $0xb4] sm:$0xf]  ;;  %v1085_v3 = vld [vmem:[#allocation2 + $0xb8] sm:$0xf]  ;;  %4759 = vmatprep.mubr.bf16.mxu1 %v7005_v62  ;;  %v2600_v34 = vsel %vm7279_vm14, %v6119_v58, %v2599_v13  ;;  %v2601_v38 = vrot.slane %v2599_v13, 4 }
  0xcc   : > { %v1448_v7 = vrot.slane %v1446_v60, 5  ;;  %v1451_v9 = vshrl.u32 %v1084_v51, 16  ;;  %v1454_v10 = vshll.u32 %v1084_v51, 16  ;;  %v1460_v27 = vshll.u32 %v1085_v3, 16  ;;  %859 = vst [vmem:[#allocation2 + $0xc4] sm:$0xf] %v699_v12 }
  0xcd   : > { %v1757_v63 = vsel %vm7279_vm14, %v1755_v46, %v1756_v0  ;;  %v1464_v56 = vshrl.u32 %v1085_v3, 16  ;;  %v1599_v18 = vld [vmem:[#allocation2 + $0xb4] sm:$0xe]  ;;  %v1600_v26 = vld [vmem:[#allocation2 + $0xb8] sm:$0xf]  ;;  %v2983_v45 = vshrl.u32 %v2934_v28, 16  ;;  %v2603_v53 = vsel %vm7279_vm14, %v2601_v38, %v2602_v41 }
  0xce   : > { %v1449_v14 = vsel %vm7235_vm9, %v1444_v55, %v1448_v7  ;;  %v6085_v15 = vcombine.low %v1754_v52, %v1757_v63  ;;  %v1453_v16 = vrot.slane %v1451_v9, 4  ;;  %v1456_v17 = vrot.slane %v1454_v10, 5  ;;  %v1086_v6 = vld [vmem:[#allocation2 + $0xbc] sm:$0x1]  ;;  %858 = vst [vmem:[#allocation2 + $0xc0] sm:$0xf] %v857_v25 }
  0xcf   : > { %v6053_v20 = vcombine.low %v1439_v61, %v1449_v14  ;;  %v1462_v22 = vrot.slane %v1460_v27, 5  ;;  %v1466_v24 = vrot.slane %v1464_v56, 4  ;;  %v1601_v30 = vld [vmem:[#allocation2 + $0xbc] sm:$0x1]  ;;  %v6070_v31 = vrot.slane %v1599_v18, 9  ;;  %v7012_v61 = vld [vmem:[#allocation2 + $0xb4] sm:$0xff]  }
  0xd0   : > { %4760 = vmatmul.mubr.bf16.gmra.mrb[56].mxu1 %v6085_v15  ;;  %v1457_v29 = vor.u32 %v1456_v17, %v1453_v16  ;;  %v1760_v33 = vrot.slane %v1600_v26, 5  ;;  %v1470_v36 = vshll.u32 %v1086_v6, 16  ;;  %v1763_v37 = vrot.slane %v1601_v30, 5  ;;  %v2935_v39 = vld [vmem:[#allocation2 + $0x1c] sm:$0xf] }
  0xd1   : > { %4598 = vmatprep.mubr.bf16.mxu0 %v6053_v20  ;;  %v1467_v35 = vor.u32 %v1466_v24, %v1462_v22  ;;  %v2936_v23 = vld [vmem:[#allocation2 + $0x20] sm:$0x1]  ;;  %v2986_v46 = vshll.u32 %v2934_v28, 16  ;;  %v1989_v47 = vld [vmem:[#allocation2 + $0xc] sm:$0xf]  ;;  %v2992_v55 = vshll.u32 %v2935_v39, 16  ;;  %v6135_v5 = vcombine.low %v2600_v34, %v2603_v53 }
  0xd2   : > { %4599 = vmatmul.mubr.bf16.gmra.mrb[56].mxu0 %v7006_v8  ;;  %v1458_v1 = vrot.slane %v1457_v29, 4  ;;  %v1761_v40 = vsel %vm7279_vm14, %v6070_v31, %v1760_v33  ;;  %v1762_v11 = vrot.slane %v1760_v33, 4  ;;  %v1472_v44 = vrot.slane %v1470_v36, 5  ;;  %v1990_v57 = vld [vmem:[#allocation2 + $0x10] sm:$0xf]  ;;  %v7013_v28 = vld [vmem:[#allocation2 + $0x18] sm:$0xff]  }
  0xd3   : > { %v1468_v42 = vrot.slane %v1467_v35, 4  ;;  %v1991_v58 = vld [vmem:[#allocation2 + $0x14] sm:$0x1]  ;;  %v2985_v52 = vrot.slane %v2983_v45, 4  ;;  %v2988_v0 = vrot.slane %v2986_v46, 5  ;;  %v2994_v51 = vrot.slane %v2992_v55, 5 }
  0xd4   : > { %v1463_v48 = vsel %vm7235_vm9, %v1458_v1, %v1462_v22  ;;  %v1764_v50 = vsel %vm7279_vm14, %v1762_v11, %v1763_v37  ;;  %v2996_v3 = vshrl.u32 %v2935_v39, 16  ;;  %v3002_v7 = vshll.u32 %v2936_v23, 16  ;;  %v2504_v22 = vld [vmem:[#allocation2 + $0x18] sm:$0xe]  ;;  %v2505_v6 = vld [vmem:[#allocation2 + $0x1c] sm:$0xf] }
  0xd5   : > { %v1473_v60 = vsel %vm7235_vm9, %v1468_v42, %v1472_v44  ;;  %v6086_v62 = vcombine.low %v1761_v40, %v1764_v50  ;;  %v7011_v4 = vld [vmem:[#allocation2 + $0xc0] sm:$0xff]   ;;  %v2038_v8 = vshrl.u32 %v1989_v47, 16  ;;  %v2041_v9 = vshll.u32 %v1989_v47, 16  ;;  %v2938_v39 = vld [vmem:[#allocation2 + $0x28] sm:$0xf] }
  0xd6   : > { %v6054_v32 = vcombine.low %v1463_v48, %v1473_v60  ;;  %v2989_v10 = vor.u32 %v2988_v0, %v2985_v52  ;;  %v2998_v27 = vrot.slane %v2996_v3, 4  ;;  %v2047_v2 = vshll.u32 %v1990_v57, 16  ;;  %4767 = vmatprep.mubr.bf16.mxu1 %v7011_v4  ;;  %v2506_v29 = vld [vmem:[#allocation2 + $0x20] sm:$0x1]  ;;  %v2937_v36 = vld [vmem:[#allocation2 + $0x24] sm:$0xf] }
  0xd7   : > { %v2051_v63 = vshrl.u32 %v1990_v57, 16  ;;  %v3004_v56 = vrot.slane %v3002_v7, 5  ;;  %v2040_v12 = vrot.slane %v2038_v8, 4  ;;  %v2043_v13 = vrot.slane %v2041_v9, 5  ;;  %v2939_v1 = vld [vmem:[#allocation2 + $0x2c] sm:$0x1] }
  0xd8   : > { %4606 = vmatprep.mubr.bf16.mxu0 %v6054_v32  ;;  %v2057_v14 = vshll.u32 %v1991_v58, 16  ;;  %4768 = vmatmul.mubr.bf16.gmra.mrb[60].mxu1 %v6086_v62  ;;  %v2990_v15 = vrot.slane %v2989_v10, 4  ;;  %v2999_v16 = vor.u32 %v2998_v27, %v2994_v51  ;;  %v2049_v17 = vrot.slane %v2047_v2, 5  ;;  %v1992_v44 = vld [vmem:[#allocation2 + $0x18] sm:$0xf]  ;;  %v7018_v46 = vld [vmem:[%s8697_s1 + $0x208] sm:$0xff]  }
  0xd9   : > { %v2053_v18 = vrot.slane %v2051_v63, 4  ;;  %v2044_v19 = vor.u32 %v2043_v13, %v2040_v12  ;;  %v6120_v30 = vrot.slane %v2504_v22, 9  ;;  %v2606_v34 = vrot.slane %v2505_v6, 5  ;;  %v1993_v45 = vld [vmem:[#allocation2 + $0x1c] sm:$0xf]  ;;  %v7019_v57 = vld [vmem:[%s8698_s2 + $0x8] sm:$0xff]  }
  0xda   : > { %4607 = vmatmul.mubr.bf16.gmra.mrb[60].mxu0 %v7012_v61  ;;  %v2059_v20 = vrot.slane %v2057_v14, 5  ;;  %v2995_v24 = vsel %vm7235_vm9, %v2990_v15, %v2994_v51  ;;  %v3000_v25 = vrot.slane %v2999_v16, 4  ;;  %v2609_v35 = vrot.slane %v2506_v29, 5  ;;  %v1994_v55 = vld [vmem:[#allocation2 + $0x20] sm:$0x1]  ;;  %v7023_v14 = vld [vmem:[%s8698_s2 + $0x10] sm:$0xff]  }
  0xdb   : > { %4808 = vmatprep.mubr.bf16.mxu0 %v6135_v5  ;;  %v2054_v26 = vor.u32 %v2053_v18, %v2049_v17  ;;  %v2045_v33 = vrot.slane %v2044_v19, 4  ;;  %v3007_v40 = vshrl.u32 %v2937_v36, 16  ;;  %v2607_v23 = vsel %vm7279_vm14, %v6120_v30, %v2606_v34  ;;  %v2507_v3 = vld [vmem:[#allocation2 + $0x24] sm:$0xe]  ;;  %v2508_v10 = vld [vmem:[#allocation2 + $0x28] sm:$0xf] }
  0xdc   : > { %v3005_v37 = vsel %vm7235_vm9, %v3000_v25, %v3004_v56  ;;  %v2608_v42 = vrot.slane %v2606_v34, 4  ;;  %v3010_v50 = vshll.u32 %v2937_v36, 16  ;;  %v3016_v53 = vshll.u32 %v2938_v39, 16  ;;  %v7061_v4 = vld [vmem:[%s8698_s2] sm:$0xff]   ;;  %v2509_v13 = vld [vmem:[#allocation2 + $0x2c] sm:$0x1] }
  0xdd   : > { %v2055_v38 = vrot.slane %v2054_v26, 4  ;;  %v6167_v11 = vcombine.low %v2995_v24, %v3005_v37  ;;  %v2050_v41 = vsel %vm7235_vm9, %v2045_v33, %v2049_v17  ;;  %v3009_v48 = vrot.slane %v3007_v40, 4  ;;  %v7062_v27 = vld [vmem:[%s8697_s1 + $0x200] sm:$0xff]   ;;  %v2940_v19 = vld [vmem:[#allocation2 + $0x30] sm:$0xf]  ;;  %v7026_v40 = vld [vmem:[%s8697_s1 + $0x218] sm:$0xff]  }
  0xde   : > { %v2610_v60 = vsel %vm7279_vm14, %v2608_v42, %v2609_v35  ;;  %v3020_v62 = vshrl.u32 %v2938_v39, 16  ;;  %v3026_v52 = vshll.u32 %v2939_v1, 16  ;;  %v3012_v61 = vrot.slane %v3010_v50, 5  ;;  %v7016_v29 = vld [vmem:[#allocation2 + $0x24] sm:$0xff]   ;;  %v2941_v33 = vld [vmem:[#allocation2 + $0x34] sm:$0xf] }
  0xdf   : > { %v2060_v47 = vsel %vm7235_vm9, %v2055_v38, %v2059_v20  ;;  %4969 = vmatprep.mubr.bf16.mxu1 %v6167_v11  ;;  %v6136_v32 = vcombine.low %v2607_v23, %v2610_v60  ;;  %v3018_v0 = vrot.slane %v3016_v53, 5  ;;  %v2062_v51 = vshrl.u32 %v1992_v44, 16  ;;  %v7022_v20 = vld [vmem:[%s8697_s1 + $0x210] sm:$0xff]   ;;  %v2942_v39 = vld [vmem:[#allocation2 + $0x38] sm:$0x1] }
  0xe0   : > { %v6103_v58 = vcombine.low %v2050_v41, %v2060_v47  ;;  %4970 = vmatmul.mubr.bf16.vlgmr.msra.gmra.mrb[64].mxu1 %v7013_v28  ;;  %v3022_v5 = vrot.slane %v3020_v62, 4  ;;  %v3028_v7 = vrot.slane %v3026_v52, 5  ;;  %v2065_v8 = vshll.u32 %v1992_v44, 16  ;;  %v1995_v1 = vld [vmem:[#allocation2 + $0x24] sm:$0xf] }
  0xe1   : > { %6861 = vmatpush3.bf16.msra.mxu1 %v7061_v4  ;;  %v2071_v9 = vshll.u32 %v1993_v45, 16  ;;  %v3013_v2 = vor.u32 %v3012_v61, %v3009_v48  ;;  %v2064_v63 = vrot.slane %v2062_v51, 4  ;;  %v2075_v56 = vshrl.u32 %v1993_v45, 16  ;;  %v1996_v44 = vld [vmem:[#allocation2 + $0x28] sm:$0xf]  ;;  %v7027_v45 = vld [vmem:[%s8698_s2 + $0x18] sm:$0xff]  }
  0xe2   : > { %4809 = vmatmul.mubr.bf16.vlgmr.msra.gmra.mrb[64].mxu0 %v6103_v58  ;;  %v2081_v12 = vshll.u32 %v1994_v55, 16  ;;  %v3023_v15 = vor.u32 %v3022_v5, %v3018_v0  ;;  %v2067_v16 = vrot.slane %v2065_v8, 5  ;;  %v6121_v18 = vrot.slane %v2507_v3, 9  ;;  %6862 = vmatprep.subr.bf16.mxu1 %v7019_v57  ;;  %v1997_v53 = vld [vmem:[#allocation2 + $0x2c] sm:$0x1]  ;;  %v7030_v62 = vld [vmem:[%s8697_s1 + $0x220] sm:$0xff]  }
  0xe3   : > { %6813 = vmatpush3.bf16.msra.mxu0 %v7062_v27  ;;  %4816 = vmatprep.mubr.bf16.mxu0 %v6136_v32  ;;  %v2073_v17 = vrot.slane %v2071_v9, 5  ;;  %v3014_v22 = vrot.slane %v3013_v2, 4  ;;  %v2077_v24 = vrot.slane %v2075_v56, 4  ;;  %v2613_v26 = vrot.slane %v2508_v10, 5  ;;  %v7031_v51 = vld [vmem:[%s8698_s2 + $0x20] sm:$0xff]  }
  0xe4   : > { %6814 = vmatprep.subr.bf16.mxu0 %v7018_v46  ;;  %v2083_v25 = vrot.slane %v2081_v12, 5  ;;  %v3024_v28 = vrot.slane %v3023_v15, 4  ;;  %v2068_v6 = vor.u32 %v2067_v16, %v2064_v63  ;;  %v2616_v30 = vrot.slane %v2509_v13, 5  ;;  %v2510_v8 = vld [vmem:[#allocation2 + $0x30] sm:$0xe]  ;;  %v7035_v16 = vld [vmem:[%s8698_s2 + $0x28] sm:$0xff]  }
  0xe5   : > { %v3031_v34 = vshrl.u32 %v2940_v19, 16  ;;  %6863 = vmatpush3.bf16.msra.mxu1 %v7019_v57  ;;  %v3019_v35 = vsel %vm7235_vm9, %v3014_v22, %v3018_v0  ;;  %v2078_v36 = vor.u32 %v2077_v24, %v2073_v17  ;;  %v2614_v37 = vsel %vm7279_vm14, %v6121_v18, %v2613_v26  ;;  %v2511_v63 = vld [vmem:[#allocation2 + $0x34] sm:$0xf]  ;;  %v2512_v15 = vld [vmem:[#allocation2 + $0x38] sm:$0x1] }
  0xe6   : > { %v2615_v38 = vrot.slane %v2613_v26, 4  ;;  %6864 = vmatprep.subr.bf16.mxu1 %v7023_v14  ;;  %v3029_v11 = vsel %vm7235_vm9, %v3024_v28, %v3028_v7  ;;  %v2069_v41 = vrot.slane %v2068_v6, 4  ;;  %v3034_v42 = vshll.u32 %v2940_v19, 16  ;;  %v2943_v22 = vld [vmem:[#allocation2 + $0x3c] sm:$0xf] }
  0xe7   : > { %6815 = vmatpush3.bf16.msra.mxu0 %v7018_v46  ;;  %v3033_v23 = vrot.slane %v3031_v34, 4  ;;  %v6168_v47 = vcombine.low %v3019_v35, %v3029_v11  ;;  %v2079_v48 = vrot.slane %v2078_v36, 4  ;;  %v3040_v50 = vshll.u32 %v2941_v33, 16  ;;  %v2944_v6 = vld [vmem:[#allocation2 + $0x40] sm:$0xf] }
  0xe8   : > { %6816 = vmatprep.subr.bf16.mxu0 %v7022_v20  ;;  %v2617_v46 = vsel %vm7279_vm14, %v2615_v38, %v2616_v30  ;;  %v2074_v55 = vsel %vm7235_vm9, %v2069_v41, %v2073_v17  ;;  %v3036_v58 = vrot.slane %v3034_v42, 5  ;;  %v3044_v60 = vshrl.u32 %v2941_v33, 16  ;;  %v7017_v33 = vld [vmem:[#allocation2 + $0x30] sm:$0xff]  }
  0xe9   : > { %v6137_v57 = vcombine.low %v2614_v37, %v2617_v46  ;;  %6865 = vmatpush3.bf16.msra.mxu1 %v7023_v14  ;;  %4977 = vmatprep.mubr.bf16.mxu1 %v6168_v47  ;;  %v2084_v52 = vsel %vm7235_vm9, %v2079_v48, %v2083_v25  ;;  %v3042_v32 = vrot.slane %v3040_v50, 5  ;;  %v3050_v61 = vshll.u32 %v2942_v39, 16  ;;  %v2945_v37 = vld [vmem:[#allocation2 + $0x44] sm:$0x1]  ;;  %v1998_v11 = vld [vmem:[#allocation2 + $0x30] sm:$0xf] }
  0xea   : > { %v2086_v0 = vshrl.u32 %v1995_v1, 16  ;;  %v6104_v3 = vcombine.low %v2074_v55, %v2084_v52  ;;  %4978 = vmatmul.mubr.bf16.gmra.mrb[68].mxu1 %v7016_v29  ;;  %v3037_v4 = vor.u32 %v3036_v58, %v3033_v23  ;;  %v3046_v5 = vrot.slane %v3044_v60, 4  ;;  %6866 = vmatprep.subr.bf16.mxu1 %v7027_v45  ;;  %v7034_v29 = vld [vmem:[%s8697_s1 + $0x228] sm:$0xff]   ;;  %v7038_v55 = vld [vmem:[%s8697_s1 + $0x230] sm:$0xff]  }
  0xeb   : > { %6817 = vmatpush3.bf16.msra.mxu0 %v7022_v20  ;;  %v2089_v7 = vshll.u32 %v1995_v1, 16  ;;  %v3052_v9 = vrot.slane %v3050_v61, 5  ;;  %v2095_v27 = vshll.u32 %v1996_v44, 16  ;;  %v2099_v2 = vshrl.u32 %v1996_v44, 16  ;;  %v2965_v59 = vld [vmem:[#allocation2 + $0x94] sm:$0xf] }
  0xec   : > { %6818 = vmatprep.subr.bf16.mxu0 %v7026_v40  ;;  %v2088_v10 = vrot.slane %v2086_v0, 4  ;;  %4817 = vmatmul.mubr.bf16.gmra.mrb[68].mxu0 %v6104_v3  ;;  %v3038_v56 = vrot.slane %v3037_v4, 4  ;;  %v3047_v12 = vor.u32 %v3046_v5, %v3042_v32  ;;  %v2105_v14 = vshll.u32 %v1997_v53, 16  ;;  %v1999_v53 = vld [vmem:[#allocation2 + $0x34] sm:$0xf] }
  0xed   : > { %v2091_v13 = vrot.slane %v2089_v7, 5  ;;  %6867 = vmatpush3.bf16.msra.mxu1 %v7027_v45  ;;  %4824 = vmatprep.mubr.bf16.mxu0 %v6137_v57  ;;  %v2097_v17 = vrot.slane %v2095_v27, 5  ;;  %v2101_v18 = vrot.slane %v2099_v2, 4  ;;  %v6122_v19 = vrot.slane %v2510_v8, 9  ;;  %v7039_v57 = vld [vmem:[%s8698_s2 + $0x30] sm:$0xff]  }
  0xee   : > { %v2620_v20 = vrot.slane %v2511_v63, 5  ;;  %v3043_v24 = vsel %vm7235_vm9, %v3038_v56, %v3042_v32  ;;  %v3048_v25 = vrot.slane %v3047_v12, 4  ;;  %v2107_v28 = vrot.slane %v2105_v14, 5  ;;  %6868 = vmatprep.subr.bf16.mxu1 %v7031_v51  ;;  %v2000_v32 = vld [vmem:[#allocation2 + $0x38] sm:$0x1] }
  0xef   : > { %6819 = vmatpush3.bf16.msra.mxu0 %v7026_v40  ;;  %v2092_v26 = vor.u32 %v2091_v13, %v2088_v10  ;;  %v2102_v30 = vor.u32 %v2101_v18, %v2097_v17  ;;  %v2623_v36 = vrot.slane %v2512_v15, 5  ;;  %v3055_v1 = vshrl.u32 %v2943_v22, 16  ;;  %v2513_v5 = vld [vmem:[#allocation2 + $0x3c] sm:$0xe]  ;;  %v2514_v7 = vld [vmem:[#allocation2 + $0x40] sm:$0xf] }
  0xf0   : > { %6820 = vmatprep.subr.bf16.mxu0 %v7030_v62  ;;  %v2621_v34 = vsel %vm7279_vm14, %v6122_v19, %v2620_v20  ;;  %v2622_v35 = vrot.slane %v2620_v20, 4  ;;  %v3053_v38 = vsel %vm7235_vm9, %v3048_v25, %v3052_v9  ;;  %v3058_v40 = vshll.u32 %v2943_v22, 16  ;;  %v2515_v2 = vld [vmem:[#allocation2 + $0x44] sm:$0x1]  ;;  %v2946_v14 = vld [vmem:[#allocation2 + $0x48] sm:$0xf] }
  0xf1   : > { %v2093_v39 = vrot.slane %v2092_v26, 4  ;;  %6869 = vmatpush3.bf16.msra.mxu1 %v7031_v51  ;;  %v6169_v23 = vcombine.low %v3043_v24, %v3053_v38  ;;  %v2103_v42 = vrot.slane %v2102_v30, 4  ;;  %v3064_v45 = vshll.u32 %v2944_v6, 16  ;;  %v2947_v26 = vld [vmem:[#allocation2 + $0x4c] sm:$0xf] }
  0xf2   : > { %v2624_v44 = vsel %vm7279_vm14, %v2622_v35, %v2623_v36  ;;  %6870 = vmatprep.subr.bf16.mxu1 %v7035_v16  ;;  %v3057_v46 = vrot.slane %v3055_v1, 4  ;;  %v3060_v50 = vrot.slane %v3058_v40, 5  ;;  %v3074_v52 = vshll.u32 %v2945_v37, 16  ;;  %v2001_v35 = vld [vmem:[#allocation2 + $0x3c] sm:$0xf] }
  0xf3   : > { %6821 = vmatpush3.bf16.msra.mxu0 %v7030_v62  ;;  %v2098_v47 = vsel %vm7235_vm9, %v2093_v39, %v2097_v17  ;;  %v6138_v48 = vcombine.low %v2621_v34, %v2624_v44  ;;  %4985 = vmatprep.mubr.bf16.mxu1 %v6169_v23  ;;  %v2108_v58 = vsel %vm7235_vm9, %v2103_v42, %v2107_v28  ;;  %v3066_v60 = vrot.slane %v3064_v45, 5  ;;  %v2002_v40 = vld [vmem:[#allocation2 + $0x40] sm:$0xf] }
  0xf4   : > { %6822 = vmatprep.subr.bf16.mxu0 %v7034_v29  ;;  %v3068_v62 = vshrl.u32 %v2944_v6, 16  ;;  %v6105_v0 = vcombine.low %v2098_v47, %v2108_v58  ;;  %4986 = vmatmul.mubr.bf16.gmra.mrb[72].mxu1 %v7017_v33  ;;  %v3061_v51 = vor.u32 %v3060_v50, %v3057_v46  ;;  %v2110_v3 = vshrl.u32 %v1998_v11, 16  ;;  %v2948_v33 = vld [vmem:[#allocation2 + $0x50] sm:$0x1] }
  0xf5   : > { %v2113_v4 = vshll.u32 %v1998_v11, 16  ;;  %v3076_v9 = vrot.slane %v3074_v52, 5  ;;  %v2119_v10 = vshll.u32 %v1999_v53, 16  ;;  %v2123_v27 = vshrl.u32 %v1999_v53, 16  ;;  %6871 = vmatpush3.bf16.msra.mxu1 %v7035_v16  ;;  %v2003_v52 = vld [vmem:[#allocation2 + $0x44] sm:$0x1] }
  0xf6   : > { %v3070_v8 = vrot.slane %v3068_v62, 4  ;;  %4825 = vmatmul.mubr.bf16.gmra.mrb[72].mxu0 %v6105_v0  ;;  %v3062_v63 = vrot.slane %v3061_v51, 4  ;;  %v2112_v56 = vrot.slane %v2110_v3, 4  ;;  %v2129_v13 = vshll.u32 %v2000_v32, 16  ;;  %6872 = vmatprep.subr.bf16.mxu1 %v7039_v57 }
  0xf7   : > { %6823 = vmatpush3.bf16.msra.mxu0 %v7034_v29  ;;  %v2115_v12 = vrot.slane %v2113_v4, 5  ;;  %4832 = vmatprep.mubr.bf16.mxu0 %v6138_v48  ;;  %v2121_v17 = vrot.slane %v2119_v10, 5  ;;  %v2125_v18 = vrot.slane %v2123_v27, 4  ;;  %v6123_v19 = vrot.slane %v2513_v5, 9  ;;  %v7020_v29 = vld [vmem:[#allocation2 + $0x3c] sm:$0xff]  }
  0xf8   : > { %6824 = vmatprep.subr.bf16.mxu0 %v7038_v55  ;;  %v3071_v15 = vor.u32 %v3070_v8, %v3066_v60  ;;  %v3067_v22 = vsel %vm7235_vm9, %v3062_v63, %v3066_v60  ;;  %v2131_v16 = vrot.slane %v2129_v13, 5  ;;  %v2627_v25 = vrot.slane %v2514_v7, 5  ;;  %v2516_v4 = vld [vmem:[#allocation2 + $0x48] sm:$0xe]  ;;  %v2517_v10 = vld [vmem:[#allocation2 + $0x4c] sm:$0xf] }
  0xf9   : > { %v2116_v24 = vor.u32 %v2115_v12, %v2112_v56  ;;  %v2126_v6 = vor.u32 %v2125_v18, %v2121_v17  ;;  %v2630_v30 = vrot.slane %v2515_v2, 5  ;;  %v3079_v34 = vshrl.u32 %v2946_v14, 16  ;;  %6873 = vmatpush3.bf16.msra.mxu1 %v7039_v57  ;;  %v2518_v12 = vld [vmem:[#allocation2 + $0x50] sm:$0x1]  ;;  %v2949_v18 = vld [vmem:[#allocation2 + $0x54] sm:$0xf] }
  0xfa   : > { %v3072_v28 = vrot.slane %v3071_v15, 4  ;;  %v2628_v38 = vsel %vm7279_vm14, %v6123_v19, %v2627_v25  ;;  %v2629_v39 = vrot.slane %v2627_v25, 4  ;;  %v3082_v1 = vshll.u32 %v2946_v14, 16 }
  0xfb   : > { %6825 = vmatpush3.bf16.msra.mxu0 %v7038_v55  ;;  %v2117_v37 = vrot.slane %v2116_v24, 4  ;;  %v2127_v42 = vrot.slane %v2126_v6, 4  ;;  %v3081_v44 = vrot.slane %v3079_v34, 4  ;;  %v3088_v45 = vshll.u32 %v2947_v26, 16 }
  0xfc   : > { %v3077_v23 = vsel %vm7235_vm9, %v3072_v28, %v3076_v9  ;;  %v2631_v50 = vsel %vm7279_vm14, %v2629_v39, %v2630_v30  ;;  %v3084_v53 = vrot.slane %v3082_v1, 5  ;;  %v3092_v62 = vshrl.u32 %v2947_v26, 16  ;;  %v2950_v26 = vld [vmem:[#allocation2 + $0x58] sm:$0xf]  ;;  %v7021_v30 = vld [vmem:[#allocation2 + $0x48] sm:$0xff]  }
  0xfd   : > { %v6170_v48 = vcombine.low %v3067_v22, %v3077_v23  ;;  %v2122_v46 = vsel %vm7235_vm9, %v2117_v37, %v2121_v17  ;;  %v2132_v57 = vsel %vm7235_vm9, %v2127_v42, %v2131_v16  ;;  %v6139_v58 = vcombine.low %v2628_v38, %v2631_v50  ;;  %v2951_v42 = vld [vmem:[#allocation2 + $0x5c] sm:$0x1] }
  0xfe   : > { %v3090_v60 = vrot.slane %v3088_v45, 5  ;;  %v6106_v32 = vcombine.low %v2122_v46, %v2132_v57  ;;  %v3085_v0 = vor.u32 %v3084_v53, %v3081_v44  ;;  %v3098_v51 = vshll.u32 %v2948_v33, 16  ;;  %v2004_v57 = vld [vmem:[#allocation2 + $0x48] sm:$0xf] }
  0xff   : > { %4993 = vmatprep.mubr.bf16.mxu1 %v6170_v48  ;;  %v2134_v3 = vshrl.u32 %v2001_v35, 16  ;;  %v3094_v5 = vrot.slane %v3092_v62, 4  ;;  %v2137_v7 = vshll.u32 %v2001_v35, 16  ;;  %v2143_v8 = vshll.u32 %v2002_v40, 16 }
 0x100   : > { %4994 = vmatmul.mubr.bf16.gmra.mrb[76].mxu1 %v7020_v29  ;;  %v2147_v9 = vshrl.u32 %v2002_v40, 16  ;;  %4833 = vmatmul.mubr.bf16.gmra.mrb[76].mxu0 %v6106_v32  ;;  %v3086_v27 = vrot.slane %v3085_v0, 4  ;;  %v3100_v2 = vrot.slane %v3098_v51, 5  ;;  %v2153_v56 = vshll.u32 %v2003_v52, 16  ;;  %v2006_v0 = vld [vmem:[#allocation2 + $0x50] sm:$0x1] }
 0x101   : > { %v2136_v63 = vrot.slane %v2134_v3, 4  ;;  %4840 = vmatprep.mubr.bf16.mxu0 %v6139_v58  ;;  %v3095_v13 = vor.u32 %v3094_v5, %v3090_v60  ;;  %v2139_v14 = vrot.slane %v2137_v7, 5  ;;  %v2145_v15 = vrot.slane %v2143_v8, 5  ;;  %v2005_v58 = vld [vmem:[#allocation2 + $0x4c] sm:$0xf] }
 0x102   : > { %v7827_v41 = vpop.f32.mrb[0].mxu0  ;;  %v2149_v17 = vrot.slane %v2147_v9, 4  ;;  %v3091_v22 = vsel %vm7235_vm9, %v3086_v27, %v3090_v60  ;;  %v2155_v24 = vrot.slane %v2153_v56, 5  ;;  %v6124_v16 = vrot.slane %v2516_v4, 9  ;;  %v2519_v51 = vld [vmem:[#allocation2 + $0x54] sm:$0xe] }
 0x103   : > { %v7841_v61 = vpop.f32.mrb[1].mxu0  ;;  %v7843_v20 = vpop.f32.mrb[0].mxu1  ;;  %v2634_v25 = vrot.slane %v2517_v10, 5  ;;  %v3096_v28 = vrot.slane %v3095_v13, 4  ;;  %v2140_v6 = vor.u32 %v2139_v14, %v2136_v63  ;;  %v2637_v33 = vrot.slane %v2518_v12, 5 }
 0x104   : > { %v7847_v36 = vpop.f32.mrb[1].mxu1  ;;  %v7851_v11 = vpop.f32.mrb[2].mxu0  ;;  %v2150_v29 = vor.u32 %v2149_v17, %v2145_v15  ;;  %v3103_v37 = vshrl.u32 %v2949_v18, 16  ;;  %v3106_v38 = vshll.u32 %v2949_v18, 16  ;;  %v3112_v44 = vshll.u32 %v2950_v26, 16 }
 0x105   : > { %v7855_v47 = vpop.f32.mrb[2].mxu1  ;;  %v7861_v55 = vpop.f32.mrb[3].mxu0  ;;  %v2635_v34 = vsel %vm7279_vm14, %v6124_v16, %v2634_v25  ;;  %v2636_v35 = vrot.slane %v2634_v25, 4  ;;  %v3101_v1 = vsel %vm7235_vm9, %v3096_v28, %v3100_v2  ;;  %v2141_v40 = vrot.slane %v2140_v6, 4  ;;  %v2520_v9 = vld [vmem:[#allocation2 + $0x58] sm:$0xf] }
 0x106   : > { %v7865_v19 = vpop.f32.mrb[3].mxu1  ;;  %v2151_v23 = vrot.slane %v2150_v29, 4  ;;  %v6171_v48 = vcombine.low %v3091_v22, %v3101_v1  ;;  %v3105_v50 = vrot.slane %v3103_v37, 4  ;;  %v3108_v53 = vrot.slane %v3106_v38, 5  ;;  %v2521_v10 = vld [vmem:[#allocation2 + $0x5c] sm:$0x1] }
 0x107   : > { %v2638_v46 = vsel %vm7279_vm14, %v2636_v35, %v2637_v33  ;;  %v2146_v60 = vsel %vm7235_vm9, %v2141_v40, %v2145_v15  ;;  %v3114_v32 = vrot.slane %v3112_v44, 5  ;;  %v3116_v7 = vshrl.u32 %v2950_v26, 16  ;;  %v2952_v12 = vld [vmem:[#allocation2 + $0x60] sm:$0xf]  ;;  %v2953_v18 = vld [vmem:[#allocation2 + $0x64] sm:$0xf] }
 0x108   : > { %v2156_v62 = vsel %vm7235_vm9, %v2151_v23, %v2155_v24  ;;  %v6140_v52 = vcombine.low %v2635_v34, %v2638_v46  ;;  %5001 = vmatprep.mubr.bf16.mxu1 %v6171_v48  ;;  %v3109_v5 = vor.u32 %v3108_v53, %v3105_v50  ;;  %v3122_v8 = vshll.u32 %v2951_v42, 16  ;;  %v7024_v38 = vld [vmem:[#allocation2 + $0x54] sm:$0xff]   ;;  %v2954_v1 = vld [vmem:[#allocation2 + $0x68] sm:$0x1] }
 0x109   : > { %v6107_v4 = vcombine.low %v2146_v60, %v2156_v62  ;;  %5002 = vmatmul.mubr.bf16.gmra.mrb[80].mxu1 %v7021_v30  ;;  %v2158_v27 = vshrl.u32 %v2004_v57, 16  ;;  %v2161_v2 = vshll.u32 %v2004_v57, 16  ;;  %v2167_v63 = vshll.u32 %v2005_v58, 16  ;;  %v2007_v53 = vld [vmem:[#allocation2 + $0x54] sm:$0xf] }
 0x10a   : > { %v2171_v56 = vshrl.u32 %v2005_v58, 16  ;;  %v3110_v13 = vrot.slane %v3109_v5, 4  ;;  %v3118_v14 = vrot.slane %v3116_v7, 4  ;;  %v3124_v15 = vrot.slane %v3122_v8, 5  ;;  %v2009_v8 = vld [vmem:[#allocation2 + $0x5c] sm:$0x1] }
 0x10b   : > { %4841 = vmatmul.mubr.bf16.gmra.mrb[80].mxu0 %v6107_v4  ;;  %v2177_v17 = vshll.u32 %v2006_v0, 16  ;;  %v2160_v22 = vrot.slane %v2158_v27, 4  ;;  %v2163_v24 = vrot.slane %v2161_v2, 5  ;;  %v2169_v16 = vrot.slane %v2167_v63, 5  ;;  %v2522_v63 = vld [vmem:[#allocation2 + $0x60] sm:$0xe] }
 0x10c   : > { %4848 = vmatprep.mubr.bf16.mxu0 %v6140_v52  ;;  %v2173_v25 = vrot.slane %v2171_v56, 4  ;;  %v3115_v26 = vsel %vm7235_vm9, %v3110_v13, %v3114_v32  ;;  %v3119_v28 = vor.u32 %v3118_v14, %v3114_v32  ;;  %v6125_v29 = vrot.slane %v2519_v51, 9  ;;  %v2008_v32 = vld [vmem:[#allocation2 + $0x58] sm:$0xf]  ;;  %v2523_v56 = vld [vmem:[#allocation2 + $0x64] sm:$0xf] }
 0x10d   : > { %v2179_v6 = vrot.slane %v2177_v17, 5  ;;  %v2164_v30 = vor.u32 %v2163_v24, %v2160_v22  ;;  %v2641_v34 = vrot.slane %v2520_v9, 5  ;;  %v2644_v35 = vrot.slane %v2521_v10, 5  ;;  %v2524_v22 = vld [vmem:[#allocation2 + $0x68] sm:$0x1] }
 0x10e   : > { %v2174_v33 = vor.u32 %v2173_v25, %v2169_v16  ;;  %v3120_v37 = vrot.slane %v3119_v28, 4  ;;  %v3127_v40 = vshrl.u32 %v2952_v12, 16  ;;  %v3130_v23 = vshll.u32 %v2952_v12, 16  ;;  %v2955_v28 = vld [vmem:[#allocation2 + $0x6c] sm:$0xf] }
 0x10f   : > { %v3136_v42 = vshll.u32 %v2953_v18, 16  ;;  %v2165_v44 = vrot.slane %v2164_v30, 4  ;;  %v2642_v46 = vsel %vm7279_vm14, %v6125_v29, %v2641_v34  ;;  %v2643_v50 = vrot.slane %v2641_v34, 4 }
 0x110   : > { %v2175_v48 = vrot.slane %v2174_v33, 4  ;;  %v3125_v58 = vsel %vm7235_vm9, %v3120_v37, %v3124_v15  ;;  %v3129_v60 = vrot.slane %v3127_v40, 4  ;;  %v3132_v62 = vrot.slane %v3130_v23, 5 }
 0x111   : > { %v7871_v39 = vpop.f32.mrb[4].mxu1  ;;  %v3138_v52 = vrot.slane %v3136_v42, 5  ;;  %v6172_v51 = vcombine.low %v3115_v26, %v3125_v58  ;;  %v2170_v4 = vsel %vm7235_vm9, %v2165_v44, %v2169_v16  ;;  %v2645_v7 = vsel %vm7279_vm14, %v2643_v50, %v2644_v35  ;;  %v7025_v50 = vld [vmem:[#allocation2 + $0x60] sm:$0xff]  }
 0x112   : > { %v7875_v45 = vpop.f32.mrb[5].mxu1  ;;  %v2180_v5 = vsel %vm7235_vm9, %v2175_v48, %v2179_v6  ;;  %v6141_v10 = vcombine.low %v2642_v46, %v2645_v7  ;;  %v3133_v27 = vor.u32 %v3132_v62, %v3129_v60  ;;  %v3140_v2 = vshrl.u32 %v2953_v18, 16 }
 0x113   : > { %v7883_v3 = vpop.f32.mrb[4].mxu0  ;;  %v6108_v9 = vcombine.low %v2170_v4, %v2180_v5  ;;  %v7901_v12 = vpop.f32.mrb[6].mxu1  ;;  %5009 = vmatprep.mubr.bf16.mxu1 %v6172_v51  ;;  %v3146_v13 = vshll.u32 %v2954_v1, 16  ;;  %v2182_v14 = vshrl.u32 %v2007_v53, 16  ;;  %v2185_v15 = vshll.u32 %v2007_v53, 16 }
 0x114   : > { %v7889_v57 = vpop.f32.mrb[5].mxu0  ;;  %v2191_v17 = vshll.u32 %v2008_v32, 16  ;;  %5010 = vmatmul.mubr.bf16.gmra.mrb[84].mxu1 %v7024_v38  ;;  %v3134_v24 = vrot.slane %v3133_v27, 4  ;;  %v3142_v16 = vrot.slane %v3140_v2, 4  ;;  %v2195_v25 = vshrl.u32 %v2008_v32, 16  ;;  %v7907_v60 = vpop.f32.mrb[7].mxu1 }
 0x115   : > { %v7893_v0 = vpop.f32.mrb[6].mxu0  ;;  %4849 = vmatmul.mubr.bf16.gmra.mrb[84].mxu0 %v6108_v9  ;;  %v2201_v26 = vshll.u32 %v2009_v8, 16  ;;  %v3148_v6 = vrot.slane %v3146_v13, 5  ;;  %v2184_v18 = vrot.slane %v2182_v14, 4  ;;  %v2187_v29 = vrot.slane %v2185_v15, 5 }
 0x116   : > { %4856 = vmatprep.mubr.bf16.mxu0 %v6141_v10  ;;  %v2193_v30 = vrot.slane %v2191_v17, 5  ;;  %v3139_v33 = vsel %vm7235_vm9, %v3134_v24, %v3138_v52  ;;  %v3143_v34 = vor.u32 %v3142_v16, %v3138_v52  ;;  %v2197_v35 = vrot.slane %v2195_v25, 4  ;;  %v2956_v1 = vld [vmem:[#allocation2 + $0x70] sm:$0xf]  ;;  %v7905_v44 = vpop.f32.mrb[7].mxu0 }
 0x117   : > { %v2203_v37 = vrot.slane %v2201_v26, 5  ;;  %v2188_v40 = vor.u32 %v2187_v29, %v2184_v18  ;;  %v6126_v23 = vrot.slane %v2522_v63, 9  ;;  %v2648_v38 = vrot.slane %v2523_v56, 5  ;;  %v2957_v51 = vld [vmem:[#allocation2 + $0x74] sm:$0x1] }
 0x118   : > { %v2651_v42 = vrot.slane %v2524_v22, 5  ;;  %v3144_v48 = vrot.slane %v3143_v34, 4  ;;  %v2198_v46 = vor.u32 %v2197_v35, %v2193_v30  ;;  %v3151_v53 = vshrl.u32 %v2955_v28, 16  ;;  %v2010_v27 = vld [vmem:[#allocation2 + $0x60] sm:$0xf] }
 0x119   : > { %v3154_v58 = vshll.u32 %v2955_v28, 16  ;;  %v2189_v62 = vrot.slane %v2188_v40, 4  ;;  %v2649_v52 = vsel %vm7279_vm14, %v6126_v23, %v2648_v38  ;;  %v2650_v32 = vrot.slane %v2648_v38, 4  ;;  %v7915_v2 = vpop.f32.mrb[8].mxu1  ;;  %v2011_v15 = vld [vmem:[#allocation2 + $0x64] sm:$0xf] }
 0x11a   : > { %v3160_v4 = vshll.u32 %v2956_v1, 16  ;;  %v3149_v7 = vsel %vm7235_vm9, %v3144_v48, %v3148_v6  ;;  %v2199_v8 = vrot.slane %v2198_v46, 4  ;;  %v3153_v9 = vrot.slane %v3151_v53, 4  ;;  %v2012_v17 = vld [vmem:[#allocation2 + $0x68] sm:$0x1]  ;;  %v7925_v18 = vpop.f32.mrb[9].mxu1 }
 0x11b   : > { %v7911_v5 = vpop.f32.mrb[8].mxu0  ;;  %v3156_v10 = vrot.slane %v3154_v58, 5  ;;  %v6173_v63 = vcombine.low %v3139_v33, %v3149_v7  ;;  %v2194_v56 = vsel %vm7235_vm9, %v2189_v62, %v2193_v30  ;;  %v2652_v13 = vsel %vm7279_vm14, %v2650_v32, %v2651_v42  ;;  %v2525_v28 = vld [vmem:[#allocation2 + $0x6c] sm:$0xe]  ;;  %v2526_v6 = vld [vmem:[#allocation2 + $0x70] sm:$0xf] }
 0x11c   : > { %v3162_v14 = vrot.slane %v3160_v4, 5  ;;  %v7921_v22 = vpop.f32.mrb[9].mxu0  ;;  %v2204_v24 = vsel %vm7235_vm9, %v2199_v8, %v2203_v37  ;;  %v6142_v16 = vcombine.low %v2649_v52, %v2652_v13  ;;  %v3164_v26 = vshrl.u32 %v2956_v1, 16  ;;  %v2527_v35 = vld [vmem:[#allocation2 + $0x74] sm:$0x1] }
 0x11d   : > { %v3157_v25 = vor.u32 %v3156_v10, %v3153_v9  ;;  %5017 = vmatprep.mubr.bf16.mxu1 %v6173_v63  ;;  %v6109_v29 = vcombine.low %v2194_v56, %v2204_v24  ;;  %v3170_v30 = vshll.u32 %v2957_v51, 16  ;;  %v2206_v33 = vshrl.u32 %v2010_v27, 16  ;;  %v2958_v40 = vld [vmem:[#allocation2 + $0x78] sm:$0xf]  ;;  %v7927_v23 = vpop.f32.mrb[10].mxu0  ;;  %v7931_v10 = vpop.f32.mrb[10].mxu1 }
 0x11e   : > { %v2209_v34 = vshll.u32 %v2010_v27, 16  ;;  %5018 = vmatmul.mubr.bf16.gmra.mrb[88].mxu1 %v7025_v50  ;;  %v3166_v42 = vrot.slane %v3164_v26, 4  ;;  %v2215_v37 = vshll.u32 %v2011_v15, 16  ;;  %v2219_v48 = vshrl.u32 %v2011_v15, 16  ;;  %v2959_v62 = vld [vmem:[#allocation2 + $0x7c] sm:$0xf] }
 0x11f   : > { %v3158_v38 = vrot.slane %v3157_v25, 4  ;;  %4857 = vmatmul.mubr.bf16.gmra.mrb[88].mxu0 %v6109_v29  ;;  %v3172_v1 = vrot.slane %v3170_v30, 5  ;;  %v2208_v46 = vrot.slane %v2206_v33, 4  ;;  %v2225_v58 = vshll.u32 %v2012_v17, 16  ;;  %v7028_v56 = vld [vmem:[#allocation2 + $0x6c] sm:$0xff]   ;;  %v7933_v17 = vpop.f32.mrb[11].mxu0 }
 0x120   : > { %v2211_v53 = vrot.slane %v2209_v34, 5  ;;  %4864 = vmatprep.mubr.bf16.mxu0 %v6142_v16  ;;  %v3167_v32 = vor.u32 %v3166_v42, %v3162_v14  ;;  %v2217_v51 = vrot.slane %v2215_v37, 5  ;;  %v2221_v4 = vrot.slane %v2219_v48, 4  ;;  %v2960_v25 = vld [vmem:[#allocation2 + $0x80] sm:$0x1]  ;;  %v7937_v29 = vpop.f32.mrb[11].mxu1 }
 0x121   : > { %v3163_v52 = vsel %vm7235_vm9, %v3158_v38, %v3162_v14  ;;  %v2227_v8 = vrot.slane %v2225_v58, 5  ;;  %v6127_v50 = vrot.slane %v2525_v28, 9  ;;  %v2655_v9 = vrot.slane %v2526_v6, 5  ;;  %v2013_v34 = vld [vmem:[#allocation2 + $0x6c] sm:$0xf] }
 0x122   : > { %v2212_v7 = vor.u32 %v2211_v53, %v2208_v46  ;;  %v3168_v27 = vrot.slane %v3167_v32, 4  ;;  %v2222_v63 = vor.u32 %v2221_v4, %v2217_v51  ;;  %v2658_v13 = vrot.slane %v2527_v35, 5  ;;  %v2015_v4 = vld [vmem:[#allocation2 + $0x74] sm:$0x1] }
 0x123   : > { %v3175_v15 = vshrl.u32 %v2958_v40, 16  ;;  %v2656_v16 = vsel %vm7279_vm14, %v6127_v50, %v2655_v9  ;;  %v2657_v14 = vrot.slane %v2655_v9, 4  ;;  %v3178_v26 = vshll.u32 %v2958_v40, 16  ;;  %v2014_v40 = vld [vmem:[#allocation2 + $0x70] sm:$0xf] }
 0x124   : > { %v2213_v24 = vrot.slane %v2212_v7, 4  ;;  %v3173_v28 = vsel %vm7235_vm9, %v3168_v27, %v3172_v1  ;;  %v2223_v6 = vrot.slane %v2222_v63, 4  ;;  %v3184_v33 = vshll.u32 %v2959_v62, 16  ;;  %v2528_v7 = vld [vmem:[#allocation2 + $0x78] sm:$0xe] }
 0x125   : > { %v3177_v30 = vrot.slane %v3175_v15, 4  ;;  %v6174_v38 = vcombine.low %v3163_v52, %v3173_v28  ;;  %v2659_v37 = vsel %vm7279_vm14, %v2657_v14, %v2658_v13  ;;  %v3180_v48 = vrot.slane %v3178_v26, 5  ;;  %v2529_v27 = vld [vmem:[#allocation2 + $0x7c] sm:$0xf]  ;;  %v2530_v63 = vld [vmem:[#allocation2 + $0x80] sm:$0x1] }
 0x126   : > { %v2218_v42 = vsel %vm7235_vm9, %v2213_v24, %v2217_v51  ;;  %v2228_v1 = vsel %vm7235_vm9, %v2223_v6, %v2227_v8  ;;  %v6143_v53 = vcombine.low %v2656_v16, %v2659_v37  ;;  %v3186_v58 = vrot.slane %v3184_v33, 5 }
 0x127   : > { %v3188_v32 = vshrl.u32 %v2959_v62, 16  ;;  %5025 = vmatprep.mubr.bf16.mxu1 %v6174_v38  ;;  %v6110_v52 = vcombine.low %v2218_v42, %v2228_v1  ;;  %v3181_v50 = vor.u32 %v3180_v48, %v3177_v30  ;;  %v3194_v9 = vshll.u32 %v2960_v25, 16  ;;  %v2961_v30 = vld [vmem:[#allocation2 + $0x84] sm:$0xf]  ;;  %v2962_v48 = vld [vmem:[#allocation2 + $0x88] sm:$0xf] }
 0x128   : > { %v2230_v51 = vshrl.u32 %v2013_v34, 16  ;;  %5026 = vmatmul.mubr.bf16.gmra.mrb[92].mxu1 %v7028_v56  ;;  %v2233_v15 = vshll.u32 %v2013_v34, 16  ;;  %v2239_v24 = vshll.u32 %v2014_v40, 16  ;;  %v2243_v14 = vshrl.u32 %v2014_v40, 16 }
 0x129   : > { %v7947_v46 = vpop.f32.mrb[12].mxu1  ;;  %v3190_v13 = vrot.slane %v3188_v32, 4  ;;  %4865 = vmatmul.mubr.bf16.gmra.mrb[92].mxu0 %v6110_v52  ;;  %v3182_v26 = vrot.slane %v3181_v50, 4  ;;  %v3196_v8 = vrot.slane %v3194_v9, 5  ;;  %v2249_v28 = vshll.u32 %v2015_v4, 16 }
 0x12a   : > { %v2232_v16 = vrot.slane %v2230_v51, 4  ;;  %4872 = vmatprep.mubr.bf16.mxu0 %v6143_v53  ;;  %v2235_v6 = vrot.slane %v2233_v15, 5  ;;  %v2241_v33 = vrot.slane %v2239_v24, 5  ;;  %v2245_v38 = vrot.slane %v2243_v14, 4  ;;  %v7955_v40 = vpop.f32.mrb[13].mxu1  ;;  %v7029_v53 = vld [vmem:[#allocation2 + $0x78] sm:$0xff]  }
 0x12b   : > { %v7941_v35 = vpop.f32.mrb[12].mxu0  ;;  %v3191_v62 = vor.u32 %v3190_v13, %v3186_v58  ;;  %v3187_v56 = vsel %vm7235_vm9, %v3182_v26, %v3186_v58  ;;  %v2251_v42 = vrot.slane %v2249_v28, 5  ;;  %v6128_v34 = vrot.slane %v2528_v7, 9  ;;  %v2963_v51 = vld [vmem:[#allocation2 + $0x8c] sm:$0x1] }
 0x12c   : > { %v7951_v25 = vpop.f32.mrb[13].mxu0  ;;  %v2662_v37 = vrot.slane %v2529_v27, 5  ;;  %v2236_v32 = vor.u32 %v2235_v6, %v2232_v16  ;;  %v2246_v4 = vor.u32 %v2245_v38, %v2241_v33  ;;  %v2665_v52 = vrot.slane %v2530_v63, 5  ;;  %v2016_v26 = vld [vmem:[#allocation2 + $0x78] sm:$0xf]  ;;  %v7963_v16 = vpop.f32.mrb[14].mxu1 }
 0x12d   : > { %v3192_v1 = vrot.slane %v3191_v62, 4  ;;  %v3199_v13 = vshrl.u32 %v2961_v30, 16  ;;  %v3202_v15 = vshll.u32 %v2961_v30, 16  ;;  %v7959_v24 = vpop.f32.mrb[14].mxu0  ;;  %v3208_v14 = vshll.u32 %v2962_v48, 16  ;;  %8721 = vst [vmem:[#allocation7_spill] sm:$0xff] %v7963_v16 }
 0x12e   : > { %v2663_v50 = vsel %vm7279_vm14, %v6128_v34, %v2662_v37  ;;  %v2664_v9 = vrot.slane %v2662_v37, 4  ;;  %v2237_v7 = vrot.slane %v2236_v32, 4  ;;  %v2247_v27 = vrot.slane %v2246_v4, 4  ;;  %v2017_v38 = vld [vmem:[#allocation2 + $0x7c] sm:$0xf]  ;;  %v7971_v4 = vpop.f32.mrb[15].mxu0 }
 0x12f   : > { %v3197_v58 = vsel %vm7235_vm9, %v3192_v1, %v3196_v8  ;;  %v3201_v62 = vrot.slane %v3199_v13, 4  ;;  %v3204_v6 = vrot.slane %v3202_v15, 5  ;;  %v2018_v34 = vld [vmem:[#allocation2 + $0x80] sm:$0x1]  ;;  %v3210_v1 = vrot.slane %v3208_v14, 5 }
 0x130   : > { %v6175_v28 = vcombine.low %v3187_v56, %v3197_v58  ;;  %v2666_v63 = vsel %vm7279_vm14, %v2664_v9, %v2665_v52  ;;  %v2242_v30 = vsel %vm7235_vm9, %v2237_v7, %v2241_v33  ;;  %v2252_v8 = vsel %vm7235_vm9, %v2247_v27, %v2251_v42  ;;  %v2531_v32 = vld [vmem:[#allocation2 + $0x84] sm:$0xe]  ;;  %v2532_v9 = vld [vmem:[#allocation2 + $0x88] sm:$0xf]  ;;  %v2533_v13 = vld [vmem:[#allocation2 + $0x8c] sm:$0x1] }
 0x131   : > { %v6144_v37 = vcombine.low %v2663_v50, %v2666_v63  ;;  %v6111_v56 = vcombine.low %v2242_v30, %v2252_v8  ;;  %v3205_v58 = vor.u32 %v3204_v6, %v3201_v62  ;;  %v3212_v31 = vshrl.u32 %v2962_v48, 16  ;;  %v2964_v7 = vld [vmem:[#allocation2 + $0x90] sm:$0xf] }
 0x132   : > { %5033 = vmatprep.mubr.bf16.mxu1 %v6175_v28  ;;  %v3218_v52 = vshll.u32 %v2963_v51, 16  ;;  %v2254_v15 = vshrl.u32 %v2016_v26, 16  ;;  %v2257_v43 = vshll.u32 %v2016_v26, 16  ;;  %v2263_v49 = vshll.u32 %v2017_v38, 16 }
 0x133   : > { %5034 = vmatmul.mubr.bf16.gmra.mrb[96].mxu1 %v7029_v53  ;;  %v2267_v33 = vshrl.u32 %v2017_v38, 16  ;;  %4873 = vmatmul.mubr.bf16.gmra.mrb[96].mxu0 %v6111_v56  ;;  %v3206_v42 = vrot.slane %v3205_v58, 4  ;;  %v3214_v50 = vrot.slane %v3212_v31, 4  ;;  %v2273_v14 = vshll.u32 %v2018_v34, 16  ;;  %v7032_v58 = vld [vmem:[#allocation2 + $0x84] sm:$0xff]  }
 0x134   : > { %v3220_v27 = vrot.slane %v3218_v52, 5  ;;  %4880 = vmatprep.mubr.bf16.mxu0 %v6144_v37  ;;  %v2256_v28 = vrot.slane %v2254_v15, 4  ;;  %v2259_v63 = vrot.slane %v2257_v43, 5  ;;  %v2265_v62 = vrot.slane %v2263_v49, 5  ;;  %v2966_v31 = vld [vmem:[#allocation2 + $0x98] sm:$0x1] }
 0x135   : > { %v2269_v48 = vrot.slane %v2267_v33, 4  ;;  %v3211_v51 = vsel %vm7235_vm9, %v3206_v42, %v3210_v1  ;;  %v3215_v53 = vor.u32 %v3214_v50, %v3210_v1  ;;  %v2275_v6 = vrot.slane %v2273_v14, 5  ;;  %v2019_v42 = vld [vmem:[#allocation2 + $0x84] sm:$0xf]  ;;  %v7977_v1 = vpop.f32.mrb[15].mxu1 }
 0x136   : > { %v6129_v26 = vrot.slane %v2531_v32, 9  ;;  %v2260_v30 = vor.u32 %v2259_v63, %v2256_v28  ;;  %v2669_v8 = vrot.slane %v2532_v9, 5  ;;  %v2672_v16 = vrot.slane %v2533_v13, 5  ;;  %v2020_v14 = vld [vmem:[#allocation2 + $0x88] sm:$0xf] }
 0x137   : > { %v2270_v38 = vor.u32 %v2269_v48, %v2265_v62  ;;  %v3216_v56 = vrot.slane %v3215_v53, 4  ;;  %v3223_v52 = vshrl.u32 %v2964_v7, 16  ;;  %v3226_v34 = vshll.u32 %v2964_v7, 16  ;;  %v7042_v7 = vld [vmem:[%s8697_s1 + $0x238] sm:$0xff]  }
 0x138   : > { %v3232_v37 = vshll.u32 %v2965_v59, 16  ;;  %v2261_v15 = vrot.slane %v2260_v30, 4  ;;  %v2670_v49 = vsel %vm7279_vm14, %v6129_v26, %v2669_v8  ;;  %v2671_v33 = vrot.slane %v2669_v8, 4  ;;  %v2021_v26 = vld [vmem:[#allocation2 + $0x8c] sm:$0x1]  ;;  %6826 = vmatprep.subr.bf16.mxu0 %v7042_v7 }
 0x139   : > { %v2271_v43 = vrot.slane %v2270_v38, 4  ;;  %v3221_v32 = vsel %vm7235_vm9, %v3216_v56, %v3220_v27  ;;  %v3225_v9 = vrot.slane %v3223_v52, 4  ;;  %v3228_v13 = vrot.slane %v3226_v34, 5  ;;  %v7043_v56 = vld [vmem:[%s8698_s2 + $0x38] sm:$0xff]   ;;  %6827 = vmatpush3.bf16.msra.mxu0 %v7042_v7  ;;  %v2535_v7 = vld [vmem:[#allocation2 + $0x94] sm:$0xf] }
 0x13a   : > { %v3234_v50 = vrot.slane %v3232_v37, 5  ;;  %v6176_v28 = vcombine.low %v3211_v51, %v3221_v32  ;;  %v2266_v63 = vsel %vm7235_vm9, %v2261_v15, %v2265_v62  ;;  %v2673_v53 = vsel %vm7279_vm14, %v2671_v33, %v2672_v16  ;;  %v2534_v32 = vld [vmem:[#allocation2 + $0x90] sm:$0xe]  ;;  %6874 = vmatprep.subr.bf16.mxu1 %v7043_v56 }
 0x13b   : > { %v2276_v48 = vsel %vm7235_vm9, %v2271_v43, %v2275_v6  ;;  %v6145_v30 = vcombine.low %v2670_v49, %v2673_v53  ;;  %v3229_v38 = vor.u32 %v3228_v13, %v3225_v9  ;;  %v3236_v8 = vshrl.u32 %v2965_v59, 16  ;;  %6875 = vmatpush3.bf16.msra.mxu1 %v7043_v56  ;;  %v2967_v53 = vld [vmem:[#allocation2 + $0x9c] sm:$0xf]  ;;  %v2969_v56 = vld [vmem:[#allocation2 + $0xa4] sm:$0x1] }
 0x13c   : > { %v6112_v27 = vcombine.low %v2266_v63, %v2276_v48  ;;  %5041 = vmatprep.mubr.bf16.mxu1 %v6176_v28  ;;  %v3242_v51 = vshll.u32 %v2966_v31, 16  ;;  %v2278_v52 = vshrl.u32 %v2019_v42, 16  ;;  %v2281_v62 = vshll.u32 %v2019_v42, 16  ;;  %v2536_v28 = vld [vmem:[#allocation2 + $0x98] sm:$0x1] }
 0x13d   : > { %v2287_v34 = vshll.u32 %v2020_v14, 16  ;;  %5042 = vmatmul.mubr.bf16.gmra.mrb[100].mxu1 %v7032_v58  ;;  %v3230_v6 = vrot.slane %v3229_v38, 4  ;;  %v3238_v16 = vrot.slane %v3236_v8, 4  ;;  %v2291_v37 = vshrl.u32 %v2020_v14, 16 }
 0x13e   : > { %4881 = vmatmul.mubr.bf16.gmra.mrb[100].mxu0 %v6112_v27  ;;  %v2297_v15 = vshll.u32 %v2021_v26, 16  ;;  %v3244_v43 = vrot.slane %v3242_v51, 5  ;;  %v2280_v59 = vrot.slane %v2278_v52, 4  ;;  %v2283_v49 = vrot.slane %v2281_v62, 5  ;;  %v2968_v26 = vld [vmem:[#allocation2 + $0xa0] sm:$0xf] }
 0x13f   : > { %4888 = vmatprep.mubr.bf16.mxu0 %v6145_v30  ;;  %v2289_v33 = vrot.slane %v2287_v34, 5  ;;  %v3235_v31 = vsel %vm7235_vm9, %v3230_v6, %v3234_v50  ;;  %v3239_v9 = vor.u32 %v3238_v16, %v3234_v50  ;;  %v2293_v42 = vrot.slane %v2291_v37, 4  ;;  %v7033_v50 = vld [vmem:[#allocation2 + $0x90] sm:$0xff]   ;;  %v8005_v62 = vpop.f32.mrb[16].mxu0  ;;  %v8015_v37 = vpop.f32.mrb[16].mxu1 }
 0x140   : > { %v2299_v13 = vrot.slane %v2297_v15, 5  ;;  %v2284_v58 = vor.u32 %v2283_v49, %v2280_v59  ;;  %v6334_v14 = vadd.f32 %v7841_v61, %v7827_v41  ;;  %v6446_v63 = vadd.f32 %v7847_v36, %v7843_v20  ;;  %v2022_v16 = vld [vmem:[#allocation2 + $0x90] sm:$0xf] }
 0x141   : > { %v6337_v48 = vadd.f32 %v7861_v55, %v7851_v11  ;;  %v3240_v27 = vrot.slane %v3239_v9, 4  ;;  %v2294_v30 = vor.u32 %v2293_v42, %v2289_v33  ;;  %v6449_v38 = vadd.f32 %v7865_v19, %v7855_v47  ;;  %v8019_v9 = vpop.f32.mrb[17].mxu0 }
 0x142   : > { %v6130_v8 = vrot.slane %v2534_v32, 9  ;;  %v2285_v51 = vrot.slane %v2284_v58, 4  ;;  %v8003_v52 = vadd.f32 %v6446_v63, %v6334_v14  ;;  %v2676_v41 = vrot.slane %v2535_v7, 5  ;;  %v2023_v32 = vld [vmem:[#allocation2 + $0x94] sm:$0xf] }
 0x143   : > { %v2679_v61 = vrot.slane %v2536_v28, 5  ;;  %v3245_v20 = vsel %vm7235_vm9, %v3240_v27, %v3244_v43  ;;  %v2295_v36 = vrot.slane %v2294_v30, 4  ;;  %v8009_v11 = vadd.f32 %v6449_v38, %v6337_v48  ;;  %v2024_v28 = vld [vmem:[#allocation2 + $0x98] sm:$0x1] }
 0x144   : > { %8722 = vst [vmem:[#allocation8_spill] sm:$0xff] %v8003_v52  ;;  %v3247_v55 = vshrl.u32 %v2967_v53, 16  ;;  %v6177_v34 = vcombine.low %v3235_v31, %v3245_v20  ;;  %v2290_v47 = vsel %vm7235_vm9, %v2285_v51, %v2289_v33  ;;  %v2677_v19 = vsel %vm7279_vm14, %v6130_v8, %v2676_v41  ;;  %v7041_v52 = vld [vmem:[#allocation2 + $0xc0] sm:$0xff]  }
 0x145   : > { %8723 = vst [vmem:[#allocation9_spill] sm:$0xff] %v8009_v11  ;;  %v2678_v6 = vrot.slane %v2676_v41, 4  ;;  %v2300_v15 = vsel %vm7235_vm9, %v2295_v36, %v2299_v13  ;;  %v3250_v43 = vshll.u32 %v2967_v53, 16  ;;  %v3256_v49 = vshll.u32 %v2968_v26, 16  ;;  %v8023_v13 = vpop.f32.mrb[17].mxu1 }
 0x146   : > { %v3249_v59 = vrot.slane %v3247_v55, 4  ;;  %5049 = vmatprep.mubr.bf16.mxu1 %v6177_v34  ;;  %v6113_v31 = vcombine.low %v2290_v47, %v2300_v15  ;;  %v3260_v42 = vshrl.u32 %v2968_v26, 16  ;;  %v3266_v7 = vshll.u32 %v2969_v56, 16  ;;  %v2537_v26 = vld [vmem:[#allocation2 + $0x9c] sm:$0xe]  ;;  %v8025_v56 = vpop.f32.mrb[18].mxu0 }
 0x147   : > { %v2680_v33 = vsel %vm7279_vm14, %v2678_v6, %v2679_v61  ;;  %5050 = vmatmul.mubr.bf16.gmra.mrb[104].mxu1 %v7033_v50  ;;  %v3252_v14 = vrot.slane %v3250_v43, 5  ;;  %v3258_v63 = vrot.slane %v3256_v49, 5  ;;  %v2302_v48 = vshrl.u32 %v2022_v16, 16  ;;  %v2538_v34 = vld [vmem:[#allocation2 + $0xa0] sm:$0xf] }
 0x148   : > { %v6146_v58 = vcombine.low %v2677_v19, %v2680_v33  ;;  %4889 = vmatmul.mubr.bf16.gmra.mrb[104].mxu0 %v6113_v31  ;;  %v3262_v53 = vrot.slane %v3260_v42, 4  ;;  %v3268_v27 = vrot.slane %v3266_v7, 5  ;;  %v2305_v30 = vshll.u32 %v2022_v16, 16  ;;  %v2539_v47 = vld [vmem:[#allocation2 + $0xa4] sm:$0x1] }
 0x149   : > { %v2311_v38 = vshll.u32 %v2023_v32, 16  ;;  %v3253_v8 = vor.u32 %v3252_v14, %v3249_v59  ;;  %v2304_v51 = vrot.slane %v2302_v48, 4  ;;  %v2315_v41 = vshrl.u32 %v2023_v32, 16  ;;  %v8031_v59 = vpop.f32.mrb[18].mxu1  ;;  %v2970_v33 = vld [vmem:[#allocation2 + $0xa8] sm:$0xf] }
 0x14a   : > { %4896 = vmatprep.mubr.bf16.mxu0 %v6146_v58  ;;  %v2321_v61 = vshll.u32 %v2024_v28, 16  ;;  %v3263_v50 = vor.u32 %v3262_v53, %v3258_v63  ;;  %v2307_v20 = vrot.slane %v2305_v30, 5  ;;  %v6340_v55 = vadd.f32 %v7889_v57, %v7883_v3  ;;  %v8037_v3 = vpop.f32.mrb[19].mxu0  ;;  %v2972_v30 = vld [vmem:[#allocation2 + $0xb0] sm:$0x1] }
 0x14b   : > { %v2313_v36 = vrot.slane %v2311_v38, 5  ;;  %v3254_v19 = vrot.slane %v3253_v8, 4  ;;  %v2317_v6 = vrot.slane %v2315_v41, 4  ;;  %v6452_v15 = vadd.f32 %v7875_v45, %v7871_v39  ;;  %v8043_v45 = vpop.f32.mrb[19].mxu1 }
 0x14c   : > { %v2323_v16 = vrot.slane %v2321_v61, 5  ;;  %v3264_v43 = vrot.slane %v3263_v50, 4  ;;  %v2308_v49 = vor.u32 %v2307_v20, %v2304_v51  ;;  %v6343_v32 = vadd.f32 %v7905_v44, %v7893_v0  ;;  %v7036_v0 = vld [vmem:[#allocation2 + $0x9c] sm:$0xff]  }
 0x14d   : > { %v6455_v31 = vadd.f32 %v7907_v60, %v7901_v12  ;;  %v3259_v57 = vsel %vm7235_vm9, %v3254_v19, %v3258_v63  ;;  %v2318_v42 = vor.u32 %v2317_v6, %v2313_v36  ;;  %v8041_v7 = vadd.f32 %v6452_v15, %v6340_v55  ;;  %v2971_v60 = vld [vmem:[#allocation2 + $0xac] sm:$0xf]  ;;  %v2026_v61 = vld [vmem:[#allocation2 + $0xa0] sm:$0xf] }
 0x14e   : > { %v6131_v39 = vrot.slane %v2537_v26, 9  ;;  %v3269_v28 = vsel %vm7235_vm9, %v3264_v43, %v3268_v27  ;;  %v2309_v58 = vrot.slane %v2308_v49, 4  ;;  %v2683_v12 = vrot.slane %v2538_v34, 5  ;;  %v2025_v27 = vld [vmem:[#allocation2 + $0x9c] sm:$0xf] }
 0x14f   : > { %8724 = vst [vmem:[#allocation10_spill] sm:$0xff] %v8041_v7  ;;  %v8047_v44 = vadd.f32 %v6455_v31, %v6343_v32  ;;  %v6178_v14 = vcombine.low %v3259_v57, %v3269_v28  ;;  %v2319_v48 = vrot.slane %v2318_v42, 4  ;;  %v2686_v53 = vrot.slane %v2539_v47, 5  ;;  %v2027_v34 = vld [vmem:[#allocation2 + $0xa4] sm:$0x1]  ;;  %v8055_v47 = vpop.f32.mrb[20].mxu0 }
 0x150   : > { %v3271_v63 = vshrl.u32 %v2970_v33, 16  ;;  %v2314_v38 = vsel %vm7235_vm9, %v2309_v58, %v2313_v36  ;;  %v2684_v8 = vsel %vm7279_vm14, %v6131_v39, %v2683_v12  ;;  %v2685_v51 = vrot.slane %v2683_v12, 4  ;;  %v2540_v28 = vld [vmem:[#allocation2 + $0xa8] sm:$0xe]  ;;  %v8061_v58 = vpop.f32.mrb[21].mxu0 }
 0x151   : > { %8725 = vst [vmem:[#allocation11_spill] sm:$0xff] %v8047_v44  ;;  %v3274_v41 = vshll.u32 %v2970_v33, 16  ;;  %5057 = vmatprep.mubr.bf16.mxu1 %v6178_v14  ;;  %v2324_v26 = vsel %vm7235_vm9, %v2319_v48, %v2323_v16  ;;  %v3280_v20 = vshll.u32 %v2971_v60, 16  ;;  %v3284_v55 = vshrl.u32 %v2971_v60, 16  ;;  %v8059_v33 = vpop.f32.mrb[20].mxu1 }
 0x152   : > { %v3273_v50 = vrot.slane %v3271_v63, 4  ;;  %v6114_v19 = vcombine.low %v2314_v38, %v2324_v26  ;;  %5058 = vmatmul.mubr.bf16.gmra.mrb[108].mxu1 %v7036_v0  ;;  %v2687_v36 = vsel %vm7279_vm14, %v2685_v51, %v2686_v53  ;;  %v3290_v15 = vshll.u32 %v2972_v30, 16  ;;  %v8063_v48 = vpop.f32.mrb[21].mxu1 }
 0x153   : > { %v3276_v6 = vrot.slane %v3274_v41, 5  ;;  %v6147_v43 = vcombine.low %v2684_v8, %v2687_v36  ;;  %v3282_v49 = vrot.slane %v3280_v20, 5  ;;  %v3286_v32 = vrot.slane %v3284_v55, 4  ;;  %v8067_v8 = vpop.f32.mrb[22].mxu0  ;;  %v8071_v20 = vpop.f32.mrb[22].mxu1 }
 0x154   : > { %v2326_v31 = vshrl.u32 %v2025_v27, 16  ;;  %4897 = vmatmul.mubr.bf16.gmra.mrb[108].mxu0 %v6114_v19  ;;  %v3292_v57 = vrot.slane %v3290_v15, 5  ;;  %v2329_v42 = vshll.u32 %v2025_v27, 16  ;;  %v2335_v39 = vshll.u32 %v2026_v61, 16  ;;  %v2973_v19 = vld [vmem:[#allocation2 + $0xb4] sm:$0xf] }
 0x155   : > { %v3277_v16 = vor.u32 %v3276_v6, %v3273_v50  ;;  %4904 = vmatprep.mubr.bf16.mxu0 %v6147_v43  ;;  %v3287_v0 = vor.u32 %v3286_v32, %v3282_v49  ;;  %v2339_v60 = vshrl.u32 %v2026_v61, 16  ;;  %v2345_v14 = vshll.u32 %v2027_v34, 16  ;;  %v2541_v50 = vld [vmem:[#allocation2 + $0xac] sm:$0xf]  ;;  %v2974_v43 = vld [vmem:[#allocation2 + $0xb8] sm:$0xf] }
 0x156   : > { %v2328_v12 = vrot.slane %v2326_v31, 4  ;;  %v2331_v30 = vrot.slane %v2329_v42, 5  ;;  %v2337_v63 = vrot.slane %v2335_v39, 5  ;;  %v6346_v38 = vadd.f32 %v7921_v22, %v7911_v5  ;;  %v2542_v22 = vld [vmem:[#allocation2 + $0xb0] sm:$0x1]  ;;  %v8083_v32 = vpop.f32.mrb[23].mxu0 }
 0x157   : > { %v3278_v53 = vrot.slane %v3277_v16, 4  ;;  %v3288_v51 = vrot.slane %v3287_v0, 4  ;;  %v2341_v41 = vrot.slane %v2339_v60, 4  ;;  %v2347_v27 = vrot.slane %v2345_v14, 5  ;;  %v2028_v60 = vld [vmem:[#allocation2 + $0xa8] sm:$0xf] }
 0x158   : > { %v6458_v26 = vadd.f32 %v7925_v18, %v7915_v2  ;;  %v2332_v55 = vor.u32 %v2331_v30, %v2328_v12  ;;  %v6349_v34 = vadd.f32 %v7933_v17, %v7927_v23  ;;  %v6461_v5 = vadd.f32 %v7937_v29, %v7931_v10  ;;  %v7037_v2 = vld [vmem:[#allocation2 + $0xa8] sm:$0xff]   ;;  %v2975_v17 = vld [vmem:[#allocation2 + $0xbc] sm:$0x1]  ;;  %v8091_v14 = vpop.f32.mrb[23].mxu1 }
 0x159   : > { %v3283_v61 = vsel %vm7235_vm9, %v3278_v53, %v3282_v49  ;;  %v3293_v36 = vsel %vm7235_vm9, %v3288_v51, %v3292_v57  ;;  %v2342_v6 = vor.u32 %v2341_v41, %v2337_v63  ;;  %v6132_v15 = vrot.slane %v2540_v28, 9  ;;  %v2029_v41 = vld [vmem:[#allocation2 + $0xac] sm:$0xf] }
 0x15a   : > { %v8081_v18 = vadd.f32 %v6458_v26, %v6346_v38  ;;  %v6179_v49 = vcombine.low %v3283_v61, %v3293_v36  ;;  %v2333_v31 = vrot.slane %v2332_v55, 4  ;;  %v8085_v16 = vadd.f32 %v6461_v5, %v6349_v34  ;;  %v2030_v55 = vld [vmem:[#allocation2 + $0xb0] sm:$0x1]  ;;  %v8740_v21 = vld [vmem:[#allocation10_spill] sm:$0xff] }
 0x15b   : > { %v2690_v23 = vrot.slane %v2541_v50, 5  ;;  %v2343_v10 = vrot.slane %v2342_v6, 4  ;;  %v2693_v29 = vrot.slane %v2542_v22, 5  ;;  %v3295_v42 = vshrl.u32 %v2973_v19, 16 }
 0x15c   : > { %8726 = vst [vmem:[#allocation12_spill] sm:$0xff] %v8081_v18  ;;  %8727 = vst [vmem:[#allocation13_spill] sm:$0xff] %v8085_v16  ;;  %v3298_v39 = vshll.u32 %v2973_v19, 16  ;;  %5065 = vmatprep.mubr.bf16.mxu1 %v6179_v49  ;;  %v2338_v57 = vsel %vm7235_vm9, %v2333_v31, %v2337_v63  ;;  %v3304_v12 = vshll.u32 %v2974_v43, 16  ;;  %v3308_v51 = vshrl.u32 %v2974_v43, 16 }
 0x15d   : > { %v2691_v28 = vsel %vm7279_vm14, %v6132_v15, %v2690_v23  ;;  %v2692_v0 = vrot.slane %v2690_v23, 4  ;;  %v2348_v53 = vsel %vm7235_vm9, %v2343_v10, %v2347_v27  ;;  %5066 = vmatmul.mubr.bf16.gmra.mrb[112].mxu1 %v7037_v2  ;;  %v3297_v30 = vrot.slane %v3295_v42, 4  ;;  %v2543_v15 = vld [vmem:[#allocation2 + $0xb4] sm:$0xe]  ;;  %v2544_v10 = vld [vmem:[#allocation2 + $0xb8] sm:$0xf] }
 0x15e   : > { %v3300_v38 = vrot.slane %v3298_v39, 5  ;;  %v6115_v26 = vcombine.low %v2338_v57, %v2348_v53  ;;  %v3306_v50 = vrot.slane %v3304_v12, 5  ;;  %v3314_v61 = vshll.u32 %v2975_v17, 16 }
 0x15f   : > { %v2694_v63 = vsel %vm7279_vm14, %v2692_v0, %v2693_v29  ;;  %v3310_v22 = vrot.slane %v3308_v51, 4  ;;  %v2350_v19 = vshrl.u32 %v2028_v60, 16  ;;  %v2353_v6 = vshll.u32 %v2028_v60, 16  ;;  %v8097_v29 = vpop.f32.mrb[24].mxu0  ;;  %v8101_v0 = vpop.f32.mrb[24].mxu1 }
 0x160   : > { %v6148_v34 = vcombine.low %v2691_v28, %v2694_v63  ;;  %v3301_v5 = vor.u32 %v3300_v38, %v3297_v30  ;;  %4905 = vmatmul.mubr.bf16.gmra.mrb[112].mxu0 %v6115_v26  ;;  %v3316_v36 = vrot.slane %v3314_v61, 5  ;;  %v2359_v27 = vshll.u32 %v2029_v41, 16  ;;  %v2545_v28 = vld [vmem:[#allocation2 + $0xbc] sm:$0x1]  ;;  %v7040_v30 = vld [vmem:[#allocation2 + $0xb4] sm:$0xff]   ;;  %v8107_v51 = vpop.f32.mrb[25].mxu0 }
 0x161   : > { %v2363_v2 = vshrl.u32 %v2029_v41, 16  ;;  %v3311_v49 = vor.u32 %v3310_v22, %v3306_v50  ;;  %v2352_v31 = vrot.slane %v2350_v19, 4  ;;  %v2369_v23 = vshll.u32 %v2030_v55, 16  ;;  %v8109_v41 = vpop.f32.mrb[25].mxu1  ;;  %v392_v55 = vld [vmem:[#allocation2 + $0xc8] sm:$0x1] }
 0x162   : > { %4912 = vmatprep.mubr.bf16.mxu0 %v6148_v34  ;;  %v3302_v43 = vrot.slane %v3301_v5, 4  ;;  %v2355_v17 = vrot.slane %v2353_v6, 5  ;;  %v2361_v42 = vrot.slane %v2359_v27, 5  ;;  %v6352_v57 = vadd.f32 %v7951_v25, %v7941_v35  ;;  %v8728_v25 = vld [vmem:[#allocation7_spill] sm:$0xff]  ;;  %v8115_v34 = vpop.f32.mrb[26].mxu0  ;;  %v8117_v5 = vpop.f32.mrb[26].mxu1 }
 0x163   : > { %v2365_v39 = vrot.slane %v2363_v2, 4  ;;  %v3312_v60 = vrot.slane %v3311_v49, 4  ;;  %v2371_v53 = vrot.slane %v2369_v23, 5  ;;  %v6464_v38 = vadd.f32 %v7955_v40, %v7947_v46  ;;  %v2977_v6 = vld [vmem:[#allocation2 + $0xc4] sm:$0xf]  ;;  %v8123_v27 = vpop.f32.mrb[27].mxu0 }
 0x164   : > { %v3307_v12 = vsel %vm7235_vm9, %v3302_v43, %v3306_v50  ;;  %v2356_v26 = vor.u32 %v2355_v17, %v2352_v31  ;;  %v6355_v35 = vadd.f32 %v7971_v4, %v7959_v24  ;;  %v6467_v61 = vadd.f32 %v7977_v1, %v8728_v25  ;;  %v2976_v50 = vld [vmem:[#allocation2 + $0xc0] sm:$0xf]  ;;  %v8125_v24 = vpop.f32.mrb[27].mxu1 }
 0x165   : > { %v2366_v63 = vor.u32 %v2365_v39, %v2361_v42  ;;  %v3317_v46 = vsel %vm7235_vm9, %v3312_v60, %v3316_v36  ;;  %v8121_v40 = vadd.f32 %v6464_v38, %v6352_v57  ;;  %v6133_v22 = vrot.slane %v2543_v15, 9  ;;  %v2031_v15 = vld [vmem:[#allocation2 + $0xb4] sm:$0xf]  ;;  %v2032_v60 = vld [vmem:[#allocation2 + $0xb8] sm:$0xf] }
 0x166   : > { %v2697_v19 = vrot.slane %v2544_v10, 5  ;;  %v6180_v4 = vcombine.low %v3307_v12, %v3317_v46  ;;  %v2357_v1 = vrot.slane %v2356_v26, 4  ;;  %v8127_v43 = vadd.f32 %v6467_v61, %v6355_v35  ;;  %v2033_v38 = vld [vmem:[#allocation2 + $0xbc] sm:$0x1] }
 0x167   : > { %8729 = vst [vmem:[#allocation7_spill] sm:$0xff] %v8121_v40  ;;  %v2367_v2 = vrot.slane %v2366_v63, 4  ;;  %v2700_v23 = vrot.slane %v2545_v28, 5  ;;  %v393_v17 = vsel %vm7241_vm10, 0, %v392_v55  ;;  %v3319_v57 = vshrl.u32 %v2976_v50, 16 }
 0x168   : > { %8730 = vst [vmem:[#allocation14_spill] sm:$0xff] %v8127_v43  ;;  %v2698_v49 = vsel %vm7279_vm14, %v6133_v22, %v2697_v19  ;;  %v2699_v31 = vrot.slane %v2697_v19, 4  ;;  %5073 = vmatprep.mubr.bf16.mxu1 %v6180_v4  ;;  %v2362_v10 = vsel %vm7235_vm9, %v2357_v1, %v2361_v42  ;;  %394 = vst [vmem:[#allocation2 + $0xc8] sm:$0x1] %v393_v17  ;;  %v3322_v12 = vshll.u32 %v2976_v50, 16  ;;  %v8139_v42 = vpop.f32.mrb[28].mxu0 }
 0x169   : > { %v2372_v39 = vsel %vm7235_vm9, %v2367_v2, %v2371_v53  ;;  %5074 = vmatmul.mubr.bf16.gmra.mrb[116].mxu1 %v7040_v30  ;;  %v3328_v63 = vshll.u32 %v2977_v6, 16  ;;  %v3332_v35 = vshrl.u32 %v2977_v6, 16  ;;  %v3321_v61 = vrot.slane %v3319_v57, 4  ;;  %v8141_v22 = vpop.f32.mrb[28].mxu1  ;;  %v8145_v30 = vpop.f32.mrb[29].mxu0 }
 0x16a   : > { %v6116_v26 = vcombine.low %v2362_v10, %v2372_v39  ;;  %v2701_v28 = vsel %vm7279_vm14, %v2699_v31, %v2700_v23  ;;  %v3324_v55 = vrot.slane %v3322_v12, 5  ;;  %v2374_v46 = vshrl.u32 %v2031_v15, 16  ;;  %v8147_v1 = vpop.f32.mrb[29].mxu1  ;;  %v2546_v23 = vld [vmem:[#allocation2 + $0xc0] sm:$0xe]  ;;  %v8149_v36 = vpop.f32.mrb[30].mxu0 }
 0x16b   : > { %v6149_v25 = vcombine.low %v2698_v49, %v2701_v28  ;;  %v8143_v53 = vrot.slane %v3328_v63, 5  ;;  %v3334_v50 = vrot.slane %v3332_v35, 4  ;;  %v2377_v19 = vshll.u32 %v2031_v15, 16  ;;  %v8151_v17 = vpop.f32.mrb[30].mxu1  ;;  %v2547_v12 = vld [vmem:[#allocation2 + $0xc4] sm:$0xf] }
 0x16c   : > { %4913 = vmatmul.mubr.bf16.gmra.mrb[116].mxu0 %v6116_v26  ;;  %v2383_v4 = vshll.u32 %v2032_v60, 16  ;;  %v3325_v6 = vor.u32 %v3324_v55, %v3321_v61  ;;  %v2376_v2 = vrot.slane %v2374_v46, 4  ;;  %v2387_v49 = vshrl.u32 %v2032_v60, 16  ;;  %v8156_v26 = vpop.f32.mrb[31].mxu0  ;;  %v8158_v28 = vpop.f32.mrb[31].mxu1 }
 0x16d   : > { %4920 = vmatprep.mubr.bf16.mxu0 %v6149_v25  ;;  %v2393_v31 = vshll.u32 %v2033_v38, 16  ;;  %v3335_v10 = vor.u32 %v3334_v50, %v8143_v53  ;;  %v2379_v39 = vrot.slane %v2377_v19, 5  ;;  %v6358_v15 = vadd.f32 %v8019_v9, %v8005_v62  ;;  %v2979_v25 = vld [vmem:[#allocation2 + $0xcc] sm:$0xf]  ;;  %v2980_v50 = vld [vmem:[#allocation2 + $0xd0] sm:$0xf] }
 0x16e   : > { %v2385_v57 = vrot.slane %v2383_v4, 5  ;;  %v8160_v63 = vrot.slane %v3325_v6, 4  ;;  %v2389_v60 = vrot.slane %v2387_v49, 4  ;;  %v6470_v35 = vadd.f32 %v8023_v13, %v8015_v37  ;;  %v8170_v19 = vpop.f32.mrb[32].mxu0  ;;  %v8732_v4 = vld [vmem:[#allocation6_spill] sm:$0xff] }
 0x16f   : > { %v2395_v38 = vrot.slane %v2393_v31, 5  ;;  %v860_v61 = vld [vmem:[#allocation2 + $0xc8] sm:$0x1]  ;;  %v8164_v55 = vrot.slane %v3335_v10, 4  ;;  %v2380_v46 = vor.u32 %v2379_v39, %v2376_v2  ;;  %v6361_v62 = vadd.f32 %v8037_v3, %v8025_v56  ;;  %v2981_v56 = vld [vmem:[#allocation2 + $0xd4] sm:$0x1] }
 0x170   : > { %v6473_v9 = vadd.f32 %v8043_v45, %v8031_v59  ;;  %v8733_v6 = vrot.slane %v8732_v4, 4  ;;  %v2390_v13 = vor.u32 %v2389_v60, %v2385_v57  ;;  %v8180_v2 = vadd.f32 %v6470_v35, %v6358_v15  ;;  %v2034_v39 = vld [vmem:[#allocation2 + $0xc0] sm:$0xf]  ;;  %v8184_v4 = vpop.f32.mrb[32].mxu1  ;;  %v2035_v40 = vld [vmem:[#allocation2 + $0xc4] sm:$0xf] }
 0x171   : > { %v2381_v3 = vrot.slane %v2380_v46, 4  ;;  %v6134_v45 = vrot.slane %v2546_v23, 9  ;;  %v2704_v10 = vrot.slane %v2547_v12, 5  ;;  %v3352_v43 = vshll.u32 %v2980_v50, 16 }
 0x172   : > { %v861_v31 = vsel %vm7225_vm6, %v8733_v6, %v860_v61  ;;  %8735 = vst [vmem:[#allocation5_spill] sm:$0xff] %v8180_v2  ;;  %v8182_v59 = vadd.f32 %v6473_v9, %v6361_v62  ;;  %v2391_v49 = vrot.slane %v2390_v13, 4  ;;  %v3343_v61 = vshrl.u32 %v2979_v25, 16 }
 0x173   : > { %862 = vst [vmem:[#allocation2 + $0xc8] sm:$0x1] %v861_v31  ;;  %v3346_v6 = vshll.u32 %v2979_v25, 16  ;;  %v2386_v60 = vsel %vm7235_vm9, %v2381_v3, %v2385_v57  ;;  %v8190_v15 = vsel %vm7279_vm14, %v6134_v45, %v2704_v10  ;;  %v2706_v35 = vrot.slane %v2704_v10, 4  ;;  %v8194_v31 = vpop.f32.mrb[33].mxu0  ;;  %v8196_v25 = vpop.f32.mrb[33].mxu1 }
 0x174   : > { %8736 = vst [vmem:[#allocation6_spill] sm:$0xff] %v8182_v59  ;;  %v3356_v46 = vshrl.u32 %v2980_v50, 16  ;;  %v2396_v23 = vsel %vm7235_vm9, %v2391_v49, %v2395_v38  ;;  %v3345_v12 = vrot.slane %v3343_v61, 4  ;;  %v3354_v9 = vrot.slane %v3352_v43, 5  ;;  %v8198_v3 = vpop.f32.mrb[34].mxu0  ;;  %v8200_v45 = vpop.f32.mrb[34].mxu1 }
 0x175   : > { %v3348_v62 = vrot.slane %v3346_v6, 5  ;;  %v6117_v13 = vcombine.low %v2386_v60, %v2396_v23  ;;  %v3362_v59 = vshll.u32 %v2981_v56, 16  ;;  %v2398_v57 = vshrl.u32 %v2034_v39, 16  ;;  %v8202_v38 = vpop.f32.mrb[35].mxu0  ;;  %v8204_v49 = vpop.f32.mrb[35].mxu1 }
 0x176   : > { %v3358_v37 = vrot.slane %v3356_v46, 4  ;;  %v2401_v50 = vshll.u32 %v2034_v39, 16  ;;  %v2407_v2 = vshll.u32 %v2035_v40, 16  ;;  %v2411_v16 = vshrl.u32 %v2035_v40, 16 }
 0x177   : > { %v3349_v10 = vor.u32 %v3348_v62, %v3345_v12  ;;  %4921 = vmatmul.mubr.bf16.gmra.mrb[120].mxu0 %v6117_v13  ;;  %v3364_v61 = vrot.slane %v3362_v59, 5  ;;  %v2400_v6 = vrot.slane %v2398_v57, 4  ;;  %v6364_v56 = vadd.f32 %v8061_v58, %v8055_v47  ;;  %v3446_v12 = vld [vmem:[#allocation2 + $0x18] sm:$0xe]  ;;  %v3447_v57 = vld [vmem:[#allocation2 + $0x1c] sm:$0xf] }
 0x178   : > { %v3359_v43 = vor.u32 %v3358_v37, %v3354_v9  ;;  %v2403_v18 = vrot.slane %v2401_v50, 5  ;;  %v6476_v39 = vadd.f32 %v8063_v48, %v8059_v33  ;;  %v6367_v40 = vadd.f32 %v8083_v32, %v8067_v8  ;;  %v3448_v50 = vld [vmem:[#allocation2 + $0x20] sm:$0x1]  ;;  %v3449_v32 = vld [vmem:[#allocation2 + $0x24] sm:$0xe] }
 0x179   : > { %v3350_v23 = vrot.slane %v3349_v10, 4  ;;  %v2409_v59 = vrot.slane %v2407_v2, 5  ;;  %v2413_v7 = vrot.slane %v2411_v16, 4  ;;  %v8220_v2 = vpop.f32.mrb[36].mxu0  ;;  %v6370_v54 = vadd.f32 %v8107_v51, %v8097_v29 }
 0x17a   : > { %v2978_v60 = vld [vmem:[#allocation2 + $0xc8] sm:$0x1]  ;;  %v3360_v13 = vrot.slane %v3359_v43, 4  ;;  %v2404_v58 = vor.u32 %v2403_v18, %v2400_v6  ;;  %v8218_v8 = vadd.f32 %v6476_v39, %v6364_v56  ;;  %v6183_v56 = vrot.slane %v3446_v12, 9 }
 0x17b   : > { %v2548_v46 = vld [vmem:[#allocation2 + $0xc8] sm:$0x1]  ;;  %v3338_v62 = vshll.u32 %v2978_v60, 16  ;;  %v3355_v47 = vsel %vm7235_vm9, %v3350_v23, %v3354_v9  ;;  %v2414_v16 = vor.u32 %v2413_v7, %v2409_v59  ;;  %v3451_v60 = vld [vmem:[#allocation2 + $0x2c] sm:$0x1]  ;;  %v6184_v12 = vrot.slane %v3449_v32, 9 }
 0x17c   : > { %v2707_v44 = vrot.slane %v2548_v46, 5  ;;  %v2036_v37 = vld [vmem:[#allocation2 + $0xc8] sm:$0x1]  ;;  %v3365_v48 = vsel %vm7235_vm9, %v3360_v13, %v3364_v61  ;;  %v2405_v18 = vrot.slane %v2404_v58, 4  ;;  %v8223_v46 = vpop.f32.mrb[36].mxu1  ;;  %v6479_v61 = vadd.f32 %v8091_v14, %v8071_v20 }
 0x17d   : > { %v2417_v10 = vshll.u32 %v2036_v37, 16  ;;  %v3340_v11 = vrot.slane %v3338_v62, 5  ;;  %v6182_v9 = vcombine.low %v3355_v47, %v3365_v48  ;;  %v3450_v6 = vld [vmem:[#allocation2 + $0x28] sm:$0xf]  ;;  %v2415_v39 = vrot.slane %v2414_v16, 4 }
 0x17e   : > { %v2708_v33 = vsel %vm7279_vm14, %v2706_v35, %v2707_v44  ;;  %v2410_v7 = vsel %vm7235_vm9, %v2405_v18, %v2409_v59  ;;  %v3544_v62 = vrot.slane %v3447_v57, 5  ;;  %v3452_v13 = vld [vmem:[#allocation2 + $0x30] sm:$0xe]  ;;  %v3453_v37 = vld [vmem:[#allocation2 + $0x34] sm:$0xf]  ;;  %v8241_v20 = vadd.f32 %v6479_v61, %v6367_v40 }
 0x17f   : > { %v6150_v43 = vcombine.low %v8190_v15, %v2708_v33  ;;  %v3341_v44 = vsel %vm7235_vm9, %v8164_v55, %v3340_v11  ;;  %v2419_v35 = vrot.slane %v2417_v10, 5  ;;  %v8737_v15 = vsel %vm7235_vm9, %v8160_v63, %v8143_v53  ;;  %v8237_v11 = vpop.f32.mrb[37].mxu0  ;;  %v8239_v55 = vpop.f32.mrb[37].mxu1  ;;  %v3454_v33 = vld [vmem:[#allocation2 + $0x38] sm:$0x1] }
 0x180   : > { %v6181_v23 = vcombine.low %v8737_v15, %v3341_v44  ;;  %v3547_v14 = vrot.slane %v3448_v50, 5  ;;  %v3551_v47 = vrot.slane %v3450_v6, 5  ;;  %v8243_v58 = vpop.f32.mrb[38].mxu0  ;;  %v8245_v53 = vpop.f32.mrb[38].mxu1  ;;  %v3545_v59 = vsel %vm7279_vm14, %v6183_v56, %v3544_v62  ;;  %v3455_v18 = vld [vmem:[#allocation2 + $0x3c] sm:$0xe] }
 0x181   : > { %4928 = vmatprep.mubr.bf16.mxu0 %v6150_v43  ;;  %v2420_v63 = vsel %vm7235_vm9, %v2415_v39, %v2419_v35  ;;  %v3546_v57 = vrot.slane %v3544_v62, 4  ;;  %v3554_v10 = vrot.slane %v3451_v60, 5  ;;  %v8251_v48 = vpop.f32.mrb[39].mxu0  ;;  %v8253_v40 = vpop.f32.mrb[39].mxu1  ;;  %v6482_v60 = vadd.f32 %v8109_v41, %v8101_v0  ;;  %v3456_v35 = vld [vmem:[#allocation2 + $0x40] sm:$0xf] }
 0x182   : > { %5081 = vmatprep.mubr.bf16.mxu1 %v6181_v23  ;;  %v6118_v50 = vcombine.low %v2410_v7, %v2420_v63  ;;  %v3552_v32 = vsel %vm7279_vm14, %v6184_v12, %v3551_v47  ;;  %v3553_v43 = vrot.slane %v3551_v47, 4  ;;  %v8259_v16 = vpop.f32.mrb[40].mxu0  ;;  %v6485_v44 = vadd.f32 %v8125_v24, %v8117_v5  ;;  %v3457_v61 = vld [vmem:[#allocation2 + $0x44] sm:$0x1]  ;;  %v3458_v15 = vld [vmem:[#allocation2 + $0x48] sm:$0xe] }
 0x183   : > { %5082 = vmatmul.mubr.bf16.gmra.mrb[120].mxu1 %v7041_v52  ;;  %v3548_v6 = vsel %vm7279_vm14, %v3546_v57, %v3547_v14  ;;  %v6373_v52 = vadd.f32 %v8123_v27, %v8115_v34  ;;  %v3558_v56 = vrot.slane %v3453_v37, 5  ;;  %v7044_v23 = vld [vmem:[#allocation2 + $0xcc] sm:$0xff]   ;;  %v8271_v7 = vadd.f32 %v6482_v60, %v6370_v54  ;;  %v8275_v34 = vpop.f32.mrb[40].mxu1  ;;  %v8277_v5 = vpop.f32.mrb[41].mxu0  ;;  %v7045_v12 = vld [vmem:[%s7221_s24] sm:$0xff]  }
 0x184   : > { %5089 = vmatprep.mubr.bf16.mxu1 %v6182_v9  ;;  %4929 = vmatmul.mubr.bf16.gmra.mrb[124].mxu0 %v6118_v50  ;;  %v6199_v29 = vcombine.low %v3545_v59, %v3548_v6  ;;  %v3555_v51 = vsel %vm7279_vm14, %v3553_v43, %v3554_v10  ;;  %v6185_v9 = vrot.slane %v3452_v13, 9  ;;  %v3561_v41 = vrot.slane %v3454_v33, 5  ;;  %v3459_v13 = vld [vmem:[#allocation2 + $0x4c] sm:$0xf]  ;;  %v8281_v37 = vpop.f32.mrb[41].mxu1  ;;  %v8283_v14 = vpop.f32.mrb[42].mxu0 }
 0x185   : > { %v8273_v0 = vadd.f32 %v6485_v44, %v6373_v52  ;;  %v6200_v27 = vcombine.low %v3552_v32, %v3555_v51  ;;  %v3560_v39 = vrot.slane %v3558_v56, 4  ;;  %v3565_v62 = vrot.slane %v3456_v35, 5  ;;  %v3460_v10 = vld [vmem:[#allocation2 + $0x50] sm:$0x1]  ;;  %v8292_v33 = vpop.f32.mrb[42].mxu1  ;;  %v8294_v50 = vpop.f32.mrb[43].mxu0 }
 0x186   : > { %6828 = vmatprep.mubr.bf16.mxu0 %v6199_v29  ;;  %v3559_v24 = vsel %vm7279_vm14, %v6185_v9, %v3558_v56  ;;  %v6186_v47 = vrot.slane %v3455_v18, 9  ;;  %v6376_v63 = vadd.f32 %v8145_v30, %v8139_v42  ;;  %v6488_v59 = vadd.f32 %v8147_v1, %v8141_v22  ;;  %v8300_v42 = vld [vmem:[#allocation2 + $0x58] sm:$0xf]  ;;  %v8302_v30 = vpop.f32.mrb[43].mxu1  ;;  %v3461_v52 = vld [vmem:[#allocation2 + $0x54] sm:$0xe] }
 0x187   : > { %v6379_v57 = vadd.f32 %v8156_v26, %v8149_v36  ;;  %v3562_v32 = vsel %vm7279_vm14, %v3560_v39, %v3561_v41  ;;  %v3567_v43 = vrot.slane %v3565_v62, 4  ;;  %v3568_v54 = vrot.slane %v3457_v61, 5  ;;  %v3465_v61 = vld [vmem:[#allocation2 + $0x64] sm:$0xf]  ;;  %v8317_v56 = vpop.f32.mrb[44].mxu0 }
 0x188   : > { %v6491_v18 = vadd.f32 %v8158_v28, %v8151_v17  ;;  %v6201_v22 = vcombine.low %v3559_v24, %v3562_v32  ;;  %v8304_v1 = vadd.f32 %v6488_v59, %v6376_v63  ;;  %v6187_v36 = vrot.slane %v3458_v15, 9  ;;  %v3463_v28 = vld [vmem:[#allocation2 + $0x5c] sm:$0x1]  ;;  %v8319_v15 = vpop.f32.mrb[44].mxu1 }
 0x189   : > { %v3572_v26 = vrot.slane %v3459_v13, 5  ;;  %v3575_v60 = vrot.slane %v3460_v10, 5  ;;  %v3579_v35 = vrot.slane %v8300_v42, 5  ;;  %v3566_v17 = vsel %vm7279_vm14, %v6186_v47, %v3565_v62  ;;  %v3468_v42 = vld [vmem:[#allocation2 + $0x70] sm:$0xf] }
 0x18a   : > { %v8306_v6 = vadd.f32 %v6491_v18, %v6379_v57  ;;  %v6382_v29 = vadd.f32 %v8194_v31, %v8170_v19  ;;  %v6494_v51 = vadd.f32 %v8196_v25, %v8184_v4  ;;  %v6385_v9 = vadd.f32 %v8202_v38, %v8198_v3  ;;  %v3464_v31 = vld [vmem:[#allocation2 + $0x60] sm:$0xe]  ;;  %v3466_v25 = vld [vmem:[#allocation2 + $0x68] sm:$0x1]  ;;  %v8329_v3 = vpop.f32.mrb[45].mxu0  ;;  %v8331_v38 = vpop.f32.mrb[45].mxu1 }
 0x18b   : > { %5090 = vmatmul.mubr.bf16.gmra.mrb[124].mxu1 %v7044_v23  ;;  %v3574_v44 = vrot.slane %v3572_v26, 4  ;;  %v3569_v23 = vsel %vm7279_vm14, %v3567_v43, %v3568_v54  ;;  %v3573_v41 = vsel %vm7279_vm14, %v6187_v36, %v3572_v26  ;;  %v6497_v4 = vadd.f32 %v8204_v49, %v8200_v45  ;;  %v8336_v62 = vpop.f32.mrb[46].mxu0  ;;  %v8338_v13 = vpop.f32.mrb[46].mxu1 }
 0x18c   : > { %6876 = vmatprep.mubr.bf16.mxu1 %v7045_v12  ;;  %6829 = vmatmul.mubr.bf16.vlgmr.msra.gmra.mrb[128].mxu0 %v6200_v27  ;;  %v7046_v27 = vld [vmem:[%s7221_s24 + $0x8] sm:$0xff]   ;;  %v8334_v24 = vadd.f32 %v6494_v51, %v6382_v29  ;;  %v3586_v39 = vrot.slane %v3465_v61, 5  ;;  %v7047_v12 = vld [vmem:[%s7221_s24 + $0x10] sm:$0xff]   ;;  %v6188_v47 = vrot.slane %v3461_v52, 9  ;;  %v3581_v63 = vrot.slane %v3579_v35, 4  ;;  %v8343_v45 = vpop.f32.mrb[47].mxu0 }
 0x18d   : > { %6832 = vmatprep.mubr.bf16.mxu0 %v6201_v22  ;;  %v3576_v19 = vsel %vm7279_vm14, %v3574_v44, %v3575_v60  ;;  %v3582_v59 = vrot.slane %v3463_v28, 5  ;;  %v8341_v57 = vadd.f32 %v6497_v4, %v6385_v9  ;;  %v8345_v49 = vpop.f32.mrb[47].mxu1  ;;  %v6202_v10 = vcombine.low %v3566_v17, %v3569_v23  ;;  %v8361_v17 = vld [vmem:[#allocation2 + $0x7c] sm:$0xf]  ;;  %v3469_v23 = vld [vmem:[#allocation2 + $0x74] sm:$0x1] }
 0x18e   : > { %v6203_v32 = vcombine.low %v3573_v41, %v3576_v19  ;;  %v6189_v43 = vrot.slane %v3464_v31, 9  ;;  %v3589_v54 = vrot.slane %v3466_v25, 5  ;;  %v3588_v18 = vrot.slane %v3586_v39, 4  ;;  %v8353_v60 = vpop.f32.mrb[48].mxu0  ;;  %v8357_v44 = vpop.f32.mrb[48].mxu1  ;;  %v7049_v4 = vld [vmem:[%s7221_s24 + $0x20] sm:$0xff]  }
 0x18f   : > { %v6388_v22 = vadd.f32 %v8237_v11, %v8220_v2  ;;  %v6500_v36 = vadd.f32 %v8239_v55, %v8223_v46  ;;  %v6391_v26 = vadd.f32 %v8251_v48, %v8243_v58  ;;  %v6503_v52 = vadd.f32 %v8253_v40, %v8245_v53  ;;  %v8363_v2 = vpop.f32.mrb[49].mxu0  ;;  %v8365_v46 = vpop.f32.mrb[49].mxu1  ;;  %v3467_v11 = vld [vmem:[#allocation2 + $0x6c] sm:$0xe]  ;;  %v7048_v40 = vld [vmem:[%s7221_s24 + $0x18] sm:$0xff]  }
 0x190   : > { %v3593_v55 = vrot.slane %v3468_v42, 5  ;;  %v8369_v48 = vpop.f32.mrb[50].mxu0  ;;  %v8371_v53 = vpop.f32.mrb[50].mxu1  ;;  %v3580_v28 = vsel %vm7279_vm14, %v6188_v47, %v3579_v35  ;;  %v3583_v29 = vsel %vm7279_vm14, %v3581_v63, %v3582_v59  ;;  %v3587_v51 = vsel %vm7279_vm14, %v6189_v43, %v3586_v39  ;;  %v3470_v31 = vld [vmem:[#allocation2 + $0x78] sm:$0xe] }
 0x191   : > { %v8359_v61 = vadd.f32 %v6500_v36, %v6388_v22  ;;  %v8367_v58 = vadd.f32 %v6503_v52, %v6391_v26  ;;  %v3590_v9 = vsel %vm7279_vm14, %v3588_v18, %v3589_v54  ;;  %v6408_v41 = vpop.f32.mrb[51].mxu0  ;;  %v6520_v19 = vpop.f32.mrb[51].mxu1  ;;  %v3600_v25 = vrot.slane %v8361_v17, 5  ;;  %v3472_v47 = vld [vmem:[#allocation2 + $0x80] sm:$0x1] }
 0x192   : > { %v6506_v35 = vadd.f32 %v8281_v37, %v8275_v34  ;;  %v6190_v39 = vrot.slane %v3467_v11, 9  ;;  %v6509_v63 = vadd.f32 %v8302_v30, %v8292_v33  ;;  %v3596_v43 = vrot.slane %v3469_v23, 5  ;;  %v3473_v22 = vld [vmem:[#allocation2 + $0x84] sm:$0xe]  ;;  %v3477_v33 = vld [vmem:[#allocation2 + $0x94] sm:$0xf] }
 0x193   : > { %6877 = vmatmul.mubr.bf16.vlgmr.msra.gmra.mrb[128].mxu1 %v7046_v27  ;;  %v6394_v27 = vadd.f32 %v8277_v5, %v8259_v16  ;;  %v6205_v18 = vcombine.low %v3587_v51, %v3590_v9  ;;  %v3474_v16 = vld [vmem:[#allocation2 + $0x88] sm:$0xf]  ;;  %v6191_v34 = vrot.slane %v3470_v31, 9  ;;  %v3602_v37 = vrot.slane %v3600_v25, 4  ;;  %v7051_v51 = vld [vmem:[%s7221_s24 + $0x30] sm:$0xff]  }
 0x194   : > { %6880 = vmatprep.mubr.bf16.mxu1 %v7047_v12  ;;  %6833 = vmatmul.mubr.bf16.gmra.mrb[132].mxu0 %v6202_v10  ;;  %v6397_v12 = vadd.f32 %v8294_v50, %v8283_v14  ;;  %v6204_v10 = vcombine.low %v3580_v28, %v3583_v29  ;;  %v3603_v14 = vrot.slane %v3472_v47, 5  ;;  %v6400_v30 = vadd.f32 %v8329_v3, %v8317_v56  ;;  %v3475_v28 = vld [vmem:[#allocation2 + $0x8c] sm:$0x1] }
 0x195   : > { %6836 = vmatprep.mubr.bf16.mxu0 %v6203_v32  ;;  %v3595_v32 = vrot.slane %v3593_v55, 4  ;;  %v8394_v54 = vadd.f32 %v6506_v35, %v6394_v27  ;;  %v6512_v36 = vadd.f32 %v8331_v38, %v8319_v15  ;;  %v6403_v26 = vadd.f32 %v8343_v45, %v8336_v62  ;;  %v7050_v45 = vld [vmem:[%s7221_s24 + $0x28] sm:$0xff]   ;;  %v3478_v35 = vld [vmem:[#allocation2 + $0x98] sm:$0x1] }
 0x196   : > { %v8392_v59 = vpop.f32.mrb[52].mxu0  ;;  %v8396_v5 = vadd.f32 %v6509_v63, %v6397_v12  ;;  %v3594_v11 = vsel %vm7279_vm14, %v6190_v39, %v3593_v55  ;;  %v3607_v29 = vrot.slane %v3474_v16, 5  ;;  %v6515_v56 = vadd.f32 %v8345_v49, %v8338_v13  ;;  %v3476_v49 = vld [vmem:[#allocation2 + $0x90] sm:$0xe] }
 0x197   : > { %v6522_v50 = vpop.f32.mrb[52].mxu1  ;;  %v6411_v42 = vpop.f32.mrb[53].mxu0  ;;  %v8410_v38 = vadd.f32 %v6512_v36, %v6400_v30  ;;  %v3601_v9 = vsel %vm7279_vm14, %v6191_v34, %v3600_v25  ;;  %v3604_v55 = vsel %vm7279_vm14, %v3602_v37, %v3603_v14  ;;  %v3614_v23 = vrot.slane %v3477_v33, 5  ;;  %v3480_v34 = vld [vmem:[#allocation2 + $0xa0] sm:$0xf] }
 0x198   : > { %v6523_v52 = vpop.f32.mrb[53].mxu1  ;;  %v6413_v17 = vpop.f32.mrb[54].mxu0  ;;  %v6192_v27 = vrot.slane %v3473_v22, 9  ;;  %v3610_v13 = vrot.slane %v3475_v28, 5  ;;  %v3609_v12 = vrot.slane %v3607_v29, 4  ;;  %v6406_v39 = vadd.f32 %v8363_v2, %v8353_v60 }
 0x199   : > { %v6525_v3 = vpop.f32.mrb[54].mxu1  ;;  %v6414_v15 = vpop.f32.mrb[55].mxu0  ;;  %v6518_v47 = vadd.f32 %v8365_v46, %v8357_v44  ;;  %v6409_v25 = vadd.f32 %v6408_v41, %v8369_v48  ;;  %v6207_v63 = vcombine.low %v3601_v9, %v3604_v55  ;;  %v3617_v16 = vrot.slane %v3478_v35, 5  ;;  %v8428_v22 = vld [vmem:[#allocation2 + $0xac] sm:$0xf]  ;;  %v7053_v55 = vld [vmem:[%s7221_s24 + $0x40] sm:$0xff]  }
 0x19a   : > { %v6526_v62 = vpop.f32.mrb[55].mxu1  ;;  %v3608_v46 = vsel %vm7279_vm14, %v6192_v27, %v3607_v29  ;;  %v3611_v48 = vsel %vm7279_vm14, %v3609_v12, %v3610_v13  ;;  %v3621_v33 = vrot.slane %v3480_v34, 5  ;;  %v6412_v30 = vadd.f32 %v6411_v42, %v8392_v59  ;;  %v3482_v27 = vld [vmem:[#allocation2 + $0xa8] sm:$0xe]  ;;  %v3484_v13 = vld [vmem:[#allocation2 + $0xb0] sm:$0x1] }
 0x19b   : > { %6881 = vmatmul.mubr.bf16.gmra.mrb[132].mxu1 %v7048_v40  ;;  %v3597_v40 = vsel %vm7279_vm14, %v3595_v32, %v3596_v43  ;;  %v6193_v43 = vrot.slane %v3476_v49, 9  ;;  %v8426_v37 = vadd.f32 %v6518_v47, %v6406_v39  ;;  %v6524_v36 = vadd.f32 %v6523_v52, %v6522_v50 }
 0x19c   : > { %6884 = vmatprep.mubr.bf16.mxu1 %v7049_v4  ;;  %6837 = vmatmul.mubr.bf16.gmra.mrb[136].mxu0 %v6204_v10  ;;  %v8418_v4 = vadd.f32 %v6515_v56, %v6403_v26  ;;  %v6206_v31 = vcombine.low %v3594_v11, %v3597_v40  ;;  %v6521_v10 = vadd.f32 %v6520_v19, %v8371_v53  ;;  %v3479_v53 = vld [vmem:[#allocation2 + $0x9c] sm:$0xe]  ;;  %v3481_v56 = vld [vmem:[#allocation2 + $0xa4] sm:$0x1]  ;;  %v3623_v35 = vrot.slane %v3621_v33, 4 }
 0x19d   : > { %6840 = vmatprep.mubr.bf16.mxu0 %v6205_v18  ;;  %v3616_v18 = vrot.slane %v3614_v23, 4  ;;  %v6415_v26 = vadd.f32 %v6414_v15, %v6413_v17  ;;  %v7052_v40 = vld [vmem:[%s7221_s24 + $0x38] sm:$0xff]   ;;  %v3615_v28 = vsel %vm7279_vm14, %v6193_v43, %v3614_v23  ;;  %v8444_v59 = vadd.f32 %v6524_v36, %v6412_v30 }
 0x19e   : > { %v8430_v60 = vadd.f32 %v6521_v10, %v6409_v25  ;;  %v6208_v52 = vcombine.low %v3608_v46, %v3611_v48  ;;  %v3624_v12 = vrot.slane %v3481_v56, 5  ;;  %v3631_v47 = vrot.slane %v3484_v13, 5  ;;  %v3486_v25 = vld [vmem:[#allocation2 + $0xb8] sm:$0xf]  ;;  %v3489_v10 = vld [vmem:[#allocation2 + $0xc4] sm:$0xf] }
 0x19f   : > { %v3618_v29 = vsel %vm7279_vm14, %v3616_v18, %v3617_v16  ;;  %v3487_v30 = vld [vmem:[#allocation2 + $0xbc] sm:$0x1]  ;;  %v3642_v36 = vrot.slane %v3489_v10, 5 }
 0x1a0   : > { %v6209_v49 = vcombine.low %v3615_v28, %v3618_v29  ;;  %v3488_v28 = vld [vmem:[#allocation2 + $0xc0] sm:$0xe]  ;;  %v3490_v29 = vld [vmem:[#allocation2 + $0xc8] sm:$0x1] }
 0x1a3   : > { %v6528_v32 = vpop.f32.mrb[56].mxu1  ;;  %6885 = vmatmul.mubr.bf16.gmra.mrb[136].mxu1 %v7050_v45  ;;  %v3628_v45 = vrot.slane %v8428_v22, 5  ;;  %v3485_v22 = vld [vmem:[#allocation2 + $0xb4] sm:$0xe] }
 0x1a4   : > { %v6529_v14 = vpop.f32.mrb[57].mxu1  ;;  %6888 = vmatprep.mubr.bf16.mxu1 %v7051_v51  ;;  %6841 = vmatmul.mubr.bf16.gmra.mrb[140].mxu0 %v6206_v31  ;;  %v6527_v51 = vadd.f32 %v6526_v62, %v6525_v3  ;;  %v6194_v31 = vrot.slane %v3479_v53, 9  ;;  %v6195_v3 = vrot.slane %v3482_v27, 9 }
 0x1a5   : > { %v6416_v44 = vpop.f32.mrb[56].mxu0  ;;  %v6531_v2 = vpop.f32.mrb[58].mxu1  ;;  %6844 = vmatprep.mubr.bf16.mxu0 %v6207_v63  ;;  %v6530_v42 = vadd.f32 %v6529_v14, %v6528_v32  ;;  %v3630_v62 = vrot.slane %v3628_v45, 4  ;;  %v3625_v14 = vsel %vm7279_vm14, %v3623_v35, %v3624_v12 }
 0x1a6   : > { %v6417_v41 = vpop.f32.mrb[57].mxu0  ;;  %v6532_v19 = vpop.f32.mrb[59].mxu1  ;;  %v8446_v17 = vadd.f32 %v6527_v51, %v6415_v26  ;;  %v3622_v18 = vsel %vm7279_vm14, %v6194_v31, %v3621_v33  ;;  %v6196_v31 = vrot.slane %v3485_v22, 9 }
 0x1a7   : > { %v6419_v11 = vpop.f32.mrb[58].mxu0  ;;  %v6418_v50 = vadd.f32 %v6417_v41, %v6416_v44  ;;  %v6533_v23 = vadd.f32 %v6532_v19, %v6531_v2  ;;  %v3635_v44 = vrot.slane %v3486_v25, 5  ;;  %v7054_v41 = vld [vmem:[%s7221_s24 + $0x48] sm:$0xff]   ;;  %v3629_v19 = vsel %vm7279_vm14, %v6195_v3, %v3628_v45  ;;  %v7056_v3 = vld [vmem:[%s7221_s24 + $0x58] sm:$0xff]  }
 0x1a8   : > { %v6420_v9 = vpop.f32.mrb[59].mxu0  ;;  %v3632_v33 = vsel %vm7279_vm14, %v3630_v62, %v3631_v47  ;;  %v3638_v45 = vrot.slane %v3487_v30, 5 }
 0x1a9   : > { %v6421_v15 = vadd.f32 %v6420_v9, %v6419_v11  ;;  %v8448_v39 = vadd.f32 %v6530_v42, %v6418_v50  ;;  %v6211_v27 = vcombine.low %v3629_v19, %v3632_v33  ;;  %v3637_v13 = vrot.slane %v3635_v44, 4  ;;  %v8738_v19 = vld [vmem:[#allocation8_spill] sm:$0xff] }
 0x1aa   : > { %v6197_v42 = vrot.slane %v3488_v28, 9  ;;  %v3636_v62 = vsel %vm7279_vm14, %v6196_v31, %v3635_v44  ;;  %v8739_v28 = vld [vmem:[#allocation9_spill] sm:$0xff] }
 0x1ab   : > { %6889 = vmatmul.mubr.bf16.gmra.mrb[140].mxu1 %v7052_v40  ;;  %v8450_v63 = vadd.f32 %v6533_v23, %v6421_v15  ;;  %v6534_v43 = vpop.f32.mrb[60].mxu1  ;;  %v7055_v40 = vld [vmem:[%s7221_s24 + $0x50] sm:$0xff]   ;;  %v3645_v15 = vrot.slane %v3490_v29, 5  ;;  %v3639_v47 = vsel %vm7279_vm14, %v3637_v13, %v3638_v45 }
 0x1ac   : > { %6892 = vmatprep.mubr.bf16.mxu1 %v7053_v55  ;;  %6845 = vmatmul.mubr.bf16.gmra.mrb[144].mxu0 %v6208_v52  ;;  %v6535_v34 = vpop.f32.mrb[61].mxu1  ;;  %v6210_v55 = vcombine.low %v3622_v18, %v3625_v14  ;;  %v3644_v52 = vrot.slane %v3642_v36, 4  ;;  %v3492_v23 = vld [vmem:[#allocation2 + $0xd0] sm:$0xf]  ;;  %v3643_v18 = vsel %vm7279_vm14, %v6197_v42, %v3642_v36  ;;  %v3493_v14 = vld [vmem:[#allocation2 + $0xd4] sm:$0x1] }
 0x1ad   : > { %v6422_v32 = vpop.f32.mrb[60].mxu0  ;;  %6848 = vmatprep.mubr.bf16.mxu0 %v6209_v49  ;;  %v6536_v46 = vadd.f32 %v6535_v34, %v6534_v43  ;;  %v6537_v53 = vpop.f32.mrb[62].mxu1  ;;  %v3649_v25 = vrot.slane %v3492_v23, 5  ;;  %v3491_v34 = vld [vmem:[#allocation2 + $0xcc] sm:$0xe]  ;;  %v7059_v45 = vld [vmem:[%s7221_s24 + $0x70] sm:$0xff]  }
 0x1ae   : > { %v6423_v16 = vpop.f32.mrb[61].mxu0  ;;  %v6538_v11 = vpop.f32.mrb[63].mxu1 }
 0x1af   : > { %v6424_v2 = vadd.f32 %v6423_v16, %v6422_v32  ;;  %v6425_v48 = vpop.f32.mrb[62].mxu0  ;;  %v6539_v9 = vadd.f32 %v6538_v11, %v6537_v53  ;;  %v3646_v16 = vsel %vm7279_vm14, %v3644_v52, %v3645_v15  ;;  %v6198_v11 = vrot.slane %v3491_v34, 9 }
 0x1b0   : > { %v6426_v26 = vpop.f32.mrb[63].mxu0  ;;  %v3651_v36 = vrot.slane %v3649_v25, 4 }
 0x1b1   : > { %v8462_v56 = vadd.f32 %v6536_v46, %v6424_v2  ;;  %v6427_v51 = vadd.f32 %v6426_v26, %v6425_v48  ;;  %v7057_v48 = vld [vmem:[%s7221_s24 + $0x60] sm:$0xff]   ;;  %v6213_v26 = vcombine.low %v3643_v18, %v3646_v16  ;;  %v8741_v18 = vld [vmem:[#allocation11_spill] sm:$0xff] }
 0x1b3   : > { %v8464_v50 = vadd.f32 %v6539_v9, %v6427_v51  ;;  %6893 = vmatmul.mubr.bf16.gmra.mrb[144].mxu1 %v7054_v41  ;;  %v6668_v49 = vpop.f32.mrb[64].mxu1  ;;  %v6212_v41 = vcombine.low %v3636_v62, %v3639_v47 }
 0x1b4   : > { %6896 = vmatprep.mubr.bf16.mxu1 %v7055_v40  ;;  %6849 = vmatmul.mubr.bf16.gmra.mrb[148].mxu0 %v6210_v55  ;;  %v6669_v12 = vpop.f32.mrb[65].mxu1  ;;  %v3652_v40 = vrot.slane %v3493_v14, 5  ;;  %v3650_v55 = vsel %vm7279_vm14, %v6198_v11, %v3649_v25  ;;  %v8742_v11 = vld [vmem:[#allocation12_spill] sm:$0xff] }
 0x1b5   : > { %v6556_v35 = vpop.f32.mrb[64].mxu0  ;;  %6852 = vmatprep.mubr.bf16.mxu0 %v6211_v27  ;;  %v6670_v32 = vadd.f32 %v6669_v12, %v6668_v49  ;;  %v6671_v43 = vpop.f32.mrb[66].mxu1  ;;  %v7058_v27 = vld [vmem:[%s7221_s24 + $0x68] sm:$0xff]  }
 0x1b6   : > { %v6557_v10 = vpop.f32.mrb[65].mxu0  ;;  %v6672_v46 = vpop.f32.mrb[67].mxu1  ;;  %v3653_v31 = vsel %vm7279_vm14, %v3651_v36, %v3652_v40 }
 0x1b7   : > { %v6558_v22 = vadd.f32 %v6557_v10, %v6556_v35  ;;  %v6559_v2 = vpop.f32.mrb[66].mxu0  ;;  %v6673_v53 = vadd.f32 %v6672_v46, %v6671_v43  ;;  %v6214_v52 = vcombine.low %v3650_v55, %v3653_v31  ;;  %v7060_v43 = vld [vmem:[%s7221_s24 + $0x78] sm:$0xff]   ;;  %s6314_s24 = sshll.u32 %s8749_s22, 8 }
 0x1b8   : > { %v6560_v44 = vpop.f32.mrb[67].mxu0  ;;  %s8579_s19 = scalar_lea.vmem %s8699_s3, %s6314_s24  ;;  %s8590_s25 = scalar_lea.vmem %s8701_s5, %s6314_s24 }
 0x1b9   : > { %v4811_v33 = vadd.f32 %v6558_v22, %v8738_v19  ;;  %v6561_v30 = vadd.f32 %v6560_v44, %v6559_v2 }
 0x1bb   : > { %6897 = vmatmul.mubr.bf16.gmra.mrb[148].mxu1 %v7056_v3  ;;  %v4814_v29 = vadd.f32 %v6561_v30, %v8739_v28  ;;  %v8478_v51 = vadd.f32 %v6670_v32, %v4811_v33  ;;  %v8743_v28 = vld [vmem:[#allocation13_spill] sm:$0xff] }
 0x1bc   : > { %6900 = vmatprep.mubr.bf16.mxu1 %v7057_v48  ;;  %6853 = vmatmul.mubr.bf16.gmra.mrb[152].mxu0 %v6212_v41 }
 0x1bd   : > { %v8480_v9 = vadd.f32 %v6673_v53, %v4814_v29  ;;  %6856 = vmatprep.mubr.bf16.mxu0 %v6213_v26  ;;  %v6674_v13 = vpop.f32.mrb[68].mxu1 }
 0x1be   : > { %v6675_v42 = vpop.f32.mrb[69].mxu1 }
 0x1bf   : > { %v6562_v15 = vpop.f32.mrb[68].mxu0  ;;  %v6676_v23 = vadd.f32 %v6675_v42, %v6674_v13  ;;  %v6677_v49 = vpop.f32.mrb[70].mxu1 }
 0x1c0   : > { %v6563_v35 = vpop.f32.mrb[69].mxu0  ;;  %v6678_v12 = vpop.f32.mrb[71].mxu1 }
 0x1c1   : > { %v6564_v3 = vadd.f32 %v6563_v35, %v6562_v15  ;;  %v6565_v62 = vpop.f32.mrb[70].mxu0  ;;  %v6679_v47 = vadd.f32 %v6678_v12, %v6677_v49 }
 0x1c2   : > { %v6566_v25 = vpop.f32.mrb[71].mxu0 }
 0x1c3   : > { %6901 = vmatmul.mubr.bf16.gmra.mrb[152].mxu1 %v7058_v27  ;;  %v4819_v10 = vadd.f32 %v6564_v3, %v8740_v21  ;;  %v6567_v32 = vadd.f32 %v6566_v25, %v6565_v62  ;;  %v8744_v62 = vld [vmem:[#allocation7_spill] sm:$0xff]  ;;  %v8745_v21 = vld [vmem:[#allocation14_spill] sm:$0xff] }
 0x1c4   : > { %6904 = vmatprep.mubr.bf16.mxu1 %v7059_v45  ;;  %6857 = vmatmul.mubr.bf16.gmra.mrb[156].mxu0 %v6214_v52 }
 0x1c5   : > { %v4822_v16 = vadd.f32 %v6567_v32, %v8741_v18  ;;  %v8491_v34 = vadd.f32 %v6676_v23, %v4819_v10 }
 0x1c7   : > { %v6680_v14 = vpop.f32.mrb[72].mxu1  ;;  %v8493_v22 = vadd.f32 %v6679_v47, %v4822_v16 }
 0x1c8   : > { %v6681_v2 = vpop.f32.mrb[73].mxu1 }
 0x1c9   : > { %v6568_v46 = vpop.f32.mrb[72].mxu0  ;;  %v6682_v48 = vadd.f32 %v6681_v2, %v6680_v14  ;;  %v6683_v44 = vpop.f32.mrb[74].mxu1 }
 0x1ca   : > { %v6569_v53 = vpop.f32.mrb[73].mxu0  ;;  %v6684_v41 = vpop.f32.mrb[75].mxu1 }
 0x1cb   : > { %6905 = vmatmul.mubr.bf16.gmra.mrb[156].mxu1 %v7060_v43  ;;  %v6570_v19 = vadd.f32 %v6569_v53, %v6568_v46  ;;  %v6571_v33 = vpop.f32.mrb[74].mxu0  ;;  %v6685_v30 = vadd.f32 %v6684_v41, %v6683_v44 }
 0x1cc   : > { %v6572_v26 = vpop.f32.mrb[75].mxu0 }
 0x1cd   : > { %v4827_v36 = vadd.f32 %v6570_v19, %v8742_v11  ;;  %v6573_v40 = vadd.f32 %v6572_v26, %v6571_v33 }
 0x1cf   : > { %v4830_v29 = vadd.f32 %v6573_v40, %v8743_v28  ;;  %v8497_v55 = vadd.f32 %v6682_v48, %v4827_v36  ;;  %v8747_v36 = vld [vmem:[#allocation6_spill] sm:$0xff] }
 0x1d1   : > { %v8499_v31 = vadd.f32 %v6685_v30, %v4830_v29  ;;  %v8746_v30 = vld [vmem:[#allocation5_spill] sm:$0xff] }
 0x1d3   : > { %v6686_v27 = vpop.f32.mrb[76].mxu1  ;;  %v6574_v13 = vpop.f32.mrb[76].mxu0 }
 0x1d4   : > { %v6687_v45 = vpop.f32.mrb[77].mxu1  ;;  %v6575_v42 = vpop.f32.mrb[77].mxu0 }
 0x1d5   : > { %v6688_v52 = vadd.f32 %v6687_v45, %v6686_v27  ;;  %v6689_v15 = vpop.f32.mrb[78].mxu1  ;;  %v6576_v23 = vadd.f32 %v6575_v42, %v6574_v13  ;;  %v6577_v49 = vpop.f32.mrb[78].mxu0 }
 0x1d6   : > { %v6690_v35 = vpop.f32.mrb[79].mxu1  ;;  %v6578_v12 = vpop.f32.mrb[79].mxu0 }
 0x1d7   : > { %v6691_v3 = vadd.f32 %v6690_v35, %v6689_v15  ;;  %v4835_v47 = vadd.f32 %v6576_v23, %v8744_v62  ;;  %v6579_v25 = vadd.f32 %v6578_v12, %v6577_v49 }
 0x1d9   : > { %v4838_v10 = vadd.f32 %v6579_v25, %v8745_v21  ;;  %v8503_v32 = vadd.f32 %v6688_v52, %v4835_v47 }
 0x1db   : > { %v8505_v43 = vadd.f32 %v6691_v3, %v4838_v10 }
 0x1dc   : > { %v6692_v18 = vpop.f32.mrb[80].mxu1 }
 0x1dd   : > { %v6693_v14 = vpop.f32.mrb[81].mxu1 }
 0x1de   : > { %v6580_v16 = vpop.f32.mrb[80].mxu0  ;;  %v6694_v46 = vadd.f32 %v6693_v14, %v6692_v18  ;;  %v6695_v48 = vpop.f32.mrb[82].mxu1 }
 0x1df   : > { %v6581_v2 = vpop.f32.mrb[81].mxu0  ;;  %v6696_v41 = vpop.f32.mrb[83].mxu1 }
 0x1e0   : > { %v6582_v44 = vadd.f32 %v6581_v2, %v6580_v16  ;;  %v6583_v53 = vpop.f32.mrb[82].mxu0  ;;  %v6697_v33 = vadd.f32 %v6696_v41, %v6695_v48 }
 0x1e1   : > { %v6584_v19 = vpop.f32.mrb[83].mxu0 }
 0x1e2   : > { %v4843_v26 = vadd.f32 %v6582_v44, %v8746_v30  ;;  %v6585_v11 = vadd.f32 %v6584_v19, %v6583_v53 }
 0x1e4   : > { %v4846_v40 = vadd.f32 %v6585_v11, %v8747_v36  ;;  %v8509_v28 = vadd.f32 %v6694_v46, %v4843_v26 }
 0x1e6   : > { %v8511_v29 = vadd.f32 %v6697_v33, %v4846_v40 }
 0x1e7   : > { %v6698_v13 = vpop.f32.mrb[84].mxu1 }
 0x1e8   : > { %v6586_v27 = vpop.f32.mrb[84].mxu0  ;;  %v6699_v42 = vpop.f32.mrb[85].mxu1 }
 0x1e9   : > { %v6587_v45 = vpop.f32.mrb[85].mxu0  ;;  %v6700_v15 = vadd.f32 %v6699_v42, %v6698_v13  ;;  %v6701_v49 = vpop.f32.mrb[86].mxu1 }
 0x1ea   : > { %v6588_v52 = vadd.f32 %v6587_v45, %v6586_v27  ;;  %v6589_v23 = vpop.f32.mrb[86].mxu0  ;;  %v6702_v12 = vpop.f32.mrb[87].mxu1 }
 0x1eb   : > { %v6590_v35 = vpop.f32.mrb[87].mxu0  ;;  %v6703_v47 = vadd.f32 %v6702_v12, %v6701_v49 }
 0x1ec   : > { %v4851_v3 = vadd.f32 %v6588_v52, %v8218_v8  ;;  %v6591_v62 = vadd.f32 %v6590_v35, %v6589_v23 }
 0x1ee   : > { %v4854_v25 = vadd.f32 %v6591_v62, %v8241_v20  ;;  %v8515_v21 = vadd.f32 %v6700_v15, %v4851_v3 }
 0x1f0   : > { %v8517_v10 = vadd.f32 %v6703_v47, %v4854_v25 }
 0x1f1   : > { %v6704_v18 = vpop.f32.mrb[88].mxu1 }
 0x1f2   : > { %v6592_v16 = vpop.f32.mrb[88].mxu0  ;;  %v6705_v14 = vpop.f32.mrb[89].mxu1 }
 0x1f3   : > { %v6593_v2 = vpop.f32.mrb[89].mxu0  ;;  %v6706_v46 = vadd.f32 %v6705_v14, %v6704_v18  ;;  %v6707_v48 = vpop.f32.mrb[90].mxu1 }
 0x1f4   : > { %v6594_v44 = vadd.f32 %v6593_v2, %v6592_v16  ;;  %v6595_v53 = vpop.f32.mrb[90].mxu0  ;;  %v6708_v41 = vpop.f32.mrb[91].mxu1 }
 0x1f5   : > { %v6596_v19 = vpop.f32.mrb[91].mxu0  ;;  %v6709_v33 = vadd.f32 %v6708_v41, %v6707_v48 }
 0x1f6   : > { %v4859_v8 = vadd.f32 %v6594_v44, %v8271_v7  ;;  %v6597_v30 = vadd.f32 %v6596_v19, %v6595_v53 }
 0x1f8   : > { %v4862_v20 = vadd.f32 %v6597_v30, %v8273_v0  ;;  %v8521_v26 = vadd.f32 %v6706_v46, %v4859_v8 }
 0x1fa   : > { %v8523_v11 = vadd.f32 %v6709_v33, %v4862_v20 }
 0x1fb   : > { %v6710_v36 = vpop.f32.mrb[92].mxu1 }
 0x1fc   : > { %v6598_v40 = vpop.f32.mrb[92].mxu0  ;;  %v6711_v27 = vpop.f32.mrb[93].mxu1 }
 0x1fd   : > { %v6599_v13 = vpop.f32.mrb[93].mxu0  ;;  %v6712_v45 = vadd.f32 %v6711_v27, %v6710_v36  ;;  %v6713_v42 = vpop.f32.mrb[94].mxu1 }
 0x1fe   : > { %v6600_v52 = vadd.f32 %v6599_v13, %v6598_v40  ;;  %v6601_v15 = vpop.f32.mrb[94].mxu0  ;;  %v6714_v23 = vpop.f32.mrb[95].mxu1 }
 0x1ff   : > { %v6602_v49 = vpop.f32.mrb[95].mxu0  ;;  %v6715_v35 = vadd.f32 %v6714_v23, %v6713_v42 }
 0x200   : > { %v4867_v7 = vadd.f32 %v6600_v52, %v8304_v1  ;;  %v6603_v12 = vadd.f32 %v6602_v49, %v6601_v15 }
 0x202   : > { %v4870_v0 = vadd.f32 %v6603_v12, %v8306_v6  ;;  %v8527_v3 = vadd.f32 %v6712_v45, %v4867_v7 }
 0x204   : > { %v8529_v62 = vadd.f32 %v6715_v35, %v4870_v0 }
 0x206   : > { %v6716_v47 = vpop.f32.mrb[96].mxu1  ;;  %v6604_v25 = vpop.f32.mrb[96].mxu0 }
 0x207   : > { %v6717_v18 = vpop.f32.mrb[97].mxu1  ;;  %v6605_v16 = vpop.f32.mrb[97].mxu0 }
 0x208   : > { %v6718_v14 = vadd.f32 %v6717_v18, %v6716_v47  ;;  %v6719_v2 = vpop.f32.mrb[98].mxu1  ;;  %v6606_v46 = vadd.f32 %v6605_v16, %v6604_v25  ;;  %v6607_v48 = vpop.f32.mrb[98].mxu0 }
 0x209   : > { %v6720_v44 = vpop.f32.mrb[99].mxu1  ;;  %v6608_v53 = vpop.f32.mrb[99].mxu0 }
 0x20a   : > { %v6721_v41 = vadd.f32 %v6720_v44, %v6719_v2  ;;  %v4875_v1 = vadd.f32 %v6606_v46, %v8334_v24  ;;  %v6609_v19 = vadd.f32 %v6608_v53, %v6607_v48 }
 0x20c   : > { %v4878_v6 = vadd.f32 %v6609_v19, %v8341_v57  ;;  %v8533_v33 = vadd.f32 %v6718_v14, %v4875_v1 }
 0x20e   : > { %v8535_v8 = vadd.f32 %v6721_v41, %v4878_v6 }
 0x210   : > { %v6722_v20 = vpop.f32.mrb[100].mxu1 }
 0x211   : > { %v6610_v30 = vpop.f32.mrb[100].mxu0  ;;  %v6723_v40 = vpop.f32.mrb[101].mxu1 }
 0x212   : > { %v6611_v36 = vpop.f32.mrb[101].mxu0  ;;  %v6724_v13 = vadd.f32 %v6723_v40, %v6722_v20  ;;  %v6725_v42 = vpop.f32.mrb[102].mxu1 }
 0x213   : > { %v6612_v27 = vadd.f32 %v6611_v36, %v6610_v30  ;;  %v6613_v45 = vpop.f32.mrb[102].mxu0  ;;  %v6726_v15 = vpop.f32.mrb[103].mxu1 }
 0x214   : > { %v6614_v52 = vpop.f32.mrb[103].mxu0  ;;  %v6727_v49 = vadd.f32 %v6726_v15, %v6725_v42 }
 0x215   : > { %v4883_v23 = vadd.f32 %v6612_v27, %v8359_v61  ;;  %v6615_v24 = vadd.f32 %v6614_v52, %v6613_v45 }
 0x217   : > { %v4886_v57 = vadd.f32 %v6615_v24, %v8367_v58  ;;  %v8539_v35 = vadd.f32 %v6724_v13, %v4883_v23 }
 0x219   : > { %v8541_v7 = vadd.f32 %v6727_v49, %v4886_v57 }
 0x21a   : > { %v6728_v12 = vpop.f32.mrb[104].mxu1 }
 0x21b   : > { %v6616_v0 = vpop.f32.mrb[104].mxu0  ;;  %v6729_v47 = vpop.f32.mrb[105].mxu1 }
 0x21c   : > { %v6617_v25 = vpop.f32.mrb[105].mxu0  ;;  %v6730_v18 = vadd.f32 %v6729_v47, %v6728_v12  ;;  %v6731_v16 = vpop.f32.mrb[106].mxu1 }
 0x21d   : > { %v6618_v14 = vadd.f32 %v6617_v25, %v6616_v0  ;;  %v6619_v2 = vpop.f32.mrb[106].mxu0  ;;  %v6732_v46 = vpop.f32.mrb[107].mxu1 }
 0x21e   : > { %v6620_v48 = vpop.f32.mrb[107].mxu0  ;;  %v6733_v44 = vadd.f32 %v6732_v46, %v6731_v16 }
 0x21f   : > { %v4891_v61 = vadd.f32 %v6618_v14, %v8394_v54  ;;  %v6621_v53 = vadd.f32 %v6620_v48, %v6619_v2 }
 0x221   : > { %v4894_v58 = vadd.f32 %v6621_v53, %v8396_v5  ;;  %v8545_v41 = vadd.f32 %v6730_v18, %v4891_v61 }
 0x223   : > { %v8547_v1 = vadd.f32 %v6733_v44, %v4894_v58 }
 0x225   : > { %v6734_v19 = vpop.f32.mrb[108].mxu1 }
 0x226   : > { %v6735_v6 = vpop.f32.mrb[109].mxu1 }
 0x227   : > { %v6622_v30 = vpop.f32.mrb[108].mxu0  ;;  %v6736_v20 = vadd.f32 %v6735_v6, %v6734_v19  ;;  %v6737_v36 = vpop.f32.mrb[110].mxu1 }
 0x228   : > { %v6623_v40 = vpop.f32.mrb[109].mxu0  ;;  %v6738_v27 = vpop.f32.mrb[111].mxu1 }
 0x229   : > { %v6624_v13 = vadd.f32 %v6623_v40, %v6622_v30  ;;  %v6625_v45 = vpop.f32.mrb[110].mxu0  ;;  %v6739_v42 = vadd.f32 %v6738_v27, %v6737_v36 }
 0x22a   : > { %v6626_v52 = vpop.f32.mrb[111].mxu0 }
 0x22b   : > { %v4899_v54 = vadd.f32 %v6624_v13, %v8410_v38  ;;  %v6627_v15 = vadd.f32 %v6626_v52, %v6625_v45 }
 0x22d   : > { %v4902_v5 = vadd.f32 %v6627_v15, %v8418_v4  ;;  %v8551_v23 = vadd.f32 %v6736_v20, %v4899_v54 }
 0x22f   : > { %v8553_v24 = vadd.f32 %v6739_v42, %v4902_v5 }
 0x230   : > { %v6740_v49 = vpop.f32.mrb[112].mxu1 }
 0x231   : > { %v6741_v57 = vpop.f32.mrb[113].mxu1 }
 0x232   : > { %v6742_v12 = vadd.f32 %v6741_v57, %v6740_v49  ;;  %v6743_v0 = vpop.f32.mrb[114].mxu1 }
 0x233   : > { %v6628_v47 = vpop.f32.mrb[112].mxu0  ;;  %v6744_v25 = vpop.f32.mrb[115].mxu1 }
 0x234   : > { %v6629_v18 = vpop.f32.mrb[113].mxu0  ;;  %v6745_v16 = vadd.f32 %v6744_v25, %v6743_v0 }
 0x235   : > { %v6630_v14 = vadd.f32 %v6629_v18, %v6628_v47  ;;  %v6631_v2 = vpop.f32.mrb[114].mxu0 }
 0x236   : > { %v6632_v46 = vpop.f32.mrb[115].mxu0 }
 0x237   : > { %v4907_v38 = vadd.f32 %v6630_v14, %v8426_v37  ;;  %v6633_v48 = vadd.f32 %v6632_v46, %v6631_v2 }
 0x239   : > { %v4910_v4 = vadd.f32 %v6633_v48, %v8430_v60  ;;  %v8557_v44 = vadd.f32 %v6742_v12, %v4907_v38 }
 0x23b   : > { %v8559_v61 = vadd.f32 %v6745_v16, %v4910_v4 }
 0x23c   : > { %v6746_v53 = vpop.f32.mrb[116].mxu1 }
 0x23d   : > { %v6747_v58 = vpop.f32.mrb[117].mxu1 }
 0x23e   : > { %v6748_v6 = vadd.f32 %v6747_v58, %v6746_v53  ;;  %v6749_v30 = vpop.f32.mrb[118].mxu1 }
 0x23f   : > { %v6634_v19 = vpop.f32.mrb[116].mxu0  ;;  %v6750_v36 = vpop.f32.mrb[119].mxu1 }
 0x240   : > { %v6635_v20 = vpop.f32.mrb[117].mxu0  ;;  %v6751_v13 = vadd.f32 %v6750_v36, %v6749_v30 }
 0x241   : > { %v6636_v40 = vadd.f32 %v6635_v20, %v6634_v19  ;;  %v6637_v27 = vpop.f32.mrb[118].mxu0 }
 0x242   : > { %v6638_v45 = vpop.f32.mrb[119].mxu0 }
 0x243   : > { %v4915_v37 = vadd.f32 %v6636_v40, %v8444_v59  ;;  %v6639_v42 = vadd.f32 %v6638_v45, %v6637_v27 }
 0x245   : > { %v4918_v60 = vadd.f32 %v6639_v42, %v8446_v17  ;;  %v8563_v52 = vadd.f32 %v6748_v6, %v4915_v37 }
 0x247   : > { %v8565_v54 = vadd.f32 %v6751_v13, %v4918_v60 }
 0x24a   : > { %v6640_v15 = vpop.f32.mrb[120].mxu0 }
 0x24b   : > { %v6641_v5 = vpop.f32.mrb[121].mxu0 }
 0x24c   : > { %v6642_v49 = vadd.f32 %v6641_v5, %v6640_v15  ;;  %v6643_v57 = vpop.f32.mrb[122].mxu0 }
 0x24d   : > { %v6644_v12 = vpop.f32.mrb[123].mxu0 }
 0x24e   : > { %v4923_v0 = vadd.f32 %v6642_v49, %v8448_v39  ;;  %v6645_v47 = vadd.f32 %v6644_v12, %v6643_v57 }
 0x250   : > { %v4926_v25 = vadd.f32 %v6645_v47, %v8450_v63 }
 0x256   : > { %v6752_v18 = vpop.f32.mrb[120].mxu1 }
 0x257   : > { %v6753_v59 = vpop.f32.mrb[121].mxu1  ;;  %v6646_v17 = vpop.f32.mrb[124].mxu0 }
 0x258   : > { %v6754_v16 = vadd.f32 %v6753_v59, %v6752_v18  ;;  %v6755_v14 = vpop.f32.mrb[122].mxu1  ;;  %v6647_v46 = vpop.f32.mrb[125].mxu0 }
 0x259   : > { %v6756_v2 = vpop.f32.mrb[123].mxu1  ;;  %v6648_v48 = vadd.f32 %v6647_v46, %v6646_v17  ;;  %v6649_v4 = vpop.f32.mrb[126].mxu0 }
 0x25a   : > { %v6757_v38 = vadd.f32 %v6756_v2, %v6755_v14  ;;  %v8569_v53 = vadd.f32 %v6754_v16, %v4923_v0  ;;  %v6650_v58 = vpop.f32.mrb[127].mxu0 }
 0x25b   : > { %v4931_v19 = vadd.f32 %v6648_v48, %v8462_v56  ;;  %v6651_v39 = vadd.f32 %v6650_v58, %v6649_v4 }
 0x25c   : > { %v8572_v6 = vadd.f32 %v6757_v38, %v4926_v25 }
 0x25d   : > { %v4934_v30 = vadd.f32 %v6651_v39, %v8464_v50 }
 0x25e   : > { %v6758_v63 = vpop.f32.mrb[124].mxu1 }
 0x25f   : > { %v6759_v20 = vpop.f32.mrb[125].mxu1  ;;  %v6830_v27 = vpop.f32.mrb[128].mxu0 }
 0x260   : > { %v6760_v36 = vadd.f32 %v6759_v20, %v6758_v63  ;;  %v6761_v40 = vpop.f32.mrb[126].mxu1  ;;  %v5141_v13 = vadd.f32 %v6830_v27, %v8491_v34  ;;  %v5132_v45 = vpop.f32.mrb[129].mxu0 }
 0x261   : > { %v6762_v56 = vpop.f32.mrb[127].mxu1  ;;  %v5133_v50 = vadd.f32 %v5132_v45, %v8478_v51  ;;  %v6831_v42 = vpop.f32.mrb[130].mxu0 }
 0x262   : > { %v6763_v37 = vadd.f32 %v6762_v56, %v6761_v40  ;;  %v8583_v60 = vadd.f32 %v6760_v36, %v4931_v19  ;;  %5369 = vst [vmem:[%s8579_s19 + $0x10] sm:$0xff] %v5141_v13  ;;  %v5144_v15 = vadd.f32 %v6831_v42, %v8493_v22  ;;  %v5135_v5 = vpop.f32.mrb[131].mxu0  ;;  %v5299_v47 = vmul.f32 %v5141_v13, %v5141_v13 }
 0x263   : > { %5367 = vst [vmem:[%s8579_s19] sm:$0xff] %v5133_v50  ;;  %v5136_v34 = vadd.f32 %v5135_v5, %v8480_v9  ;;  %v5297_v57 = vmul.f32 %v5133_v50, %v5133_v50 }
 0x264   : > { %v8594_v49 = vadd.f32 %v6763_v37, %v4934_v30  ;;  %5370 = vst [vmem:[%s8579_s19 + $0x18] sm:$0xff] %v5144_v15  ;;  %v5300_v14 = vmul.f32 %v5144_v15, %v5144_v15 }
 0x265   : > { %v5259_v12 = vadd.f32 %v5136_v34, %v5133_v50  ;;  %v5298_v0 = vmul.f32 %v5136_v34, %v5136_v34  ;;  %5368 = vst [vmem:[%s8579_s19 + $0x8] sm:$0xff] %v5136_v34 }
 0x266   : > { %v6878_v51 = vpop.f32.mrb[128].mxu1 }
 0x267   : > { %5830 = vst [vmem:[%s8590_s25 + $0x10] sm:$0xff] %v6878_v51  ;;  %v5593_v22 = vpop.f32.mrb[129].mxu1  ;;  %v5260_v59 = vadd.f32 %v5259_v12, %v5141_v13  ;;  %v5329_v16 = vadd.f32 %v5298_v0, %v5297_v57  ;;  %v6834_v9 = vpop.f32.mrb[132].mxu0  ;;  %v5760_v39 = vmul.f32 %v6878_v51, %v6878_v51 }
 0x268   : > { %v5758_v25 = vmul.f32 %v5593_v22, %v5593_v22  ;;  %5828 = vst [vmem:[%s8590_s25] sm:$0xff] %v5593_v22  ;;  %v6879_v18 = vpop.f32.mrb[130].mxu1  ;;  %v5157_v2 = vadd.f32 %v6834_v9, %v8503_v32  ;;  %v5148_v46 = vpop.f32.mrb[133].mxu0 }
 0x269   : > { %5831 = vst [vmem:[%s8590_s25 + $0x18] sm:$0xff] %v6879_v18  ;;  %v5596_v17 = vpop.f32.mrb[131].mxu1  ;;  %v5330_v38 = vadd.f32 %v5329_v16, %v5299_v47  ;;  %v5149_v58 = vadd.f32 %v5148_v46, %v8497_v55  ;;  %v6835_v19 = vpop.f32.mrb[134].mxu0  ;;  %v5261_v63 = vadd.f32 %v5260_v59, %v5144_v15  ;;  %v5761_v55 = vmul.f32 %v6879_v18, %v6879_v18 }
 0x26a   : > { %v5720_v48 = vadd.f32 %v5596_v17, %v5593_v22  ;;  %v5759_v4 = vmul.f32 %v5596_v17, %v5596_v17  ;;  %5829 = vst [vmem:[%s8590_s25 + $0x8] sm:$0xff] %v5596_v17  ;;  %5373 = vst [vmem:[%s8579_s19 + $0x30] sm:$0xff] %v5157_v2  ;;  %v5160_v30 = vadd.f32 %v6835_v19, %v8505_v43  ;;  %v5151_v20 = vpop.f32.mrb[135].mxu0 }
 0x26b   : > { %v5301_v32 = vmul.f32 %v5149_v58, %v5149_v58  ;;  %v5331_v27 = vadd.f32 %v5330_v38, %v5300_v14  ;;  %5371 = vst [vmem:[%s8579_s19 + $0x20] sm:$0xff] %v5149_v58  ;;  %v5262_v56 = vadd.f32 %v5261_v63, %v5149_v58  ;;  %v5152_v13 = vadd.f32 %v5151_v20, %v8499_v31 }
 0x26c   : > { %v5721_v36 = vadd.f32 %v6878_v51, %v5720_v48  ;;  %v5790_v40 = vadd.f32 %v5759_v4, %v5758_v25  ;;  %5374 = vst [vmem:[%s8579_s19 + $0x38] sm:$0xff] %v5160_v30  ;;  %v5303_v34 = vmul.f32 %v5157_v2, %v5157_v2  ;;  %v5304_v31 = vmul.f32 %v5160_v30, %v5160_v30 }
 0x26d   : > { %v5332_v50 = vadd.f32 %v5331_v27, %v5301_v32  ;;  %v5263_v15 = vadd.f32 %v5262_v56, %v5152_v13  ;;  %v5302_v5 = vmul.f32 %v5152_v13, %v5152_v13  ;;  %5372 = vst [vmem:[%s8579_s19 + $0x28] sm:$0xff] %v5152_v13 }
 0x26e   : > { %v5791_v45 = vadd.f32 %v5790_v40, %v5760_v39  ;;  %v6882_v37 = vpop.f32.mrb[132].mxu1  ;;  %v5722_v42 = vadd.f32 %v6879_v18, %v5721_v36 }
 0x26f   : > { %5834 = vst [vmem:[%s8590_s25 + $0x30] sm:$0xff] %v6882_v37  ;;  %v5609_v43 = vpop.f32.mrb[133].mxu1  ;;  %v6838_v22 = vpop.f32.mrb[136].mxu0  ;;  %v5264_v47 = vadd.f32 %v5263_v15, %v5157_v2  ;;  %v5333_v25 = vadd.f32 %v5332_v50, %v5302_v5  ;;  %v5764_v48 = vmul.f32 %v6882_v37, %v6882_v37 }
 0x270   : > { %v5723_v51 = vadd.f32 %v5722_v42, %v5609_v43  ;;  %v5762_v57 = vmul.f32 %v5609_v43, %v5609_v43  ;;  %v5792_v12 = vadd.f32 %v5791_v45, %v5761_v55  ;;  %5832 = vst [vmem:[%s8590_s25 + $0x20] sm:$0xff] %v5609_v43  ;;  %v6883_v0 = vpop.f32.mrb[134].mxu1  ;;  %v5173_v18 = vadd.f32 %v6838_v22, %v8515_v21  ;;  %v5164_v16 = vpop.f32.mrb[137].mxu0 }
 0x271   : > { %5835 = vst [vmem:[%s8590_s25 + $0x38] sm:$0xff] %v6883_v0  ;;  %v5612_v59 = vpop.f32.mrb[135].mxu1  ;;  %v5165_v46 = vadd.f32 %v5164_v16, %v8509_v28  ;;  %v6839_v38 = vpop.f32.mrb[138].mxu0  ;;  %v5334_v4 = vadd.f32 %v5333_v25, %v5303_v34  ;;  %v5265_v58 = vadd.f32 %v5264_v47, %v5160_v30  ;;  %v5765_v28 = vmul.f32 %v6883_v0, %v6883_v0 }
 0x272   : > { %v5793_v9 = vadd.f32 %v5792_v12, %v5762_v57  ;;  %v5724_v14 = vadd.f32 %v5723_v51, %v5612_v59  ;;  %v5763_v17 = vmul.f32 %v5612_v59, %v5612_v59  ;;  %5833 = vst [vmem:[%s8590_s25 + $0x28] sm:$0xff] %v5612_v59  ;;  %5377 = vst [vmem:[%s8579_s19 + $0x50] sm:$0xff] %v5173_v18  ;;  %v5167_v19 = vpop.f32.mrb[139].mxu0 }
 0x273   : > { %v5176_v2 = vadd.f32 %v6839_v38, %v8517_v10  ;;  %v5305_v63 = vmul.f32 %v5165_v46, %v5165_v46  ;;  %5375 = vst [vmem:[%s8579_s19 + $0x40] sm:$0xff] %v5165_v46  ;;  %v5168_v20 = vadd.f32 %v5167_v19, %v8511_v29  ;;  %v5266_v36 = vadd.f32 %v5265_v58, %v5165_v46 }
 0x274   : > { %v5725_v21 = vadd.f32 %v6882_v37, %v5724_v14  ;;  %v5794_v39 = vadd.f32 %v5793_v9, %v5763_v17  ;;  %v5335_v40 = vadd.f32 %v5334_v4, %v5304_v31  ;;  %v5307_v45 = vmul.f32 %v5173_v18, %v5173_v18 }
 0x275   : > { %5378 = vst [vmem:[%s8579_s19 + $0x58] sm:$0xff] %v5176_v2  ;;  %v5306_v56 = vmul.f32 %v5168_v20, %v5168_v20  ;;  %5376 = vst [vmem:[%s8579_s19 + $0x48] sm:$0xff] %v5168_v20  ;;  %v5267_v55 = vadd.f32 %v5266_v36, %v5168_v20  ;;  %v5308_v15 = vmul.f32 %v5176_v2, %v5176_v2 }
 0x276   : > { %v5795_v32 = vadd.f32 %v5794_v39, %v5764_v48  ;;  %v6886_v27 = vpop.f32.mrb[136].mxu1  ;;  %v5726_v30 = vadd.f32 %v6883_v0, %v5725_v21  ;;  %v5336_v10 = vadd.f32 %v5335_v40, %v5305_v63 }
 0x277   : > { %5838 = vst [vmem:[%s8590_s25 + $0x50] sm:$0xff] %v6886_v27  ;;  %v5625_v13 = vpop.f32.mrb[137].mxu1  ;;  %v6842_v43 = vpop.f32.mrb[140].mxu0  ;;  %v5268_v5 = vadd.f32 %v5267_v55, %v5173_v18  ;;  %v5768_v59 = vmul.f32 %v6886_v27, %v6886_v27 }
 0x278   : > { %v5727_v37 = vadd.f32 %v5726_v30, %v5625_v13  ;;  %v5766_v50 = vmul.f32 %v5625_v13, %v5625_v13  ;;  %v5796_v29 = vadd.f32 %v5795_v32, %v5765_v28  ;;  %5836 = vst [vmem:[%s8590_s25 + $0x40] sm:$0xff] %v5625_v13  ;;  %v6887_v42 = vpop.f32.mrb[138].mxu1  ;;  %v5337_v34 = vadd.f32 %v5336_v10, %v5306_v56  ;;  %v5180_v12 = vpop.f32.mrb[141].mxu0 }
 0x279   : > { %5839 = vst [vmem:[%s8590_s25 + $0x58] sm:$0xff] %v6887_v42  ;;  %v5628_v51 = vpop.f32.mrb[139].mxu1  ;;  %v5189_v57 = vadd.f32 %v6842_v43, %v8527_v3  ;;  %v5181_v47 = vadd.f32 %v5180_v12, %v8521_v26  ;;  %v6843_v25 = vpop.f32.mrb[142].mxu0  ;;  %v5269_v9 = vadd.f32 %v5268_v5, %v5176_v2  ;;  %v5769_v26 = vmul.f32 %v6887_v42, %v6887_v42 }
 0x27a   : > { %v5797_v0 = vadd.f32 %v5796_v29, %v5766_v50  ;;  %v5728_v22 = vadd.f32 %v5727_v37, %v5628_v51  ;;  %v5767_v31 = vmul.f32 %v5628_v51, %v5628_v51  ;;  %5837 = vst [vmem:[%s8590_s25 + $0x48] sm:$0xff] %v5628_v51  ;;  %v5338_v16 = vadd.f32 %v5337_v34, %v5307_v45  ;;  %v5183_v14 = vpop.f32.mrb[143].mxu0 }
 0x27b   : > { %5381 = vst [vmem:[%s8579_s19 + $0x70] sm:$0xff] %v5189_v57  ;;  %v5192_v18 = vadd.f32 %v6843_v25, %v8529_v62  ;;  %v5309_v46 = vmul.f32 %v5181_v47, %v5181_v47  ;;  %5379 = vst [vmem:[%s8579_s19 + $0x60] sm:$0xff] %v5181_v47  ;;  %v5184_v38 = vadd.f32 %v5183_v14, %v8523_v11 }
 0x27c   : > { %v5729_v3 = vadd.f32 %v6886_v27, %v5728_v22  ;;  %v5798_v17 = vadd.f32 %v5797_v0, %v5767_v31  ;;  %v5270_v48 = vadd.f32 %v5269_v9, %v5181_v47  ;;  %v5339_v4 = vadd.f32 %v5338_v16, %v5308_v15 }
 0x27d   : > { %5382 = vst [vmem:[%s8579_s19 + $0x78] sm:$0xff] %v5192_v18  ;;  %v5310_v21 = vmul.f32 %v5184_v38, %v5184_v38  ;;  %5380 = vst [vmem:[%s8579_s19 + $0x68] sm:$0xff] %v5184_v38  ;;  %v5311_v20 = vmul.f32 %v5189_v57, %v5189_v57  ;;  %v5312_v27 = vmul.f32 %v5192_v18, %v5192_v18 }
 0x27e   : > { %v5799_v58 = vadd.f32 %v5798_v17, %v5768_v59  ;;  %v6890_v19 = vpop.f32.mrb[140].mxu1  ;;  %v5730_v2 = vadd.f32 %v6887_v42, %v5729_v3  ;;  %v5340_v62 = vadd.f32 %v5339_v4, %v5309_v46  ;;  %v5271_v63 = vadd.f32 %v5270_v48, %v5184_v38 }
 0x27f   : > { %5842 = vst [vmem:[%s8590_s25 + $0x70] sm:$0xff] %v6890_v19  ;;  %v5641_v39 = vpop.f32.mrb[141].mxu1  ;;  %v6846_v32 = vpop.f32.mrb[144].mxu0  ;;  %v5772_v43 = vmul.f32 %v6890_v19, %v6890_v19 }
 0x280   : > { %v5731_v36 = vadd.f32 %v5730_v2, %v5641_v39  ;;  %v5770_v40 = vmul.f32 %v5641_v39, %v5641_v39  ;;  %v5800_v11 = vadd.f32 %v5799_v58, %v5769_v26  ;;  %5840 = vst [vmem:[%s8590_s25 + $0x60] sm:$0xff] %v5641_v39  ;;  %v6891_v28 = vpop.f32.mrb[142].mxu1  ;;  %v5272_v30 = vadd.f32 %v5271_v63, %v5189_v57  ;;  %v5196_v55 = vpop.f32.mrb[145].mxu0 }
 0x281   : > { %5843 = vst [vmem:[%s8590_s25 + $0x78] sm:$0xff] %v6891_v28  ;;  %v5341_v56 = vadd.f32 %v5340_v62, %v5310_v21  ;;  %v5644_v10 = vpop.f32.mrb[143].mxu1  ;;  %v5205_v13 = vadd.f32 %v6846_v32, %v8539_v35  ;;  %v5197_v29 = vadd.f32 %v5196_v55, %v8533_v33  ;;  %v6847_v42 = vpop.f32.mrb[146].mxu0  ;;  %v5773_v33 = vmul.f32 %v6891_v28, %v6891_v28 }
 0x282   : > { %v5801_v45 = vadd.f32 %v5800_v11, %v5770_v40  ;;  %v5732_v37 = vadd.f32 %v5731_v36, %v5644_v10  ;;  %v5771_v50 = vmul.f32 %v5644_v10, %v5644_v10  ;;  %5841 = vst [vmem:[%s8590_s25 + $0x68] sm:$0xff] %v5644_v10  ;;  %v5273_v5 = vadd.f32 %v5272_v30, %v5192_v18  ;;  %v5199_v51 = vpop.f32.mrb[147].mxu0 }
 0x283   : > { %v5342_v15 = vadd.f32 %v5341_v56, %v5311_v20  ;;  %5385 = vst [vmem:[%s8579_s19 + $0x90] sm:$0xff] %v5205_v13  ;;  %v5208_v34 = vadd.f32 %v6847_v42, %v8541_v7  ;;  %v5313_v12 = vmul.f32 %v5197_v29, %v5197_v29  ;;  %5383 = vst [vmem:[%s8579_s19 + $0x80] sm:$0xff] %v5197_v29 }
 0x284   : > { %v5733_v35 = vadd.f32 %v6890_v19, %v5732_v37  ;;  %v5802_v57 = vadd.f32 %v5801_v45, %v5771_v50  ;;  %v5200_v0 = vadd.f32 %v5199_v51, %v8535_v8  ;;  %v5274_v22 = vadd.f32 %v5273_v5, %v5197_v29 }
 0x285   : > { %v5343_v31 = vadd.f32 %v5342_v15, %v5312_v27  ;;  %5386 = vst [vmem:[%s8579_s19 + $0x98] sm:$0xff] %v5208_v34  ;;  %v5315_v14 = vmul.f32 %v5205_v13, %v5205_v13  ;;  %v5316_v48 = vmul.f32 %v5208_v34, %v5208_v34 }
 0x286   : > { %v5803_v47 = vadd.f32 %v5802_v57, %v5772_v43  ;;  %v6894_v25 = vpop.f32.mrb[144].mxu1  ;;  %v5734_v59 = vadd.f32 %v6891_v28, %v5733_v35  ;;  %v5314_v16 = vmul.f32 %v5200_v0, %v5200_v0  ;;  %5384 = vst [vmem:[%s8579_s19 + $0x88] sm:$0xff] %v5200_v0  ;;  %v5275_v18 = vadd.f32 %v5274_v22, %v5200_v0 }
 0x287   : > { %5846 = vst [vmem:[%s8590_s25 + $0x90] sm:$0xff] %v6894_v25  ;;  %v5344_v7 = vadd.f32 %v5343_v31, %v5313_v12  ;;  %v5657_v9 = vpop.f32.mrb[145].mxu1  ;;  %v6850_v38 = vpop.f32.mrb[148].mxu0  ;;  %v5776_v36 = vmul.f32 %v6894_v25, %v6894_v25 }
 0x288   : > { %v5735_v3 = vadd.f32 %v5734_v59, %v5657_v9  ;;  %v5774_v17 = vmul.f32 %v5657_v9, %v5657_v9  ;;  %v5804_v8 = vadd.f32 %v5803_v47, %v5773_v33  ;;  %5844 = vst [vmem:[%s8590_s25 + $0x80] sm:$0xff] %v5657_v9  ;;  %v6895_v46 = vpop.f32.mrb[146].mxu1  ;;  %v5276_v4 = vadd.f32 %v5275_v18, %v5205_v13  ;;  %v5212_v2 = vpop.f32.mrb[149].mxu0 }
 0x289   : > { %5847 = vst [vmem:[%s8590_s25 + $0x98] sm:$0xff] %v6895_v46  ;;  %v5345_v26 = vadd.f32 %v5344_v7, %v5314_v16  ;;  %v5660_v58 = vpop.f32.mrb[147].mxu1  ;;  %v5221_v19 = vadd.f32 %v6850_v38, %v8551_v23  ;;  %v5213_v63 = vadd.f32 %v5212_v2, %v8545_v41  ;;  %v6851_v20 = vpop.f32.mrb[150].mxu0  ;;  %v5777_v41 = vmul.f32 %v6895_v46, %v6895_v46 }
 0x28a   : > { %v5805_v21 = vadd.f32 %v5804_v8, %v5774_v17  ;;  %v5736_v62 = vadd.f32 %v5735_v3, %v5660_v58  ;;  %v5775_v39 = vmul.f32 %v5660_v58, %v5660_v58  ;;  %5845 = vst [vmem:[%s8590_s25 + $0x88] sm:$0xff] %v5660_v58  ;;  %v5277_v11 = vadd.f32 %v5276_v4, %v5208_v34  ;;  %v5215_v32 = vpop.f32.mrb[151].mxu0 }
 0x28b   : > { %v5346_v40 = vadd.f32 %v5345_v26, %v5315_v14  ;;  %5389 = vst [vmem:[%s8579_s19 + $0xb0] sm:$0xff] %v5221_v19  ;;  %v5224_v28 = vadd.f32 %v6851_v20, %v8553_v24  ;;  %v5317_v30 = vmul.f32 %v5213_v63, %v5213_v63  ;;  %5387 = vst [vmem:[%s8579_s19 + $0xa0] sm:$0xff] %v5213_v63 }
 0x28c   : > { %v5737_v23 = vadd.f32 %v6894_v25, %v5736_v62  ;;  %v5806_v27 = vadd.f32 %v5805_v21, %v5775_v39  ;;  %v5216_v56 = vadd.f32 %v5215_v32, %v8547_v1  ;;  %v5278_v10 = vadd.f32 %v5277_v11, %v5213_v63 }
 0x28d   : > { %v5347_v13 = vadd.f32 %v5346_v40, %v5316_v48  ;;  %5390 = vst [vmem:[%s8579_s19 + $0xb8] sm:$0xff] %v5224_v28  ;;  %v5319_v43 = vmul.f32 %v5221_v19, %v5221_v19  ;;  %v5320_v35 = vmul.f32 %v5224_v28, %v5224_v28 }
 0x28e   : > { %v5807_v55 = vadd.f32 %v5806_v27, %v5776_v36  ;;  %v6898_v45 = vpop.f32.mrb[148].mxu1  ;;  %v5738_v37 = vadd.f32 %v6895_v46, %v5737_v23  ;;  %v5318_v50 = vmul.f32 %v5216_v56, %v5216_v56  ;;  %5388 = vst [vmem:[%s8579_s19 + $0xa8] sm:$0xff] %v5216_v56  ;;  %v5279_v42 = vadd.f32 %v5278_v10, %v5216_v56 }
 0x28f   : > { %5850 = vst [vmem:[%s8590_s25 + $0xb0] sm:$0xff] %v6898_v45  ;;  %v5348_v24 = vadd.f32 %v5347_v13, %v5317_v30  ;;  %v5673_v29 = vpop.f32.mrb[149].mxu1  ;;  %v6854_v51 = vpop.f32.mrb[152].mxu0  ;;  %v5780_v7 = vmul.f32 %v6898_v45, %v6898_v45 }
 0x290   : > { %v5739_v15 = vadd.f32 %v5738_v37, %v5673_v29  ;;  %v5778_v5 = vmul.f32 %v5673_v29, %v5673_v29  ;;  %v5808_v1 = vadd.f32 %v5807_v55, %v5777_v41  ;;  %5848 = vst [vmem:[%s8590_s25 + $0xa0] sm:$0xff] %v5673_v29  ;;  %v6899_v34 = vpop.f32.mrb[150].mxu1  ;;  %v5280_v57 = vadd.f32 %v5279_v42, %v5221_v19  ;;  %v5228_v31 = vpop.f32.mrb[153].mxu0 }
 0x291   : > { %5851 = vst [vmem:[%s8590_s25 + $0xb8] sm:$0xff] %v6899_v34  ;;  %v5349_v12 = vadd.f32 %v5348_v24, %v5318_v50  ;;  %v5676_v0 = vpop.f32.mrb[151].mxu1  ;;  %v5237_v22 = vadd.f32 %v6854_v51, %v8563_v52  ;;  %v5229_v59 = vadd.f32 %v5228_v31, %v8557_v44  ;;  %v6855_v16 = vpop.f32.mrb[154].mxu0  ;;  %v5781_v44 = vmul.f32 %v6899_v34, %v6899_v34 }
 0x292   : > { %v5809_v33 = vadd.f32 %v5808_v1, %v5778_v5  ;;  %v5740_v47 = vadd.f32 %v5739_v15, %v5676_v0  ;;  %v5779_v25 = vmul.f32 %v5676_v0, %v5676_v0  ;;  %5849 = vst [vmem:[%s8590_s25 + $0xa8] sm:$0xff] %v5676_v0  ;;  %v5281_v18 = vadd.f32 %v5280_v57, %v5224_v28  ;;  %v5231_v3 = vpop.f32.mrb[155].mxu0 }
 0x293   : > { %v5350_v9 = vadd.f32 %v5349_v12, %v5319_v43  ;;  %5393 = vst [vmem:[%s8579_s19 + $0xd0] sm:$0xff] %v5237_v22  ;;  %v5240_v14 = vadd.f32 %v6855_v16, %v8565_v54  ;;  %v5321_v8 = vmul.f32 %v5229_v59, %v5229_v59  ;;  %5391 = vst [vmem:[%s8579_s19 + $0xc0] sm:$0xff] %v5229_v59 }
 0x294   : > { %v5741_v52 = vadd.f32 %v6898_v45, %v5740_v47  ;;  %v5810_v17 = vadd.f32 %v5809_v33, %v5779_v25  ;;  %v5232_v46 = vadd.f32 %v5231_v3, %v8559_v61  ;;  %v5282_v38 = vadd.f32 %v5281_v18, %v5229_v59 }
 0x295   : > { %v5351_v48 = vadd.f32 %v5350_v9, %v5320_v35  ;;  %5394 = vst [vmem:[%s8579_s19 + $0xd8] sm:$0xff] %v5240_v14  ;;  %v5323_v62 = vmul.f32 %v5237_v22, %v5237_v22  ;;  %v5324_v40 = vmul.f32 %v5240_v14, %v5240_v14 }
 0x296   : > { %v5811_v4 = vadd.f32 %v5810_v17, %v5780_v7  ;;  %v6902_v26 = vpop.f32.mrb[152].mxu1  ;;  %v5742_v58 = vadd.f32 %v6899_v34, %v5741_v52  ;;  %v5322_v19 = vmul.f32 %v5232_v46, %v5232_v46  ;;  %5392 = vst [vmem:[%s8579_s19 + $0xc8] sm:$0xff] %v5232_v46  ;;  %v5283_v21 = vadd.f32 %v5282_v38, %v5232_v46 }
 0x297   : > { %5854 = vst [vmem:[%s8590_s25 + $0xd0] sm:$0xff] %v6902_v26  ;;  %v5352_v54 = vadd.f32 %v5351_v48, %v5321_v8  ;;  %v5689_v2 = vpop.f32.mrb[153].mxu1  ;;  %v6858_v36 = vpop.f32.mrb[156].mxu0  ;;  %v5784_v55 = vmul.f32 %v6902_v26, %v6902_v26 }
 0x298   : > { %v5743_v39 = vadd.f32 %v5742_v58, %v5689_v2  ;;  %v5782_v63 = vmul.f32 %v5689_v2, %v5689_v2  ;;  %v5812_v61 = vadd.f32 %v5811_v4, %v5781_v44  ;;  %5852 = vst [vmem:[%s8590_s25 + $0xc0] sm:$0xff] %v5689_v2  ;;  %v6903_v20 = vpop.f32.mrb[154].mxu1  ;;  %v5284_v11 = vadd.f32 %v5283_v21, %v5237_v22  ;;  %v5244_v27 = vpop.f32.mrb[157].mxu0 }
 0x299   : > { %5855 = vst [vmem:[%s8590_s25 + $0xd8] sm:$0xff] %v6903_v20  ;;  %v5353_v28 = vadd.f32 %v5352_v54, %v5322_v19  ;;  %v5692_v32 = vpop.f32.mrb[155].mxu1  ;;  %v5253_v23 = vadd.f32 %v6858_v36, %v8583_v60  ;;  %v5245_v13 = vadd.f32 %v5244_v27, %v8569_v53  ;;  %v6859_v41 = vpop.f32.mrb[158].mxu0  ;;  %v5785_v53 = vmul.f32 %v6903_v20, %v6903_v20 }
 0x29a   : > { %v5813_v30 = vadd.f32 %v5812_v61, %v5782_v63  ;;  %v5744_v56 = vadd.f32 %v5743_v39, %v5692_v32  ;;  %v5783_v10 = vmul.f32 %v5692_v32, %v5692_v32  ;;  %5853 = vst [vmem:[%s8590_s25 + $0xc8] sm:$0xff] %v5692_v32  ;;  %v5285_v37 = vadd.f32 %v5284_v11, %v5240_v14  ;;  %v5247_v24 = vpop.f32.mrb[159].mxu0 }
 0x29b   : > { %v5354_v45 = vadd.f32 %v5353_v28, %v5323_v62  ;;  %5397 = vst [vmem:[%s8579_s19 + $0xf0] sm:$0xff] %v5253_v23  ;;  %v5256_v50 = vadd.f32 %v6859_v41, %v8594_v49  ;;  %v5325_v42 = vmul.f32 %v5245_v13, %v5245_v13  ;;  %5395 = vst [vmem:[%s8579_s19 + $0xe0] sm:$0xff] %v5245_v13 }
 0x29c   : > { %v5745_v60 = vadd.f32 %v6902_v26, %v5744_v56  ;;  %v5814_v29 = vadd.f32 %v5813_v30, %v5783_v10  ;;  %v5248_v43 = vadd.f32 %v5247_v24, %v8572_v6  ;;  %v5286_v15 = vadd.f32 %v5285_v37, %v5245_v13 }
 0x29d   : > { %v5355_v5 = vadd.f32 %v5354_v45, %v5324_v40  ;;  %5398 = vst [vmem:[%s8579_s19 + $0xf8] sm:$0xff] %v5256_v50  ;;  %v5327_v33 = vmul.f32 %v5253_v23, %v5253_v23  ;;  %v5328_v18 = vmul.f32 %v5256_v50, %v5256_v50 }
 0x29e   : > { %v5815_v1 = vadd.f32 %v5814_v29, %v5784_v55  ;;  %v6906_v34 = vpop.f32.mrb[156].mxu1  ;;  %v5746_v51 = vadd.f32 %v6903_v20, %v5745_v60  ;;  %v5326_v35 = vmul.f32 %v5248_v43, %v5248_v43  ;;  %5396 = vst [vmem:[%s8579_s19 + $0xe8] sm:$0xff] %v5248_v43  ;;  %v5287_v12 = vadd.f32 %v5286_v15, %v5248_v43 }
 0x29f   : > { %5858 = vst [vmem:[%s8590_s25 + $0xf0] sm:$0xff] %v6906_v34  ;;  %v5356_v49 = vadd.f32 %v5355_v5, %v5325_v42  ;;  %v5705_v57 = vpop.f32.mrb[157].mxu1  ;;  %v5788_v52 = vmul.f32 %v6906_v34, %v6906_v34 }
 0x2a0   : > { %v5747_v0 = vadd.f32 %v5746_v51, %v5705_v57  ;;  %v5786_v22 = vmul.f32 %v5705_v57, %v5705_v57  ;;  %v5816_v31 = vadd.f32 %v5815_v1, %v5785_v53  ;;  %5856 = vst [vmem:[%s8590_s25 + $0xe0] sm:$0xff] %v5705_v57  ;;  %v6907_v6 = vpop.f32.mrb[158].mxu1  ;;  %v5288_v47 = vadd.f32 %v5287_v12, %v5253_v23 }
 0x2a1   : > { %5859 = vst [vmem:[%s8590_s25 + $0xf8] sm:$0xff] %v6907_v6  ;;  %v5357_v25 = vadd.f32 %v5356_v49, %v5326_v35  ;;  %v5708_v59 = vpop.f32.mrb[159].mxu1  ;;  %v5789_v48 = vmul.f32 %v6907_v6, %v6907_v6 }
 0x2a2   : > { %v5817_v16 = vadd.f32 %v5816_v31, %v5786_v22  ;;  %v5748_v7 = vadd.f32 %v5747_v0, %v5708_v59  ;;  %v5787_v9 = vmul.f32 %v5708_v59, %v5708_v59  ;;  %5857 = vst [vmem:[%s8590_s25 + $0xe8] sm:$0xff] %v5708_v59  ;;  %v5289_v14 = vadd.f32 %v5288_v47, %v5256_v50 }
 0x2a3   : > { %v5358_v3 = vadd.f32 %v5357_v25, %v5327_v33 }
 0x2a4   : > { %v5749_v17 = vadd.f32 %v6906_v34, %v5748_v7  ;;  %v5818_v8 = vadd.f32 %v5817_v16, %v5787_v9  ;;  %v5290_v46 = vrot.slane %v5289_v14, 4 }
 0x2a5   : > { %v5359_v38 = vadd.f32 %v5358_v3, %v5328_v18 }
 0x2a6   : > { %v5750_v44 = vadd.f32 %v6907_v6, %v5749_v17  ;;  %v5819_v4 = vadd.f32 %v5818_v8, %v5788_v52  ;;  %v5291_v26 = vadd.f32 %v5290_v46, %v5289_v14 }
 0x2a7   : > { %v5360_v58 = vrot.slane %v5359_v38, 4 }
 0x2a8   : > { %v5751_v19 = vrot.slane %v5750_v44, 4  ;;  %v5820_v54 = vadd.f32 %v5819_v4, %v5789_v48  ;;  %v5292_v2 = vrot.slane %v5291_v26, 2 }
 0x2a9   : > { %v5361_v21 = vadd.f32 %v5360_v58, %v5359_v38 }
 0x2aa   : > { %v5752_v62 = vadd.f32 %v5751_v19, %v5750_v44  ;;  %v5821_v39 = vrot.slane %v5820_v54, 4  ;;  %v5293_v63 = vadd.f32 %v5292_v2, %v5291_v26 }
 0x2ab   : > { %v5362_v61 = vrot.slane %v5361_v21, 2 }
 0x2ac   : > { %v5753_v20 = vrot.slane %v5752_v62, 2  ;;  %v5822_v36 = vadd.f32 %v5821_v39, %v5820_v54  ;;  %v5294_v40 = vrot.slane %v5293_v63, 1 }
 0x2ad   : > { %v5363_v11 = vadd.f32 %v5362_v61, %v5361_v21 }
 0x2ae   : > { %v5754_v28 = vadd.f32 %v5753_v20, %v5752_v62  ;;  %v5823_v32 = vrot.slane %v5822_v36, 2  ;;  %v5295_v23 = vadd.f32 %v5294_v40, %v5293_v63 }
 0x2af   : > { %v5364_v27 = vrot.slane %v5363_v11, 1 }
 0x2b0   : > { %v5755_v30 = vrot.slane %v5754_v28, 1  ;;  %v5824_v56 = vadd.f32 %v5823_v32, %v5822_v36  ;;  %5296 = vst [vmem:[%s275_s29] sm:$0x1] %v5295_v23 }
 0x2b1   : > { %v5365_v10 = vadd.f32 %v5364_v27, %v5363_v11 }
 0x2b2   : > { %v5756_v13 = vadd.f32 %v5755_v30, %v5754_v28  ;;  %v5825_v41 = vrot.slane %v5824_v56, 1 }
 0x2b3   : > { %5366 = vst [vmem:[%s275_s29 + $0x1] sm:$0x1] %v5365_v10 }
 0x2b4   : > { %5757 = vst [vmem:[%s284_s8] sm:$0x1] %v5756_v13  ;;  %v5826_v55 = vadd.f32 %v5825_v41, %v5824_v56 }
 0x2b6   : > { %5827 = vst [vmem:[%s284_s8 + $0x1] sm:$0x1] %v5826_v55 }
 0x2b7 PF: > { %s17_s21 = sadd.s32 1, %s7069_s21  }
 0x2b8   : > { %p14_p4 = scmp.ge.s32.totalorder %s17_s21, 4  }
 0x2ba   :  { %16 = sbr.rel (!%p14_p4) target bundleno = 1 (0x1), region = 101 }

</bundles_post_ra>
